<compile_context>
chip_gen: v7x
topology: tpu7x:2x2x1
jax: 0.10.0
libtpu: 0.0.40
codegen_flags: <defaults>
</compile_context>

<pallas_src>
import math
import functools

import numpy as np
import jax
import jax.numpy as jnp
from jax import lax
from jax.experimental import pallas as pl
from jax.experimental.pallas import tpu as pltpu


# ----------------------------------------------------------------------------
# Flat zero-padded layout geometry
# ----------------------------------------------------------------------------
def _flat_geom(H, W):
    Wp2 = W + 2                   # padded width
    P = (H + 2) * Wp2             # rows of the zero-padded image (row-major)
    M = Wp2 + 1                   # margin so every 3x3 tap is a contiguous slice
    return Wp2, P, M, P + 2 * M   # (Wp2, P, M, total slab length)


def _pool_select_matrix(H, W, last):
    """numpy (L_next, Q) one-hot matrix, Q = P - Wp2 - 1.

    The kernel first computes ym[r] = max(y[r], y[r+1], y[r+Wp2], y[r+Wp2+1]) with three
    VPU maxes over shifted views; this matrix then selects, for each pooled pixel, the
    row of ym holding its 2x2 max AND embeds it into the next layer's flat zero-padded
    slab (all-zero rows there provide the next conv's zero padding).
    """
    Wp2, P, _, _ = _flat_geom(H, W)
    Q = P - Wp2 - 1
    Hn, Wn = H // 2, W // 2
    if last:                      # last block: pooled spatial is 1x1 -> plain (1, C)
        L_next = 1

        def dst(hp, wp):
            return 0
    else:
        Wp2n, _, Mn, L_next = _flat_geom(Hn, Wn)

        def dst(hp, wp):
            return Mn + (hp + 1) * Wp2n + (wp + 1)

    S = np.zeros((L_next, Q), np.float32)
    for hp in range(Hn):
        for wp in range(Wn):
            src = (2 * hp + 1) * Wp2 + (2 * wp + 1)
            S[dst(hp, wp), src] = 1.0
    return S


# ----------------------------------------------------------------------------
# Fused whole-network kernel (B images per grid step)
# ----------------------------------------------------------------------------
def _vgg_kernel(x_ref,
                w1_ref, b1_ref, s1_ref,
                w2_ref, b2_ref, s2_ref,
                w3_ref, b3_ref, s3_ref,
                w4_ref, b4_ref, s4_ref,
                fw1_ref, fb1_ref, fw2_ref, fb2_ref, fw3_ref, fb3_ref,
                scale_ref, o_ref, *, spatial, block_n):
    H = W = spatial

    def pool_embed(y, Hc, Wc, s_ref):
        # y: (P, Cout) f32 conv+bias+ReLU output on this layer's padded grid.
        # 2x2/2 max-pool = 3 VPU maxes over shifted views, then ONE one-hot select
        # matmul that also embeds the pooled rows into the next layer's padded slab.
        Wp2, P, _, _ = _flat_geom(Hc, Wc)
        Q = P - Wp2 - 1
        ym = jnp.maximum(jnp.maximum(y[0:Q], y[1:1 + Q]),
                         jnp.maximum(y[Wp2:Wp2 + Q], y[Wp2 + 1:Wp2 + 1 + Q]))
        return jnp.dot(s_ref[...], ym.astype(jnp.bfloat16),
                       preferred_element_type=jnp.float32)       # (L_next, Cout) f32

    def conv_relu_pool(z, w_ref, b_ref, s_ref, Hc, Wc):
        # z: (L, Cin) f32 flat zero-padded slab; 3x3 conv = 9 shift-and-matmul taps.
        Wp2, P, M, _ = _flat_geom(Hc, Wc)
        zb = z.astype(jnp.bfloat16)          # bf16 cast hoisted out of the tap loop
        acc = None
        for kh in range(3):
            for kw in range(3):
                t = kh * 3 + kw
                start = M + (kh - 1) * Wp2 + (kw - 1)
                d = jnp.dot(zb[start:start + P, :], w_ref[t],
                            preferred_element_type=jnp.float32)
                acc = d if acc is None else acc + d              # (P, Cout) f32
        y = jnp.maximum(acc + b_ref[...], 0.0)                   # bias + ReLU, once
        return pool_embed(y, Hc, Wc, s_ref)

    rows = lax.broadcasted_iota(jnp.int32, (block_n, 1), 0)      # hoisted

    def per_image(i, feats):
        # Layer 1: single K=9*Cin im2col matmul (patch matrix prepared in the wrapper).
        y1 = jnp.maximum(
            jnp.dot(x_ref[i], w1_ref[...], preferred_element_type=jnp.float32)
            + b1_ref[...], 0.0)                                   # (P1, 64) f32
        z = pool_embed(y1, H, W, s1_ref)                          # (L2, 64) f32
        z = conv_relu_pool(z, w2_ref, b2_ref, s2_ref, H // 2, W // 2)
        z = conv_relu_pool(z, w3_ref, b3_ref, s3_ref, H // 4, W // 4)
        z = conv_relu_pool(z, w4_ref, b4_ref, s4_ref, H // 8, W // 8)   # (1, 512) f32
        return jnp.where(rows == i, z, feats)                    # write row i of feats

    feats = lax.fori_loop(0, block_n, per_image,
                          jnp.zeros((block_n, 512), jnp.float32))

    # out += out * hparam  <=>  out * (1 + hparam); scale is a runtime SMEM scalar.
    # FC head runs once per grid step on the whole (B, 512) feature tile.
    h = feats * scale_ref[0]
    h = jnp.maximum(jnp.dot(h.astype(jnp.bfloat16), fw1_ref[...],
                            preferred_element_type=jnp.float32) + fb1_ref[...], 0.0)
    h = jnp.maximum(jnp.dot(h.astype(jnp.bfloat16), fw2_ref[...],
                            preferred_element_type=jnp.float32) + fb2_ref[...], 0.0)
    o_ref[...] = (jnp.dot(h.astype(jnp.bfloat16), fw3_ref[...],
                          preferred_element_type=jnp.float32) + fb3_ref[...])


# ----------------------------------------------------------------------------
# Wrapper-side parameter / input preparation ("layout plumbing" only)
# ----------------------------------------------------------------------------
def _prep_inputs(params, num_classes, spatial):
    cpad = max(128, ((num_classes + 127) // 128) * 128)
    conv_in = []
    H = W = spatial
    n_layers = len(params["convs"])
    for i, (w, b) in enumerate(params["convs"]):
        cin, cout = w.shape[2], w.shape[3]
        if i == 0:
            cin_pad = max(8, cin)                       # pad layer-1 Cin 3 -> 8
            if cin_pad != cin:
                w = jnp.pad(w, ((0, 0), (0, 0), (0, cin_pad - cin), (0, 0)))
            wt = w.reshape(9 * cin_pad, cout).astype(jnp.bfloat16)   # im2col weight
        else:
            wt = w.reshape(9, cin, cout).astype(jnp.bfloat16)
        bt = b.reshape(1, cout).astype(jnp.float32)
        S = jnp.asarray(_pool_select_matrix(H, W, last=(i == n_layers - 1)),
                        jnp.bfloat16)
        conv_in += [wt, bt, S]
        H, W = H // 2, W // 2

    (w1, b1), (w2, b2), (w3, b3) = params["fc"]
    fc_in = [w1.astype(jnp.bfloat16), b1.reshape(1, -1).astype(jnp.float32),
             w2.astype(jnp.bfloat16), b2.reshape(1, -1).astype(jnp.float32),
             jnp.pad(w3, ((0, 0), (0, cpad - w3.shape[1]))).astype(jnp.bfloat16),
             jnp.pad(b3, (0, cpad - b3.shape[0])).reshape(1, -1).astype(jnp.float32)]
    return conv_in, fc_in, cpad


def _im2col_input(x_nchw, cin_pad):
    """NCHW -> (N, (H+2)*(W+2), 9*cin_pad) bf16 im2col patches over the 1-zero-padded
    grid (row-major).  One-time tiny XLA ops (layout plumbing, no compute hoisted)."""
    N, C, H, W = x_nchw.shape
    x = jnp.transpose(x_nchw, (0, 2, 3, 1)).astype(jnp.float32)
    x = jnp.pad(x, ((0, 0), (2, 2), (2, 2), (0, cin_pad - C)))    # (N, H+4, W+4, cp)
    taps = [x[:, kh:kh + H + 2, kw:kw + W + 2, :]
            for kh in range(3) for kw in range(3)]
    p = jnp.concatenate(taps, axis=-1)                            # (N, H+2, W+2, 9*cp)
    return p.reshape(N, (H + 2) * (W + 2), 9 * cin_pad).astype(jnp.bfloat16)


def _flops_per_image(spatial, cin_pad, couts, cpad):
    H = W = spatial
    cin = cin_pad
    flops = 0
    for i, cout in enumerate(couts):
        Wp2, P, _, _ = _flat_geom(H, W)
        Q = P - Wp2 - 1
        last = (i == len(couts) - 1)
        L_next = 1 if last else _flat_geom(H // 2, W // 2)[3]
        flops += 2 * P * 9 * cin * cout        # conv (same MACs for im2col / 9 taps)
        flops += 2 * L_next * Q * cout         # pool select/embed matmul
        cin = cout
        H, W = H // 2, W // 2
    nf = couts[-1]
    flops += 2 * (nf * nf + nf * nf + nf * cpad)   # FC head
    return int(flops)


# ----------------------------------------------------------------------------
# Forward pass (equivalent of VGG.forward)
# ----------------------------------------------------------------------------
def vgg_forward(params, x_nchw, hparam=None, block_n=8):
    N, C, H, W = x_nchw.shape
    assert H == W and H == 2 ** len(params["convs"]), "flatten must yield 1x1 spatial"
    assert params["convs"][-1][0].shape[3] == 512, "feature width must be 512"
    num_classes = params["fc"][-1][0].shape[1]

    conv_in, fc_in, cpad = _prep_inputs(params, num_classes, H)

    cin_pad = max(8, C)
    # B images per grid step.  Either B == N (single partial-batch step, full-dim
    # block) or B == block_n (multiple of 8 -> dense (8,128)-aligned output tiles).
    B = N if N < block_n else block_n
    assert B == N or B % 8 == 0
    n_steps = -(-N // B)
    N_pad = n_steps * B

    patches = _im2col_input(x_nchw, cin_pad)        # (N, P1, 9*cin_pad) bf16
    if N_pad != N:
        patches = jnp.pad(patches, ((0, N_pad - N), (0, 0), (0, 0)))
    P1, K1 = patches.shape[1], patches.shape[2]

    # TODO(synk): hparam supported as a (Python or traced) scalar only; tensor-shaped
    # hparam broadcasting is not implemented.
    if hparam is None:
        scale = jnp.ones((1,), jnp.float32)
    else:
        scale = (jnp.float32(1.0) + jnp.asarray(hparam, jnp.float32)).reshape(1)

    args = [patches] + conv_in + fc_in + [scale]

    def full_spec(a):
        nd = a.ndim
        return pl.BlockSpec(tuple(a.shape), lambda n, _nd=nd: (0,) * _nd)

    in_specs = [pl.BlockSpec((B, P1, K1), lambda n: (n, 0, 0))]
    in_specs += [full_spec(a) for a in conv_in + fc_in]
    in_specs += [pl.BlockSpec(memory_space=pltpu.MemorySpace.SMEM)]

    couts = [w.shape[3] for (w, _) in params["convs"]]
    flops = N_pad * _flops_per_image(H, cin_pad, couts, cpad)
    bytes_accessed = int(sum(int(np.prod(a.shape)) * a.dtype.itemsize for a in args)
                         + N_pad * cpad * 4)

    out = pl.pallas_call(
        functools.partial(_vgg_kernel, spatial=H, block_n=B),
        out_shape=jax.ShapeDtypeStruct((N_pad, cpad), jnp.float32),
        grid_spec=pltpu.PrefetchScalarGridSpec(
            num_scalar_prefetch=0,
            grid=(n_steps,),
            in_specs=in_specs,
            out_specs=pl.BlockSpec((B, cpad), lambda n: (n, 0)),
        ),
        compiler_params=pltpu.CompilerParams(
            dimension_semantics=("parallel",),
            vmem_limit_bytes=32 * 1024 * 1024,
        ),
        cost_estimate=pl.CostEstimate(flops=flops, transcendentals=0,
                                      bytes_accessed=bytes_accessed),
    )(*args)
    return out[:N, :num_classes]


# ----------------------------------------------------------------------------
# Parameter init (deterministic, mirroring the PyTorch module's __init__)
# ----------------------------------------------------------------------------
def init_vgg_params(key, cfg, num_classes, in_channels=3):
    params = {"convs": [], "fc": []}
    cin = in_channels
    for cout in cfg:
        key, k = jax.random.split(key)
        n = 3 * 3 * cout
        w = jax.random.normal(k, (3, 3, cin, cout), jnp.float32) * math.sqrt(2.0 / n)
        b = jnp.zeros((cout,), jnp.float32)
        params["convs"].append((w, b))
        cin = cout
    dims = [512, 512, 512, num_classes]
    for i in range(3):
        key, kw, kb = jax.random.split(key, 3)
        bound = 1.0 / math.sqrt(dims[i])
        w = jax.random.uniform(kw, (dims[i], dims[i + 1]), jnp.float32, -bound, bound)
        b = jax.random.uniform(kb, (dims[i + 1],), jnp.float32, -bound, bound)
        params["fc"].append((w, b))
    return params


# ----------------------------------------------------------------------------
# Pure-JAX reference (NCHW, mirrors the PyTorch forward) for correctness check
# ----------------------------------------------------------------------------
def ref_forward(params, x_nchw, hparam=None):
    x = x_nchw.astype(jnp.float32)
    for (w, b) in params["convs"]:
        x = lax.conv_general_dilated(
            x, w, window_strides=(1, 1), padding=((1, 1), (1, 1)),
            dimension_numbers=("NCHW", "HWIO", "NCHW"),
            precision=lax.Precision.HIGHEST)
        x = jnp.maximum(x + b.reshape(1, -1, 1, 1), 0.0)
        x = lax.reduce_window(x, -jnp.inf, lax.max,
                              (1, 1, 2, 2), (1, 1, 2, 2), "VALID")
    out = x.reshape(x.shape[0], -1)
    if hparam is not None:
        out = out + out * hparam
    for i, (w, b) in enumerate(params["fc"]):
        out = jnp.dot(out, w, precision=lax.Precision.HIGHEST) + b
        if i < 2:
            out = jnp.maximum(out, 0.0)
    return out


if __name__ == "__main__":
    key = jax.random.PRNGKey(0)
    key, kx, kx2, kp = jax.random.split(key, 4)

    num_classes = 10
    cfg = [64, 128, 256, 512]                    # 4 conv blocks: 16x16 -> 1x1, 512 feats
    params = init_vgg_params(kp, cfg, num_classes)

    # Small batch (B == N path, single grid step), hparam None and scalar paths.
    x = jax.random.normal(kx, (2, 3, 16, 16), jnp.float32)   # NCHW like PyTorch
    out = jax.block_until_ready(vgg_forward(params, x, hparam=None))
    ref = ref_forward(params, x, hparam=None)
    np.testing.assert_allclose(np.asarray(out), np.asarray(ref), rtol=5e-2, atol=5e-2)

    out_h = jax.block_until_ready(vgg_forward(params, x, hparam=0.5))
    ref_h = ref_forward(params, x, hparam=0.5)
    np.testing.assert_allclose(np.asarray(out_h), np.asarray(ref_h), rtol=5e-2, atol=5e-2)

    # Larger batch: B = 8 images per step, 2 grid steps, dense (8,128) output tiles.
    x2 = jax.random.normal(kx2, (16, 3, 16, 16), jnp.float32)
    out2 = jax.block_until_ready(vgg_forward(params, x2, hparam=None))
    ref2 = ref_forward(params, x2, hparam=None)
    np.testing.assert_allclose(np.asarray(out2), np.asarray(ref2), rtol=5e-2, atol=5e-2)

    print("KERNEL_OK")
</pallas_src>

<mosaic_0001>
module attributes {stable_mosaic.version = 11 : i64} {
  func.func @_vgg_kernel(%arg0: i32, %arg1: memref<2x324x72xbf16, #tpu.memory_space<vmem>>, %arg2: memref<72x64xbf16, #tpu.memory_space<vmem>>, %arg3: memref<1x64xf32, #tpu.memory_space<vmem>>, %arg4: memref<122x305xbf16, #tpu.memory_space<vmem>>, %arg5: memref<9x64x128xbf16, #tpu.memory_space<vmem>>, %arg6: memref<1x128xf32, #tpu.memory_space<vmem>>, %arg7: memref<50x89xbf16, #tpu.memory_space<vmem>>, %arg8: memref<9x128x256xbf16, #tpu.memory_space<vmem>>, %arg9: memref<1x256xf32, #tpu.memory_space<vmem>>, %arg10: memref<26x29xbf16, #tpu.memory_space<vmem>>, %arg11: memref<9x256x512xbf16, #tpu.memory_space<vmem>>, %arg12: memref<1x512xf32, #tpu.memory_space<vmem>>, %arg13: memref<1x11xbf16, #tpu.memory_space<vmem>>, %arg14: memref<512x512xbf16, #tpu.memory_space<vmem>>, %arg15: memref<1x512xf32, #tpu.memory_space<vmem>>, %arg16: memref<512x512xbf16, #tpu.memory_space<vmem>>, %arg17: memref<1x512xf32, #tpu.memory_space<vmem>>, %arg18: memref<512x128xbf16, #tpu.memory_space<vmem>>, %arg19: memref<1x128xf32, #tpu.memory_space<vmem>>, %arg20: memref<1xf32, #tpu.memory_space<smem>>, %arg21: memref<2x128xf32, #tpu.memory_space<vmem>>) attributes {dimension_semantics = [#tpu.dimension_semantics<parallel>], iteration_bounds = array<i64: 1>, scalar_prefetch = 0 : i64, scratch_operands = 0 : i64, tpu.core_type = #tpu.core_type<tc>, window_params = [{transform_indices = @transform_0, window_bounds = array<i64: 2, 324, 72>}, {pipeline_mode = #tpu.pipeline_mode<synchronous>, transform_indices = @transform_1, window_bounds = array<i64: 72, 64>}, {pipeline_mode = #tpu.pipeline_mode<synchronous>, transform_indices = @transform_2, window_bounds = array<i64: 1, 64>}, {pipeline_mode = #tpu.pipeline_mode<synchronous>, transform_indices = @transform_3, window_bounds = array<i64: 122, 305>}, {pipeline_mode = #tpu.pipeline_mode<synchronous>, transform_indices = @transform_4, window_bounds = array<i64: 9, 64, 128>}, {pipeline_mode = #tpu.pipeline_mode<synchronous>, transform_indices = @transform_5, window_bounds = array<i64: 1, 128>}, {pipeline_mode = #tpu.pipeline_mode<synchronous>, transform_indices = @transform_6, window_bounds = array<i64: 50, 89>}, {pipeline_mode = #tpu.pipeline_mode<synchronous>, transform_indices = @transform_7, window_bounds = array<i64: 9, 128, 256>}, {pipeline_mode = #tpu.pipeline_mode<synchronous>, transform_indices = @transform_8, window_bounds = array<i64: 1, 256>}, {pipeline_mode = #tpu.pipeline_mode<synchronous>, transform_indices = @transform_9, window_bounds = array<i64: 26, 29>}, {pipeline_mode = #tpu.pipeline_mode<synchronous>, transform_indices = @transform_10, window_bounds = array<i64: 9, 256, 512>}, {pipeline_mode = #tpu.pipeline_mode<synchronous>, transform_indices = @transform_11, window_bounds = array<i64: 1, 512>}, {pipeline_mode = #tpu.pipeline_mode<synchronous>, transform_indices = @transform_12, window_bounds = array<i64: 1, 11>}, {pipeline_mode = #tpu.pipeline_mode<synchronous>, transform_indices = @transform_13, window_bounds = array<i64: 512, 512>}, {pipeline_mode = #tpu.pipeline_mode<synchronous>, transform_indices = @transform_14, window_bounds = array<i64: 1, 512>}, {pipeline_mode = #tpu.pipeline_mode<synchronous>, transform_indices = @transform_15, window_bounds = array<i64: 512, 512>}, {pipeline_mode = #tpu.pipeline_mode<synchronous>, transform_indices = @transform_16, window_bounds = array<i64: 1, 512>}, {pipeline_mode = #tpu.pipeline_mode<synchronous>, transform_indices = @transform_17, window_bounds = array<i64: 512, 128>}, {pipeline_mode = #tpu.pipeline_mode<synchronous>, transform_indices = @transform_18, window_bounds = array<i64: 1, 128>}, {transform_indices = @transform_19, window_bounds = array<i64: 1>}, {transform_indices = @transform_20, window_bounds = array<i64: 2, 128>}]} {
    %0 = tpu.iota {dimensions = array<i32: 0>} : vector<2x1xi32>
    %cst = arith.constant 0.000000e+00 : f32
    %1 = vector.broadcast %cst : f32 to vector<2x512xf32>
    %c0_i32 = arith.constant 0 : i32
    %c2_i32 = arith.constant 2 : i32
    %2 = arith.addi %c0_i32, %c2_i32 : i32
    %c1_i32 = arith.constant 1 : i32
    %3 = scf.for %arg22 = %c0_i32 to %2 step %c1_i32 iter_args(%arg23 = %1) -> (vector<2x512xf32>)  : i32 {
      %30 = arith.index_cast %arg22 : i32 to index
      %c0_20 = arith.constant 0 : index
      %c0_21 = arith.constant 0 : index
      %31 = vector.load %arg1[%30, %c0_20, %c0_21] : memref<2x324x72xbf16, #tpu.memory_space<vmem>>, vector<1x324x72xbf16>
      %32 = vector.shape_cast %31 : vector<1x324x72xbf16> to vector<324x72xbf16>
      %c0_22 = arith.constant 0 : index
      %c0_23 = arith.constant 0 : index
      %33 = vector.load %arg2[%c0_22, %c0_23] : memref<72x64xbf16, #tpu.memory_space<vmem>>, vector<72x64xbf16>
      %cst_24 = arith.constant dense<0.000000e+00> : vector<324x64xf32>
      %34 = tpu.matmul %32, %33, %cst_24 {dimension_numbers = #tpu.dot_dimension_numbers<[1], [0], [0], [1], [0, 0, 1, 1], [], []>} : vector<324x72xbf16>, vector<72x64xbf16>, vector<324x64xf32> -> vector<324x64xf32>
      %c0_25 = arith.constant 0 : index
      %c0_26 = arith.constant 0 : index
      %35 = vector.load %arg3[%c0_25, %c0_26] : memref<1x64xf32, #tpu.memory_space<vmem>>, vector<1x64xf32>
      %36 = vector.broadcast %35 : vector<1x64xf32> to vector<324x64xf32>
      %37 = arith.addf %34, %36 : vector<324x64xf32>
      %cst_27 = arith.constant 0.000000e+00 : f32
      %38 = vector.broadcast %cst_27 : f32 to vector<324x64xf32>
      %39 = arith.maximumf %37, %38 : vector<324x64xf32>
      %40 = vector.extract_strided_slice %39 {offsets = [0, 0], sizes = [305, 64], strides = [1, 1]} : vector<324x64xf32> to vector<305x64xf32>
      %41 = vector.extract_strided_slice %39 {offsets = [1, 0], sizes = [305, 64], strides = [1, 1]} : vector<324x64xf32> to vector<305x64xf32>
      %42 = arith.maximumf %40, %41 : vector<305x64xf32>
      %43 = vector.extract_strided_slice %39 {offsets = [18, 0], sizes = [305, 64], strides = [1, 1]} : vector<324x64xf32> to vector<305x64xf32>
      %44 = vector.extract_strided_slice %39 {offsets = [19, 0], sizes = [305, 64], strides = [1, 1]} : vector<324x64xf32> to vector<305x64xf32>
      %45 = arith.maximumf %43, %44 : vector<305x64xf32>
      %46 = arith.maximumf %42, %45 : vector<305x64xf32>
      %c0_28 = arith.constant 0 : index
      %c0_29 = arith.constant 0 : index
      %47 = vector.load %arg4[%c0_28, %c0_29] : memref<122x305xbf16, #tpu.memory_space<vmem>>, vector<122x305xbf16>
      %48 = arith.truncf %46 : vector<305x64xf32> to vector<305x64xbf16>
      %cst_30 = arith.constant dense<0.000000e+00> : vector<122x64xf32>
      %49 = tpu.matmul %47, %48, %cst_30 {dimension_numbers = #tpu.dot_dimension_numbers<[1], [0], [0], [1], [0, 0, 1, 1], [], []>} : vector<122x305xbf16>, vector<305x64xbf16>, vector<122x64xf32> -> vector<122x64xf32>
      %50 = arith.truncf %49 : vector<122x64xf32> to vector<122x64xbf16>
      %51 = vector.extract_strided_slice %50 {offsets = [0, 0], sizes = [100, 64], strides = [1, 1]} : vector<122x64xbf16> to vector<100x64xbf16>
      %c0_31 = arith.constant 0 : index
      %c0_32 = arith.constant 0 : index
      %c0_33 = arith.constant 0 : index
      %52 = vector.load %arg5[%c0_31, %c0_32, %c0_33] : memref<9x64x128xbf16, #tpu.memory_space<vmem>>, vector<1x64x128xbf16>
      %53 = vector.shape_cast %52 : vector<1x64x128xbf16> to vector<64x128xbf16>
      %cst_34 = arith.constant dense<0.000000e+00> : vector<100x128xf32>
      %54 = tpu.matmul %51, %53, %cst_34 {dimension_numbers = #tpu.dot_dimension_numbers<[1], [0], [0], [1], [0, 0, 1, 1], [], []>} : vector<100x64xbf16>, vector<64x128xbf16>, vector<100x128xf32> -> vector<100x128xf32>
      %55 = vector.extract_strided_slice %50 {offsets = [1, 0], sizes = [100, 64], strides = [1, 1]} : vector<122x64xbf16> to vector<100x64xbf16>
      %c1 = arith.constant 1 : index
      %c0_35 = arith.constant 0 : index
      %c0_36 = arith.constant 0 : index
      %56 = vector.load %arg5[%c1, %c0_35, %c0_36] : memref<9x64x128xbf16, #tpu.memory_space<vmem>>, vector<1x64x128xbf16>
      %57 = vector.shape_cast %56 : vector<1x64x128xbf16> to vector<64x128xbf16>
      %cst_37 = arith.constant dense<0.000000e+00> : vector<100x128xf32>
      %58 = tpu.matmul %55, %57, %cst_37 {dimension_numbers = #tpu.dot_dimension_numbers<[1], [0], [0], [1], [0, 0, 1, 1], [], []>} : vector<100x64xbf16>, vector<64x128xbf16>, vector<100x128xf32> -> vector<100x128xf32>
      %59 = arith.addf %54, %58 : vector<100x128xf32>
      %60 = vector.extract_strided_slice %50 {offsets = [2, 0], sizes = [100, 64], strides = [1, 1]} : vector<122x64xbf16> to vector<100x64xbf16>
      %c2 = arith.constant 2 : index
      %c0_38 = arith.constant 0 : index
      %c0_39 = arith.constant 0 : index
      %61 = vector.load %arg5[%c2, %c0_38, %c0_39] : memref<9x64x128xbf16, #tpu.memory_space<vmem>>, vector<1x64x128xbf16>
      %62 = vector.shape_cast %61 : vector<1x64x128xbf16> to vector<64x128xbf16>
      %cst_40 = arith.constant dense<0.000000e+00> : vector<100x128xf32>
      %63 = tpu.matmul %60, %62, %cst_40 {dimension_numbers = #tpu.dot_dimension_numbers<[1], [0], [0], [1], [0, 0, 1, 1], [], []>} : vector<100x64xbf16>, vector<64x128xbf16>, vector<100x128xf32> -> vector<100x128xf32>
      %64 = arith.addf %59, %63 : vector<100x128xf32>
      %65 = vector.extract_strided_slice %50 {offsets = [10, 0], sizes = [100, 64], strides = [1, 1]} : vector<122x64xbf16> to vector<100x64xbf16>
      %c3 = arith.constant 3 : index
      %c0_41 = arith.constant 0 : index
      %c0_42 = arith.constant 0 : index
      %66 = vector.load %arg5[%c3, %c0_41, %c0_42] : memref<9x64x128xbf16, #tpu.memory_space<vmem>>, vector<1x64x128xbf16>
      %67 = vector.shape_cast %66 : vector<1x64x128xbf16> to vector<64x128xbf16>
      %cst_43 = arith.constant dense<0.000000e+00> : vector<100x128xf32>
      %68 = tpu.matmul %65, %67, %cst_43 {dimension_numbers = #tpu.dot_dimension_numbers<[1], [0], [0], [1], [0, 0, 1, 1], [], []>} : vector<100x64xbf16>, vector<64x128xbf16>, vector<100x128xf32> -> vector<100x128xf32>
      %69 = arith.addf %64, %68 : vector<100x128xf32>
      %70 = vector.extract_strided_slice %50 {offsets = [11, 0], sizes = [100, 64], strides = [1, 1]} : vector<122x64xbf16> to vector<100x64xbf16>
      %c4 = arith.constant 4 : index
      %c0_44 = arith.constant 0 : index
      %c0_45 = arith.constant 0 : index
      %71 = vector.load %arg5[%c4, %c0_44, %c0_45] : memref<9x64x128xbf16, #tpu.memory_space<vmem>>, vector<1x64x128xbf16>
      %72 = vector.shape_cast %71 : vector<1x64x128xbf16> to vector<64x128xbf16>
      %cst_46 = arith.constant dense<0.000000e+00> : vector<100x128xf32>
      %73 = tpu.matmul %70, %72, %cst_46 {dimension_numbers = #tpu.dot_dimension_numbers<[1], [0], [0], [1], [0, 0, 1, 1], [], []>} : vector<100x64xbf16>, vector<64x128xbf16>, vector<100x128xf32> -> vector<100x128xf32>
      %74 = arith.addf %69, %73 : vector<100x128xf32>
      %75 = vector.extract_strided_slice %50 {offsets = [12, 0], sizes = [100, 64], strides = [1, 1]} : vector<122x64xbf16> to vector<100x64xbf16>
      %c5 = arith.constant 5 : index
      %c0_47 = arith.constant 0 : index
      %c0_48 = arith.constant 0 : index
      %76 = vector.load %arg5[%c5, %c0_47, %c0_48] : memref<9x64x128xbf16, #tpu.memory_space<vmem>>, vector<1x64x128xbf16>
      %77 = vector.shape_cast %76 : vector<1x64x128xbf16> to vector<64x128xbf16>
      %cst_49 = arith.constant dense<0.000000e+00> : vector<100x128xf32>
      %78 = tpu.matmul %75, %77, %cst_49 {dimension_numbers = #tpu.dot_dimension_numbers<[1], [0], [0], [1], [0, 0, 1, 1], [], []>} : vector<100x64xbf16>, vector<64x128xbf16>, vector<100x128xf32> -> vector<100x128xf32>
      %79 = arith.addf %74, %78 : vector<100x128xf32>
      %80 = vector.extract_strided_slice %50 {offsets = [20, 0], sizes = [100, 64], strides = [1, 1]} : vector<122x64xbf16> to vector<100x64xbf16>
      %c6 = arith.constant 6 : index
      %c0_50 = arith.constant 0 : index
      %c0_51 = arith.constant 0 : index
      %81 = vector.load %arg5[%c6, %c0_50, %c0_51] : memref<9x64x128xbf16, #tpu.memory_space<vmem>>, vector<1x64x128xbf16>
      %82 = vector.shape_cast %81 : vector<1x64x128xbf16> to vector<64x128xbf16>
      %cst_52 = arith.constant dense<0.000000e+00> : vector<100x128xf32>
      %83 = tpu.matmul %80, %82, %cst_52 {dimension_numbers = #tpu.dot_dimension_numbers<[1], [0], [0], [1], [0, 0, 1, 1], [], []>} : vector<100x64xbf16>, vector<64x128xbf16>, vector<100x128xf32> -> vector<100x128xf32>
      %84 = arith.addf %79, %83 : vector<100x128xf32>
      %85 = vector.extract_strided_slice %50 {offsets = [21, 0], sizes = [100, 64], strides = [1, 1]} : vector<122x64xbf16> to vector<100x64xbf16>
      %c7 = arith.constant 7 : index
      %c0_53 = arith.constant 0 : index
      %c0_54 = arith.constant 0 : index
      %86 = vector.load %arg5[%c7, %c0_53, %c0_54] : memref<9x64x128xbf16, #tpu.memory_space<vmem>>, vector<1x64x128xbf16>
      %87 = vector.shape_cast %86 : vector<1x64x128xbf16> to vector<64x128xbf16>
      %cst_55 = arith.constant dense<0.000000e+00> : vector<100x128xf32>
      %88 = tpu.matmul %85, %87, %cst_55 {dimension_numbers = #tpu.dot_dimension_numbers<[1], [0], [0], [1], [0, 0, 1, 1], [], []>} : vector<100x64xbf16>, vector<64x128xbf16>, vector<100x128xf32> -> vector<100x128xf32>
      %89 = arith.addf %84, %88 : vector<100x128xf32>
      %90 = vector.extract_strided_slice %50 {offsets = [22, 0], sizes = [100, 64], strides = [1, 1]} : vector<122x64xbf16> to vector<100x64xbf16>
      %c8 = arith.constant 8 : index
      %c0_56 = arith.constant 0 : index
      %c0_57 = arith.constant 0 : index
      %91 = vector.load %arg5[%c8, %c0_56, %c0_57] : memref<9x64x128xbf16, #tpu.memory_space<vmem>>, vector<1x64x128xbf16>
      %92 = vector.shape_cast %91 : vector<1x64x128xbf16> to vector<64x128xbf16>
      %cst_58 = arith.constant dense<0.000000e+00> : vector<100x128xf32>
      %93 = tpu.matmul %90, %92, %cst_58 {dimension_numbers = #tpu.dot_dimension_numbers<[1], [0], [0], [1], [0, 0, 1, 1], [], []>} : vector<100x64xbf16>, vector<64x128xbf16>, vector<100x128xf32> -> vector<100x128xf32>
      %94 = arith.addf %89, %93 : vector<100x128xf32>
      %c0_59 = arith.constant 0 : index
      %c0_60 = arith.constant 0 : index
      %95 = vector.load %arg6[%c0_59, %c0_60] : memref<1x128xf32, #tpu.memory_space<vmem>>, vector<1x128xf32>
      %96 = vector.broadcast %95 : vector<1x128xf32> to vector<100x128xf32>
      %97 = arith.addf %94, %96 : vector<100x128xf32>
      %cst_61 = arith.constant 0.000000e+00 : f32
      %98 = vector.broadcast %cst_61 : f32 to vector<100x128xf32>
      %99 = arith.maximumf %97, %98 : vector<100x128xf32>
      %100 = vector.extract_strided_slice %99 {offsets = [0, 0], sizes = [89, 128], strides = [1, 1]} : vector<100x128xf32> to vector<89x128xf32>
      %101 = vector.extract_strided_slice %99 {offsets = [1, 0], sizes = [89, 128], strides = [1, 1]} : vector<100x128xf32> to vector<89x128xf32>
      %102 = arith.maximumf %100, %101 : vector<89x128xf32>
      %103 = vector.extract_strided_slice %99 {offsets = [10, 0], sizes = [89, 128], strides = [1, 1]} : vector<100x128xf32> to vector<89x128xf32>
      %104 = vector.extract_strided_slice %99 {offsets = [11, 0], sizes = [89, 128], strides = [1, 1]} : vector<100x128xf32> to vector<89x128xf32>
      %105 = arith.maximumf %103, %104 : vector<89x128xf32>
      %106 = arith.maximumf %102, %105 : vector<89x128xf32>
      %c0_62 = arith.constant 0 : index
      %c0_63 = arith.constant 0 : index
      %107 = vector.load %arg7[%c0_62, %c0_63] : memref<50x89xbf16, #tpu.memory_space<vmem>>, vector<50x89xbf16>
      %108 = arith.truncf %106 : vector<89x128xf32> to vector<89x128xbf16>
      %cst_64 = arith.constant dense<0.000000e+00> : vector<50x128xf32>
      %109 = tpu.matmul %107, %108, %cst_64 {dimension_numbers = #tpu.dot_dimension_numbers<[1], [0], [0], [1], [0, 0, 1, 1], [], []>} : vector<50x89xbf16>, vector<89x128xbf16>, vector<50x128xf32> -> vector<50x128xf32>
      %110 = arith.truncf %109 : vector<50x128xf32> to vector<50x128xbf16>
      %111 = vector.extract_strided_slice %110 {offsets = [0, 0], sizes = [36, 128], strides = [1, 1]} : vector<50x128xbf16> to vector<36x128xbf16>
      %c0_65 = arith.constant 0 : index
      %c0_66 = arith.constant 0 : index
      %c0_67 = arith.constant 0 : index
      %112 = vector.load %arg8[%c0_65, %c0_66, %c0_67] : memref<9x128x256xbf16, #tpu.memory_space<vmem>>, vector<1x128x256xbf16>
      %113 = vector.shape_cast %112 : vector<1x128x256xbf16> to vector<128x256xbf16>
      %cst_68 = arith.constant dense<0.000000e+00> : vector<36x256xf32>
      %114 = tpu.matmul %111, %113, %cst_68 {dimension_numbers = #tpu.dot_dimension_numbers<[1], [0], [0], [1], [0, 0, 1, 1], [], []>} : vector<36x128xbf16>, vector<128x256xbf16>, vector<36x256xf32> -> vector<36x256xf32>
      %115 = vector.extract_strided_slice %110 {offsets = [1, 0], sizes = [36, 128], strides = [1, 1]} : vector<50x128xbf16> to vector<36x128xbf16>
      %c1_69 = arith.constant 1 : index
      %c0_70 = arith.constant 0 : index
      %c0_71 = arith.constant 0 : index
      %116 = vector.load %arg8[%c1_69, %c0_70, %c0_71] : memref<9x128x256xbf16, #tpu.memory_space<vmem>>, vector<1x128x256xbf16>
      %117 = vector.shape_cast %116 : vector<1x128x256xbf16> to vector<128x256xbf16>
      %cst_72 = arith.constant dense<0.000000e+00> : vector<36x256xf32>
      %118 = tpu.matmul %115, %117, %cst_72 {dimension_numbers = #tpu.dot_dimension_numbers<[1], [0], [0], [1], [0, 0, 1, 1], [], []>} : vector<36x128xbf16>, vector<128x256xbf16>, vector<36x256xf32> -> vector<36x256xf32>
      %119 = arith.addf %114, %118 : vector<36x256xf32>
      %120 = vector.extract_strided_slice %110 {offsets = [2, 0], sizes = [36, 128], strides = [1, 1]} : vector<50x128xbf16> to vector<36x128xbf16>
      %c2_73 = arith.constant 2 : index
      %c0_74 = arith.constant 0 : index
      %c0_75 = arith.constant 0 : index
      %121 = vector.load %arg8[%c2_73, %c0_74, %c0_75] : memref<9x128x256xbf16, #tpu.memory_space<vmem>>, vector<1x128x256xbf16>
      %122 = vector.shape_cast %121 : vector<1x128x256xbf16> to vector<128x256xbf16>
      %cst_76 = arith.constant dense<0.000000e+00> : vector<36x256xf32>
      %123 = tpu.matmul %120, %122, %cst_76 {dimension_numbers = #tpu.dot_dimension_numbers<[1], [0], [0], [1], [0, 0, 1, 1], [], []>} : vector<36x128xbf16>, vector<128x256xbf16>, vector<36x256xf32> -> vector<36x256xf32>
      %124 = arith.addf %119, %123 : vector<36x256xf32>
      %125 = vector.extract_strided_slice %110 {offsets = [6, 0], sizes = [36, 128], strides = [1, 1]} : vector<50x128xbf16> to vector<36x128xbf16>
      %c3_77 = arith.constant 3 : index
      %c0_78 = arith.constant 0 : index
      %c0_79 = arith.constant 0 : index
      %126 = vector.load %arg8[%c3_77, %c0_78, %c0_79] : memref<9x128x256xbf16, #tpu.memory_space<vmem>>, vector<1x128x256xbf16>
      %127 = vector.shape_cast %126 : vector<1x128x256xbf16> to vector<128x256xbf16>
      %cst_80 = arith.constant dense<0.000000e+00> : vector<36x256xf32>
      %128 = tpu.matmul %125, %127, %cst_80 {dimension_numbers = #tpu.dot_dimension_numbers<[1], [0], [0], [1], [0, 0, 1, 1], [], []>} : vector<36x128xbf16>, vector<128x256xbf16>, vector<36x256xf32> -> vector<36x256xf32>
      %129 = arith.addf %124, %128 : vector<36x256xf32>
      %130 = vector.extract_strided_slice %110 {offsets = [7, 0], sizes = [36, 128], strides = [1, 1]} : vector<50x128xbf16> to vector<36x128xbf16>
      %c4_81 = arith.constant 4 : index
      %c0_82 = arith.constant 0 : index
      %c0_83 = arith.constant 0 : index
      %131 = vector.load %arg8[%c4_81, %c0_82, %c0_83] : memref<9x128x256xbf16, #tpu.memory_space<vmem>>, vector<1x128x256xbf16>
      %132 = vector.shape_cast %131 : vector<1x128x256xbf16> to vector<128x256xbf16>
      %cst_84 = arith.constant dense<0.000000e+00> : vector<36x256xf32>
      %133 = tpu.matmul %130, %132, %cst_84 {dimension_numbers = #tpu.dot_dimension_numbers<[1], [0], [0], [1], [0, 0, 1, 1], [], []>} : vector<36x128xbf16>, vector<128x256xbf16>, vector<36x256xf32> -> vector<36x256xf32>
      %134 = arith.addf %129, %133 : vector<36x256xf32>
      %135 = vector.extract_strided_slice %110 {offsets = [8, 0], sizes = [36, 128], strides = [1, 1]} : vector<50x128xbf16> to vector<36x128xbf16>
      %c5_85 = arith.constant 5 : index
      %c0_86 = arith.constant 0 : index
      %c0_87 = arith.constant 0 : index
      %136 = vector.load %arg8[%c5_85, %c0_86, %c0_87] : memref<9x128x256xbf16, #tpu.memory_space<vmem>>, vector<1x128x256xbf16>
      %137 = vector.shape_cast %136 : vector<1x128x256xbf16> to vector<128x256xbf16>
      %cst_88 = arith.constant dense<0.000000e+00> : vector<36x256xf32>
      %138 = tpu.matmul %135, %137, %cst_88 {dimension_numbers = #tpu.dot_dimension_numbers<[1], [0], [0], [1], [0, 0, 1, 1], [], []>} : vector<36x128xbf16>, vector<128x256xbf16>, vector<36x256xf32> -> vector<36x256xf32>
      %139 = arith.addf %134, %138 : vector<36x256xf32>
      %140 = vector.extract_strided_slice %110 {offsets = [12, 0], sizes = [36, 128], strides = [1, 1]} : vector<50x128xbf16> to vector<36x128xbf16>
      %c6_89 = arith.constant 6 : index
      %c0_90 = arith.constant 0 : index
      %c0_91 = arith.constant 0 : index
      %141 = vector.load %arg8[%c6_89, %c0_90, %c0_91] : memref<9x128x256xbf16, #tpu.memory_space<vmem>>, vector<1x128x256xbf16>
      %142 = vector.shape_cast %141 : vector<1x128x256xbf16> to vector<128x256xbf16>
      %cst_92 = arith.constant dense<0.000000e+00> : vector<36x256xf32>
      %143 = tpu.matmul %140, %142, %cst_92 {dimension_numbers = #tpu.dot_dimension_numbers<[1], [0], [0], [1], [0, 0, 1, 1], [], []>} : vector<36x128xbf16>, vector<128x256xbf16>, vector<36x256xf32> -> vector<36x256xf32>
      %144 = arith.addf %139, %143 : vector<36x256xf32>
      %145 = vector.extract_strided_slice %110 {offsets = [13, 0], sizes = [36, 128], strides = [1, 1]} : vector<50x128xbf16> to vector<36x128xbf16>
      %c7_93 = arith.constant 7 : index
      %c0_94 = arith.constant 0 : index
      %c0_95 = arith.constant 0 : index
      %146 = vector.load %arg8[%c7_93, %c0_94, %c0_95] : memref<9x128x256xbf16, #tpu.memory_space<vmem>>, vector<1x128x256xbf16>
      %147 = vector.shape_cast %146 : vector<1x128x256xbf16> to vector<128x256xbf16>
      %cst_96 = arith.constant dense<0.000000e+00> : vector<36x256xf32>
      %148 = tpu.matmul %145, %147, %cst_96 {dimension_numbers = #tpu.dot_dimension_numbers<[1], [0], [0], [1], [0, 0, 1, 1], [], []>} : vector<36x128xbf16>, vector<128x256xbf16>, vector<36x256xf32> -> vector<36x256xf32>
      %149 = arith.addf %144, %148 : vector<36x256xf32>
      %150 = vector.extract_strided_slice %110 {offsets = [14, 0], sizes = [36, 128], strides = [1, 1]} : vector<50x128xbf16> to vector<36x128xbf16>
      %c8_97 = arith.constant 8 : index
      %c0_98 = arith.constant 0 : index
      %c0_99 = arith.constant 0 : index
      %151 = vector.load %arg8[%c8_97, %c0_98, %c0_99] : memref<9x128x256xbf16, #tpu.memory_space<vmem>>, vector<1x128x256xbf16>
      %152 = vector.shape_cast %151 : vector<1x128x256xbf16> to vector<128x256xbf16>
      %cst_100 = arith.constant dense<0.000000e+00> : vector<36x256xf32>
      %153 = tpu.matmul %150, %152, %cst_100 {dimension_numbers = #tpu.dot_dimension_numbers<[1], [0], [0], [1], [0, 0, 1, 1], [], []>} : vector<36x128xbf16>, vector<128x256xbf16>, vector<36x256xf32> -> vector<36x256xf32>
      %154 = arith.addf %149, %153 : vector<36x256xf32>
      %c0_101 = arith.constant 0 : index
      %c0_102 = arith.constant 0 : index
      %155 = vector.load %arg9[%c0_101, %c0_102] : memref<1x256xf32, #tpu.memory_space<vmem>>, vector<1x256xf32>
      %156 = vector.broadcast %155 : vector<1x256xf32> to vector<36x256xf32>
      %157 = arith.addf %154, %156 : vector<36x256xf32>
      %cst_103 = arith.constant 0.000000e+00 : f32
      %158 = vector.broadcast %cst_103 : f32 to vector<36x256xf32>
      %159 = arith.maximumf %157, %158 : vector<36x256xf32>
      %160 = vector.extract_strided_slice %159 {offsets = [0, 0], sizes = [29, 256], strides = [1, 1]} : vector<36x256xf32> to vector<29x256xf32>
      %161 = vector.extract_strided_slice %159 {offsets = [1, 0], sizes = [29, 256], strides = [1, 1]} : vector<36x256xf32> to vector<29x256xf32>
      %162 = arith.maximumf %160, %161 : vector<29x256xf32>
      %163 = vector.extract_strided_slice %159 {offsets = [6, 0], sizes = [29, 256], strides = [1, 1]} : vector<36x256xf32> to vector<29x256xf32>
      %164 = vector.extract_strided_slice %159 {offsets = [7, 0], sizes = [29, 256], strides = [1, 1]} : vector<36x256xf32> to vector<29x256xf32>
      %165 = arith.maximumf %163, %164 : vector<29x256xf32>
      %166 = arith.maximumf %162, %165 : vector<29x256xf32>
      %c0_104 = arith.constant 0 : index
      %c0_105 = arith.constant 0 : index
      %167 = vector.load %arg10[%c0_104, %c0_105] : memref<26x29xbf16, #tpu.memory_space<vmem>>, vector<26x29xbf16>
      %168 = arith.truncf %166 : vector<29x256xf32> to vector<29x256xbf16>
      %cst_106 = arith.constant dense<0.000000e+00> : vector<26x256xf32>
      %169 = tpu.matmul %167, %168, %cst_106 {dimension_numbers = #tpu.dot_dimension_numbers<[1], [0], [0], [1], [0, 0, 1, 1], [], []>} : vector<26x29xbf16>, vector<29x256xbf16>, vector<26x256xf32> -> vector<26x256xf32>
      %170 = arith.truncf %169 : vector<26x256xf32> to vector<26x256xbf16>
      %171 = vector.extract_strided_slice %170 {offsets = [0, 0], sizes = [16, 256], strides = [1, 1]} : vector<26x256xbf16> to vector<16x256xbf16>
      %c0_107 = arith.constant 0 : index
      %c0_108 = arith.constant 0 : index
      %c0_109 = arith.constant 0 : index
      %172 = vector.load %arg11[%c0_107, %c0_108, %c0_109] : memref<9x256x512xbf16, #tpu.memory_space<vmem>>, vector<1x256x512xbf16>
      %173 = vector.shape_cast %172 : vector<1x256x512xbf16> to vector<256x512xbf16>
      %cst_110 = arith.constant dense<0.000000e+00> : vector<16x512xf32>
      %174 = tpu.matmul %171, %173, %cst_110 {dimension_numbers = #tpu.dot_dimension_numbers<[1], [0], [0], [1], [0, 0, 1, 1], [], []>} : vector<16x256xbf16>, vector<256x512xbf16>, vector<16x512xf32> -> vector<16x512xf32>
      %175 = vector.extract_strided_slice %170 {offsets = [1, 0], sizes = [16, 256], strides = [1, 1]} : vector<26x256xbf16> to vector<16x256xbf16>
      %c1_111 = arith.constant 1 : index
      %c0_112 = arith.constant 0 : index
      %c0_113 = arith.constant 0 : index
      %176 = vector.load %arg11[%c1_111, %c0_112, %c0_113] : memref<9x256x512xbf16, #tpu.memory_space<vmem>>, vector<1x256x512xbf16>
      %177 = vector.shape_cast %176 : vector<1x256x512xbf16> to vector<256x512xbf16>
      %cst_114 = arith.constant dense<0.000000e+00> : vector<16x512xf32>
      %178 = tpu.matmul %175, %177, %cst_114 {dimension_numbers = #tpu.dot_dimension_numbers<[1], [0], [0], [1], [0, 0, 1, 1], [], []>} : vector<16x256xbf16>, vector<256x512xbf16>, vector<16x512xf32> -> vector<16x512xf32>
      %179 = arith.addf %174, %178 : vector<16x512xf32>
      %180 = vector.extract_strided_slice %170 {offsets = [2, 0], sizes = [16, 256], strides = [1, 1]} : vector<26x256xbf16> to vector<16x256xbf16>
      %c2_115 = arith.constant 2 : index
      %c0_116 = arith.constant 0 : index
      %c0_117 = arith.constant 0 : index
      %181 = vector.load %arg11[%c2_115, %c0_116, %c0_117] : memref<9x256x512xbf16, #tpu.memory_space<vmem>>, vector<1x256x512xbf16>
      %182 = vector.shape_cast %181 : vector<1x256x512xbf16> to vector<256x512xbf16>
      %cst_118 = arith.constant dense<0.000000e+00> : vector<16x512xf32>
      %183 = tpu.matmul %180, %182, %cst_118 {dimension_numbers = #tpu.dot_dimension_numbers<[1], [0], [0], [1], [0, 0, 1, 1], [], []>} : vector<16x256xbf16>, vector<256x512xbf16>, vector<16x512xf32> -> vector<16x512xf32>
      %184 = arith.addf %179, %183 : vector<16x512xf32>
      %185 = vector.extract_strided_slice %170 {offsets = [4, 0], sizes = [16, 256], strides = [1, 1]} : vector<26x256xbf16> to vector<16x256xbf16>
      %c3_119 = arith.constant 3 : index
      %c0_120 = arith.constant 0 : index
      %c0_121 = arith.constant 0 : index
      %186 = vector.load %arg11[%c3_119, %c0_120, %c0_121] : memref<9x256x512xbf16, #tpu.memory_space<vmem>>, vector<1x256x512xbf16>
      %187 = vector.shape_cast %186 : vector<1x256x512xbf16> to vector<256x512xbf16>
      %cst_122 = arith.constant dense<0.000000e+00> : vector<16x512xf32>
      %188 = tpu.matmul %185, %187, %cst_122 {dimension_numbers = #tpu.dot_dimension_numbers<[1], [0], [0], [1], [0, 0, 1, 1], [], []>} : vector<16x256xbf16>, vector<256x512xbf16>, vector<16x512xf32> -> vector<16x512xf32>
      %189 = arith.addf %184, %188 : vector<16x512xf32>
      %190 = vector.extract_strided_slice %170 {offsets = [5, 0], sizes = [16, 256], strides = [1, 1]} : vector<26x256xbf16> to vector<16x256xbf16>
      %c4_123 = arith.constant 4 : index
      %c0_124 = arith.constant 0 : index
      %c0_125 = arith.constant 0 : index
      %191 = vector.load %arg11[%c4_123, %c0_124, %c0_125] : memref<9x256x512xbf16, #tpu.memory_space<vmem>>, vector<1x256x512xbf16>
      %192 = vector.shape_cast %191 : vector<1x256x512xbf16> to vector<256x512xbf16>
      %cst_126 = arith.constant dense<0.000000e+00> : vector<16x512xf32>
      %193 = tpu.matmul %190, %192, %cst_126 {dimension_numbers = #tpu.dot_dimension_numbers<[1], [0], [0], [1], [0, 0, 1, 1], [], []>} : vector<16x256xbf16>, vector<256x512xbf16>, vector<16x512xf32> -> vector<16x512xf32>
      %194 = arith.addf %189, %193 : vector<16x512xf32>
      %195 = vector.extract_strided_slice %170 {offsets = [6, 0], sizes = [16, 256], strides = [1, 1]} : vector<26x256xbf16> to vector<16x256xbf16>
      %c5_127 = arith.constant 5 : index
      %c0_128 = arith.constant 0 : index
      %c0_129 = arith.constant 0 : index
      %196 = vector.load %arg11[%c5_127, %c0_128, %c0_129] : memref<9x256x512xbf16, #tpu.memory_space<vmem>>, vector<1x256x512xbf16>
      %197 = vector.shape_cast %196 : vector<1x256x512xbf16> to vector<256x512xbf16>
      %cst_130 = arith.constant dense<0.000000e+00> : vector<16x512xf32>
      %198 = tpu.matmul %195, %197, %cst_130 {dimension_numbers = #tpu.dot_dimension_numbers<[1], [0], [0], [1], [0, 0, 1, 1], [], []>} : vector<16x256xbf16>, vector<256x512xbf16>, vector<16x512xf32> -> vector<16x512xf32>
      %199 = arith.addf %194, %198 : vector<16x512xf32>
      %200 = vector.extract_strided_slice %170 {offsets = [8, 0], sizes = [16, 256], strides = [1, 1]} : vector<26x256xbf16> to vector<16x256xbf16>
      %c6_131 = arith.constant 6 : index
      %c0_132 = arith.constant 0 : index
      %c0_133 = arith.constant 0 : index
      %201 = vector.load %arg11[%c6_131, %c0_132, %c0_133] : memref<9x256x512xbf16, #tpu.memory_space<vmem>>, vector<1x256x512xbf16>
      %202 = vector.shape_cast %201 : vector<1x256x512xbf16> to vector<256x512xbf16>
      %cst_134 = arith.constant dense<0.000000e+00> : vector<16x512xf32>
      %203 = tpu.matmul %200, %202, %cst_134 {dimension_numbers = #tpu.dot_dimension_numbers<[1], [0], [0], [1], [0, 0, 1, 1], [], []>} : vector<16x256xbf16>, vector<256x512xbf16>, vector<16x512xf32> -> vector<16x512xf32>
      %204 = arith.addf %199, %203 : vector<16x512xf32>
      %205 = vector.extract_strided_slice %170 {offsets = [9, 0], sizes = [16, 256], strides = [1, 1]} : vector<26x256xbf16> to vector<16x256xbf16>
      %c7_135 = arith.constant 7 : index
      %c0_136 = arith.constant 0 : index
      %c0_137 = arith.constant 0 : index
      %206 = vector.load %arg11[%c7_135, %c0_136, %c0_137] : memref<9x256x512xbf16, #tpu.memory_space<vmem>>, vector<1x256x512xbf16>
      %207 = vector.shape_cast %206 : vector<1x256x512xbf16> to vector<256x512xbf16>
      %cst_138 = arith.constant dense<0.000000e+00> : vector<16x512xf32>
      %208 = tpu.matmul %205, %207, %cst_138 {dimension_numbers = #tpu.dot_dimension_numbers<[1], [0], [0], [1], [0, 0, 1, 1], [], []>} : vector<16x256xbf16>, vector<256x512xbf16>, vector<16x512xf32> -> vector<16x512xf32>
      %209 = arith.addf %204, %208 : vector<16x512xf32>
      %210 = vector.extract_strided_slice %170 {offsets = [10, 0], sizes = [16, 256], strides = [1, 1]} : vector<26x256xbf16> to vector<16x256xbf16>
      %c8_139 = arith.constant 8 : index
      %c0_140 = arith.constant 0 : index
      %c0_141 = arith.constant 0 : index
      %211 = vector.load %arg11[%c8_139, %c0_140, %c0_141] : memref<9x256x512xbf16, #tpu.memory_space<vmem>>, vector<1x256x512xbf16>
      %212 = vector.shape_cast %211 : vector<1x256x512xbf16> to vector<256x512xbf16>
      %cst_142 = arith.constant dense<0.000000e+00> : vector<16x512xf32>
      %213 = tpu.matmul %210, %212, %cst_142 {dimension_numbers = #tpu.dot_dimension_numbers<[1], [0], [0], [1], [0, 0, 1, 1], [], []>} : vector<16x256xbf16>, vector<256x512xbf16>, vector<16x512xf32> -> vector<16x512xf32>
      %214 = arith.addf %209, %213 : vector<16x512xf32>
      %c0_143 = arith.constant 0 : index
      %c0_144 = arith.constant 0 : index
      %215 = vector.load %arg12[%c0_143, %c0_144] : memref<1x512xf32, #tpu.memory_space<vmem>>, vector<1x512xf32>
      %216 = vector.broadcast %215 : vector<1x512xf32> to vector<16x512xf32>
      %217 = arith.addf %214, %216 : vector<16x512xf32>
      %cst_145 = arith.constant 0.000000e+00 : f32
      %218 = vector.broadcast %cst_145 : f32 to vector<16x512xf32>
      %219 = arith.maximumf %217, %218 : vector<16x512xf32>
      %220 = vector.extract_strided_slice %219 {offsets = [0, 0], sizes = [11, 512], strides = [1, 1]} : vector<16x512xf32> to vector<11x512xf32>
      %221 = vector.extract_strided_slice %219 {offsets = [1, 0], sizes = [11, 512], strides = [1, 1]} : vector<16x512xf32> to vector<11x512xf32>
      %222 = arith.maximumf %220, %221 : vector<11x512xf32>
      %223 = vector.extract_strided_slice %219 {offsets = [4, 0], sizes = [11, 512], strides = [1, 1]} : vector<16x512xf32> to vector<11x512xf32>
      %224 = vector.extract_strided_slice %219 {offsets = [5, 0], sizes = [11, 512], strides = [1, 1]} : vector<16x512xf32> to vector<11x512xf32>
      %225 = arith.maximumf %223, %224 : vector<11x512xf32>
      %226 = arith.maximumf %222, %225 : vector<11x512xf32>
      %c0_146 = arith.constant 0 : index
      %c0_147 = arith.constant 0 : index
      %227 = vector.load %arg13[%c0_146, %c0_147] : memref<1x11xbf16, #tpu.memory_space<vmem>>, vector<1x11xbf16>
      %228 = arith.truncf %226 : vector<11x512xf32> to vector<11x512xbf16>
      %cst_148 = arith.constant dense<0.000000e+00> : vector<1x512xf32>
      %229 = tpu.matmul %227, %228, %cst_148 {dimension_numbers = #tpu.dot_dimension_numbers<[1], [0], [0], [1], [0, 0, 1, 1], [], []>} : vector<1x11xbf16>, vector<11x512xbf16>, vector<1x512xf32> -> vector<1x512xf32>
      %230 = vector.broadcast %arg22 : i32 to vector<2x1xi32>
      %231 = arith.cmpi eq, %0, %230 : vector<2x1xi32>
      %232 = vector.shape_cast %231 : vector<2x1xi1> to vector<2x1xi1>
      %233 = vector.broadcast %232 : vector<2x1xi1> to vector<2x512xi1>
      %234 = vector.shape_cast %229 : vector<1x512xf32> to vector<1x512xf32>
      %235 = vector.broadcast %234 : vector<1x512xf32> to vector<2x512xf32>
      %236 = arith.select %233, %235, %arg23 : vector<2x512xi1>, vector<2x512xf32>
      scf.yield %236 : vector<2x512xf32>
    }
    %c2_i32_0 = arith.constant 2 : i32
    %c0 = arith.constant 0 : index
    %4 = memref.load %arg20[%c0] : memref<1xf32, #tpu.memory_space<smem>>
    %5 = vector.broadcast %4 : f32 to vector<2x512xf32>
    %6 = arith.mulf %3, %5 : vector<2x512xf32>
    %7 = arith.truncf %6 : vector<2x512xf32> to vector<2x512xbf16>
    %c0_1 = arith.constant 0 : index
    %c0_2 = arith.constant 0 : index
    %8 = vector.load %arg14[%c0_1, %c0_2] : memref<512x512xbf16, #tpu.memory_space<vmem>>, vector<512x512xbf16>
    %cst_3 = arith.constant dense<0.000000e+00> : vector<2x512xf32>
    %9 = tpu.matmul %7, %8, %cst_3 {dimension_numbers = #tpu.dot_dimension_numbers<[1], [0], [0], [1], [0, 0, 1, 1], [], []>} : vector<2x512xbf16>, vector<512x512xbf16>, vector<2x512xf32> -> vector<2x512xf32>
    %c0_4 = arith.constant 0 : index
    %c0_5 = arith.constant 0 : index
    %10 = vector.load %arg15[%c0_4, %c0_5] : memref<1x512xf32, #tpu.memory_space<vmem>>, vector<1x512xf32>
    %11 = vector.broadcast %10 : vector<1x512xf32> to vector<2x512xf32>
    %12 = arith.addf %9, %11 : vector<2x512xf32>
    %cst_6 = arith.constant 0.000000e+00 : f32
    %13 = vector.broadcast %cst_6 : f32 to vector<2x512xf32>
    %14 = arith.maximumf %12, %13 : vector<2x512xf32>
    %15 = arith.truncf %14 : vector<2x512xf32> to vector<2x512xbf16>
    %c0_7 = arith.constant 0 : index
    %c0_8 = arith.constant 0 : index
    %16 = vector.load %arg16[%c0_7, %c0_8] : memref<512x512xbf16, #tpu.memory_space<vmem>>, vector<512x512xbf16>
    %cst_9 = arith.constant dense<0.000000e+00> : vector<2x512xf32>
    %17 = tpu.matmul %15, %16, %cst_9 {dimension_numbers = #tpu.dot_dimension_numbers<[1], [0], [0], [1], [0, 0, 1, 1], [], []>} : vector<2x512xbf16>, vector<512x512xbf16>, vector<2x512xf32> -> vector<2x512xf32>
    %c0_10 = arith.constant 0 : index
    %c0_11 = arith.constant 0 : index
    %18 = vector.load %arg17[%c0_10, %c0_11] : memref<1x512xf32, #tpu.memory_space<vmem>>, vector<1x512xf32>
    %19 = vector.broadcast %18 : vector<1x512xf32> to vector<2x512xf32>
    %20 = arith.addf %17, %19 : vector<2x512xf32>
    %cst_12 = arith.constant 0.000000e+00 : f32
    %21 = vector.broadcast %cst_12 : f32 to vector<2x512xf32>
    %22 = arith.maximumf %20, %21 : vector<2x512xf32>
    %23 = arith.truncf %22 : vector<2x512xf32> to vector<2x512xbf16>
    %c0_13 = arith.constant 0 : index
    %c0_14 = arith.constant 0 : index
    %24 = vector.load %arg18[%c0_13, %c0_14] : memref<512x128xbf16, #tpu.memory_space<vmem>>, vector<512x128xbf16>
    %cst_15 = arith.constant dense<0.000000e+00> : vector<2x128xf32>
    %25 = tpu.matmul %23, %24, %cst_15 {dimension_numbers = #tpu.dot_dimension_numbers<[1], [0], [0], [1], [0, 0, 1, 1], [], []>} : vector<2x512xbf16>, vector<512x128xbf16>, vector<2x128xf32> -> vector<2x128xf32>
    %c0_16 = arith.constant 0 : index
    %c0_17 = arith.constant 0 : index
    %26 = vector.load %arg19[%c0_16, %c0_17] : memref<1x128xf32, #tpu.memory_space<vmem>>, vector<1x128xf32>
    %27 = vector.broadcast %26 : vector<1x128xf32> to vector<2x128xf32>
    %28 = arith.addf %25, %27 : vector<2x128xf32>
    %c0_18 = arith.constant 0 : index
    %c0_19 = arith.constant 0 : index
    %29 = vector.load %arg21[%c0_18, %c0_19] : memref<2x128xf32, #tpu.memory_space<vmem>>, vector<2x128xf32>
    tpu.vector_store %arg21[%c0_18, %c0_19], %28 {strides = array<i32>} : memref<2x128xf32, #tpu.memory_space<vmem>>, vector<2x128xf32>,
    return
  }
  func.func @transform_0(%arg0: i32) -> (i32, i32, i32) {
    %c0_i32 = arith.constant 0 : i32
    %c0_i32_0 = arith.constant 0 : i32
    %c0_i32_1 = arith.constant 0 : i32
    return %arg0, %c0_i32, %c0_i32_0 : i32, i32, i32
  }
  func.func @transform_1(%arg0: i32) -> (i32, i32) {
    %c0_i32 = arith.constant 0 : i32
    %c0_i32_0 = arith.constant 0 : i32
    %c0_i32_1 = arith.constant 0 : i32
    return %c0_i32, %c0_i32_0 : i32, i32
  }
  func.func @transform_2(%arg0: i32) -> (i32, i32) {
    %c0_i32 = arith.constant 0 : i32
    %c0_i32_0 = arith.constant 0 : i32
    %c0_i32_1 = arith.constant 0 : i32
    return %c0_i32, %c0_i32_0 : i32, i32
  }
  func.func @transform_3(%arg0: i32) -> (i32, i32) {
    %c0_i32 = arith.constant 0 : i32
    %c0_i32_0 = arith.constant 0 : i32
    %c0_i32_1 = arith.constant 0 : i32
    return %c0_i32, %c0_i32_0 : i32, i32
  }
  func.func @transform_4(%arg0: i32) -> (i32, i32, i32) {
    %c0_i32 = arith.constant 0 : i32
    %c0_i32_0 = arith.constant 0 : i32
    %c0_i32_1 = arith.constant 0 : i32
    %c0_i32_2 = arith.constant 0 : i32
    return %c0_i32, %c0_i32_0, %c0_i32_1 : i32, i32, i32
  }
  func.func @transform_5(%arg0: i32) -> (i32, i32) {
    %c0_i32 = arith.constant 0 : i32
    %c0_i32_0 = arith.constant 0 : i32
    %c0_i32_1 = arith.constant 0 : i32
    return %c0_i32, %c0_i32_0 : i32, i32
  }
  func.func @transform_6(%arg0: i32) -> (i32, i32) {
    %c0_i32 = arith.constant 0 : i32
    %c0_i32_0 = arith.constant 0 : i32
    %c0_i32_1 = arith.constant 0 : i32
    return %c0_i32, %c0_i32_0 : i32, i32
  }
  func.func @transform_7(%arg0: i32) -> (i32, i32, i32) {
    %c0_i32 = arith.constant 0 : i32
    %c0_i32_0 = arith.constant 0 : i32
    %c0_i32_1 = arith.constant 0 : i32
    %c0_i32_2 = arith.constant 0 : i32
    return %c0_i32, %c0_i32_0, %c0_i32_1 : i32, i32, i32
  }
  func.func @transform_8(%arg0: i32) -> (i32, i32) {
    %c0_i32 = arith.constant 0 : i32
    %c0_i32_0 = arith.constant 0 : i32
    %c0_i32_1 = arith.constant 0 : i32
    return %c0_i32, %c0_i32_0 : i32, i32
  }
  func.func @transform_9(%arg0: i32) -> (i32, i32) {
    %c0_i32 = arith.constant 0 : i32
    %c0_i32_0 = arith.constant 0 : i32
    %c0_i32_1 = arith.constant 0 : i32
    return %c0_i32, %c0_i32_0 : i32, i32
  }
  func.func @transform_10(%arg0: i32) -> (i32, i32, i32) {
    %c0_i32 = arith.constant 0 : i32
    %c0_i32_0 = arith.constant 0 : i32
    %c0_i32_1 = arith.constant 0 : i32
    %c0_i32_2 = arith.constant 0 : i32
    return %c0_i32, %c0_i32_0, %c0_i32_1 : i32, i32, i32
  }
  func.func @transform_11(%arg0: i32) -> (i32, i32) {
    %c0_i32 = arith.constant 0 : i32
    %c0_i32_0 = arith.constant 0 : i32
    %c0_i32_1 = arith.constant 0 : i32
    return %c0_i32, %c0_i32_0 : i32, i32
  }
  func.func @transform_12(%arg0: i32) -> (i32, i32) {
    %c0_i32 = arith.constant 0 : i32
    %c0_i32_0 = arith.constant 0 : i32
    %c0_i32_1 = arith.constant 0 : i32
    return %c0_i32, %c0_i32_0 : i32, i32
  }
  func.func @transform_13(%arg0: i32) -> (i32, i32) {
    %c0_i32 = arith.constant 0 : i32
    %c0_i32_0 = arith.constant 0 : i32
    %c0_i32_1 = arith.constant 0 : i32
    return %c0_i32, %c0_i32_0 : i32, i32
  }
  func.func @transform_14(%arg0: i32) -> (i32, i32) {
    %c0_i32 = arith.constant 0 : i32
    %c0_i32_0 = arith.constant 0 : i32
    %c0_i32_1 = arith.constant 0 : i32
    return %c0_i32, %c0_i32_0 : i32, i32
  }
  func.func @transform_15(%arg0: i32) -> (i32, i32) {
    %c0_i32 = arith.constant 0 : i32
    %c0_i32_0 = arith.constant 0 : i32
    %c0_i32_1 = arith.constant 0 : i32
    return %c0_i32, %c0_i32_0 : i32, i32
  }
  func.func @transform_16(%arg0: i32) -> (i32, i32) {
    %c0_i32 = arith.constant 0 : i32
    %c0_i32_0 = arith.constant 0 : i32
    %c0_i32_1 = arith.constant 0 : i32
    return %c0_i32, %c0_i32_0 : i32, i32
  }
  func.func @transform_17(%arg0: i32) -> (i32, i32) {
    %c0_i32 = arith.constant 0 : i32
    %c0_i32_0 = arith.constant 0 : i32
    %c0_i32_1 = arith.constant 0 : i32
    return %c0_i32, %c0_i32_0 : i32, i32
  }
  func.func @transform_18(%arg0: i32) -> (i32, i32) {
    %c0_i32 = arith.constant 0 : i32
    %c0_i32_0 = arith.constant 0 : i32
    %c0_i32_1 = arith.constant 0 : i32
    return %c0_i32, %c0_i32_0 : i32, i32
  }
  func.func @transform_19(%arg0: i32) -> i32 {
    %c0_i32 = arith.constant 0 : i32
    %c0_i32_0 = arith.constant 0 : i32
    return %c0_i32 : i32
  }
  func.func @transform_20(%arg0: i32) -> (i32, i32) {
    %c0_i32 = arith.constant 0 : i32
    %c0_i32_0 = arith.constant 0 : i32
    return %arg0, %c0_i32 : i32, i32
  }
}

</mosaic_0001>

<bundles_post_ra>
// kernel: tpu_custom_call.1
= control target key start
LH: loop header
LB: loop body
LE: loop exit
PB: predicated region body
PF: predicated region fallthrough
CT: control target
= control target key end

     0   :  { %s18391_s0 = inlined_call_operand.vmem [shape: bf16[2,324,72], index: 0, kind: input, shape index: {}]   ;;  %s18392_s1 = inlined_call_operand.vmem [shape: bf16[72,64], index: 1, kind: input, shape index: {}]   ;;  %s18393_s2 = inlined_call_operand.hbm [shape: f32[1,64], index: 2, kind: input, shape index: {}]   ;;  %s18394_s3 = inlined_call_operand.vmem [shape: bf16[122,305], index: 3, kind: input, shape index: {}]   ;;  %s18395_s4 = inlined_call_operand.hbm [shape: bf16[9,64,128], index: 4, kind: input, shape index: {}]   ;;  %s18396_s5 = inlined_call_operand.hbm [shape: f32[1,128], index: 5, kind: input, shape index: {}]   ;;  %s18397_s6 = inlined_call_operand.hbm [shape: bf16[50,89], index: 6, kind: input, shape index: {}]   ;;  %s18398_s7 = inlined_call_operand.hbm [shape: bf16[9,128,256], index: 7, kind: input, shape index: {}]   ;;  %s18399_s8 = inlined_call_operand.hbm [shape: f32[1,256], index: 8, kind: input, shape index: {}]   ;;  %s18400_s9 = inlined_call_operand.hbm [shape: bf16[26,29], index: 9, kind: input, shape index: {}]   ;;  %s18401_s10 = inlined_call_operand.hbm [shape: bf16[9,256,512], index: 10, kind: input, shape index: {}]   ;;  %s18402_s11 = inlined_call_operand.hbm [shape: f32[1,512], index: 11, kind: input, shape index: {}]   ;;  %s18403_s12 = inlined_call_operand.hbm [shape: bf16[1,11], index: 12, kind: input, shape index: {}]   ;;  %s18404_s13 = inlined_call_operand.hbm [shape: bf16[512,512], index: 13, kind: input, shape index: {}]   ;;  %s18405_s14 = inlined_call_operand.hbm [shape: f32[1,512], index: 14, kind: input, shape index: {}]   ;;  %s18406_s15 = inlined_call_operand.hbm [shape: bf16[512,512], index: 15, kind: input, shape index: {}]   ;;  %s18407_s16 = inlined_call_operand.hbm [shape: f32[1,512], index: 16, kind: input, shape index: {}]   ;;  %s18408_s17 = inlined_call_operand.hbm [shape: bf16[512,128], index: 17, kind: input, shape index: {}]   ;;  %s18409_s18 = inlined_call_operand.hbm [shape: f32[1,128], index: 18, kind: input, shape index: {}]   ;;  %s18410_s19 = inlined_call_operand.<no memory space> [shape: f32[1], index: 19, kind: input, shape index: {}]   ;;  %s18411_s20 = inlined_call_operand.hbm [shape: f32[2,128], index: 20, kind: output, shape index: {}]  }
   0x1   :  { %18424 = sst [smem:[#allocation41_spill]] %s18391_s0 }
   0x2   :  { %18425 = sst [smem:[#allocation42_spill]] %s18392_s1 }
   0x3   :  { %18426 = sst [smem:[#allocation43_spill]] %s18393_s2 }
   0x4   :  { %18427 = sst [smem:[#allocation44_spill]] %s18394_s3 }
   0x5   :  { %18428 = sst [smem:[#allocation45_spill]] %s18395_s4 }
   0x6   :  { %18429 = sst [smem:[#allocation46_spill]] %s18411_s20 }
   0x7   :  { %25 = sst [smem:[#allocation2]] %s18410_s19 }
   0x8   :  { %26 = vsyncpa [#allocation4], 0 }
   0x9   :  { %27 = vsyncpa [#allocation7], 0 }
   0xa   :  { %28 = vsyncpa [#allocation10], 0 }
   0xb   :  { %29 = vsyncpa [#allocation13], 0 }
   0xc   :  { %30 = vsyncpa [#allocation16], 0 }
   0xd   :  { %31 = vsyncpa [#allocation19], 0 }
   0xe   :  { %32 = vsyncpa [#allocation22], 0 }
   0xf   :  { %33 = vsyncpa [#allocation25], 0 }
  0x10   :  { %34 = vsyncpa [#allocation28], 0 }
  0x11   :  { %35 = vsyncpa [#allocation5], 0  ;;  %s16371_s23 = smov [#allocation6]   ;;  %s18430_s3 = sld [smem:[#allocation45_spill]] }
  0x12   :  { %s57_s24 = sshll.u32 %s16371_s23, 4  ;;  %s58_s24 = int_to_ptr.vmem [resolvable:$true] %s57_s24 }
  0x17   :  { %s15937_s26 = scalar_lea.hbm %s18430_s3, 4608 }
  0x18   :  { %p15938_p0 = scmp.ne.s32.totalorder %s18430_s3, %s15937_s26  ;;  %p15941_p1 = scmp.lt.u32.totalorder %s15937_s26, %s18430_s3 }
  0x1a   :  { %p15943_p2 = pnand %p15941_p1, %p15938_p0 }
  0x1c   :  { %15946 = shalt.err (!%p15943_p2)
}
  0x1d   :  { %s15947_s29 = scalar_lea.vmem %s58_s24, 4608  ;;  %p15952_p4 = scmp.lt.s32.totalorder %s58_s24, %s58_s24 }
  0x1e   :  { %p15948_p3 = scmp.ne.s32.totalorder %s58_s24, %s15947_s29  ;;  %p15953_p5 = scmp.lt.s32.totalorder %s15947_s29, %s15947_s29 }
  0x20   :  { %p15954_p6 = por %p15953_p5, %p15952_p4 }
  0x22   :  { %p15955_p7 = pnand %p15954_p6, %p15948_p3 }
  0x24   :  { %15958 = shalt.err (!%p15955_p7)
}
  0x25   :  { %s16372_s30 = smov 64   ;;  %s16373_s0 = smov 4  }
  0x26   :  { %63 = dma.hbm_to_vmem [thread:$0]  %s18430_s3, 4608, %s58_s24, [#allocation7], %s16372_s30, %s16372_s30, %s16373_s0  }
  0x27   :  { %s16374_s22 = smov [#allocation9]   ;;  %s16375_s2 = smov [#allocation12]  }
  0x28   :  { %s79_s23 = sshll.u32 %s16374_s22, 4  ;;  %s104_s25 = sshll.u32 %s16375_s2, 4  ;;  %s80_s23 = int_to_ptr.vmem [resolvable:$true] %s79_s23  ;;  %s105_s25 = int_to_ptr.vmem [resolvable:$true] %s104_s25 }
  0x29   :  { %s15959_s28 = scalar_lea.hbm %s18397_s6, 448 }
  0x2a   :  { %p15960_p8 = scmp.ne.s32.totalorder %s18397_s6, %s15959_s28  ;;  %p15963_p9 = scmp.lt.u32.totalorder %s15959_s28, %s18397_s6 }
  0x2c   :  { %p15965_p10 = pnand %p15963_p9, %p15960_p8 }
  0x2e   :  { %15968 = shalt.err (!%p15965_p10)
}
  0x2f   :  { %s15969_s24 = scalar_lea.vmem %s80_s23, 448  ;;  %p15974_p12 = scmp.lt.s32.totalorder %s80_s23, %s80_s23 }
  0x30   :  { %p15970_p11 = scmp.ne.s32.totalorder %s80_s23, %s15969_s24  ;;  %p15975_p13 = scmp.lt.s32.totalorder %s15969_s24, %s15969_s24 }
  0x32   :  { %p15976_p0 = por %p15975_p13, %p15974_p12 }
  0x34   :  { %p15977_p1 = pnand %p15976_p0, %p15970_p11 }
  0x36   :  { %15980 = shalt.err (!%p15977_p1)
}
  0x37   :  { %85 = dma.hbm_to_vmem [thread:$0]  %s18397_s6, 448, %s80_s23, [#allocation10], %s16372_s30, %s16372_s30, %s16373_s0  }
  0x38   :  { %s15981_s22 = scalar_lea.hbm %s18399_s8, 32 }
  0x39   :  { %p15982_p2 = scmp.ne.s32.totalorder %s18399_s8, %s15981_s22  ;;  %p15985_p3 = scmp.lt.u32.totalorder %s15981_s22, %s18399_s8 }
  0x3b   :  { %p15987_p4 = pnand %p15985_p3, %p15982_p2 }
  0x3d   :  { %15990 = shalt.err (!%p15987_p4)
}
  0x3e   :  { %s15991_s19 = scalar_lea.vmem %s105_s25, 32  ;;  %p15996_p6 = scmp.lt.s32.totalorder %s105_s25, %s105_s25 }
  0x3f   :  { %p15992_p5 = scmp.ne.s32.totalorder %s105_s25, %s15991_s19  ;;  %p15997_p7 = scmp.lt.s32.totalorder %s15991_s19, %s15991_s19 }
  0x41   :  { %p15998_p8 = por %p15997_p7, %p15996_p6 }
  0x43   :  { %p15999_p9 = pnand %p15998_p8, %p15992_p5 }
  0x45   :  { %16002 = shalt.err (!%p15999_p9)
}
  0x46   :  { %107 = dma.hbm_to_vmem [thread:$0]  %s18399_s8, 32, %s105_s25, [#allocation13]  }
  0x47   :  { %s16376_s4 = smov [#allocation15]   ;;  %s16003_s21 = scalar_lea.hbm %s18401_s10, 73728 }
  0x48   :  { %s125_s29 = sshll.u32 %s16376_s4, 4  ;;  %p16004_p10 = scmp.ne.s32.totalorder %s18401_s10, %s16003_s21  ;;  %s126_s29 = int_to_ptr.vmem [resolvable:$true] %s125_s29 }
  0x49   :  { %p16007_p11 = scmp.lt.u32.totalorder %s16003_s21, %s18401_s10 }
  0x4b   :  { %p16009_p12 = pnand %p16007_p11, %p16004_p10 }
  0x4d   :  { %16012 = shalt.err (!%p16009_p12)
}
  0x4e   :  { %s16013_s26 = scalar_lea.vmem %s126_s29, 73728  ;;  %p16018_p0 = scmp.lt.s32.totalorder %s126_s29, %s126_s29 }
  0x4f   :  { %p16014_p13 = scmp.ne.s32.totalorder %s126_s29, %s16013_s26  ;;  %p16019_p1 = scmp.lt.s32.totalorder %s16013_s26, %s16013_s26 }
  0x51   :  { %p16020_p2 = por %p16019_p1, %p16018_p0 }
  0x53   :  { %p16021_p3 = pnand %p16020_p2, %p16014_p13 }
  0x55   :  { %16024 = shalt.err (!%p16021_p3)
}
  0x56   :  { %s16377_s8 = smov 256   ;;  %s16378_s25 = smov 16  }
  0x57   :  { %131 = dma.hbm_to_vmem [thread:$0]  %s18401_s10, 73728, %s126_s29, [#allocation16], %s16377_s8, %s16377_s8, %s16378_s25  }
  0x58   :  { %s16379_s19 = smov [#allocation18]   ;;  %s16380_s23 = smov [#allocation21]  }
  0x59   :  { %s148_s6 = sshll.u32 %s16379_s19, 4  ;;  %s170_s4 = sshll.u32 %s16380_s23, 4  ;;  %s149_s6 = int_to_ptr.vmem [resolvable:$true] %s148_s6  ;;  %s171_s4 = int_to_ptr.vmem [resolvable:$true] %s170_s4 }
  0x5a   :  { %s16025_s21 = scalar_lea.hbm %s18403_s12, 16 }
  0x5b   :  { %p16026_p4 = scmp.ne.s32.totalorder %s18403_s12, %s16025_s21  ;;  %p16029_p5 = scmp.lt.u32.totalorder %s16025_s21, %s18403_s12 }
  0x5d   :  { %p16031_p6 = pnand %p16029_p5, %p16026_p4 }
  0x5f   :  { %16034 = shalt.err (!%p16031_p6)
}
  0x60   :  { %s16035_s10 = scalar_lea.vmem %s149_s6, 16  ;;  %s16039_s29 = scalar_lea.vmem %s149_s6, 32 }
  0x61   :  { %p16036_p7 = scmp.ne.s32.totalorder %s149_s6, %s16035_s10  ;;  %p16040_p8 = scmp.lt.s32.totalorder %s149_s6, %s149_s6 }
  0x62   :  { %p16041_p9 = scmp.lt.s32.totalorder %s16039_s29, %s16035_s10 }
  0x64   :  { %p16042_p10 = por %p16041_p9, %p16040_p8 }
  0x66   :  { %p16043_p11 = pnand %p16042_p10, %p16036_p7 }
  0x68   :  { %16046 = shalt.err (!%p16043_p11)
}
  0x69   :  { %151 = dma.hbm_to_vmem [thread:$0]  %s18403_s12, 16, %s149_s6, [#allocation19]  }
  0x6a   :  { %s16047_s23 = scalar_lea.hbm %s18405_s14, 64 }
  0x6b   :  { %p16048_p12 = scmp.ne.s32.totalorder %s18405_s14, %s16047_s23  ;;  %p16051_p13 = scmp.lt.u32.totalorder %s16047_s23, %s18405_s14 }
  0x6d   :  { %p16053_p0 = pnand %p16051_p13, %p16048_p12 }
  0x6f   :  { %16056 = shalt.err (!%p16053_p0)
}
  0x70   :  { %s16057_s20 = scalar_lea.vmem %s171_s4, 64  ;;  %p16062_p2 = scmp.lt.s32.totalorder %s171_s4, %s171_s4 }
  0x71   :  { %p16058_p1 = scmp.ne.s32.totalorder %s171_s4, %s16057_s20  ;;  %p16063_p3 = scmp.lt.s32.totalorder %s16057_s20, %s16057_s20 }
  0x73   :  { %p16064_p4 = por %p16063_p3, %p16062_p2 }
  0x75   :  { %p16065_p5 = pnand %p16064_p4, %p16058_p1 }
  0x77   :  { %16068 = shalt.err (!%p16065_p5)
}
  0x78   :  { %173 = dma.hbm_to_vmem [thread:$0]  %s18405_s14, 64, %s171_s4, [#allocation22]  }
  0x79   :  { %s16381_s22 = smov [#allocation24]   ;;  %s16382_s10 = smov [#allocation3]  }
  0x7a   :  { %s192_s2 = sshll.u32 %s16381_s22, 4  ;;  %s46_s29 = sshll.u32 %s16382_s10, 4  ;;  %s193_s2 = int_to_ptr.vmem [resolvable:$true] %s192_s2  ;;  %s47_s29 = int_to_ptr.vmem [resolvable:$true] %s46_s29 }
  0x7b   :  { %s16069_s28 = scalar_lea.hbm %s18407_s16, 64 }
  0x7c   :  { %p16070_p6 = scmp.ne.s32.totalorder %s18407_s16, %s16069_s28  ;;  %p16073_p7 = scmp.lt.u32.totalorder %s16069_s28, %s18407_s16 }
  0x7e   :  { %p16075_p8 = pnand %p16073_p7, %p16070_p6 }
  0x80   :  { %16078 = shalt.err (!%p16075_p8)
}
  0x81   :  { %s16079_s14 = scalar_lea.vmem %s193_s2, 64  ;;  %p16084_p10 = scmp.lt.s32.totalorder %s193_s2, %s193_s2 }
  0x82   :  { %p16080_p9 = scmp.ne.s32.totalorder %s193_s2, %s16079_s14  ;;  %p16085_p11 = scmp.lt.s32.totalorder %s16079_s14, %s16079_s14 }
  0x84   :  { %p16086_p12 = por %p16085_p11, %p16084_p10 }
  0x86   :  { %p16087_p13 = pnand %p16086_p12, %p16080_p9 }
  0x88   :  { %16090 = shalt.err (!%p16087_p13)
}
  0x89   :  { %195 = dma.hbm_to_vmem [thread:$0]  %s18407_s16, 64, %s193_s2, [#allocation25]  }
  0x8a   :  { %s18431_s12 = sld [smem:[#allocation43_spill]] }
  0x90   :  { %s16091_s6 = scalar_lea.hbm %s18431_s12, 16 }
  0x91   :  { %p16092_p0 = scmp.ne.s32.totalorder %s18431_s12, %s16091_s6  ;;  %p16095_p1 = scmp.lt.u32.totalorder %s16091_s6, %s18431_s12 }
  0x93   :  { %p16097_p2 = pnand %p16095_p1, %p16092_p0 }
  0x95   :  { %16100 = shalt.err (!%p16097_p2)
}
  0x96   :  { %s16101_s28 = scalar_lea.vmem %s47_s29, 16  ;;  %s16105_s19 = scalar_lea.vmem %s47_s29, 32 }
  0x97   :  { %p16102_p3 = scmp.ne.s32.totalorder %s47_s29, %s16101_s28  ;;  %p16106_p4 = scmp.lt.s32.totalorder %s47_s29, %s47_s29 }
  0x98   :  { %p16107_p5 = scmp.lt.s32.totalorder %s16105_s19, %s16101_s28 }
  0x9a   :  { %p16108_p6 = por %p16107_p5, %p16106_p4 }
  0x9c   :  { %p16109_p7 = pnand %p16108_p6, %p16102_p3 }
  0x9e   :  { %16112 = shalt.err (!%p16109_p7)
}
  0x9f   :  { %49 = dma.hbm_to_vmem [thread:$0]  %s18431_s12, 16, %s47_s29, [#allocation4]  }
  0xa0   :  { %s16383_s23 = smov [#allocation8]   ;;  %s16384_s3 = smov [#allocation11]  }
  0xa1   :  { %s70_s24 = sshll.u32 %s16383_s23, 4  ;;  %s91_s14 = sshll.u32 %s16384_s3, 4  ;;  %s71_s24 = int_to_ptr.vmem [resolvable:$true] %s70_s24  ;;  %s16611_s14 = int_to_ptr.vmem [resolvable:$true] %s91_s14 }
  0xa2   :  { %s16113_s1 = scalar_lea.hbm %s18396_s5, 16 }
  0xa3   :  { %p16114_p8 = scmp.ne.s32.totalorder %s18396_s5, %s16113_s1  ;;  %p16117_p9 = scmp.lt.u32.totalorder %s16113_s1, %s18396_s5 }
  0xa5   :  { %p16119_p10 = pnand %p16117_p9, %p16114_p8 }
  0xa7   :  { %16122 = shalt.err (!%p16119_p10)
}
  0xa8   :  { %s16123_s29 = scalar_lea.vmem %s71_s24, 16  ;;  %s16127_s12 = scalar_lea.vmem %s71_s24, 32 }
  0xa9   :  { %p16124_p11 = scmp.ne.s32.totalorder %s71_s24, %s16123_s29  ;;  %p16128_p12 = scmp.lt.s32.totalorder %s71_s24, %s71_s24 }
  0xaa   :  { %p16129_p13 = scmp.lt.s32.totalorder %s16127_s12, %s16123_s29 }
  0xac   :  { %p16130_p0 = por %p16129_p13, %p16128_p12 }
  0xae   :  { %p16131_p1 = pnand %p16130_p0, %p16124_p11 }
  0xb0   :  { %16134 = shalt.err (!%p16131_p1)
}
  0xb1   :  { %73 = dma.hbm_to_vmem [thread:$0]  %s18396_s5, 16, %s71_s24, [#allocation7]  }
  0xb2   :  { %s16135_s16 = scalar_lea.hbm %s18398_s7, 18432 }
  0xb3   :  { %p16136_p2 = scmp.ne.s32.totalorder %s18398_s7, %s16135_s16  ;;  %p16139_p3 = scmp.lt.u32.totalorder %s16135_s16, %s18398_s7 }
  0xb5   :  { %p16141_p4 = pnand %p16139_p3, %p16136_p2 }
  0xb7   :  { %16144 = shalt.err (!%p16141_p4)
}
  0xb8   :  { %s16145_s21 = scalar_lea.vmem %s16611_s14, 18432  ;;  %p16150_p6 = scmp.lt.s32.totalorder %s16611_s14, %s16611_s14 }
  0xb9   :  { %p16146_p5 = scmp.ne.s32.totalorder %s16611_s14, %s16145_s21  ;;  %p16151_p7 = scmp.lt.s32.totalorder %s16145_s21, %s16145_s21 }
  0xbb   :  { %p16152_p8 = por %p16151_p7, %p16150_p6 }
  0xbd   :  { %p16153_p9 = pnand %p16152_p8, %p16146_p5 }
  0xbf   :  { %16156 = shalt.err (!%p16153_p9)
}
  0xc0   :  { %s16385_s5 = smov 128   ;;  %s16386_s24 = smov 8  }
  0xc1   :  { %97 = dma.hbm_to_vmem [thread:$0]  %s18398_s7, 18432, %s16611_s14, [#allocation10], %s16385_s5, %s16385_s5, %s16386_s24  }
  0xc2   :  { %s16387_s6 = smov [#allocation14]   ;;  %s16388_s10 = smov [#allocation17]  }
  0xc3   :  { %s113_s22 = sshll.u32 %s16387_s6, 4  ;;  %s138_s29 = sshll.u32 %s16388_s10, 4  ;;  %s114_s22 = int_to_ptr.vmem [resolvable:$true] %s113_s22  ;;  %s139_s29 = int_to_ptr.vmem [resolvable:$true] %s138_s29 }
  0xc4   :  { %s16157_s27 = scalar_lea.hbm %s18400_s9, 256 }
  0xc5   :  { %p16158_p10 = scmp.ne.s32.totalorder %s18400_s9, %s16157_s27  ;;  %p16161_p11 = scmp.lt.u32.totalorder %s16157_s27, %s18400_s9 }
  0xc7   :  { %p16163_p12 = pnand %p16161_p11, %p16158_p10 }
  0xc9   :  { %16166 = shalt.err (!%p16163_p12)
}
  0xca   :  { %s16167_s7 = scalar_lea.vmem %s114_s22, 256  ;;  %p16172_p0 = scmp.lt.s32.totalorder %s114_s22, %s114_s22 }
  0xcb   :  { %p16168_p13 = scmp.ne.s32.totalorder %s114_s22, %s16167_s7  ;;  %p16173_p1 = scmp.lt.s32.totalorder %s16167_s7, %s16167_s7 }
  0xcd   :  { %p16174_p2 = por %p16173_p1, %p16172_p0 }
  0xcf   :  { %p16175_p3 = pnand %p16174_p2, %p16168_p13 }
  0xd1   :  { %16178 = shalt.err (!%p16175_p3)
}
  0xd2   :  { %119 = dma.hbm_to_vmem [thread:$0]  %s18400_s9, 256, %s114_s22, [#allocation13], %s16372_s30, %s16372_s30, %s16373_s0  }
  0xd3   :  { %s16179_s21 = scalar_lea.hbm %s18402_s11, 64 }
  0xd4   :  { %p16180_p4 = scmp.ne.s32.totalorder %s18402_s11, %s16179_s21  ;;  %p16183_p5 = scmp.lt.u32.totalorder %s16179_s21, %s18402_s11 }
  0xd6   :  { %p16185_p6 = pnand %p16183_p5, %p16180_p4 }
  0xd8   :  { %16188 = shalt.err (!%p16185_p6)
}
  0xd9   :  { %s16189_s6 = scalar_lea.vmem %s139_s29, 64  ;;  %p16194_p8 = scmp.lt.s32.totalorder %s139_s29, %s139_s29 }
  0xda   :  { %p16190_p7 = scmp.ne.s32.totalorder %s139_s29, %s16189_s6  ;;  %p16195_p9 = scmp.lt.s32.totalorder %s16189_s6, %s16189_s6 }
  0xdc   :  { %p16196_p10 = por %p16195_p9, %p16194_p8 }
  0xde   :  { %p16197_p11 = pnand %p16196_p10, %p16190_p7 }
  0xe0   :  { %16200 = shalt.err (!%p16197_p11)
}
  0xe1   :  { %141 = dma.hbm_to_vmem [thread:$0]  %s18402_s11, 64, %s139_s29, [#allocation16]  }
  0xe2   :  { %s16389_s10 = smov [#allocation20]   ;;  %s16390_s26 = smov [#allocation23]  }
  0xe3   :  { %s157_s12 = sshll.u32 %s16389_s10, 4  ;;  %s179_s27 = sshll.u32 %s16390_s26, 4  ;;  %s158_s12 = int_to_ptr.vmem [resolvable:$true] %s157_s12  ;;  %s16669_s27 = int_to_ptr.vmem [resolvable:$true] %s179_s27 }
  0xe4   :  { %s16201_s16 = scalar_lea.hbm %s18404_s13, 16384 }
  0xe5   :  { %p16202_p12 = scmp.ne.s32.totalorder %s18404_s13, %s16201_s16  ;;  %p16205_p13 = scmp.lt.u32.totalorder %s16201_s16, %s18404_s13 }
  0xe7   :  { %p16207_p0 = pnand %p16205_p13, %p16202_p12 }
  0xe9   :  { %16210 = shalt.err (!%p16207_p0)
}
  0xea   :  { %s16211_s11 = scalar_lea.vmem %s158_s12, 16384  ;;  %p16216_p2 = scmp.lt.s32.totalorder %s158_s12, %s158_s12 }
  0xeb   :  { %p16212_p1 = scmp.ne.s32.totalorder %s158_s12, %s16211_s11  ;;  %p16217_p3 = scmp.lt.s32.totalorder %s16211_s11, %s16211_s11 }
  0xed   :  { %p16218_p4 = por %p16217_p3, %p16216_p2 }
  0xef   :  { %p16219_p5 = pnand %p16218_p4, %p16212_p1 }
  0xf1   :  { %16222 = shalt.err (!%p16219_p5)
}
  0xf2   :  { %163 = dma.hbm_to_vmem [thread:$0]  %s18404_s13, 16384, %s158_s12, [#allocation19], %s16377_s8, %s16377_s8, %s16378_s25  }
  0xf3   :  { %s16223_s5 = scalar_lea.hbm %s18406_s15, 16384 }
  0xf4   :  { %p16224_p6 = scmp.ne.s32.totalorder %s18406_s15, %s16223_s5  ;;  %p16227_p7 = scmp.lt.u32.totalorder %s16223_s5, %s18406_s15 }
  0xf6   :  { %p16229_p8 = pnand %p16227_p7, %p16224_p6 }
  0xf8   :  { %16232 = shalt.err (!%p16229_p8)
}
  0xf9   :  { %s16233_s9 = scalar_lea.vmem %s16669_s27, 16384  ;;  %p16238_p10 = scmp.lt.s32.totalorder %s16669_s27, %s16669_s27 }
  0xfa   :  { %p16234_p9 = scmp.ne.s32.totalorder %s16669_s27, %s16233_s9  ;;  %p16239_p11 = scmp.lt.s32.totalorder %s16233_s9, %s16233_s9 }
  0xfc   :  { %p16240_p12 = por %p16239_p11, %p16238_p10 }
  0xfe   :  { %p16241_p13 = pnand %p16240_p12, %p16234_p9 }
 0x100   :  { %16244 = shalt.err (!%p16241_p13)
}
 0x101   :  { %185 = dma.hbm_to_vmem [thread:$0]  %s18406_s15, 16384, %s16669_s27, [#allocation22], %s16377_s8, %s16377_s8, %s16378_s25  }
 0x102   :  { %s16391_s10 = smov [#allocation26]   ;;  %s16392_s26 = smov [#allocation27]  }
 0x103   :  { %s201_s12 = sshll.u32 %s16391_s10, 4  ;;  %s214_s28 = sshll.u32 %s16392_s26, 4  ;;  %s202_s12 = int_to_ptr.vmem [resolvable:$true] %s201_s12  ;;  %s215_s28 = int_to_ptr.vmem [resolvable:$true] %s214_s28 }
 0x104   :  { %s16245_s2 = scalar_lea.hbm %s18408_s17, 4096 }
 0x105   :  { %p16246_p0 = scmp.ne.s32.totalorder %s18408_s17, %s16245_s2  ;;  %p16249_p1 = scmp.lt.u32.totalorder %s16245_s2, %s18408_s17 }
 0x107   :  { %p16251_p2 = pnand %p16249_p1, %p16246_p0 }
 0x109   :  { %16254 = shalt.err (!%p16251_p2)
}
 0x10a   :  { %s16255_s15 = scalar_lea.vmem %s202_s12, 4096  ;;  %p16260_p4 = scmp.lt.s32.totalorder %s202_s12, %s202_s12 }
 0x10b   :  { %p16256_p3 = scmp.ne.s32.totalorder %s202_s12, %s16255_s15  ;;  %p16261_p5 = scmp.lt.s32.totalorder %s16255_s15, %s16255_s15 }
 0x10d   :  { %p16262_p6 = por %p16261_p5, %p16260_p4 }
 0x10f   :  { %p16263_p7 = pnand %p16262_p6, %p16256_p3 }
 0x111   :  { %16266 = shalt.err (!%p16263_p7)
}
 0x112   :  { %207 = dma.hbm_to_vmem [thread:$0]  %s18408_s17, 4096, %s202_s12, [#allocation25], %s16372_s30, %s16372_s30, %s16373_s0  }
 0x113   :  { %s16267_s3 = scalar_lea.hbm %s18409_s18, 16 }
 0x114   :  { %p16268_p8 = scmp.ne.s32.totalorder %s18409_s18, %s16267_s3  ;;  %p16271_p9 = scmp.lt.u32.totalorder %s16267_s3, %s18409_s18 }
 0x116   :  { %p16273_p10 = pnand %p16271_p9, %p16268_p8 }
 0x118   :  { %16276 = shalt.err (!%p16273_p10)
}
 0x119   :  { %s16277_s1 = scalar_lea.vmem %s215_s28, 16  ;;  %s16281_s20 = scalar_lea.vmem %s215_s28, 32 }
 0x11a   :  { %p16278_p11 = scmp.ne.s32.totalorder %s215_s28, %s16277_s1  ;;  %p16282_p12 = scmp.lt.s32.totalorder %s215_s28, %s215_s28 }
 0x11b   :  { %p16283_p13 = scmp.lt.s32.totalorder %s16281_s20, %s16277_s1 }
 0x11d   :  { %p16284_p0 = por %p16283_p13, %p16282_p12 }
 0x11f   :  { %p16285_p1 = pnand %p16284_p0, %p16278_p11 }
 0x121   :  { %16288 = shalt.err (!%p16285_p1)
}
 0x122   :  { %217 = dma.hbm_to_vmem [thread:$0]  %s18409_s18, 16, %s215_s28, [#allocation28]  }
 0x123   :  { %16331 = dma.done.wait [#allocation4], 16  }
 0x124   :  { %16332 = vsyncadd [#allocation4], 4294967280 }
 0x125   :  { %16333 = dma.done.wait [#allocation7], 4624  }
 0x126   :  { %16334 = vsyncadd [#allocation7], 4294962672 }
 0x127   :  { %16335 = dma.done.wait [#allocation10], 18880  }
 0x128   :  { %16336 = vsyncadd [#allocation10], 4294948416 }
 0x129   :  { %16337 = dma.done.wait [#allocation13], 288  }
 0x12a   :  { %16338 = vsyncadd [#allocation13], 4294967008 }
 0x12b   :  { %16339 = dma.done.wait [#allocation16], 73792  }
 0x12c   :  { %16340 = vsyncadd [#allocation16], 4294893504 }
 0x12d   :  { %16341 = dma.done.wait [#allocation19], 16400  }
 0x12e   :  { %16342 = vsyncadd [#allocation19], 4294950896 }
 0x12f   :  { %16343 = dma.done.wait [#allocation22], 16448  }
 0x130   :  { %16344 = vsyncadd [#allocation22], 4294950848 }
 0x131   :  { %16345 = dma.done.wait [#allocation25], 4160  }
 0x132   :  { %16346 = vsyncadd [#allocation25], 4294963136 }
 0x133   :  { %16347 = dma.done.wait [#allocation28], 16  }
 0x134   :  { %16348 = vsyncadd [#allocation28], 4294967280  ;;  %v269_v0 = vlaneseq  ;;  %v16735_v2 = vmov 0.0   ;;  %v16737_v3 = vmov 0.0   ;;  %v16739_v4 = vmov 0.0   ;;  %s16743_s18 = smov 0  }
 0x135   :  { %v16741_v5 = vmov 0.0  }
 0x136   :  { %v16733_v1 = vshrl.u32 %v269_v0, 7 }
 0x137 LB: > { %18432 = vst [vmem:[#allocation40_spill] sm:$0xff] %v16353_v2  ;;  %s18433_s9 = sld [smem:[#allocation42_spill]]  ;;  %v18419_v7 = vmov 0.0   ;;  %vm16394_vm0 = vmmov 0   ;;  %s13403_s10 = smul.u32 164, %s16369_s18  ;;  %vm535_vm1 = vcmask 1043456   ;;  %s16369_s18 = sphi %s16743_s18, %s276_s18   ;;  %v16365_v5 = vphi %v16741_v5, %v18452_v5   ;;  %v16361_v4 = vphi %v16739_v4, %v18451_v4   ;;  %v16357_v3 = vphi %v16737_v3, %v18450_v3   ;;  %v16353_v2 = vphi %v16735_v2, %v18449_v2  }
 0x138   : > { %13659 = vmatprep.subr.bf16.mxu0 %v18419_v7  ;;  %13669 = vmatprep.mubr.msk.bf16.mxu0 %vm16394_vm0, %v18419_v7  ;;  %s18434_s28 = sld [smem:[#allocation41_spill]]  ;;  %vm471_vm2 = vcmask 588800   ;;  %v16871_v34 = vld [vmem:[#allocation3] ss:$0 sm:$0xff]  ;;  %vm819_vm3 = vcmask 1046528   ;;  %vm1026_vm4 = vcmask 1045504  }
 0x139   : > { %s18435_s25 = sld [smem:[#allocation44_spill]]  ;;  %vm1354_vm5 = vcmask 400384   ;;  %vm1379_vm6 = vcmask 1040384   ;;  %vm1684_vm7 = vcmask 523264   ;;  %vm1604_vm8 = vsmask.f32 7424 }
 0x13a   : > { %vm2105_vm9 = vcmask 1042432   ;;  %vm2457_vm10 = vcmask 1041408   ;;  %vm2274_vm11 = vsmask.f32 2304  ;;  %vm2796_vm12 = vsmask.f32 5376 }
 0x13b   : > { %vm2984_vm13 = vcmask 1044480   ;;  %vm3333_vm14 = vcmask 728064   ;;  %vm4133_vm15 = vsmask.f32 4352 }
 0x13d   : > { %v14340_v6 = vld [vmem:[%s18433_s9] sm:$0xff]   ;;  %v14341_v8 = vld [vmem:[%s18433_s9 + $0x8] sm:$0xff]   ;;  %v14342_v9 = vld [vmem:[%s18433_s9 + $0x10] sm:$0xff]  }
 0x13e   : > { %13660 = vmatpush3.bf16.msra.mxu0 %v14340_v6  ;;  %s16774_s19 = scalar_lea.vmem %s18434_s28, %s13403_s10  ;;  %v14343_v10 = vld [vmem:[%s18433_s9 + $0x18] sm:$0xff]   ;;  %v14344_v11 = vld [vmem:[%s18433_s9 + $0x20] ss:$0 sps:$4 sm:$0xff]  }
 0x13f   : > { %13661 = vmatprep.subr.bf16.mxu0 %v18419_v7  ;;  %v537_v12 = vsel %vm535_vm1, %v14344_v11, 0  ;;  %v14345_v13 = vld [vmem:[%s16774_s19] sm:$0xff]   ;;  %v14346_v14 = vld [vmem:[%s16774_s19 + $0x8] sm:$0xff]   ;;  %v14347_v15 = vld [vmem:[%s16774_s19 + $0x10] sm:$0xff]  }
 0x140   : > { %v14348_v16 = vld [vmem:[%s16774_s19 + $0x18] sm:$0xff]   ;;  %v14349_v17 = vld [vmem:[%s16774_s19 + $0x20] sm:$0xff]   ;;  %v14350_v18 = vld [vmem:[%s16774_s19 + $0x28] sm:$0xff]  }
 0x141   : > { %v14351_v19 = vld [vmem:[%s16774_s19 + $0x30] sm:$0xff]   ;;  %v14352_v20 = vld [vmem:[%s16774_s19 + $0x38] sm:$0xff]   ;;  %v14353_v21 = vld [vmem:[%s16774_s19 + $0x40] sm:$0xff]  }
 0x142   : > { %13662 = vmatpush3.bf16.msra.mxu0 %v14341_v8  ;;  %v14354_v22 = vld [vmem:[%s16774_s19 + $0x48] sm:$0xff]   ;;  %v14355_v23 = vld [vmem:[%s16774_s19 + $0x50] sm:$0xff]   ;;  %v14356_v24 = vld [vmem:[%s16774_s19 + $0x58] sm:$0xff]  }
 0x143   : > { %13663 = vmatprep.subr.bf16.mxu0 %v18419_v7  ;;  %v14357_v25 = vld [vmem:[%s16774_s19 + $0x60] sm:$0xff]   ;;  %v14358_v26 = vld [vmem:[%s16774_s19 + $0x68] sm:$0xff]   ;;  %v14359_v27 = vld [vmem:[%s16774_s19 + $0x70] sm:$0xff]  }
 0x144   : > { %v14360_v28 = vld [vmem:[%s16774_s19 + $0x78] sm:$0xff]   ;;  %v14361_v29 = vld [vmem:[%s16774_s19 + $0x80] sm:$0xff]   ;;  %v14362_v30 = vld [vmem:[%s16774_s19 + $0x88] sm:$0xff]  }
 0x145   : > { %v14363_v31 = vld [vmem:[%s16774_s19 + $0x90] sm:$0xff]   ;;  %v14364_v32 = vld [vmem:[%s16774_s19 + $0x98] sm:$0xff]   ;;  %v14365_v33 = vld [vmem:[%s16774_s19 + $0xa0] ss:$0 sps:$4 sm:$0x33]  }
 0x146   : > { %13664 = vmatpush3.bf16.msra.mxu0 %v14342_v9 }
 0x147   : > { %13665 = vmatprep.subr.bf16.mxu0 %v18419_v7 }
 0x14a   : > { %13666 = vmatpush3.bf16.msra.mxu0 %v14343_v10 }
 0x14b   : > { %13667 = vmatprep.subr.bf16.mxu0 %v18419_v7 }
 0x14e   : > { %13668 = vmatpush3.bf16.msra.mxu0 %v537_v12 }
 0x151   : > { %13670 = vmatmul.mubr.msk.bf16.vlgmr.msra.gmra.mrb[0].mxu0 %vm471_vm2, %v14345_v13 }
 0x152   : > { %13673 = vmatprep.mubr.msk.bf16.mxu0 %vm16394_vm0, %v18419_v7 }
 0x159   : > { %13674 = vmatmul.mubr.msk.bf16.gmra.mrb[4].mxu0 %vm471_vm2, %v14346_v14 }
 0x15a   : > { %13677 = vmatprep.mubr.msk.bf16.mxu0 %vm16394_vm0, %v18419_v7 }
 0x161   : > { %13678 = vmatmul.mubr.msk.bf16.gmra.mrb[8].mxu0 %vm471_vm2, %v14347_v15 }
 0x162   : > { %13681 = vmatprep.mubr.msk.bf16.mxu0 %vm16394_vm0, %v18419_v7 }
 0x169   : > { %13682 = vmatmul.mubr.msk.bf16.gmra.mrb[12].mxu0 %vm471_vm2, %v14348_v16 }
 0x16a   : > { %13685 = vmatprep.mubr.msk.bf16.mxu0 %vm16394_vm0, %v18419_v7 }
 0x171   : > { %13686 = vmatmul.mubr.msk.bf16.gmra.mrb[16].mxu0 %vm471_vm2, %v14349_v17 }
 0x172   : > { %13689 = vmatprep.mubr.msk.bf16.mxu0 %vm16394_vm0, %v18419_v7 }
 0x179   : > { %13690 = vmatmul.mubr.msk.bf16.gmra.mrb[20].mxu0 %vm471_vm2, %v14350_v18 }
 0x17a   : > { %13693 = vmatprep.mubr.msk.bf16.mxu0 %vm16394_vm0, %v18419_v7 }
 0x181   : > { %13694 = vmatmul.mubr.msk.bf16.gmra.mrb[24].mxu0 %vm471_vm2, %v14351_v19 }
 0x182   : > { %13697 = vmatprep.mubr.msk.bf16.mxu0 %vm16394_vm0, %v18419_v7 }
 0x189   : > { %13698 = vmatmul.mubr.msk.bf16.gmra.mrb[28].mxu0 %vm471_vm2, %v14352_v20 }
 0x18a   : > { %13701 = vmatprep.mubr.msk.bf16.mxu0 %vm16394_vm0, %v18419_v7 }
 0x191   : > { %13702 = vmatmul.mubr.msk.bf16.gmra.mrb[32].mxu0 %vm471_vm2, %v14353_v21 }
 0x192   : > { %13705 = vmatprep.mubr.msk.bf16.mxu0 %vm16394_vm0, %v18419_v7 }
 0x199   : > { %13706 = vmatmul.mubr.msk.bf16.gmra.mrb[36].mxu0 %vm471_vm2, %v14354_v22 }
 0x19a   : > { %13709 = vmatprep.mubr.msk.bf16.mxu0 %vm16394_vm0, %v18419_v7 }
 0x1a1   : > { %13710 = vmatmul.mubr.msk.bf16.gmra.mrb[40].mxu0 %vm471_vm2, %v14355_v23 }
 0x1a2   : > { %13713 = vmatprep.mubr.msk.bf16.mxu0 %vm16394_vm0, %v18419_v7 }
 0x1a9   : > { %13714 = vmatmul.mubr.msk.bf16.gmra.mrb[44].mxu0 %vm471_vm2, %v14356_v24 }
 0x1aa   : > { %13717 = vmatprep.mubr.msk.bf16.mxu0 %vm16394_vm0, %v18419_v7 }
 0x1b1   : > { %13718 = vmatmul.mubr.msk.bf16.gmra.mrb[48].mxu0 %vm471_vm2, %v14357_v25 }
 0x1b2   : > { %13721 = vmatprep.mubr.msk.bf16.mxu0 %vm16394_vm0, %v18419_v7 }
 0x1b9   : > { %13722 = vmatmul.mubr.msk.bf16.gmra.mrb[52].mxu0 %vm471_vm2, %v14358_v26 }
 0x1ba   : > { %13725 = vmatprep.mubr.msk.bf16.mxu0 %vm16394_vm0, %v18419_v7 }
 0x1c1   : > { %13726 = vmatmul.mubr.msk.bf16.gmra.mrb[56].mxu0 %vm471_vm2, %v14359_v27 }
 0x1c2   : > { %13729 = vmatprep.mubr.msk.bf16.mxu0 %vm16394_vm0, %v18419_v7 }
 0x1c9   : > { %13730 = vmatmul.mubr.msk.bf16.gmra.mrb[60].mxu0 %vm471_vm2, %v14360_v28  ;;  %v14368_v28 = vld [vmem:[%s18435_s25 + $0x4] ss:$12 sps:$4 sm:$0xff]  }
 0x1ca   : > { %13733 = vmatprep.mubr.msk.bf16.mxu0 %vm16394_vm0, %v18419_v7 }
 0x1d1   : > { %13734 = vmatmul.mubr.msk.bf16.gmra.mrb[64].mxu0 %vm471_vm2, %v14361_v29 }
 0x1d2   : > { %13737 = vmatprep.mubr.msk.bf16.mxu0 %vm16394_vm0, %v18419_v7 }
 0x1d9   : > { %13738 = vmatmul.mubr.msk.bf16.gmra.mrb[68].mxu0 %vm471_vm2, %v14362_v30 }
 0x1da   : > { %13741 = vmatprep.mubr.msk.bf16.mxu0 %vm16394_vm0, %v18419_v7 }
 0x1e1   : > { %13742 = vmatmul.mubr.msk.bf16.gmra.mrb[72].mxu0 %vm471_vm2, %v14363_v31 }
 0x1e2   : > { %13745 = vmatprep.mubr.msk.bf16.mxu0 %vm16394_vm0, %v18419_v7 }
 0x1e9   : > { %13746 = vmatmul.mubr.msk.bf16.gmra.mrb[76].mxu0 %vm471_vm2, %v14364_v32 }
 0x1ea   : > { %13749 = vmatprep.mubr.msk.bf16.mxu0 %vm16394_vm0, %v18419_v7 }
 0x1f1   : > { %13750 = vmatmul.mubr.msk.bf16.gmra.mrb[80].mxu0 %vm471_vm2, %v14365_v33  ;;  %vm5167_vm2 = vcmask 236544  }
 0x1f2   : > { %1417 = vmatprep.mubr.bf16.mxu0 %v14368_v28 }
 0x224   : > { %v573_v35 = vpop.f32.mrb[0].mxu0 }
 0x225   : > { %v13671_v36 = vpop.f32.mrb[1].mxu0  ;;  %v574_v37 = vadd.f32 %v16871_v34, %v573_v35 }
 0x226   : > { %v576_v38 = vpop.f32.mrb[2].mxu0 }
 0x227   : > { %v13672_v39 = vpop.f32.mrb[3].mxu0  ;;  %v577_v40 = vadd.f32 %v16871_v34, %v576_v38  ;;  %v739_v41 = vmax.f32 %v574_v37, 0.0 }
 0x229   : > { %v740_v42 = vmax.f32 %v577_v40, 0.0  ;;  %v820_v43 = vrot.slane %v739_v41, 1 }
 0x22b   : > { %v821_v44 = vrot.slane %v740_v42, 1 }
 0x22c   : > { %v581_v45 = vpop.f32.mrb[4].mxu0 }
 0x22d   : > { %v13675_v46 = vpop.f32.mrb[5].mxu0  ;;  %v582_v47 = vadd.f32 %v16871_v34, %v581_v45  ;;  %v822_v48 = vsel %vm819_vm3, %v820_v43, %v821_v44 }
 0x22e   : > { %v584_v49 = vpop.f32.mrb[6].mxu0  ;;  %v936_v50 = vmax.f32 %v739_v41, %v822_v48 }
 0x22f   : > { %v13676_v51 = vpop.f32.mrb[7].mxu0  ;;  %v585_v52 = vadd.f32 %v16871_v34, %v584_v49  ;;  %v741_v53 = vmax.f32 %v582_v47, 0.0 }
 0x231   : > { %v742_v54 = vmax.f32 %v585_v52, 0.0  ;;  %v823_v55 = vrot.slane %v741_v53, 1 }
 0x233   : > { %v825_v56 = vrot.slane %v742_v54, 1  ;;  %v824_v57 = vsel %vm819_vm3, %v821_v44, %v823_v55 }
 0x234   : > { %v589_v58 = vpop.f32.mrb[8].mxu0  ;;  %v937_v59 = vmax.f32 %v740_v42, %v824_v57 }
 0x235   : > { %v590_v60 = vadd.f32 %v16871_v34, %v589_v58  ;;  %v13679_v61 = vpop.f32.mrb[9].mxu0  ;;  %v826_v62 = vsel %vm819_vm3, %v823_v55, %v825_v56 }
 0x236   : > { %v592_v63 = vpop.f32.mrb[10].mxu0  ;;  %v938_v0 = vmax.f32 %v741_v53, %v826_v62 }
 0x237   : > { %v743_v6 = vmax.f32 %v590_v60, 0.0  ;;  %v593_v8 = vadd.f32 %v16871_v34, %v592_v63  ;;  %v13680_v9 = vpop.f32.mrb[11].mxu0 }
 0x238   : > { %v1027_v22 = vrot.slane %v938_v0, 2 }
 0x239   : > { %v827_v10 = vrot.slane %v743_v6, 1  ;;  %v744_v11 = vmax.f32 %v593_v8, 0.0 }
 0x23b   : > { %v828_v12 = vsel %vm819_vm3, %v825_v56, %v827_v10  ;;  %v829_v13 = vrot.slane %v744_v11, 1 }
 0x23c   : > { %v939_v14 = vmax.f32 %v742_v54, %v828_v12  ;;  %v597_v15 = vpop.f32.mrb[12].mxu0 }
 0x23d   : > { %v830_v16 = vsel %vm819_vm3, %v827_v10, %v829_v13  ;;  %v598_v17 = vadd.f32 %v16871_v34, %v597_v15  ;;  %v13683_v18 = vpop.f32.mrb[13].mxu0 }
 0x23e   : > { %v1028_v19 = vrot.slane %v939_v14, 2  ;;  %v16885_v20 = vmax.f32 %v743_v6, %v830_v16  ;;  %v600_v21 = vpop.f32.mrb[14].mxu0 }
 0x23f   : > { %v745_v23 = vmax.f32 %v598_v17, 0.0  ;;  %v601_v24 = vadd.f32 %v16871_v34, %v600_v21  ;;  %v13684_v25 = vpop.f32.mrb[15].mxu0 }
 0x240   : > { %v1030_v26 = vrot.slane %v16885_v20, 2  ;;  %v1029_v27 = vsel %vm1026_vm4, %v1027_v22, %v1028_v19 }
 0x241   : > { %v831_v29 = vrot.slane %v745_v23, 1  ;;  %v746_v30 = vmax.f32 %v601_v24, 0.0  ;;  %v1143_v31 = vmax.f32 %v936_v50, %v1029_v27 }
 0x242   : > { %v1031_v32 = vsel %vm1026_vm4, %v1028_v19, %v1030_v26 }
 0x243   : > { %v832_v33 = vsel %vm819_vm3, %v829_v13, %v831_v29  ;;  %v833_v35 = vrot.slane %v746_v30, 1  ;;  %v1144_v36 = vmax.f32 %v937_v59, %v1031_v32 }
 0x244   : > { %v941_v37 = vmax.f32 %v744_v11, %v832_v33  ;;  %v605_v38 = vpop.f32.mrb[16].mxu0 }
 0x245   : > { %v834_v39 = vsel %vm819_vm3, %v831_v29, %v833_v35  ;;  %v606_v40 = vadd.f32 %v16871_v34, %v605_v38  ;;  %v13687_v41 = vpop.f32.mrb[17].mxu0  ;;  %v16897_v42 = vpack.c.bf16 %v1144_v36, %v1143_v31 }
 0x246   : > { %v1032_v43 = vrot.slane %v941_v37, 2  ;;  %v16899_v44 = vmax.f32 %v745_v23, %v834_v39  ;;  %v608_v45 = vpop.f32.mrb[18].mxu0 }
 0x247   : > { %v747_v46 = vmax.f32 %v606_v40, 0.0  ;;  %v609_v47 = vadd.f32 %v16871_v34, %v608_v45  ;;  %v13688_v48 = vpop.f32.mrb[19].mxu0  ;;  %v14371_v40 = vld [vmem:[%s18435_s25 + $0x8] ss:$12 sps:$4 sm:$0xff]  }
 0x248   : > { %v1034_v49 = vrot.slane %v16899_v44, 2  ;;  %v1033_v50 = vsel %vm1026_vm4, %v1030_v26, %v1032_v43  ;;  %13761 = vmatprep.mubr.msk.bf16.mxu1 %vm1354_vm5, %v14371_v40 }
 0x249   : > { %v835_v51 = vrot.slane %v747_v46, 1  ;;  %v748_v52 = vmax.f32 %v609_v47, 0.0  ;;  %v1145_v53 = vmax.f32 %v938_v0, %v1033_v50 }
 0x24a   : > { %v1035_v54 = vsel %vm1026_vm4, %v1032_v43, %v1034_v49 }
 0x24b   : > { %v836_v55 = vsel %vm819_vm3, %v833_v35, %v835_v51  ;;  %v837_v56 = vrot.slane %v748_v52, 1  ;;  %v1146_v57 = vmax.f32 %v939_v14, %v1035_v54 }
 0x24c   : > { %v943_v58 = vmax.f32 %v746_v30, %v836_v55  ;;  %v613_v59 = vpop.f32.mrb[20].mxu0 }
 0x24d   : > { %v838_v60 = vsel %vm819_vm3, %v835_v51, %v837_v56  ;;  %v614_v61 = vadd.f32 %v16871_v34, %v613_v59  ;;  %v13691_v62 = vpop.f32.mrb[21].mxu0  ;;  %v16908_v63 = vpack.c.bf16 %v1146_v57, %v1145_v53 }
 0x24e   : > { %v1036_v6 = vrot.slane %v943_v58, 2  ;;  %v16910_v8 = vmax.f32 %v747_v46, %v838_v60  ;;  %v616_v9 = vpop.f32.mrb[22].mxu0 }
 0x24f   : > { %v749_v0 = vmax.f32 %v614_v61, 0.0  ;;  %v617_v10 = vadd.f32 %v16871_v34, %v616_v9  ;;  %v13692_v11 = vpop.f32.mrb[23].mxu0 }
 0x250   : > { %v1038_v12 = vrot.slane %v16910_v8, 2  ;;  %v1037_v13 = vsel %vm1026_vm4, %v1034_v49, %v1036_v6 }
 0x251   : > { %v839_v14 = vrot.slane %v749_v0, 1  ;;  %v750_v15 = vmax.f32 %v617_v10, 0.0  ;;  %v1147_v16 = vmax.f32 %v16885_v20, %v1037_v13 }
 0x252   : > { %v1039_v17 = vsel %vm1026_vm4, %v1036_v6, %v1038_v12 }
 0x253   : > { %v840_v18 = vsel %vm819_vm3, %v837_v56, %v839_v14  ;;  %v841_v19 = vrot.slane %v750_v15, 1  ;;  %v1148_v21 = vmax.f32 %v941_v37, %v1039_v17 }
 0x254   : > { %v945_v22 = vmax.f32 %v748_v52, %v840_v18  ;;  %v621_v23 = vpop.f32.mrb[24].mxu0 }
 0x255   : > { %v842_v24 = vsel %vm819_vm3, %v839_v14, %v841_v19  ;;  %v622_v25 = vadd.f32 %v16871_v34, %v621_v23  ;;  %v13695_v26 = vpop.f32.mrb[25].mxu0  ;;  %v16920_v27 = vpack.c.bf16 %v1148_v21, %v1147_v16 }
 0x256   : > { %v1040_v28 = vrot.slane %v945_v22, 2  ;;  %v16922_v29 = vmax.f32 %v749_v0, %v842_v24  ;;  %v624_v30 = vpop.f32.mrb[26].mxu0 }
 0x257   : > { %v751_v20 = vmax.f32 %v622_v25, 0.0  ;;  %v625_v31 = vadd.f32 %v16871_v34, %v624_v30  ;;  %v13696_v32 = vpop.f32.mrb[27].mxu0 }
 0x258   : > { %v1042_v33 = vrot.slane %v16922_v29, 2  ;;  %v1041_v35 = vsel %vm1026_vm4, %v1038_v12, %v1040_v28 }
 0x259   : > { %v843_v36 = vrot.slane %v751_v20, 1  ;;  %v752_v37 = vmax.f32 %v625_v31, 0.0  ;;  %v1149_v38 = vmax.f32 %v16899_v44, %v1041_v35 }
 0x25a   : > { %v1043_v39 = vsel %vm1026_vm4, %v1040_v28, %v1042_v33 }
 0x25b   : > { %v844_v41 = vsel %vm819_vm3, %v841_v19, %v843_v36  ;;  %v845_v43 = vrot.slane %v752_v37, 1  ;;  %v1150_v45 = vmax.f32 %v943_v58, %v1043_v39 }
 0x25c   : > { %v947_v46 = vmax.f32 %v750_v15, %v844_v41  ;;  %v629_v47 = vpop.f32.mrb[28].mxu0 }
 0x25d   : > { %v846_v48 = vsel %vm819_vm3, %v843_v36, %v845_v43  ;;  %v630_v49 = vadd.f32 %v16871_v34, %v629_v47  ;;  %v13699_v44 = vpop.f32.mrb[29].mxu0  ;;  %v16936_v50 = vpack.c.bf16 %v1150_v45, %v1149_v38 }
 0x25e   : > { %v1044_v51 = vrot.slane %v947_v46, 2  ;;  %v948_v52 = vmax.f32 %v751_v20, %v846_v48  ;;  %v632_v53 = vpop.f32.mrb[30].mxu0 }
 0x25f   : > { %v753_v54 = vmax.f32 %v630_v49, 0.0  ;;  %v633_v55 = vadd.f32 %v16871_v34, %v632_v53  ;;  %v13700_v56 = vpop.f32.mrb[31].mxu0 }
 0x260   : > { %v1046_v57 = vrot.slane %v948_v52, 2  ;;  %v1045_v58 = vsel %vm1026_vm4, %v1042_v33, %v1044_v51 }
 0x261   : > { %v847_v59 = vrot.slane %v753_v54, 1  ;;  %v754_v60 = vmax.f32 %v633_v55, 0.0  ;;  %v1151_v61 = vmax.f32 %v16910_v8, %v1045_v58 }
 0x262   : > { %v1047_v62 = vsel %vm1026_vm4, %v1044_v51, %v1046_v57 }
 0x263   : > { %v848_v6 = vsel %vm819_vm3, %v845_v43, %v847_v59  ;;  %v849_v9 = vrot.slane %v754_v60, 1  ;;  %v1152_v0 = vmax.f32 %v945_v22, %v1047_v62 }
 0x264   : > { %v949_v10 = vmax.f32 %v752_v37, %v848_v6  ;;  %v637_v11 = vpop.f32.mrb[32].mxu0 }
 0x265   : > { %v850_v12 = vsel %vm819_vm3, %v847_v59, %v849_v9  ;;  %v638_v13 = vadd.f32 %v16871_v34, %v637_v11  ;;  %v13703_v14 = vpop.f32.mrb[33].mxu0  ;;  %v16945_v15 = vpack.c.bf16 %v1152_v0, %v1151_v61 }
 0x266   : > { %v1048_v16 = vrot.slane %v949_v10, 2  ;;  %v950_v17 = vmax.f32 %v753_v54, %v850_v12  ;;  %v640_v18 = vpop.f32.mrb[34].mxu0 }
 0x267   : > { %v755_v19 = vmax.f32 %v638_v13, 0.0  ;;  %v641_v8 = vadd.f32 %v16871_v34, %v640_v18  ;;  %v13704_v21 = vpop.f32.mrb[35].mxu0 }
 0x268   : > { %v1050_v23 = vrot.slane %v950_v17, 2  ;;  %v1049_v24 = vsel %vm1026_vm4, %v1046_v57, %v1048_v16 }
 0x269   : > { %v851_v22 = vrot.slane %v755_v19, 1  ;;  %v756_v25 = vmax.f32 %v641_v8, 0.0  ;;  %v1153_v26 = vmax.f32 %v16922_v29, %v1049_v24 }
 0x26a   : > { %v1051_v28 = vsel %vm1026_vm4, %v1048_v16, %v1050_v23 }
 0x26b   : > { %v852_v30 = vsel %vm819_vm3, %v849_v9, %v851_v22  ;;  %v853_v20 = vrot.slane %v756_v25, 1  ;;  %v1154_v31 = vmax.f32 %v947_v46, %v1051_v28 }
 0x26c   : > { %v951_v32 = vmax.f32 %v754_v60, %v852_v30  ;;  %v645_v33 = vpop.f32.mrb[36].mxu0 }
 0x26d   : > { %v646_v35 = vadd.f32 %v16871_v34, %v645_v33  ;;  %v13707_v36 = vpop.f32.mrb[37].mxu0  ;;  %v854_v37 = vsel %vm819_vm3, %v851_v22, %v853_v20  ;;  %v16954_v38 = vpack.c.bf16 %v1154_v31, %v1153_v26 }
 0x26e   : > { %v1052_v39 = vrot.slane %v951_v32, 2  ;;  %v648_v40 = vpop.f32.mrb[38].mxu0  ;;  %v952_v41 = vmax.f32 %v755_v19, %v854_v37 }
 0x26f   : > { %v757_v43 = vmax.f32 %v646_v35, 0.0  ;;  %v649_v29 = vadd.f32 %v16871_v34, %v648_v40  ;;  %v13708_v45 = vpop.f32.mrb[39].mxu0 }
 0x270   : > { %v1054_v47 = vrot.slane %v952_v41, 2  ;;  %v1053_v48 = vsel %vm1026_vm4, %v1050_v23, %v1052_v39 }
 0x271   : > { %v855_v46 = vrot.slane %v757_v43, 1  ;;  %v758_v49 = vmax.f32 %v649_v29, 0.0  ;;  %v1155_v44 = vmax.f32 %v948_v52, %v1053_v48 }
 0x272   : > { %v1055_v51 = vsel %vm1026_vm4, %v1052_v39, %v1054_v47 }
 0x273   : > { %v857_v53 = vrot.slane %v758_v49, 1  ;;  %v856_v54 = vsel %vm819_vm3, %v853_v20, %v855_v46  ;;  %v1156_v55 = vmax.f32 %v949_v10, %v1055_v51 }
 0x274   : > { %v653_v56 = vpop.f32.mrb[40].mxu0  ;;  %v953_v57 = vmax.f32 %v756_v25, %v856_v54 }
 0x275   : > { %v858_v58 = vsel %vm819_vm3, %v855_v46, %v857_v53  ;;  %v654_v59 = vadd.f32 %v16871_v34, %v653_v56  ;;  %v13711_v60 = vpop.f32.mrb[41].mxu0  ;;  %v16962_v61 = vpack.c.bf16 %v1156_v55, %v1155_v44 }
 0x276   : > { %v16964_v62 = vmax.f32 %v757_v43, %v858_v58  ;;  %v656_v6 = vpop.f32.mrb[42].mxu0  ;;  %v1056_v9 = vrot.slane %v953_v57, 2 }
 0x277   : > { %v759_v52 = vmax.f32 %v654_v59, 0.0  ;;  %v657_v0 = vadd.f32 %v16871_v34, %v656_v6  ;;  %v13712_v11 = vpop.f32.mrb[43].mxu0 }
 0x278   : > { %v1058_v12 = vrot.slane %v16964_v62, 2  ;;  %v1057_v10 = vsel %vm1026_vm4, %v1054_v47, %v1056_v9 }
 0x279   : > { %v859_v13 = vrot.slane %v759_v52, 1  ;;  %v760_v14 = vmax.f32 %v657_v0, 0.0  ;;  %v1157_v16 = vmax.f32 %v950_v17, %v1057_v10 }
 0x27a   : > { %v1059_v18 = vsel %vm1026_vm4, %v1056_v9, %v1058_v12 }
 0x27b   : > { %v860_v19 = vsel %vm819_vm3, %v857_v53, %v859_v13  ;;  %v861_v8 = vrot.slane %v760_v14, 1  ;;  %v1158_v21 = vmax.f32 %v951_v32, %v1059_v18 }
 0x27c   : > { %v955_v23 = vmax.f32 %v758_v49, %v860_v19  ;;  %v661_v24 = vpop.f32.mrb[44].mxu0 }
 0x27d   : > { %v862_v22 = vsel %vm819_vm3, %v859_v13, %v861_v8  ;;  %v662_v25 = vadd.f32 %v16871_v34, %v661_v24  ;;  %v13715_v26 = vpop.f32.mrb[45].mxu0  ;;  %v16973_v28 = vpack.c.bf16 %v1158_v21, %v1157_v16 }
 0x27e   : > { %v16975_v30 = vmax.f32 %v759_v52, %v862_v22  ;;  %v664_v20 = vpop.f32.mrb[46].mxu0  ;;  %v1060_v31 = vrot.slane %v955_v23, 2 }
 0x27f   : > { %v761_v17 = vmax.f32 %v662_v25, 0.0  ;;  %v665_v33 = vadd.f32 %v16871_v34, %v664_v20  ;;  %v13716_v35 = vpop.f32.mrb[47].mxu0 }
 0x280   : > { %v1061_v36 = vsel %vm1026_vm4, %v1058_v12, %v1060_v31  ;;  %v1062_v32 = vrot.slane %v16975_v30, 2 }
 0x281   : > { %v863_v37 = vrot.slane %v761_v17, 1  ;;  %v762_v39 = vmax.f32 %v665_v33, 0.0  ;;  %v1159_v40 = vmax.f32 %v952_v41, %v1061_v36 }
 0x282   : > { %v1063_v43 = vsel %vm1026_vm4, %v1060_v31, %v1062_v32 }
 0x283   : > { %v865_v29 = vrot.slane %v762_v39, 1  ;;  %v1160_v45 = vmax.f32 %v953_v57, %v1063_v43  ;;  %v864_v47 = vsel %vm819_vm3, %v861_v8, %v863_v37 }
 0x284   : > { %v669_v48 = vpop.f32.mrb[48].mxu0  ;;  %v957_v46 = vmax.f32 %v760_v14, %v864_v47 }
 0x285   : > { %v670_v49 = vadd.f32 %v16871_v34, %v669_v48  ;;  %v13719_v44 = vpop.f32.mrb[49].mxu0  ;;  %v1222_v51 = vpack.c.bf16 %v1160_v45, %v1159_v40  ;;  %v866_v53 = vsel %vm819_vm3, %v863_v37, %v865_v29 }
 0x286   : > { %v672_v54 = vpop.f32.mrb[50].mxu0  ;;  %v16984_v55 = vmax.f32 %v761_v17, %v866_v53  ;;  %v1064_v56 = vrot.slane %v957_v46, 2 }
 0x287   : > { %v763_v58 = vmax.f32 %v670_v49, 0.0  ;;  %v673_v41 = vadd.f32 %v16871_v34, %v672_v54  ;;  %13430 = vmatprep.subr.bf16.mxu0 %v1222_v51  ;;  %v13720_v59 = vpop.f32.mrb[51].mxu0 }
 0x288   : > { %13431 = vmatpush3.bf16.msra.mxu0 %v16897_v42  ;;  %v1065_v57 = vsel %vm1026_vm4, %v1062_v32, %v1064_v56  ;;  %v1066_v60 = vrot.slane %v16984_v55, 2 }
 0x289   : > { %v867_v6 = vrot.slane %v763_v58, 1  ;;  %v764_v9 = vmax.f32 %v673_v41, 0.0  ;;  %v1161_v52 = vmax.f32 %v16964_v62, %v1065_v57 }
 0x28a   : > { %v1067_v0 = vsel %vm1026_vm4, %v1064_v56, %v1066_v60 }
 0x28b   : > { %v868_v11 = vsel %vm819_vm3, %v865_v29, %v867_v6  ;;  %v869_v12 = vrot.slane %v764_v9, 1  ;;  %v1162_v10 = vmax.f32 %v955_v23, %v1067_v0 }
 0x28c   : > { %v677_v13 = vpop.f32.mrb[52].mxu0  ;;  %v959_v14 = vmax.f32 %v762_v39, %v868_v11 }
 0x28d   : > { %v870_v16 = vsel %vm819_vm3, %v867_v6, %v869_v12  ;;  %v678_v42 = vadd.f32 %v16871_v34, %v677_v13  ;;  %v13723_v18 = vpop.f32.mrb[53].mxu0  ;;  %v1223_v19 = vpack.c.bf16 %v1162_v10, %v1161_v52 }
 0x28e   : > { %v680_v8 = vpop.f32.mrb[54].mxu0  ;;  %v16995_v21 = vmax.f32 %v763_v58, %v870_v16  ;;  %v1068_v24 = vrot.slane %v959_v14, 2 }
 0x28f   : > { %v765_v22 = vmax.f32 %v678_v42, 0.0  ;;  %v681_v62 = vadd.f32 %v16871_v34, %v680_v8  ;;  %13432 = vmatprep.subr.bf16.mxu0 %v1223_v19  ;;  %v13724_v25 = vpop.f32.mrb[55].mxu0 }
 0x290   : > { %13433 = vmatpush3.bf16.msra.mxu0 %v16908_v63  ;;  %v1069_v23 = vsel %vm1026_vm4, %v1066_v60, %v1068_v24  ;;  %v1070_v26 = vrot.slane %v16995_v21, 2 }
 0x291   : > { %v871_v20 = vrot.slane %v765_v22, 1  ;;  %v766_v31 = vmax.f32 %v681_v62, 0.0  ;;  %v1163_v17 = vmax.f32 %v16975_v30, %v1069_v23  ;;  %v17008_v30 = vld [vmem:[#allocation3] ss:$0 sm:$0xff] }
 0x292   : > { %v1071_v33 = vsel %vm1026_vm4, %v1068_v24, %v1070_v26 }
 0x293   : > { %v872_v35 = vsel %vm819_vm3, %v869_v12, %v871_v20  ;;  %v873_v36 = vrot.slane %v766_v31, 1  ;;  %v1164_v32 = vmax.f32 %v957_v46, %v1071_v33 }
 0x294   : > { %v961_v37 = vmax.f32 %v764_v9, %v872_v35  ;;  %v685_v39 = vpop.f32.mrb[56].mxu0 }
 0x295   : > { %v874_v40 = vsel %vm819_vm3, %v871_v20, %v873_v36  ;;  %v686_v63 = vadd.f32 %v16871_v34, %v685_v39  ;;  %v13727_v43 = vpop.f32.mrb[57].mxu0  ;;  %v1224_v29 = vpack.c.bf16 %v1164_v32, %v1163_v17 }
 0x296   : > { %v17006_v45 = vmax.f32 %v765_v22, %v874_v40  ;;  %v688_v47 = vpop.f32.mrb[58].mxu0  ;;  %v1072_v48 = vrot.slane %v961_v37, 2 }
 0x297   : > { %v767_v49 = vmax.f32 %v686_v63, 0.0  ;;  %v689_v44 = vadd.f32 %v17008_v30, %v688_v47  ;;  %13434 = vmatprep.subr.bf16.mxu0 %v1224_v29  ;;  %v13728_v51 = vpop.f32.mrb[59].mxu0 }
 0x298   : > { %13435 = vmatpush3.bf16.msra.mxu0 %v16920_v27  ;;  %v1073_v46 = vsel %vm1026_vm4, %v1070_v26, %v1072_v48  ;;  %v1074_v53 = vrot.slane %v17006_v45, 2 }
 0x299   : > { %v875_v34 = vrot.slane %v767_v49, 1  ;;  %v768_v54 = vmax.f32 %v689_v44, 0.0  ;;  %v1165_v56 = vmax.f32 %v16984_v55, %v1073_v46 }
 0x29a   : > { %v1075_v58 = vsel %vm1026_vm4, %v1072_v48, %v1074_v53 }
 0x29b   : > { %v876_v41 = vsel %vm819_vm3, %v873_v36, %v875_v34  ;;  %v877_v59 = vrot.slane %v768_v54, 1  ;;  %v1166_v57 = vmax.f32 %v959_v14, %v1075_v58 }
 0x29c   : > { %v963_v60 = vmax.f32 %v766_v31, %v876_v41  ;;  %v693_v6 = vpop.f32.mrb[60].mxu0 }
 0x29d   : > { %v878_v9 = vsel %vm819_vm3, %v875_v34, %v877_v59  ;;  %v694_v27 = vadd.f32 %v17008_v30, %v693_v6  ;;  %v13731_v52 = vpop.f32.mrb[61].mxu0  ;;  %v1225_v0 = vpack.c.bf16 %v1166_v57, %v1165_v56 }
 0x29e   : > { %v17019_v11 = vmax.f32 %v767_v49, %v878_v9  ;;  %v696_v12 = vpop.f32.mrb[62].mxu0  ;;  %v1076_v10 = vrot.slane %v963_v60, 2 }
 0x29f   : > { %v769_v13 = vmax.f32 %v694_v27, 0.0  ;;  %v697_v55 = vadd.f32 %v17008_v30, %v696_v12  ;;  %13436 = vmatprep.subr.bf16.mxu0 %v1225_v0  ;;  %v13732_v16 = vpop.f32.mrb[63].mxu0 }
 0x2a0   : > { %13437 = vmatpush3.bf16.msra.mxu0 %v16936_v50  ;;  %v1077_v14 = vsel %vm1026_vm4, %v1074_v53, %v1076_v10  ;;  %v1078_v42 = vrot.slane %v17019_v11, 2 }
 0x2a1   : > { %v879_v18 = vrot.slane %v769_v13, 1  ;;  %v770_v19 = vmax.f32 %v697_v55, 0.0  ;;  %v1167_v8 = vmax.f32 %v16995_v21, %v1077_v14 }
 0x2a2   : > { %v1079_v24 = vsel %vm1026_vm4, %v1076_v10, %v1078_v42 }
 0x2a3   : > { %v880_v22 = vsel %vm819_vm3, %v877_v59, %v879_v18  ;;  %v881_v62 = vrot.slane %v770_v19, 1  ;;  %v1168_v25 = vmax.f32 %v961_v37, %v1079_v24 }
 0x2a4   : > { %v965_v23 = vmax.f32 %v768_v54, %v880_v22  ;;  %v701_v26 = vpop.f32.mrb[64].mxu0 }
 0x2a5   : > { %v882_v20 = vsel %vm819_vm3, %v879_v18, %v881_v62  ;;  %v702_v50 = vadd.f32 %v17008_v30, %v701_v26  ;;  %v13735_v31 = vpop.f32.mrb[65].mxu0  ;;  %v1226_v17 = vpack.c.bf16 %v1168_v25, %v1167_v8 }
 0x2a6   : > { %v1080_v33 = vrot.slane %v965_v23, 2  ;;  %v17030_v35 = vmax.f32 %v769_v13, %v882_v20  ;;  %v704_v36 = vpop.f32.mrb[66].mxu0 }
 0x2a7   : > { %v771_v32 = vmax.f32 %v702_v50, 0.0  ;;  %v705_v21 = vadd.f32 %v17008_v30, %v704_v36  ;;  %13438 = vmatprep.subr.bf16.mxu0 %v1226_v17  ;;  %v13736_v39 = vpop.f32.mrb[67].mxu0 }
 0x2a8   : > { %v1082_v40 = vrot.slane %v17030_v35, 2  ;;  %13439 = vmatpush3.bf16.msra.mxu0 %v16945_v15  ;;  %v1081_v37 = vsel %vm1026_vm4, %v1078_v42, %v1080_v33 }
 0x2a9   : > { %v883_v63 = vrot.slane %v771_v32, 1  ;;  %v772_v43 = vmax.f32 %v705_v21, 0.0  ;;  %v1169_v29 = vmax.f32 %v17006_v45, %v1081_v37 }
 0x2aa   : > { %v1083_v47 = vsel %vm1026_vm4, %v1080_v33, %v1082_v40 }
 0x2ab   : > { %v884_v48 = vsel %vm819_vm3, %v881_v62, %v883_v63  ;;  %v885_v49 = vrot.slane %v772_v43, 1  ;;  %v1170_v44 = vmax.f32 %v963_v60, %v1083_v47 }
 0x2ac   : > { %v967_v51 = vmax.f32 %v770_v19, %v884_v48  ;;  %v709_v46 = vpop.f32.mrb[68].mxu0 }
 0x2ad   : > { %v886_v53 = vsel %vm819_vm3, %v883_v63, %v885_v49  ;;  %v710_v34 = vadd.f32 %v17008_v30, %v709_v46  ;;  %v13739_v54 = vpop.f32.mrb[69].mxu0  ;;  %v1227_v15 = vpack.c.bf16 %v1170_v44, %v1169_v29  ;;  %v14369_v46 = vld [vmem:[%s18435_s25 + $0x1c] ss:$12 sps:$4 sm:$0xff]  }
 0x2ae   : > { %v1084_v56 = vrot.slane %v967_v51, 2  ;;  %v17041_v58 = vmax.f32 %v771_v32, %v886_v53  ;;  %v712_v41 = vpop.f32.mrb[70].mxu0 }
 0x2af   : > { %v773_v59 = vmax.f32 %v710_v34, 0.0  ;;  %v713_v45 = vadd.f32 %v17008_v30, %v712_v41  ;;  %13440 = vmatprep.subr.bf16.mxu0 %v1227_v15  ;;  %v13740_v57 = vpop.f32.mrb[71].mxu0 }
 0x2b0   : > { %v1086_v6 = vrot.slane %v17041_v58, 2  ;;  %13441 = vmatpush3.bf16.msra.mxu0 %v16954_v38  ;;  %v1085_v60 = vsel %vm1026_vm4, %v1082_v40, %v1084_v56 }
 0x2b1   : > { %v887_v9 = vrot.slane %v773_v59, 1  ;;  %v774_v27 = vmax.f32 %v713_v45, 0.0  ;;  %v1171_v52 = vmax.f32 %v17019_v11, %v1085_v60 }
 0x2b2   : > { %v1087_v0 = vsel %vm1026_vm4, %v1084_v56, %v1086_v6 }
 0x2b3   : > { %v888_v12 = vsel %vm819_vm3, %v885_v49, %v887_v9  ;;  %v889_v10 = vrot.slane %v774_v27, 1  ;;  %v1172_v13 = vmax.f32 %v965_v23, %v1087_v0  ;;  %v14366_v49 = vld [vmem:[%s18435_s25] ss:$12 sps:$4 sm:$0xff]  }
 0x2b4   : > { %v969_v55 = vmax.f32 %v772_v43, %v888_v12  ;;  %v717_v16 = vpop.f32.mrb[72].mxu0  ;;  %v14372_v12 = vld [vmem:[%s18435_s25 + $0x18] ss:$12 sps:$4 sm:$0xff]  }
 0x2b5   : > { %v890_v14 = vsel %vm819_vm3, %v887_v9, %v889_v10  ;;  %v1228_v42 = vpack.c.bf16 %v1172_v13, %v1171_v52  ;;  %v718_v18 = vadd.f32 %v17008_v30, %v717_v16  ;;  %v13743_v38 = vpop.f32.mrb[73].mxu0 }
 0x2b6   : > { %v1088_v19 = vrot.slane %v969_v55, 2  ;;  %v17052_v8 = vmax.f32 %v773_v59, %v890_v14  ;;  %v720_v24 = vpop.f32.mrb[74].mxu0 }
 0x2b7   : > { %13442 = vmatprep.subr.bf16.mxu0 %v1228_v42  ;;  %v775_v11 = vmax.f32 %v718_v18, 0.0  ;;  %v721_v22 = vadd.f32 %v17008_v30, %v720_v24  ;;  %v13744_v62 = vpop.f32.mrb[75].mxu0 }
 0x2b8   : > { %v1090_v25 = vrot.slane %v17052_v8, 2  ;;  %13443 = vmatpush3.bf16.msra.mxu0 %v16962_v61  ;;  %v1089_v23 = vsel %vm1026_vm4, %v1086_v6, %v1088_v19 }
 0x2b9   : > { %v891_v26 = vrot.slane %v775_v11, 1  ;;  %v776_v20 = vmax.f32 %v721_v22, 0.0  ;;  %v1173_v50 = vmax.f32 %v17030_v35, %v1089_v23 }
 0x2ba   : > { %v1091_v31 = vsel %vm1026_vm4, %v1088_v19, %v1090_v25 }
 0x2bb   : > { %v892_v17 = vsel %vm819_vm3, %v889_v10, %v891_v26  ;;  %v893_v33 = vrot.slane %v776_v20, 1  ;;  %v1174_v36 = vmax.f32 %v967_v51, %v1091_v31 }
 0x2bc   : > { %v971_v32 = vmax.f32 %v774_v27, %v892_v17  ;;  %v725_v21 = vpop.f32.mrb[76].mxu0 }
 0x2bd   : > { %v894_v39 = vsel %vm819_vm3, %v891_v26, %v893_v33  ;;  %v726_v40 = vadd.f32 %v17008_v30, %v725_v21  ;;  %v13747_v37 = vpop.f32.mrb[77].mxu0  ;;  %v1229_v61 = vpack.c.bf16 %v1174_v36, %v1173_v50  ;;  %v14379_v50 = vld [vmem:[%s18435_s25 + $0x4c] ss:$12 sps:$4 sm:$0xff]   ;;  %v18417_v36 = vmov 0  }
 0x2be   : > { %v17063_v63 = vmax.f32 %v775_v11, %v894_v39  ;;  %v728_v43 = vpop.f32.mrb[78].mxu0  ;;  %v1092_v29 = vrot.slane %v971_v32, 2  ;;  %v14382_v37 = vld [vmem:[%s18435_s25 + $0x64] ss:$12 sps:$4 sm:$0xff]  }
 0x2bf   : > { %v777_v47 = vmax.f32 %v726_v40, 0.0  ;;  %13444 = vmatprep.subr.bf16.mxu0 %v1229_v61  ;;  %v729_v35 = vadd.f32 %v17008_v30, %v728_v43  ;;  %v13748_v48 = vpop.f32.mrb[79].mxu0  ;;  %v14381_v40 = vld [vmem:[%s18435_s25 + $0x48] ss:$12 sps:$4 sm:$0xff]   ;;  %v14373_v61 = vld [vmem:[%s18435_s25 + $0x20] ss:$12 sps:$4 sm:$0xff]  }
 0x2c0   : > { %13445 = vmatpush3.bf16.msra.mxu0 %v16973_v28  ;;  %v1093_v44 = vsel %vm1026_vm4, %v1090_v25, %v1092_v29  ;;  %v1094_v51 = vrot.slane %v17063_v63, 2  ;;  %v14398_v43 = vld [vmem:[#allocation6] sm:$0xff]  }
 0x2c1   : > { %v895_v53 = vrot.slane %v777_v47, 1  ;;  %v778_v34 = vmax.f32 %v729_v35, 0.0  ;;  %v1175_v54 = vmax.f32 %v17041_v58, %v1093_v44  ;;  %13777 = vmatprep.subr.bf16.mxu0 %v18419_v7  ;;  %v14378_v35 = vld [vmem:[%s18435_s25 + $0x50] ss:$12 sps:$4 sm:$0xff]   ;;  %v14385_v48 = vld [vmem:[%s18435_s25 + $0x68] ss:$12 sps:$4 sm:$0xff]  }
 0x2c2   : > { %v1095_v15 = vsel %vm1026_vm4, %v1092_v29, %v1094_v51  ;;  %v14384_v29 = vld [vmem:[%s18435_s25 + $0x60] ss:$12 sps:$4 sm:$0xff]  }
 0x2c3   : > { %v896_v56 = vsel %vm819_vm3, %v893_v33, %v895_v53  ;;  %v977_v41 = vrot.slane %v778_v34, 1  ;;  %v1176_v28 = vmax.f32 %v969_v55, %v1095_v15  ;;  %1418 = vmatmul.mubr.bf16.vlgmr.msra.gmra.mrb[84].mxu0 %v14366_v49  ;;  %v974_v11 = vmax.f32 %v777_v47, %v895_v53  ;;  %v14389_v49 = vld [vmem:[%s18435_s25 + $0x78] ss:$12 sps:$4 sm:$0xff]   ;;  %v14390_v44 = vld [vmem:[%s18435_s25 + $0x94] ss:$12 sps:$4 sm:$0xff]  }
 0x2c4   : > { %v973_v59 = vmax.f32 %v776_v20, %v896_v56  ;;  %v733_v45 = vpop.f32.mrb[80].mxu0  ;;  %1425 = vmatprep.mubr.bf16.mxu0 %v14369_v46  ;;  %v14393_v46 = vld [vmem:[%s18435_s25 + $0x98] ss:$12 sps:$4 sm:$0xff]   ;;  %v14397_v15 = vld [vmem:[%s18435_s25 + $0xa8] ss:$12 sps:$4 sm:$0x1f]  }
 0x2c5   : > { %v978_v57 = vsel %vm819_vm3, %v895_v53, %v977_v41  ;;  %v734_v6 = vadd.f32 %v17008_v30, %v733_v45  ;;  %v1230_v60 = vpack.c.bf16 %v1176_v28, %v1175_v54  ;;  %v13751_v9 = vpop.f32.mrb[81].mxu0  ;;  %v14374_v30 = vld [vmem:[%s18435_s25 + $0x34] ss:$12 sps:$4 sm:$0xff]   ;;  %v14392_v53 = vld [vmem:[%s18435_s25 + $0x90] ss:$12 sps:$4 sm:$0xff]  }
 0x2c6   : > { %v984_v27 = vmax.f32 %v777_v47, %v978_v57  ;;  %v1096_v58 = vrot.slane %v973_v59, 2  ;;  %v736_v52 = vpop.f32.mrb[82].mxu0  ;;  %v14387_v47 = vld [vmem:[%s18435_s25 + $0x7c] ss:$12 sps:$4 sm:$0xff]   ;;  %v14401_v28 = vld [vmem:[#allocation6 + $0x10] sm:$0xff]  }
 0x2c7   : > { %v779_v0 = vmax.f32 %v734_v6, 0.0  ;;  %13753 = vmatprep.subr.bf16.mxu1 %v1230_v60  ;;  %v13752_v10 = vpop.f32.mrb[83].mxu0  ;;  %v14394_v54 = vld [vmem:[%s18435_s25 + $0xb0] ss:$12 sps:$4 sm:$0x1f]  }
 0x2c8   : > { %v1098_v13 = vrot.slane %v984_v27, 2  ;;  %13754 = vmatpush3.bf16.msra.mxu1 %v1230_v60  ;;  %v1097_v55 = vsel %vm1026_vm4, %v1094_v51, %v1096_v58  ;;  %v14386_v51 = vld [vmem:[%s18435_s25 + $0x80] ss:$12 sps:$4 sm:$0xff]   ;;  %v14404_v57 = vld [vmem:[#allocation6 + $0x30] sm:$0xff]  }
 0x2c9   : > { %v979_v16 = vrot.slane %v779_v0, 1  ;;  %v1177_v14 = vmax.f32 %v17052_v8, %v1097_v55  ;;  %v14376_v8 = vld [vmem:[%s18435_s25 + $0x30] ss:$12 sps:$4 sm:$0xff]  }
 0x2ca   : > { %v1099_v42 = vsel %vm1026_vm4, %v1096_v58, %v1098_v13  ;;  %v14399_v56 = vld [vmem:[#allocation6 + $0x8] sm:$0xff]   ;;  %v14403_v45 = vld [vmem:[#allocation6 + $0x18] sm:$0xff]  }
 0x2cb   : > { %v980_v18 = vsel %vm819_vm3, %v977_v41, %v979_v16  ;;  %v986_v38 = vmax.f32 %v779_v0, %v979_v16  ;;  %v1178_v19 = vmax.f32 %v971_v32, %v1099_v42  ;;  %1426 = vmatmul.mubr.bf16.gmra.mrb[88].mxu0 %v14372_v12  ;;  %v1381_v32 = vsel %vm1379_vm6, 65535, %v18417_v36  ;;  %v14400_v41 = vld [vmem:[#allocation6 + $0x20] sm:$0xff]   ;;  %v14405_v6 = vld [vmem:[#allocation6 + $0x38] sm:$0xff]  }
 0x2cc   : > { %v985_v24 = vmax.f32 %v778_v34, %v980_v18  ;;  %1433 = vmatprep.mubr.bf16.mxu0 %v14374_v30  ;;  %v14395_v34 = vld [vmem:[%s18435_s25 + $0xac] ss:$12 sps:$4 sm:$0x1f]   ;;  %13778 = vmatpush3.bf16.msra.mxu0 %v14400_v41 }
 0x2cd   : > { %v1102_v22 = vrot.slane %v986_v38, 2  ;;  %v1231_v62 = vpack.c.bf16 %v1178_v19, %v1177_v14  ;;  %13779 = vmatprep.subr.bf16.mxu0 %v18419_v7  ;;  %v14407_v41 = vld [vmem:[#allocation6 + $0x68] sm:$0xff]  }
 0x2ce   : > { %v1100_v25 = vrot.slane %v985_v24, 2 }
 0x2cf   : > { %v1181_v23 = vmax.f32 %v974_v11, %v1102_v22  ;;  %13755 = vmatprep.subr.bf16.mxu1 %v1231_v62 }
 0x2d0   : > { %13756 = vmatpush3.bf16.msra.mxu1 %v1231_v62  ;;  %v1101_v26 = vsel %vm1026_vm4, %v1098_v13, %v1100_v25  ;;  %v1103_v20 = vsel %vm1026_vm4, %v1100_v25, %v1102_v22 }
 0x2d1   : > { %v1179_v31 = vmax.f32 %v17063_v63, %v1101_v26  ;;  %v1180_v17 = vmax.f32 %v973_v59, %v1103_v20  ;;  %v1233_v33 = vpack.c.bf16 %v1181_v23, %v1181_v23  ;;  %v14377_v63 = vld [vmem:[%s18435_s25 + $0x38] ss:$12 sps:$4 sm:$0xff]   ;;  %v14402_v59 = vld [vmem:[#allocation6 + $0x28] sm:$0xff]  }
 0x2d2   : > { %13780 = vmatpush3.bf16.msra.mxu0 %v14402_v59 }
 0x2d3   : > { %v1232_v21 = vpack.c.bf16 %v1180_v17, %v1179_v31  ;;  %1434 = vmatmul.mubr.bf16.gmra.mrb[92].mxu0 %v14376_v8  ;;  %v1383_v39 = vand.u32 %v1381_v32, %v1233_v33  ;;  %13781 = vmatprep.subr.bf16.mxu0 %v18419_v7 }
 0x2d4   : > { %1441 = vmatprep.mubr.bf16.mxu0 %v14379_v50 }
 0x2d5   : > { %13757 = vmatprep.subr.bf16.mxu1 %v1232_v21 }
 0x2d6   : > { %13758 = vmatpush3.bf16.msra.mxu1 %v1232_v21  ;;  %13782 = vmatpush3.bf16.msra.mxu0 %v14404_v57 }
 0x2d7   : > { %13759 = vmatprep.subr.bf16.mxu1 %v1383_v39  ;;  %13783 = vmatprep.subr.bf16.mxu0 %v18419_v7 }
 0x2da   : > { %13760 = vmatpush3.bf16.msra.mxu1 %v1383_v39  ;;  %13784 = vmatpush3.bf16.msra.mxu0 %v14405_v6 }
 0x2db   : > { %1442 = vmatmul.mubr.bf16.gmra.mrb[96].mxu0 %v14381_v40  ;;  %13813 = vmatprep.subr.bf16.mxu1 %v18419_v7  ;;  %v14406_v40 = vld [vmem:[#allocation6 + $0x60] sm:$0xff]  }
 0x2dc   : > { %1449 = vmatprep.mubr.bf16.mxu0 %v14382_v37  ;;  %13849 = vmatprep.subr.bf16.mxu0 %v18419_v7 }
 0x2dd   : > { %13762 = vmatmul.mubr.msk.bf16.vlgmr.msra.gmra.mrb[0].mxu1 %vm1354_vm5, %v14373_v61 }
 0x2de   : > { %13765 = vmatprep.mubr.msk.bf16.mxu1 %vm1354_vm5, %v14377_v63  ;;  %13814 = vmatpush3.bf16.msra.mxu1 %v14398_v43 }
 0x2df   : > { %13815 = vmatprep.subr.bf16.mxu1 %v18419_v7 }
 0x2e2   : > { %13816 = vmatpush3.bf16.msra.mxu1 %v14399_v56 }
 0x2e3   : > { %1450 = vmatmul.mubr.bf16.gmra.mrb[100].mxu0 %v14384_v29  ;;  %13817 = vmatprep.subr.bf16.mxu1 %v18419_v7 }
 0x2e4   : > { %1457 = vmatprep.mubr.bf16.mxu0 %v14387_v47 }
 0x2e5   : > { %13766 = vmatmul.mubr.msk.bf16.gmra.mrb[4].mxu1 %vm1354_vm5, %v14378_v35 }
 0x2e6   : > { %13769 = vmatprep.mubr.msk.bf16.mxu1 %vm1354_vm5, %v14385_v48  ;;  %13818 = vmatpush3.bf16.msra.mxu1 %v14401_v28 }
 0x2e7   : > { %13819 = vmatprep.subr.bf16.mxu1 %v18419_v7 }
 0x2ea   : > { %13820 = vmatpush3.bf16.msra.mxu1 %v14403_v45 }
 0x2eb   : > { %1458 = vmatmul.mubr.bf16.gmra.mrb[104].mxu0 %v14389_v49  ;;  %13885 = vmatprep.subr.bf16.mxu1 %v18419_v7 }
 0x2ec   : > { %1465 = vmatprep.mubr.bf16.mxu0 %v14390_v44 }
 0x2ed   : > { %13770 = vmatmul.mubr.msk.bf16.gmra.mrb[8].mxu1 %vm1354_vm5, %v14386_v51 }
 0x2ee   : > { %13773 = vmatprep.mubr.msk.bf16.mxu1 %vm1354_vm5, %v14393_v46 }
 0x2f3   : > { %1466 = vmatmul.mubr.bf16.gmra.mrb[108].mxu0 %v14392_v53 }
 0x2f4   : > { %1473 = vmatprep.mubr.bf16.mxu0 %v14395_v34 }
 0x2f5   : > { %13774 = vmatmul.mubr.msk.bf16.gmra.mrb[12].mxu1 %vm1354_vm5, %v14394_v54  ;;  %vm8722_vm5 = vsmask.f32 3328 }
 0x2f6   : > { %13821 = vmatprep.mubr.msk.bf16.mxu1 %vm16394_vm0, %v18419_v7 }
 0x2fb   : > { %1474 = vmatmul.mubr.bf16.gmra.mrb[112].mxu0 %v14397_v15 }
 0x2fc   : > { %13785 = vmatprep.mubr.msk.bf16.mxu0 %vm16394_vm0, %v18419_v7 }
 0x396   : > { %v13446_v60 = vpop.f32.mrb[84].mxu0 }
 0x397   : > { %v13447_v9 = vpop.f32.mrb[85].mxu0 }
 0x398   : > { %v13448_v27 = vadd.f32 %v13447_v9, %v13446_v60  ;;  %v13449_v58 = vpop.f32.mrb[86].mxu0 }
 0x399   : > { %v13450_v52 = vpop.f32.mrb[87].mxu0 }
 0x39a   : > { %v13451_v0 = vadd.f32 %v13450_v52, %v13449_v58 }
 0x39e   : > { %v13452_v12 = vpop.f32.mrb[88].mxu0 }
 0x39f   : > { %v13453_v10 = vpop.f32.mrb[89].mxu0 }
 0x3a0   : > { %v13454_v13 = vadd.f32 %v13453_v10, %v13452_v12  ;;  %v13455_v55 = vpop.f32.mrb[90].mxu0 }
 0x3a1   : > { %v13456_v30 = vpop.f32.mrb[91].mxu0 }
 0x3a2   : > { %v13457_v16 = vadd.f32 %v13456_v30, %v13455_v55 }
 0x3a6   : > { %v13458_v14 = vpop.f32.mrb[92].mxu0 }
 0x3a7   : > { %v13459_v42 = vpop.f32.mrb[93].mxu0 }
 0x3a8   : > { %v13460_v18 = vadd.f32 %v13459_v42, %v13458_v14  ;;  %v13461_v38 = vpop.f32.mrb[94].mxu0  ;;  %v14408_v14 = vld [vmem:[#allocation6 + $0x40] sm:$0xff]  }
 0x3a9   : > { %v13462_v19 = vpop.f32.mrb[95].mxu0 }
 0x3aa   : > { %v13463_v24 = vadd.f32 %v13462_v19, %v13461_v38 }
 0x3ae   : > { %v13464_v11 = vpop.f32.mrb[96].mxu0 }
 0x3af   : > { %v13465_v22 = vpop.f32.mrb[97].mxu0 }
 0x3b0   : > { %v13763_v62 = vpop.f32.mrb[0].mxu1  ;;  %v13466_v25 = vadd.f32 %v13465_v22, %v13464_v11  ;;  %v13467_v23 = vpop.f32.mrb[98].mxu0  ;;  %v14409_v22 = vld [vmem:[#allocation6 + $0x70] sm:$0xff]  }
 0x3b1   : > { %v1525_v8 = vadd.f32 %v13763_v62, %v13454_v13  ;;  %v1516_v26 = vpop.f32.mrb[1].mxu1  ;;  %v13468_v20 = vpop.f32.mrb[99].mxu0 }
 0x3b2   : > { %v1517_v50 = vadd.f32 %v13448_v27, %v1516_v26  ;;  %v13764_v31 = vpop.f32.mrb[2].mxu1  ;;  %v13469_v17 = vadd.f32 %v13468_v20, %v13467_v23 }
 0x3b3   : > { %v1528_v33 = vadd.f32 %v13764_v31, %v13457_v16  ;;  %v1519_v32 = vpop.f32.mrb[3].mxu1 }
 0x3b4   : > { %v1520_v21 = vadd.f32 %v13451_v0, %v1519_v32 }
 0x3b5   : > { %v17170_v39 = vpack.c.bf16 %v1528_v33, %v1525_v8 }
 0x3b6   : > { %v1579_v37 = vpack.c.bf16 %v1520_v21, %v1517_v50  ;;  %v13470_v61 = vpop.f32.mrb[100].mxu0 }
 0x3b7   : > { %v17173_v63 = vshll.u32 %v17170_v39, 16  ;;  %v17176_v43 = vshrl.u32 %v17170_v39, 16  ;;  %v13471_v29 = vpop.f32.mrb[101].mxu0  ;;  %v2107_v47 = vrot.slane %v17170_v39, 5  ;;  %v1938_v35 = vrot.slane %v17170_v39, 1 }
 0x3b8   : > { %13822 = vmatmul.mubr.msk.bf16.vlgmr.msra.gmra.mrb[16].mxu1 %vm1684_vm7, %v1579_v37  ;;  %v13767_v48 = vpop.f32.mrb[4].mxu1  ;;  %v1606_v49 = vshrl.u32 %v1579_v37, 16  ;;  %v1608_v44 = vshll.u32 %v1579_v37, 16  ;;  %v17181_v51 = vadd.f32 %v13471_v29, %v13470_v61  ;;  %v13473_v46 = vpop.f32.mrb[102].mxu0  ;;  %v2106_v53 = vrot.slane %v1579_v37, 5 }
 0x3b9   : > { %v1532_v34 = vpop.f32.mrb[5].mxu1  ;;  %v1615_v54 = vrot.slane %v17173_v63, 1  ;;  %13825 = vmatprep.mubr.msk.bf16.mxu1 %vm16394_vm0, %v18419_v7  ;;  %v1541_v15 = vadd.f32 %v13767_v48, %v13466_v25  ;;  %v13474_v56 = vpop.f32.mrb[103].mxu0  ;;  %13886 = vmatpush3.bf16.msra.mxu1 %v14406_v40  ;;  %v1937_v28 = vrot.slane %v1579_v37, 1  ;;  %v2458_v59 = vrot.slane %v1579_v37, 6  ;;  %v14410_v48 = vld [vmem:[#allocation6 + $0x48] sm:$0xff]  }
 0x3ba   : > { %v1533_v45 = vadd.f32 %v13460_v18, %v1532_v34  ;;  %v13768_v57 = vpop.f32.mrb[6].mxu1  ;;  %v1610_v6 = vrot.slane %v1608_v44, 1  ;;  %v17186_v60 = vadd.f32 %v13474_v56, %v13473_v46  ;;  %13887 = vmatprep.subr.bf16.mxu1 %v18419_v7  ;;  %v17192_v9 = vsel %vm2105_vm9, %v2106_v53, %v2107_v47 }
 0x3bb   : > { %v1535_v27 = vpop.f32.mrb[7].mxu1  ;;  %v1544_v58 = vadd.f32 %v13768_v57, %v13469_v17  ;;  %v1619_v52 = vor.u32 %v17176_v43, %v1615_v54  ;;  %v17198_v0 = vsel %vm819_vm3, %v1937_v28, %v1938_v35  ;;  %v2459_v12 = vrot.slane %v17170_v39, 6 }
 0x3bc   : > { %v1536_v10 = vadd.f32 %v13463_v24, %v1535_v27  ;;  %v1611_v13 = vor.u32 %v1610_v6, %v1606_v49  ;;  %v2275_v55 = vrot.slane %v1606_v49, 5  ;;  %v2276_v30 = vrot.slane %v1608_v44, 6 }
 0x3bd   : > { %v17201_v16 = vpack.c.bf16 %v1544_v58, %v1541_v15  ;;  %13888 = vmatpush3.bf16.msra.mxu1 %v14407_v41  ;;  %v17206_v42 = vsel %vm2457_vm10, %v2458_v59, %v2459_v12  ;;  %v2278_v18 = vrot.slane %v17176_v43, 5  ;;  %v2279_v38 = vrot.slane %v17173_v63, 6  ;;  %v14411_v41 = vld [vmem:[#allocation6 + $0x78] sm:$0xff]  }
 0x3be   : > { %v17210_v19 = vpack.c.bf16 %v1536_v10, %v1533_v45  ;;  %v1616_v24 = vsel %vm1604_vm8, %v1611_v13, %v1615_v54  ;;  %v13476_v11 = vpop.f32.mrb[104].mxu0  ;;  %13889 = vmatprep.subr.bf16.mxu1 %v18419_v7  ;;  %v2277_v62 = vor.u32 %v2276_v30, %v2275_v55 }
 0x3bf   : > { %13786 = vmatmul.mubr.msk.bf16.vlgmr.msra.gmra.mrb[116].mxu0 %vm1684_vm7, %v1616_v24  ;;  %v17217_v23 = vshll.u32 %v17201_v16, 16  ;;  %v13477_v8 = vpop.f32.mrb[105].mxu0  ;;  %v17220_v26 = vshrl.u32 %v17201_v16, 16  ;;  %v2111_v20 = vrot.slane %v17201_v16, 5  ;;  %v1942_v50 = vrot.slane %v17201_v16, 1 }
 0x3c0   : > { %13826 = vmatmul.mubr.msk.bf16.gmra.mrb[20].mxu1 %vm1684_vm7, %v17170_v39  ;;  %13789 = vmatprep.mubr.msk.bf16.mxu0 %vm16394_vm0, %v18419_v7  ;;  %v17229_v31 = vshll.u32 %v17210_v19, 16  ;;  %v13771_v17 = vpop.f32.mrb[8].mxu1  ;;  %v17232_v33 = vshrl.u32 %v17210_v19, 16  ;;  %v13478_v32 = vadd.f32 %v13477_v8, %v13476_v11  ;;  %v13479_v21 = vpop.f32.mrb[106].mxu0  ;;  %v2109_v40 = vrot.slane %v17210_v19, 5 }
 0x3c1   : > { %13829 = vmatprep.mubr.msk.bf16.mxu1 %vm16394_vm0, %v18419_v7  ;;  %v1548_v37 = vpop.f32.mrb[9].mxu1  ;;  %v1631_v61 = vrot.slane %v17217_v23, 1  ;;  %v13480_v29 = vpop.f32.mrb[107].mxu0  ;;  %13850 = vmatpush3.bf16.msra.mxu0 %v14408_v14  ;;  %v1940_v49 = vrot.slane %v17210_v19, 1  ;;  %v17239_v44 = vor.u32 %v2279_v38, %v2278_v18  ;;  %v2461_v46 = vrot.slane %v17210_v19, 6 }
 0x3c2   : > { %v1623_v53 = vrot.slane %v17229_v31, 1  ;;  %v1549_v34 = vadd.f32 %v17181_v51, %v1548_v37  ;;  %v13772_v54 = vpop.f32.mrb[10].mxu1  ;;  %v1557_v15 = vadd.f32 %v13771_v17, %v13478_v32  ;;  %v13481_v56 = vadd.f32 %v13480_v29, %v13479_v21  ;;  %13890 = vmatpush3.bf16.msra.mxu1 %v14409_v22  ;;  %13851 = vmatprep.subr.bf16.mxu0 %v18419_v7 }
 0x3c3   : > { %v1551_v28 = vpop.f32.mrb[11].mxu1  ;;  %v1635_v59 = vor.u32 %v17220_v26, %v1631_v61  ;;  %13891 = vmatprep.subr.bf16.mxu1 %v18419_v7  ;;  %v17250_v45 = vsel %vm2105_vm9, %v2107_v47, %v2109_v40  ;;  %v17255_v51 = vsel %vm819_vm3, %v1938_v35, %v1940_v49  ;;  %v17260_v57 = vsel %vm2105_vm9, %v2109_v40, %v2111_v20  ;;  %v14412_v47 = vld [vmem:[#allocation6 + $0x50] sm:$0xff]  }
 0x3c4   : > { %v1624_v6 = vsel %vm1604_vm8, %v1619_v52, %v1623_v53  ;;  %v1552_v27 = vadd.f32 %v17186_v60, %v1551_v28  ;;  %v1627_v58 = vor.u32 %v17232_v33, %v1623_v53  ;;  %v1560_v10 = vadd.f32 %v13772_v54, %v13481_v56 }
 0x3c5   : > { %13852 = vmatpush3.bf16.msra.mxu0 %v14410_v48  ;;  %v17268_v13 = vsel %vm819_vm3, %v1940_v49, %v1942_v50  ;;  %v17272_v35 = vsel %vm2274_vm11, %v2277_v62, %v17239_v44  ;;  %v17279_v60 = vsel %vm2457_vm10, %v2459_v12, %v2461_v46  ;;  %v2282_v52 = vrot.slane %v17232_v33, 5 }
 0x3c6   : > { %v17282_v55 = vpack.c.bf16 %v1552_v27, %v1549_v34  ;;  %v1632_v30 = vsel %vm1604_vm8, %v1627_v58, %v1631_v61  ;;  %v17285_v14 = vpack.c.bf16 %v1560_v10, %v1557_v15  ;;  %v13482_v18 = vpop.f32.mrb[108].mxu0  ;;  %13892 = vmatpush3.bf16.msra.mxu1 %v14411_v41  ;;  %13853 = vmatprep.subr.bf16.mxu0 %v18419_v7  ;;  %v2283_v38 = vrot.slane %v17229_v31, 6  ;;  %v14413_v61 = vld [vmem:[#allocation6 + $0x58] sm:$0xff]  }
 0x3c7   : > { %13790 = vmatmul.mubr.msk.bf16.gmra.mrb[120].mxu0 %vm1684_vm7, %v1624_v6  ;;  %v13483_v24 = vpop.f32.mrb[109].mxu0  ;;  %13957 = vmatprep.subr.bf16.mxu1 %v18419_v7  ;;  %v2463_v12 = vrot.slane %v17201_v16, 6  ;;  %v2286_v11 = vrot.slane %v17220_v26, 5  ;;  %v2287_v22 = vrot.slane %v17217_v23, 6 }
 0x3c8   : > { %13830 = vmatmul.mubr.msk.bf16.gmra.mrb[24].mxu1 %vm1684_vm7, %v17210_v19  ;;  %13793 = vmatprep.mubr.msk.bf16.mxu0 %vm16394_vm0, %v18419_v7  ;;  %v17300_v8 = vshll.u32 %v17282_v55, 16  ;;  %v13484_v17 = vadd.f32 %v13483_v24, %v13482_v18  ;;  %v13485_v32 = vpop.f32.mrb[110].mxu0  ;;  %v13775_v21 = vpop.f32.mrb[12].mxu1  ;;  %v17303_v40 = vshrl.u32 %v17282_v55, 16  ;;  %v17306_v37 = vshll.u32 %v17285_v14, 16 }
 0x3c9   : > { %13833 = vmatprep.mubr.msk.bf16.mxu1 %vm16394_vm0, %v18419_v7  ;;  %v13486_v29 = vpop.f32.mrb[111].mxu0  ;;  %v1564_v48 = vpop.f32.mrb[13].mxu1  ;;  %v17311_v49 = vshrl.u32 %v17285_v14, 16  ;;  %13854 = vmatpush3.bf16.msra.mxu0 %v14412_v47  ;;  %v2113_v53 = vrot.slane %v17282_v55, 5  ;;  %v1944_v34 = vrot.slane %v17282_v55, 1  ;;  %v2115_v54 = vrot.slane %v17285_v14, 5 }
 0x3ca   : > { %v1639_v15 = vrot.slane %v17300_v8, 1  ;;  %v13487_v56 = vadd.f32 %v13486_v29, %v13485_v32  ;;  %v1565_v41 = vadd.f32 %v13484_v17, %v1564_v48  ;;  %v13776_v28 = vpop.f32.mrb[14].mxu1  ;;  %v1647_v6 = vrot.slane %v17306_v37, 1  ;;  %13855 = vmatprep.subr.bf16.mxu0 %v18419_v7 }
 0x3cb   : > { %v1567_v27 = vpop.f32.mrb[15].mxu1  ;;  %v17322_v58 = vsel %vm2105_vm9, %v2111_v20, %v2113_v53  ;;  %v17327_v10 = vsel %vm819_vm3, %v1942_v50, %v1944_v34  ;;  %v17330_v47 = vsel %vm2105_vm9, %v2113_v53, %v2115_v54  ;;  %v1946_v18 = vrot.slane %v17285_v14, 1 }
 0x3cc   : > { %v1640_v24 = vsel %vm1604_vm8, %v1635_v59, %v1639_v15  ;;  %v1568_v17 = vadd.f32 %v13487_v56, %v1567_v27  ;;  %v1643_v32 = vor.u32 %v17303_v40, %v1639_v15  ;;  %v1651_v29 = vor.u32 %v17311_v49, %v1647_v6 }
 0x3cd   : > { %13856 = vmatpush3.bf16.msra.mxu0 %v14413_v61  ;;  %v17337_v20 = vsel %vm819_vm3, %v1944_v34, %v1946_v18  ;;  %v2284_v48 = vor.u32 %v2283_v38, %v2282_v52  ;;  %v17344_v50 = vsel %vm2457_vm10, %v2461_v46, %v2463_v12  ;;  %v2288_v53 = vor.u32 %v2287_v22, %v2286_v11 }
 0x3ce   : > { %v17346_v36 = vpack.c.bf16 %v1568_v17, %v1565_v41  ;;  %v17349_v59 = vsel %vm1604_vm8, %v1643_v32, %v1647_v6  ;;  %v13488_v15 = vpop.f32.mrb[112].mxu0  ;;  %13921 = vmatprep.subr.bf16.mxu0 %v18419_v7  ;;  %v2465_v61 = vrot.slane %v17282_v55, 6  ;;  %v2290_v52 = vrot.slane %v17303_v40, 5 }
 0x3cf   : > { %13794 = vmatmul.mubr.msk.bf16.gmra.mrb[124].mxu0 %vm1684_vm7, %v1632_v30  ;;  %v13489_v38 = vpop.f32.mrb[113].mxu0  ;;  %v17357_v46 = vsel %vm2274_vm11, %v17239_v44, %v2284_v48  ;;  %v17360_v11 = vsel %vm2274_vm11, %v2284_v48, %v2288_v53  ;;  %v2291_v22 = vrot.slane %v17300_v8, 6  ;;  %v2467_v34 = vrot.slane %v17285_v14, 6 }
 0x3d0   : > { %13834 = vmatmul.mubr.msk.bf16.gmra.mrb[28].mxu1 %vm1684_vm7, %v17201_v16  ;;  %13797 = vmatprep.mubr.msk.bf16.mxu0 %vm16394_vm0, %v18419_v7  ;;  %v17369_v30 = vshll.u32 %v17346_v36, 16  ;;  %v17372_v56 = vshrl.u32 %v17346_v36, 16  ;;  %v18421_v44 = vrot.slane %v17346_v36, 5  ;;  %v13491_v6 = vpop.f32.mrb[114].mxu0  ;;  %v13490_v27 = vadd.f32 %v13489_v38, %v13488_v15 }
 0x3d1   : > { %13837 = vmatprep.mubr.msk.bf16.mxu1 %vm16394_vm0, %v18419_v7  ;;  %v13492_v17 = vpop.f32.mrb[115].mxu0  ;;  %v17381_v32 = vsel %vm2457_vm10, %v2463_v12, %v2465_v61  ;;  %v2292_v48 = vor.u32 %v2291_v22, %v2290_v52  ;;  %v17384_v62 = vsel %vm2457_vm10, %v2465_v61, %v2467_v34  ;;  %v18436_v7 = vrot.slane %v17346_v36, 1 }
 0x3d2   : > { %v1655_v25 = vrot.slane %v17369_v30, 1  ;;  %v17390_v41 = vsel %vm2105_vm9, %v2115_v54, %v18421_v44  ;;  %v13493_v38 = vadd.f32 %v13492_v17, %v13491_v6  ;;  %v1573_v2 = vadd.f32 %v13775_v21, %v13490_v27 }
 0x3d3   : > { %v17395_v15 = vsel %vm819_vm3, %v1946_v18, %v18436_v7  ;;  %v17398_v12 = vsel %vm2274_vm11, %v2288_v53, %v2292_v48  ;;  %v2294_v61 = vrot.slane %v17311_v49, 5  ;;  %v2295_v52 = vrot.slane %v17306_v37, 6 }
 0x3d4   : > { %v17405_v22 = vsel %vm1604_vm8, %v1651_v29, %v1655_v25  ;;  %v1576_v54 = vadd.f32 %v13776_v28, %v13493_v38  ;;  %v18422_v44 = vrot.slane %v17346_v36, 6  ;;  %v2298_v18 = vrot.slane %v17372_v56, 5 }
 0x3d5   : > { %v2296_v7 = vor.u32 %v2295_v52, %v2294_v61  ;;  %v2299_v21 = vrot.slane %v17369_v30, 6  ;;  %v18437_v53 = vrot.slane %v17176_v43, 2  ;;  %v18438_v6 = vrot.slane %v17173_v63, 3 }
 0x3d6   : > { %v17414_v17 = vpack.c.bf16 %v1576_v54, %v1573_v2  ;;  %v17419_v29 = vsel %vm2457_vm10, %v2467_v34, %v18422_v44  ;;  %v2800_v28 = vrot.slane %v17232_v33, 2  ;;  %v2801_v38 = vrot.slane %v17229_v31, 3 }
 0x3d7   : > { %v2799_v27 = vor.u32 %v18438_v6, %v18437_v53  ;;  %13798 = vmatmul.mubr.msk.bf16.gmra.mrb[128].mxu0 %vm1684_vm7, %v1640_v24  ;;  %v17425_v61 = vsel %vm2274_vm11, %v2292_v48, %v2296_v7  ;;  %v17427_v43 = vor.u32 %v2299_v21, %v2298_v18  ;;  %v2628_v2 = vrot.slane %v17170_v39, 2 }
 0x3d8   : > { %v2629_v63 = vrot.slane %v17210_v19, 2  ;;  %13838 = vmatmul.mubr.msk.bf16.gmra.mrb[32].mxu1 %vm1684_vm7, %v17282_v55  ;;  %v18439_v34 = vmov 0.0   ;;  %v2802_v33 = vor.u32 %v2801_v38, %v2800_v28  ;;  %v2804_v31 = vrot.slane %v17220_v26, 2 }
 0x3d9   : > { %13801 = vmatprep.mubr.msk.bf16.mxu0 %vm16394_vm0, %v18439_v34  ;;  %v2805_v24 = vrot.slane %v17217_v23, 3  ;;  %v2631_v48 = vrot.slane %v17201_v16, 2  ;;  %13841 = vmatprep.mubr.msk.bf16.mxu1 %vm16394_vm0, %v18439_v34  ;;  %v17442_v52 = vsel %vm2274_vm11, %v2296_v7, %v17427_v43  ;;  %v2808_v18 = vrot.slane %v17303_v40, 2 }
 0x3da   : > { %v17445_v54 = vsel %vm1026_vm4, %v2628_v2, %v2629_v63  ;;  %v2809_v21 = vrot.slane %v17300_v8, 3  ;;  %v17450_v26 = vsel %vm2796_vm12, %v2799_v27, %v2802_v33  ;;  %v2633_v6 = vrot.slane %v17282_v55, 2 }
 0x3db   : > { %v2806_v23 = vor.u32 %v2805_v24, %v2804_v31  ;;  %v17453_v53 = vsel %vm1026_vm4, %v2629_v63, %v2631_v48  ;;  %v2812_v7 = vrot.slane %v17311_v49, 2  ;;  %v2813_v38 = vrot.slane %v17306_v37, 3 }
 0x3dc   : > { %v2810_v28 = vor.u32 %v2809_v21, %v2808_v18  ;;  %v2635_v2 = vrot.slane %v17285_v14, 2  ;;  %v17463_v8 = vsel %vm1026_vm4, %v2631_v48, %v2633_v6  ;;  %v2816_v27 = vrot.slane %v17372_v56, 2 }
 0x3dd   : > { %v17460_v40 = vsel %vm2796_vm12, %v2802_v33, %v2806_v23  ;;  %v2817_v63 = vrot.slane %v17369_v30, 3  ;;  %v2814_v24 = vor.u32 %v2813_v38, %v2812_v7  ;;  %v2637_v37 = vrot.slane %v17346_v36, 2  ;;  %v14416_v30 = vld [vmem:[#allocation6 + $0x80] sm:$0xff]  }
 0x3de   : > { %v17468_v31 = vsel %vm2796_vm12, %v2806_v23, %v2810_v28  ;;  %v17471_v49 = vsel %vm1026_vm4, %v2633_v6, %v2635_v2  ;;  %v2821_v33 = vshrl.u32 %v17414_v17, 16  ;;  %v2824_v21 = vshll.u32 %v17414_v17, 16 }
 0x3df   : > { %v2818_v18 = vor.u32 %v2817_v63, %v2816_v27  ;;  %v18423_v48 = vrot.slane %v17414_v17, 2  ;;  %13802 = vmatmul.mubr.msk.bf16.gmra.mrb[132].mxu0 %vm1684_vm7, %v17349_v59  ;;  %v17480_v44 = vsel %vm2796_vm12, %v2810_v28, %v2814_v24  ;;  %v17483_v23 = vsel %vm1026_vm4, %v2635_v2, %v2637_v37 }
 0x3e0   : > { %v2985_v6 = vrot.slane %v17170_v39, 3  ;;  %v2986_v7 = vrot.slane %v17210_v19, 3  ;;  %13842 = vmatmul.mubr.msk.bf16.gmra.mrb[36].mxu1 %vm1684_vm7, %v17285_v14  ;;  %13805 = vmatprep.mubr.msk.bf16.mxu0 %vm16394_vm0, %v18439_v34  ;;  %v2823_v59 = vrot.slane %v2821_v33, 2  ;;  %v2826_v27 = vrot.slane %v2824_v21, 3 }
 0x3e1   : > { %v17492_v38 = vsel %vm2796_vm12, %v2814_v24, %v2818_v18  ;;  %v17497_v28 = vsel %vm1026_vm4, %v2637_v37, %v18423_v48  ;;  %13845 = vmatprep.mubr.msk.bf16.mxu1 %vm16394_vm0, %v18439_v34  ;;  %v2988_v19 = vrot.slane %v17201_v16, 3  ;;  %v2990_v2 = vrot.slane %v17282_v55, 3 }
 0x3e2   : > { %v17502_v39 = vsel %vm2984_vm13, %v2985_v6, %v2986_v7  ;;  %v2992_v63 = vrot.slane %v17285_v14, 3  ;;  %v17507_v24 = vor.u32 %v2826_v27, %v2823_v59  ;;  %v2994_v33 = vrot.slane %v17346_v36, 3  ;;  %v14420_v59 = vld [vmem:[#allocation6 + $0x90] sm:$0xff]  }
 0x3e3   : > { %v2996_v21 = vrot.slane %v17414_v17, 3  ;;  %v17512_v37 = vsel %vm2984_vm13, %v2986_v7, %v2988_v19  ;;  %v17515_v48 = vsel %vm2984_vm13, %v2988_v19, %v2990_v2  ;;  %v14414_v7 = vld [vmem:[#allocation6 + $0xa0] sm:$0xff]  }
 0x3e4   : > { %v17518_v6 = vsel %vm2984_vm13, %v2990_v2, %v2992_v63  ;;  %v17522_v16 = vsel %vm2796_vm12, %v2818_v18, %v17507_v24  ;;  %v17525_v55 = vsel %vm2984_vm13, %v2992_v63, %v2994_v33  ;;  %v1659_v18 = vor.u32 %v17372_v56, %v1655_v25  ;;  %v14417_v25 = vld [vmem:[#allocation6 + $0xb0] sm:$0xff]   ;;  %v14419_v56 = vld [vmem:[#allocation6 + $0xb8] sm:$0xff]  }
 0x3e5   : > { %v17530_v14 = vsel %vm2984_vm13, %v2994_v33, %v2996_v21 }
 0x3e7   : > { %13806 = vmatmul.mubr.msk.bf16.gmra.mrb[136].mxu0 %vm1684_vm7, %v17405_v22  ;;  %v14415_v22 = vld [vmem:[#allocation6 + $0xa8] sm:$0xff]  }
 0x3e8   : > { %13846 = vmatmul.mubr.msk.bf16.gmra.mrb[40].mxu1 %vm1684_vm7, %v17346_v36  ;;  %13809 = vmatprep.mubr.msk.bf16.mxu0 %vm16394_vm0, %v18439_v34 }
 0x3e9   : > { %13893 = vmatprep.mubr.msk.bf16.mxu1 %vm16394_vm0, %v18439_v34 }
 0x3ef   : > { %13810 = vmatmul.mubr.msk.bf16.gmra.mrb[140].mxu0 %vm1684_vm7, %v1659_v18 }
 0x3f0   : > { %13894 = vmatmul.mubr.msk.bf16.vlgmr.msra.gmra.mrb[44].mxu1 %vm1684_vm7, %v17192_v9  ;;  %13857 = vmatprep.mubr.msk.bf16.mxu0 %vm16394_vm0, %v18439_v34  ;;  %v14418_v9 = vld [vmem:[#allocation6 + $0x88] sm:$0xff]  }
 0x3f1   : > { %13897 = vmatprep.mubr.msk.bf16.mxu1 %vm16394_vm0, %v18439_v34  ;;  %13958 = vmatpush3.bf16.msra.mxu1 %v14414_v7 }
 0x3f2   : > { %13959 = vmatprep.subr.bf16.mxu1 %v18439_v34 }
 0x3f5   : > { %13960 = vmatpush3.bf16.msra.mxu1 %v14415_v22 }
 0x3f6   : > { %13961 = vmatprep.subr.bf16.mxu1 %v18439_v34 }
 0x3f7   : > { %13858 = vmatmul.mubr.msk.bf16.vlgmr.msra.gmra.mrb[144].mxu0 %vm1684_vm7, %v17198_v0  ;;  %v14421_v0 = vld [vmem:[#allocation6 + $0x98] sm:$0xff]  }
 0x3f8   : > { %13898 = vmatmul.mubr.msk.bf16.gmra.mrb[48].mxu1 %vm1684_vm7, %v17250_v45  ;;  %13861 = vmatprep.mubr.msk.bf16.mxu0 %vm16394_vm0, %v18439_v34  ;;  %v18440_v45 = vrot.slane %v17346_v36, 5 }
 0x3f9   : > { %13901 = vmatprep.mubr.msk.bf16.mxu1 %vm16394_vm0, %v18439_v34  ;;  %13922 = vmatpush3.bf16.msra.mxu0 %v14416_v30 }
 0x3fa   : > { %13962 = vmatpush3.bf16.msra.mxu1 %v14417_v25  ;;  %13923 = vmatprep.subr.bf16.mxu0 %v18439_v34 }
 0x3fb   : > { %13963 = vmatprep.subr.bf16.mxu1 %v18439_v34 }
 0x3fd   : > { %13924 = vmatpush3.bf16.msra.mxu0 %v14418_v9 }
 0x3fe   : > { %13964 = vmatpush3.bf16.msra.mxu1 %v14419_v56  ;;  %13925 = vmatprep.subr.bf16.mxu0 %v18439_v34 }
 0x3ff   : > { %13862 = vmatmul.mubr.msk.bf16.gmra.mrb[148].mxu0 %vm1684_vm7, %v17255_v51  ;;  %14029 = vmatprep.subr.bf16.mxu1 %v18439_v34  ;;  %v14422_v51 = vld [vmem:[#allocation6 + $0xe0] sm:$0xff]  }
 0x400   : > { %13902 = vmatmul.mubr.msk.bf16.gmra.mrb[52].mxu1 %vm1684_vm7, %v17260_v57  ;;  %13865 = vmatprep.mubr.msk.bf16.mxu0 %vm16394_vm0, %v18439_v34  ;;  %v18441_v57 = vrot.slane %v17346_v36, 1 }
 0x401   : > { %13905 = vmatprep.mubr.msk.bf16.mxu1 %vm16394_vm0, %v18439_v34  ;;  %13926 = vmatpush3.bf16.msra.mxu0 %v14420_v59 }
 0x402   : > { %13927 = vmatprep.subr.bf16.mxu0 %v18439_v34 }
 0x405   : > { %13928 = vmatpush3.bf16.msra.mxu0 %v14421_v0 }
 0x406   : > { %13993 = vmatprep.subr.bf16.mxu0 %v18439_v34 }
 0x407   : > { %13866 = vmatmul.mubr.msk.bf16.gmra.mrb[152].mxu0 %vm1684_vm7, %v17268_v13  ;;  %v14423_v13 = vld [vmem:[#allocation6 + $0xe8] sm:$0xff]  }
 0x408   : > { %13906 = vmatmul.mubr.msk.bf16.gmra.mrb[56].mxu1 %vm1684_vm7, %v17322_v58  ;;  %13869 = vmatprep.mubr.msk.bf16.mxu0 %vm16394_vm0, %v18439_v34  ;;  %v14424_v58 = vld [vmem:[#allocation6 + $0xc0] sm:$0xff]  }
 0x409   : > { %13909 = vmatprep.mubr.msk.bf16.mxu1 %vm16394_vm0, %v18439_v34 }
 0x40f   : > { %13870 = vmatmul.mubr.msk.bf16.gmra.mrb[156].mxu0 %vm1684_vm7, %v17327_v10  ;;  %v14425_v10 = vld [vmem:[#allocation6 + $0xf0] sm:$0xff]  }
 0x410   : > { %13910 = vmatmul.mubr.msk.bf16.gmra.mrb[60].mxu1 %vm1684_vm7, %v17330_v47  ;;  %13873 = vmatprep.mubr.msk.bf16.mxu0 %vm16394_vm0, %v18439_v34  ;;  %v14427_v47 = vld [vmem:[#allocation6 + $0xf8] sm:$0xff]  }
 0x411   : > { %13913 = vmatprep.mubr.msk.bf16.mxu1 %vm16394_vm0, %v18439_v34 }
 0x417   : > { %13874 = vmatmul.mubr.msk.bf16.gmra.mrb[160].mxu0 %vm1684_vm7, %v17337_v20  ;;  %v14428_v20 = vld [vmem:[#allocation6 + $0xd0] sm:$0xff]  }
 0x418   : > { %13914 = vmatmul.mubr.msk.bf16.gmra.mrb[64].mxu1 %vm1684_vm7, %v17390_v41  ;;  %13877 = vmatprep.mubr.msk.bf16.mxu0 %vm16394_vm0, %v18439_v34 }
 0x419   : > { %13917 = vmatprep.mubr.msk.bf16.mxu1 %vm16394_vm0, %v18439_v34 }
 0x41f   : > { %13878 = vmatmul.mubr.msk.bf16.gmra.mrb[164].mxu0 %vm1684_vm7, %v17395_v15 }
 0x420   : > { %13918 = vmatmul.mubr.msk.bf16.gmra.mrb[68].mxu1 %vm1684_vm7, %v18440_v45  ;;  %13881 = vmatprep.mubr.msk.bf16.mxu0 %vm16394_vm0, %v18439_v34 }
 0x421   : > { %13965 = vmatprep.mubr.msk.bf16.mxu1 %vm16394_vm0, %v18439_v34 }
 0x427   : > { %13882 = vmatmul.mubr.msk.bf16.gmra.mrb[168].mxu0 %vm1684_vm7, %v18441_v57 }
 0x428   : > { %13966 = vmatmul.mubr.msk.bf16.vlgmr.msra.gmra.mrb[72].mxu1 %vm1684_vm7, %v17206_v42  ;;  %13929 = vmatprep.mubr.msk.bf16.mxu0 %vm16394_vm0, %v18439_v34  ;;  %v14426_v42 = vld [vmem:[#allocation6 + $0xc8] sm:$0xff]  }
 0x429   : > { %13969 = vmatprep.mubr.msk.bf16.mxu1 %vm16394_vm0, %v18439_v34  ;;  %14030 = vmatpush3.bf16.msra.mxu1 %v14422_v51 }
 0x42a   : > { %14031 = vmatprep.subr.bf16.mxu1 %v18439_v34 }
 0x42d   : > { %14032 = vmatpush3.bf16.msra.mxu1 %v14423_v13 }
 0x42e   : > { %14033 = vmatprep.subr.bf16.mxu1 %v18439_v34 }
 0x42f   : > { %13930 = vmatmul.mubr.msk.bf16.vlgmr.msra.gmra.mrb[172].mxu0 %vm1684_vm7, %v17272_v35  ;;  %v14429_v35 = vld [vmem:[#allocation6 + $0xd8] sm:$0xff]  }
 0x430   : > { %13970 = vmatmul.mubr.msk.bf16.gmra.mrb[76].mxu1 %vm1684_vm7, %v17279_v60  ;;  %13933 = vmatprep.mubr.msk.bf16.mxu0 %vm16394_vm0, %v18439_v34  ;;  %v18442_v60 = vrot.slane %v17346_v36, 6  ;;  %v14430_v36 = vld [vmem:[#allocation6 + $0x100] sm:$0xff]  }
 0x431   : > { %13973 = vmatprep.mubr.msk.bf16.mxu1 %vm16394_vm0, %v18439_v34  ;;  %13994 = vmatpush3.bf16.msra.mxu0 %v14424_v58 }
 0x432   : > { %14034 = vmatpush3.bf16.msra.mxu1 %v14425_v10  ;;  %13995 = vmatprep.subr.bf16.mxu0 %v18439_v34 }
 0x433   : > { %14035 = vmatprep.subr.bf16.mxu1 %v18439_v34 }
 0x435   : > { %13996 = vmatpush3.bf16.msra.mxu0 %v14426_v42 }
 0x436   : > { %14036 = vmatpush3.bf16.msra.mxu1 %v14427_v47  ;;  %13997 = vmatprep.subr.bf16.mxu0 %v18439_v34 }
 0x437   : > { %13934 = vmatmul.mubr.msk.bf16.gmra.mrb[176].mxu0 %vm1684_vm7, %v17357_v46  ;;  %v14433_v46 = vld [vmem:[#allocation6 + $0x118] sm:$0xff]  }
 0x438   : > { %13974 = vmatmul.mubr.msk.bf16.gmra.mrb[80].mxu1 %vm1684_vm7, %v17344_v50  ;;  %13937 = vmatprep.mubr.msk.bf16.mxu0 %vm16394_vm0, %v18439_v34  ;;  %v14432_v50 = vld [vmem:[#allocation6 + $0x110] sm:$0xff]  }
 0x439   : > { %13977 = vmatprep.mubr.msk.bf16.mxu1 %vm16394_vm0, %v18439_v34  ;;  %13998 = vmatpush3.bf16.msra.mxu0 %v14428_v20 }
 0x43a   : > { %13999 = vmatprep.subr.bf16.mxu0 %v18439_v34 }
 0x43d   : > { %14000 = vmatpush3.bf16.msra.mxu0 %v14429_v35 }
 0x43e   : > { %14065 = vmatprep.subr.bf16.mxu0 %v18439_v34 }
 0x43f   : > { %13938 = vmatmul.mubr.msk.bf16.gmra.mrb[180].mxu0 %vm1684_vm7, %v17360_v11 }
 0x440   : > { %13978 = vmatmul.mubr.msk.bf16.gmra.mrb[84].mxu1 %vm1684_vm7, %v17381_v32  ;;  %13941 = vmatprep.mubr.msk.bf16.mxu0 %vm16394_vm0, %v18439_v34 }
 0x441   : > { %13981 = vmatprep.mubr.msk.bf16.mxu1 %vm16394_vm0, %v18439_v34 }
 0x447   : > { %13942 = vmatmul.mubr.msk.bf16.gmra.mrb[184].mxu0 %vm1684_vm7, %v17398_v12 }
 0x448   : > { %13982 = vmatmul.mubr.msk.bf16.gmra.mrb[88].mxu1 %vm1684_vm7, %v17384_v62  ;;  %13945 = vmatprep.mubr.msk.bf16.mxu0 %vm16394_vm0, %v18439_v34  ;;  %v14431_v62 = vld [vmem:[#allocation6 + $0x108] sm:$0xff]  }
 0x449   : > { %13985 = vmatprep.mubr.msk.bf16.mxu1 %vm16394_vm0, %v18439_v34 }
 0x44f   : > { %13946 = vmatmul.mubr.msk.bf16.gmra.mrb[188].mxu0 %vm1684_vm7, %v17425_v61 }
 0x450   : > { %13986 = vmatmul.mubr.msk.bf16.gmra.mrb[92].mxu1 %vm1684_vm7, %v17419_v29  ;;  %13949 = vmatprep.mubr.msk.bf16.mxu0 %vm16394_vm0, %v18439_v34 }
 0x451   : > { %13989 = vmatprep.mubr.msk.bf16.mxu1 %vm16394_vm0, %v18439_v34 }
 0x457   : > { %13950 = vmatmul.mubr.msk.bf16.gmra.mrb[192].mxu0 %vm1684_vm7, %v17442_v52 }
 0x458   : > { %13990 = vmatmul.mubr.msk.bf16.gmra.mrb[96].mxu1 %vm1684_vm7, %v18442_v60  ;;  %13953 = vmatprep.mubr.msk.bf16.mxu0 %vm16394_vm0, %v18439_v34 }
 0x459   : > { %14037 = vmatprep.mubr.msk.bf16.mxu1 %vm16394_vm0, %v18439_v34 }
 0x45f   : > { %13954 = vmatmul.mubr.msk.bf16.gmra.mrb[196].mxu0 %vm1684_vm7, %v17427_v43 }
 0x460   : > { %14038 = vmatmul.mubr.msk.bf16.vlgmr.msra.gmra.mrb[100].mxu1 %vm1684_vm7, %v17450_v26  ;;  %14001 = vmatprep.mubr.msk.bf16.mxu0 %vm16394_vm0, %v18439_v34 }
 0x461   : > { %14041 = vmatprep.mubr.msk.bf16.mxu1 %vm16394_vm0, %v18439_v34 }
 0x467   : > { %14002 = vmatmul.mubr.msk.bf16.vlgmr.msra.gmra.mrb[200].mxu0 %vm1684_vm7, %v17445_v54 }
 0x468   : > { %14042 = vmatmul.mubr.msk.bf16.gmra.mrb[104].mxu1 %vm1684_vm7, %v17460_v40  ;;  %14005 = vmatprep.mubr.msk.bf16.mxu0 %vm16394_vm0, %v18439_v34 }
 0x469   : > { %14045 = vmatprep.mubr.msk.bf16.mxu1 %vm16394_vm0, %v18439_v34  ;;  %14066 = vmatpush3.bf16.msra.mxu0 %v14430_v36 }
 0x46a   : > { %14067 = vmatprep.subr.bf16.mxu0 %v18439_v34 }
 0x46d   : > { %14068 = vmatpush3.bf16.msra.mxu0 %v14431_v62 }
 0x46e   : > { %14069 = vmatprep.subr.bf16.mxu0 %v18439_v34 }
 0x46f   : > { %14006 = vmatmul.mubr.msk.bf16.gmra.mrb[204].mxu0 %vm1684_vm7, %v17453_v53 }
 0x470   : > { %14046 = vmatmul.mubr.msk.bf16.gmra.mrb[108].mxu1 %vm1684_vm7, %v17468_v31  ;;  %14009 = vmatprep.mubr.msk.bf16.mxu0 %vm16394_vm0, %v18439_v34 }
 0x471   : > { %14049 = vmatprep.mubr.msk.bf16.mxu1 %vm16394_vm0, %v18439_v34  ;;  %14070 = vmatpush3.bf16.msra.mxu0 %v14432_v50 }
 0x472   : > { %14071 = vmatprep.subr.bf16.mxu0 %v18439_v34 }
 0x475   : > { %14072 = vmatpush3.bf16.msra.mxu0 %v14433_v46 }
 0x477   : > { %14010 = vmatmul.mubr.msk.bf16.gmra.mrb[208].mxu0 %vm1684_vm7, %v17463_v8  ;;  %v18443_v8 = vrot.slane %v17414_v17, 2 }
 0x478   : > { %14050 = vmatmul.mubr.msk.bf16.gmra.mrb[112].mxu1 %vm1684_vm7, %v17480_v44  ;;  %14013 = vmatprep.mubr.msk.bf16.mxu0 %vm16394_vm0, %v18439_v34 }
 0x479   : > { %14053 = vmatprep.mubr.msk.bf16.mxu1 %vm16394_vm0, %v18439_v34 }
 0x47f   : > { %14014 = vmatmul.mubr.msk.bf16.gmra.mrb[212].mxu0 %vm1684_vm7, %v17471_v49 }
 0x480   : > { %14054 = vmatmul.mubr.msk.bf16.gmra.mrb[116].mxu1 %vm1684_vm7, %v17492_v38  ;;  %14017 = vmatprep.mubr.msk.bf16.mxu0 %vm16394_vm0, %v18439_v34 }
 0x481   : > { %14057 = vmatprep.mubr.msk.bf16.mxu1 %vm16394_vm0, %v18439_v34 }
 0x487   : > { %14018 = vmatmul.mubr.msk.bf16.gmra.mrb[216].mxu0 %vm1684_vm7, %v17483_v23 }
 0x488   : > { %14058 = vmatmul.mubr.msk.bf16.gmra.mrb[120].mxu1 %vm1684_vm7, %v17522_v16  ;;  %14021 = vmatprep.mubr.msk.bf16.mxu0 %vm16394_vm0, %v18439_v34 }
 0x489   : > { %14061 = vmatprep.mubr.msk.bf16.mxu1 %vm16394_vm0, %v18439_v34 }
 0x48b   : > { %v1866_v11 = vpop.f32.mrb[16].mxu1 }
 0x48c   : > { %v13823_v44 = vpop.f32.mrb[17].mxu1 }
 0x48d   : > { %v1869_v41 = vpop.f32.mrb[18].mxu1 }
 0x48e   : > { %v13824_v32 = vpop.f32.mrb[19].mxu1 }
 0x48f   : > { %14022 = vmatmul.mubr.msk.bf16.gmra.mrb[220].mxu0 %vm1684_vm7, %v17497_v28 }
 0x490   : > { %14062 = vmatmul.mubr.msk.bf16.gmra.mrb[124].mxu1 %vm1684_vm7, %v17507_v24  ;;  %14025 = vmatprep.mubr.msk.bf16.mxu0 %vm16394_vm0, %v18439_v34 }
 0x492   : > { %v1740_v15 = vpop.f32.mrb[116].mxu0 }
 0x493   : > { %v13787_v12 = vpop.f32.mrb[117].mxu0  ;;  %v17729_v29 = vadd.f32 %v1866_v11, %v1740_v15  ;;  %v1874_v61 = vpop.f32.mrb[20].mxu1 }
 0x494   : > { %v1743_v43 = vpop.f32.mrb[118].mxu0  ;;  %v13827_v52 = vpop.f32.mrb[21].mxu1 }
 0x495   : > { %v13788_v54 = vpop.f32.mrb[119].mxu0  ;;  %v17731_v26 = vadd.f32 %v1869_v41, %v1743_v43  ;;  %v1877_v53 = vpop.f32.mrb[22].mxu1 }
 0x496   : > { %v13828_v40 = vpop.f32.mrb[23].mxu1 }
 0x497   : > { %14026 = vmatmul.mubr.msk.bf16.gmra.mrb[224].mxu0 %vm1684_vm7, %v18443_v8 }
 0x498   : > { %14073 = vmatprep.mubr.msk.bf16.mxu0 %vm16394_vm0, %v18439_v34 }
 0x49a   : > { %v1748_v31 = vpop.f32.mrb[120].mxu0 }
 0x49b   : > { %v13791_v49 = vpop.f32.mrb[121].mxu0  ;;  %v17738_v23 = vadd.f32 %v1874_v61, %v1748_v31  ;;  %v1882_v38 = vpop.f32.mrb[24].mxu1 }
 0x49c   : > { %v1751_v27 = vpop.f32.mrb[122].mxu0  ;;  %v13831_v28 = vpop.f32.mrb[25].mxu1 }
 0x49d   : > { %v13792_v19 = vpop.f32.mrb[123].mxu0  ;;  %v17740_v2 = vadd.f32 %v1877_v53, %v1751_v27  ;;  %v1885_v63 = vpop.f32.mrb[26].mxu1 }
 0x49e   : > { %v13832_v24 = vpop.f32.mrb[27].mxu1 }
 0x49f   : > { %14074 = vmatmul.mubr.msk.bf16.vlgmr.msra.gmra.mrb[228].mxu0 %vm1684_vm7, %v17502_v39 }
 0x4a0   : > { %14077 = vmatprep.mubr.msk.bf16.mxu0 %vm16394_vm0, %v18439_v34 }
 0x4a2   : > { %v1756_v33 = vpop.f32.mrb[124].mxu0 }
 0x4a3   : > { %v13795_v16 = vpop.f32.mrb[125].mxu0  ;;  %v17746_v18 = vadd.f32 %v1882_v38, %v1756_v33  ;;  %v1890_v7 = vpop.f32.mrb[28].mxu1 }
 0x4a4   : > { %v1759_v22 = vpop.f32.mrb[126].mxu0  ;;  %v13835_v30 = vpop.f32.mrb[29].mxu1 }
 0x4a5   : > { %v13796_v25 = vpop.f32.mrb[127].mxu0  ;;  %v17748_v9 = vadd.f32 %v1885_v63, %v1759_v22  ;;  %v1893_v56 = vpop.f32.mrb[30].mxu1 }
 0x4a6   : > { %v13836_v59 = vpop.f32.mrb[31].mxu1 }
 0x4a7   : > { %14078 = vmatmul.mubr.msk.bf16.gmra.mrb[232].mxu0 %vm1684_vm7, %v17512_v37 }
 0x4a8   : > { %14081 = vmatprep.mubr.msk.bf16.mxu0 %vm16394_vm0, %v18439_v34 }
 0x4aa   : > { %v1764_v39 = vpop.f32.mrb[128].mxu0 }
 0x4ab   : > { %v13799_v0 = vpop.f32.mrb[129].mxu0  ;;  %v17754_v45 = vadd.f32 %v1890_v7, %v1764_v39  ;;  %v1898_v51 = vpop.f32.mrb[32].mxu1 }
 0x4ac   : > { %v1767_v57 = vpop.f32.mrb[130].mxu0  ;;  %v13839_v13 = vpop.f32.mrb[33].mxu1 }
 0x4ad   : > { %v13800_v58 = vpop.f32.mrb[131].mxu0  ;;  %v17756_v10 = vadd.f32 %v1893_v56, %v1767_v57  ;;  %v1901_v42 = vpop.f32.mrb[34].mxu1 }
 0x4ae   : > { %v13840_v47 = vpop.f32.mrb[35].mxu1 }
 0x4af   : > { %14082 = vmatmul.mubr.msk.bf16.gmra.mrb[236].mxu0 %vm1684_vm7, %v17515_v48 }
 0x4b0   : > { %14085 = vmatprep.mubr.msk.bf16.mxu0 %vm16394_vm0, %v18439_v34 }
 0x4b2   : > { %v1772_v37 = vpop.f32.mrb[132].mxu0 }
 0x4b3   : > { %v13803_v20 = vpop.f32.mrb[133].mxu0  ;;  %v17762_v35 = vadd.f32 %v1898_v51, %v1772_v37  ;;  %v1906_v60 = vpop.f32.mrb[36].mxu1 }
 0x4b4   : > { %v1775_v36 = vpop.f32.mrb[134].mxu0  ;;  %v13843_v62 = vpop.f32.mrb[37].mxu1 }
 0x4b5   : > { %v13804_v50 = vpop.f32.mrb[135].mxu0  ;;  %v17764_v46 = vadd.f32 %v1901_v42, %v1775_v36  ;;  %v1909_v11 = vpop.f32.mrb[38].mxu1 }
 0x4b6   : > { %v13844_v44 = vpop.f32.mrb[39].mxu1 }
 0x4b7   : > { %14086 = vmatmul.mubr.msk.bf16.gmra.mrb[240].mxu0 %vm1684_vm7, %v17518_v6 }
 0x4b8   : > { %14089 = vmatprep.mubr.msk.bf16.mxu0 %vm16394_vm0, %v18439_v34 }
 0x4ba   : > { %v1780_v48 = vpop.f32.mrb[136].mxu0 }
 0x4bb   : > { %v13807_v41 = vpop.f32.mrb[137].mxu0  ;;  %v17770_v32 = vadd.f32 %v1906_v60, %v1780_v48  ;;  %v1914_v15 = vpop.f32.mrb[40].mxu1 }
 0x4bc   : > { %v1783_v12 = vpop.f32.mrb[138].mxu0  ;;  %v13847_v61 = vpop.f32.mrb[41].mxu1 }
 0x4bd   : > { %v13808_v43 = vpop.f32.mrb[139].mxu0  ;;  %v17772_v52 = vadd.f32 %v1909_v11, %v1783_v12  ;;  %v1917_v54 = vpop.f32.mrb[42].mxu1 }
 0x4be   : > { %v13848_v53 = vpop.f32.mrb[43].mxu1 }
 0x4bf   : > { %14090 = vmatmul.mubr.msk.bf16.gmra.mrb[244].mxu0 %vm1684_vm7, %v17525_v55 }
 0x4c0   : > { %14093 = vmatprep.mubr.msk.bf16.mxu0 %vm16394_vm0, %v18439_v34 }
 0x4c2   : > { %v1788_v6 = vpop.f32.mrb[140].mxu0 }
 0x4c3   : > { %v13811_v40 = vpop.f32.mrb[141].mxu0  ;;  %v17778_v8 = vadd.f32 %v1914_v15, %v1788_v6  ;;  %v2198_v31 = vpop.f32.mrb[44].mxu1 }
 0x4c4   : > { %v1791_v49 = vpop.f32.mrb[142].mxu0  ;;  %v13895_v38 = vpop.f32.mrb[45].mxu1 }
 0x4c5   : > { %v13812_v27 = vpop.f32.mrb[143].mxu0  ;;  %v2201_v28 = vpop.f32.mrb[46].mxu1 }
 0x4c6   : > { %v13896_v19 = vpop.f32.mrb[47].mxu1 }
 0x4c7   : > { %14094 = vmatmul.mubr.msk.bf16.gmra.mrb[248].mxu0 %vm1684_vm7, %v17530_v14 }
 0x4c8   : > { %14097 = vmatprep.mubr.msk.bf16.mxu0 %vm16394_vm0, %v18439_v34  ;;  %v18444_v34 = vmov 0   ;;  %vm4669_vm0 = vsmask.f32 1280 }
 0x4ca   : > { %v2029_v55 = vpop.f32.mrb[144].mxu0 }
 0x4cb   : > { %v2083_v63 = vadd.f32 %v2029_v55, %v17729_v29  ;;  %v13859_v24 = vpop.f32.mrb[145].mxu0  ;;  %v2206_v33 = vpop.f32.mrb[48].mxu1 }
 0x4cc   : > { %v2032_v16 = vpop.f32.mrb[146].mxu0  ;;  %v13899_v7 = vpop.f32.mrb[49].mxu1 }
 0x4cd   : > { %v17785_v22 = vadd.f32 %v2198_v31, %v2083_v63  ;;  %v2084_v30 = vadd.f32 %v2032_v16, %v17731_v26  ;;  %v13860_v25 = vpop.f32.mrb[147].mxu0  ;;  %v2209_v56 = vpop.f32.mrb[50].mxu1 }
 0x4ce   : > { %v13900_v59 = vpop.f32.mrb[51].mxu1 }
 0x4cf   : > { %v17788_v39 = vadd.f32 %v2201_v28, %v2084_v30  ;;  %14098 = vmatmul.mubr.msk.bf16.gmra.mrb[252].mxu0 %vm1684_vm7, %v2996_v21 }
 0x4d0   : > { %3591 = vmatprep.mubr.bf16.mxu0 %v18444_v34 }
 0x4d2   : > { %v2037_v14 = vpop.f32.mrb[148].mxu0 }
 0x4d3   : > { %v2085_v29 = vadd.f32 %v2037_v14, %v17738_v23  ;;  %v13863_v0 = vpop.f32.mrb[149].mxu0  ;;  %v2214_v51 = vpop.f32.mrb[52].mxu1 }
 0x4d4   : > { %v2040_v57 = vpop.f32.mrb[150].mxu0  ;;  %v13903_v13 = vpop.f32.mrb[53].mxu1 }
 0x4d5   : > { %v17795_v58 = vadd.f32 %v2206_v33, %v2085_v29  ;;  %v2086_v26 = vadd.f32 %v2040_v57, %v17740_v2  ;;  %v13864_v42 = vpop.f32.mrb[151].mxu0  ;;  %v2217_v47 = vpop.f32.mrb[54].mxu1 }
 0x4d6   : > { %v13904_v37 = vpop.f32.mrb[55].mxu1 }
 0x4d7   : > { %v17798_v20 = vadd.f32 %v2209_v56, %v2086_v26 }
 0x4da   : > { %v2045_v17 = vpop.f32.mrb[152].mxu0 }
 0x4db   : > { %v2087_v21 = vadd.f32 %v2045_v17, %v17746_v18  ;;  %v13867_v60 = vpop.f32.mrb[153].mxu0  ;;  %v2222_v36 = vpop.f32.mrb[56].mxu1 }
 0x4dc   : > { %v2048_v62 = vpop.f32.mrb[154].mxu0  ;;  %v13907_v23 = vpop.f32.mrb[57].mxu1 }
 0x4dd   : > { %v2088_v50 = vadd.f32 %v2048_v62, %v17748_v9  ;;  %v2225_v11 = vpop.f32.mrb[58].mxu1  ;;  %v13868_v44 = vpop.f32.mrb[155].mxu0  ;;  %v17802_v48 = vadd.f32 %v2214_v51, %v2087_v21 }
 0x4de   : > { %v13908_v41 = vpop.f32.mrb[59].mxu1 }
 0x4df   : > { %v17804_v2 = vadd.f32 %v2217_v47, %v2088_v50 }
 0x4e2   : > { %v2053_v15 = vpop.f32.mrb[156].mxu0 }
 0x4e3   : > { %v2089_v12 = vadd.f32 %v2053_v15, %v17754_v45  ;;  %v13871_v61 = vpop.f32.mrb[157].mxu0  ;;  %v2230_v43 = vpop.f32.mrb[60].mxu1 }
 0x4e4   : > { %v2056_v54 = vpop.f32.mrb[158].mxu0  ;;  %v13911_v18 = vpop.f32.mrb[61].mxu1 }
 0x4e5   : > { %v2090_v53 = vadd.f32 %v2056_v54, %v17756_v10  ;;  %v13872_v6 = vpop.f32.mrb[159].mxu0  ;;  %v2233_v40 = vpop.f32.mrb[62].mxu1  ;;  %v17808_v31 = vadd.f32 %v2222_v36, %v2089_v12 }
 0x4e6   : > { %v13912_v9 = vpop.f32.mrb[63].mxu1 }
 0x4e7   : > { %v17810_v49 = vadd.f32 %v2225_v11, %v2090_v53 }
 0x4ea   : > { %v2061_v38 = vpop.f32.mrb[160].mxu0 }
 0x4eb   : > { %v2091_v27 = vadd.f32 %v2061_v38, %v17762_v35  ;;  %v13875_v28 = vpop.f32.mrb[161].mxu0  ;;  %v2238_v19 = vpop.f32.mrb[64].mxu1 }
 0x4ec   : > { %v2064_v55 = vpop.f32.mrb[162].mxu0  ;;  %v13915_v45 = vpop.f32.mrb[65].mxu1 }
 0x4ed   : > { %v2092_v63 = vadd.f32 %v2064_v55, %v17764_v46  ;;  %v2241_v24 = vpop.f32.mrb[66].mxu1  ;;  %v13876_v33 = vpop.f32.mrb[163].mxu0  ;;  %v17814_v16 = vadd.f32 %v2230_v43, %v2091_v27 }
 0x4ee   : > { %v13916_v10 = vpop.f32.mrb[67].mxu1 }
 0x4ef   : > { %v17816_v7 = vadd.f32 %v2233_v40, %v2092_v63 }
 0x4f2   : > { %v2069_v30 = vpop.f32.mrb[164].mxu0 }
 0x4f3   : > { %v2093_v25 = vadd.f32 %v2069_v30, %v17770_v32  ;;  %v13879_v56 = vpop.f32.mrb[165].mxu0  ;;  %v2246_v59 = vpop.f32.mrb[68].mxu1 }
 0x4f4   : > { %v2072_v14 = vpop.f32.mrb[166].mxu0  ;;  %v13919_v35 = vpop.f32.mrb[69].mxu1 }
 0x4f5   : > { %v2094_v29 = vadd.f32 %v2072_v14, %v17772_v52  ;;  %v13880_v0 = vpop.f32.mrb[167].mxu0  ;;  %v2249_v51 = vpop.f32.mrb[70].mxu1  ;;  %v17820_v57 = vadd.f32 %v2238_v19, %v2093_v25 }
 0x4f6   : > { %v13920_v46 = vpop.f32.mrb[71].mxu1 }
 0x4f7   : > { %v17822_v13 = vadd.f32 %v2241_v24, %v2094_v29 }
 0x4fa   : > { %v2077_v26 = vpop.f32.mrb[168].mxu0 }
 0x4fb   : > { %v2095_v42 = vadd.f32 %v2077_v26, %v17778_v8  ;;  %v2550_v47 = vpop.f32.mrb[72].mxu1  ;;  %v13883_v37 = vpop.f32.mrb[169].mxu0 }
 0x4fc   : > { %v13967_v17 = vpop.f32.mrb[73].mxu1  ;;  %v2080_v32 = vpop.f32.mrb[170].mxu0 }
 0x4fd   : > { %v2553_v21 = vpop.f32.mrb[74].mxu1  ;;  %v13884_v60 = vpop.f32.mrb[171].mxu0  ;;  %v17825_v36 = vadd.f32 %v2246_v59, %v2095_v42 }
 0x4fe   : > { %v13968_v62 = vpop.f32.mrb[75].mxu1 }
 0x502   : > { %v2381_v52 = vpop.f32.mrb[172].mxu0 }
 0x503   : > { %v2435_v23 = vadd.f32 %v2381_v52, %v17785_v22  ;;  %v13931_v50 = vpop.f32.mrb[173].mxu0  ;;  %v2558_v11 = vpop.f32.mrb[76].mxu1 }
 0x504   : > { %v2384_v44 = vpop.f32.mrb[174].mxu0  ;;  %v13971_v41 = vpop.f32.mrb[77].mxu1 }
 0x505   : > { %v2436_v15 = vadd.f32 %v2384_v44, %v17788_v39  ;;  %v13932_v12 = vpop.f32.mrb[175].mxu0  ;;  %v2561_v8 = vpop.f32.mrb[78].mxu1  ;;  %v17829_v61 = vadd.f32 %v2550_v47, %v2435_v23 }
 0x506   : > { %v13972_v43 = vpop.f32.mrb[79].mxu1 }
 0x507   : > { %v17831_v54 = vadd.f32 %v2553_v21, %v2436_v15 }
 0x50a   : > { %v2389_v18 = vpop.f32.mrb[176].mxu0 }
 0x50b   : > { %v2437_v53 = vadd.f32 %v2389_v18, %v17795_v58  ;;  %v13935_v6 = vpop.f32.mrb[177].mxu0  ;;  %v2566_v40 = vpop.f32.mrb[80].mxu1 }
 0x50c   : > { %v2392_v9 = vpop.f32.mrb[178].mxu0  ;;  %v13975_v22 = vpop.f32.mrb[81].mxu1 }
 0x50d   : > { %v2438_v38 = vadd.f32 %v2392_v9, %v17798_v20  ;;  %v13936_v27 = vpop.f32.mrb[179].mxu0  ;;  %v2569_v28 = vpop.f32.mrb[82].mxu1  ;;  %v17835_v19 = vadd.f32 %v2558_v11, %v2437_v53 }
 0x50e   : > { %v13976_v39 = vpop.f32.mrb[83].mxu1 }
 0x50f   : > { %v17837_v55 = vadd.f32 %v2561_v8, %v2438_v38 }
 0x512   : > { %v2397_v45 = vpop.f32.mrb[180].mxu0 }
 0x513   : > { %v2439_v63 = vadd.f32 %v2397_v45, %v17802_v48  ;;  %v13939_v24 = vpop.f32.mrb[181].mxu0  ;;  %v2574_v33 = vpop.f32.mrb[84].mxu1 }
 0x514   : > { %v2400_v10 = vpop.f32.mrb[182].mxu0  ;;  %v13979_v58 = vpop.f32.mrb[85].mxu1 }
 0x515   : > { %v2440_v30 = vadd.f32 %v2400_v10, %v17804_v2  ;;  %v13940_v25 = vpop.f32.mrb[183].mxu0  ;;  %v2577_v56 = vpop.f32.mrb[86].mxu1  ;;  %v17841_v59 = vadd.f32 %v2566_v40, %v2439_v63  ;;  %v14434_v58 = vld [vmem:[#allocation9] sm:$0xff]  }
 0x516   : > { %v13980_v20 = vpop.f32.mrb[87].mxu1  ;;  %14113 = vmatprep.mubr.msk.bf16.mxu1 %vm3333_vm14, %v14434_v58 }
 0x517   : > { %v17843_v14 = vadd.f32 %v2569_v28, %v2440_v30 }
 0x51a   : > { %v2405_v35 = vpop.f32.mrb[184].mxu0 }
 0x51b   : > { %v2441_v29 = vadd.f32 %v2405_v35, %v17808_v31  ;;  %v13943_v0 = vpop.f32.mrb[185].mxu0  ;;  %v2582_v51 = vpop.f32.mrb[88].mxu1 }
 0x51c   : > { %v2408_v46 = vpop.f32.mrb[186].mxu0  ;;  %v13983_v48 = vpop.f32.mrb[89].mxu1 }
 0x51d   : > { %v2442_v26 = vadd.f32 %v2408_v46, %v17810_v49  ;;  %v13944_v42 = vpop.f32.mrb[187].mxu0  ;;  %v2585_v47 = vpop.f32.mrb[90].mxu1  ;;  %v17847_v37 = vadd.f32 %v2574_v33, %v2441_v29 }
 0x51e   : > { %v13984_v2 = vpop.f32.mrb[91].mxu1 }
 0x51f   : > { %v17849_v17 = vadd.f32 %v2577_v56, %v2442_v26 }
 0x522   : > { %v2413_v32 = vpop.f32.mrb[188].mxu0 }
 0x523   : > { %v2443_v21 = vadd.f32 %v2413_v32, %v17814_v16  ;;  %v13947_v60 = vpop.f32.mrb[189].mxu0  ;;  %v2590_v62 = vpop.f32.mrb[92].mxu1 }
 0x524   : > { %v2416_v52 = vpop.f32.mrb[190].mxu0  ;;  %v13987_v31 = vpop.f32.mrb[93].mxu1 }
 0x525   : > { %v2444_v23 = vadd.f32 %v2416_v52, %v17816_v7  ;;  %v13948_v50 = vpop.f32.mrb[191].mxu0  ;;  %v2593_v11 = vpop.f32.mrb[94].mxu1  ;;  %v17853_v44 = vadd.f32 %v2582_v51, %v2443_v21  ;;  %v14440_v31 = vld [vmem:[#allocation11 + $0x84] ss:$8 sps:$4 sm:$0xff]  }
 0x526   : > { %v13988_v49 = vpop.f32.mrb[95].mxu1  ;;  %v14443_v50 = vld [vmem:[#allocation11 + $0x94] ss:$8 sps:$4 sm:$0xff]   ;;  %3559 = vmatprep.subr.bf16.mxu0 %v14440_v31 }
 0x527   : > { %v17855_v41 = vadd.f32 %v2585_v47, %v2444_v23  ;;  %v14441_v49 = vld [vmem:[#allocation11 + $0x90] ss:$8 sps:$4 sm:$0xff]  }
 0x52a   : > { %v2421_v15 = vpop.f32.mrb[192].mxu0 }
 0x52b   : > { %v2445_v12 = vadd.f32 %v2421_v15, %v17820_v57  ;;  %v13951_v8 = vpop.f32.mrb[193].mxu0  ;;  %v2598_v43 = vpop.f32.mrb[96].mxu1 }
 0x52c   : > { %v2424_v18 = vpop.f32.mrb[194].mxu0  ;;  %v13991_v16 = vpop.f32.mrb[97].mxu1 }
 0x52d   : > { %v2446_v53 = vadd.f32 %v2424_v18, %v17822_v13  ;;  %v13952_v6 = vpop.f32.mrb[195].mxu0  ;;  %v2601_v40 = vpop.f32.mrb[98].mxu1  ;;  %v17859_v9 = vadd.f32 %v2590_v62, %v2445_v12  ;;  %v14444_v16 = vld [vmem:[#allocation11 + $0xa0] ss:$8 sps:$4 sm:$0xff]  }
 0x52e   : > { %v13992_v7 = vpop.f32.mrb[99].mxu1 }
 0x52f   : > { %v17861_v22 = vadd.f32 %v2593_v11, %v2446_v53 }
 0x532   : > { %v2429_v38 = vpop.f32.mrb[196].mxu0 }
 0x533   : > { %v2447_v27 = vadd.f32 %v2429_v38, %v17825_v36  ;;  %v13955_v28 = vpop.f32.mrb[197].mxu0  ;;  %v2908_v39 = vpop.f32.mrb[100].mxu1  ;;  %v14449_v38 = vld [vmem:[#allocation11 + $0xb4] ss:$8 sps:$4 sm:$0xff]  }
 0x534   : > { %v2432_v45 = vpop.f32.mrb[198].mxu0  ;;  %v14039_v57 = vpop.f32.mrb[101].mxu1 }
 0x535   : > { %v13956_v63 = vpop.f32.mrb[199].mxu0  ;;  %v2911_v24 = vpop.f32.mrb[102].mxu1  ;;  %v17864_v33 = vadd.f32 %v2598_v43, %v2447_v27 }
 0x536   : > { %v14040_v10 = vpop.f32.mrb[103].mxu1 }
 0x53a   : > { %v2720_v13 = vpop.f32.mrb[200].mxu0 }
 0x53b   : > { %v2774_v30 = vadd.f32 %v2720_v13, %v17829_v61  ;;  %v14003_v25 = vpop.f32.mrb[201].mxu0  ;;  %v2916_v56 = vpop.f32.mrb[104].mxu1  ;;  %v14450_v13 = vld [vmem:[#allocation11 + $0xc0] ss:$8 sps:$4 sm:$0xff]  }
 0x53c   : > { %v2723_v20 = vpop.f32.mrb[202].mxu0  ;;  %v14043_v35 = vpop.f32.mrb[105].mxu1 }
 0x53d   : > { %v2775_v36 = vadd.f32 %v2723_v20, %v17831_v54  ;;  %v14004_v29 = vpop.f32.mrb[203].mxu0  ;;  %v2919_v0 = vpop.f32.mrb[106].mxu1  ;;  %v17869_v51 = vadd.f32 %v2908_v39, %v2774_v30  ;;  %v14438_v54 = vld [vmem:[#allocation11 + $0x80] ss:$8 sps:$4 sm:$0xff]   ;;  %v14447_v39 = vld [vmem:[#allocation11 + $0xb0] ss:$8 sps:$4 sm:$0xff]  }
 0x53e   : > { %v14044_v46 = vpop.f32.mrb[107].mxu1  ;;  %3560 = vmatpush1.bf16.msra.mxu0 %v14438_v54 }
 0x53f   : > { %v17871_v48 = vadd.f32 %v2911_v24, %v2775_v36  ;;  %3561 = vmatprep.subr.bf16.mxu0 %v14443_v50 }
 0x542   : > { %v2728_v26 = vpop.f32.mrb[204].mxu0  ;;  %3562 = vmatpush1.bf16.msra.mxu0 %v14441_v49 }
 0x543   : > { %v2776_v42 = vadd.f32 %v2728_v26, %v17835_v19  ;;  %v14007_v47 = vpop.f32.mrb[205].mxu0  ;;  %v2924_v61 = vpop.f32.mrb[108].mxu1  ;;  %v14446_v19 = vld [vmem:[#allocation11 + $0xa4] ss:$8 sps:$4 sm:$0xff]  }
 0x544   : > { %v2731_v2 = vpop.f32.mrb[206].mxu0  ;;  %v14047_v32 = vpop.f32.mrb[109].mxu1  ;;  %3563 = vmatprep.subr.bf16.mxu0 %v14446_v19 }
 0x545   : > { %v2777_v21 = vadd.f32 %v2731_v2, %v17837_v55  ;;  %v14008_v60 = vpop.f32.mrb[207].mxu0  ;;  %v2927_v62 = vpop.f32.mrb[110].mxu1  ;;  %v17875_v52 = vadd.f32 %v2916_v56, %v2776_v42 }
 0x546   : > { %v14048_v23 = vpop.f32.mrb[111].mxu1  ;;  %3564 = vmatpush1.bf16.msra.mxu0 %v14444_v16 }
 0x547   : > { %v17877_v11 = vadd.f32 %v2919_v0, %v2777_v21  ;;  %3565 = vmatprep.subr.bf16.mxu0 %v14449_v38 }
 0x54a   : > { %v2736_v15 = vpop.f32.mrb[208].mxu0  ;;  %3566 = vmatpush1.bf16.msra.mxu0 %v14447_v39 }
 0x54b   : > { %v2778_v12 = vadd.f32 %v2736_v15, %v17841_v59  ;;  %v14011_v8 = vpop.f32.mrb[209].mxu0  ;;  %v2932_v55 = vpop.f32.mrb[112].mxu1  ;;  %v14452_v59 = vld [vmem:[#allocation11 + $0xc4] ss:$8 sps:$4 sm:$0xff]  }
 0x54c   : > { %v2739_v43 = vpop.f32.mrb[210].mxu0  ;;  %v14051_v18 = vpop.f32.mrb[113].mxu1  ;;  %3567 = vmatprep.subr.bf16.mxu0 %v14452_v59 }
 0x54d   : > { %v2779_v53 = vadd.f32 %v2739_v43, %v17843_v14  ;;  %v14012_v6 = vpop.f32.mrb[211].mxu0  ;;  %v2935_v40 = vpop.f32.mrb[114].mxu1  ;;  %v17881_v7 = vadd.f32 %v2924_v61, %v2778_v12 }
 0x54e   : > { %v14052_v27 = vpop.f32.mrb[115].mxu1  ;;  %3568 = vmatpush1.bf16.msra.mxu0 %v14450_v13 }
 0x54f   : > { %v17883_v28 = vadd.f32 %v2927_v62, %v2779_v53  ;;  %v17906_v53 = vld [vmem:[#allocation8] ss:$0 sm:$0xff] }
 0x552   : > { %v2744_v45 = vpop.f32.mrb[212].mxu0 }
 0x553   : > { %v2780_v57 = vadd.f32 %v2744_v45, %v17847_v37  ;;  %v14015_v63 = vpop.f32.mrb[213].mxu0  ;;  %v2940_v24 = vpop.f32.mrb[116].mxu1 }
 0x554   : > { %v2747_v10 = vpop.f32.mrb[214].mxu0  ;;  %v14055_v14 = vpop.f32.mrb[117].mxu1 }
 0x555   : > { %v2781_v58 = vadd.f32 %v2747_v10, %v17849_v17  ;;  %v14016_v30 = vpop.f32.mrb[215].mxu0  ;;  %v2943_v25 = vpop.f32.mrb[118].mxu1  ;;  %v17887_v56 = vadd.f32 %v2932_v55, %v2780_v57 }
 0x556   : > { %v14056_v20 = vpop.f32.mrb[119].mxu1 }
 0x557   : > { %v17889_v35 = vadd.f32 %v2935_v40, %v2781_v58 }
 0x55a   : > { %v2752_v36 = vpop.f32.mrb[216].mxu0 }
 0x55b   : > { %v2782_v37 = vadd.f32 %v2752_v36, %v17853_v44  ;;  %v14019_v29 = vpop.f32.mrb[217].mxu0  ;;  %v2948_v0 = vpop.f32.mrb[120].mxu1 }
 0x55c   : > { %v2755_v46 = vpop.f32.mrb[218].mxu0  ;;  %v14059_v26 = vpop.f32.mrb[121].mxu1 }
 0x55d   : > { %v2783_v42 = vadd.f32 %v2755_v46, %v17855_v41  ;;  %v14020_v47 = vpop.f32.mrb[219].mxu0  ;;  %v2951_v17 = vpop.f32.mrb[122].mxu1  ;;  %v17893_v61 = vadd.f32 %v2940_v24, %v2782_v37 }
 0x55e   : > { %v14060_v2 = vpop.f32.mrb[123].mxu1 }
 0x55f   : > { %v17895_v32 = vadd.f32 %v2943_v25, %v2783_v42 }
 0x562   : > { %v2760_v21 = vpop.f32.mrb[220].mxu0 }
 0x563   : > { %v2784_v60 = vadd.f32 %v2760_v21, %v17859_v9  ;;  %v14023_v62 = vpop.f32.mrb[221].mxu0  ;;  %v2956_v54 = vpop.f32.mrb[124].mxu1 }
 0x564   : > { %v2763_v31 = vpop.f32.mrb[222].mxu0  ;;  %v14063_v44 = vpop.f32.mrb[125].mxu1 }
 0x565   : > { %v2785_v23 = vadd.f32 %v2763_v31, %v17861_v22  ;;  %v14024_v50 = vpop.f32.mrb[223].mxu0  ;;  %v2959_v49 = vpop.f32.mrb[126].mxu1  ;;  %v17899_v19 = vadd.f32 %v2948_v0, %v2784_v60 }
 0x566   : > { %v14064_v41 = vpop.f32.mrb[127].mxu1 }
 0x567   : > { %v17901_v15 = vadd.f32 %v2951_v17, %v2785_v23 }
 0x56a   : > { %v2768_v12 = vpop.f32.mrb[224].mxu0 }
 0x56b   : > { %v2786_v8 = vadd.f32 %v2768_v12, %v17864_v33  ;;  %v14027_v55 = vpop.f32.mrb[225].mxu0 }
 0x56c   : > { %v2771_v43 = vpop.f32.mrb[226].mxu0 }
 0x56d   : > { %v14028_v18 = vpop.f32.mrb[227].mxu0  ;;  %v17904_v9 = vadd.f32 %v2956_v54, %v2786_v8 }
 0x572   : > { %v3077_v16 = vpop.f32.mrb[228].mxu0 }
 0x573   : > { %v3131_v22 = vadd.f32 %v3077_v16, %v17869_v51  ;;  %v14075_v6 = vpop.f32.mrb[229].mxu0 }
 0x574   : > { %v3080_v40 = vpop.f32.mrb[230].mxu0 }
 0x575   : > { %v3151_v38 = vadd.f32 %v17906_v53, %v3131_v22  ;;  %v3132_v27 = vadd.f32 %v3080_v40, %v17871_v48  ;;  %v14076_v39 = vpop.f32.mrb[231].mxu0 }
 0x577   : > { %v3164_v59 = vmax.f32 %v3151_v38, 0.0  ;;  %v3152_v33 = vadd.f32 %v17906_v53, %v3132_v27 }
 0x579   : > { %v3165_v45 = vmax.f32 %v3152_v33, 0.0  ;;  %v3189_v63 = vrot.slane %v3164_v59, 1 }
 0x57a   : > { %v3085_v57 = vpop.f32.mrb[232].mxu0 }
 0x57b   : > { %v3190_v24 = vrot.slane %v3165_v45, 1  ;;  %v3133_v10 = vadd.f32 %v3085_v57, %v17875_v52  ;;  %v14079_v14 = vpop.f32.mrb[233].mxu0 }
 0x57c   : > { %v3088_v13 = vpop.f32.mrb[234].mxu0 }
 0x57d   : > { %v3153_v51 = vadd.f32 %v17906_v53, %v3133_v10  ;;  %v3134_v58 = vadd.f32 %v3088_v13, %v17877_v11  ;;  %v14080_v30 = vpop.f32.mrb[235].mxu0  ;;  %v3191_v25 = vsel %vm819_vm3, %v3189_v63, %v3190_v24 }
 0x57e   : > { %v3224_v48 = vmax.f32 %v3164_v59, %v3191_v25 }
 0x57f   : > { %v3166_v20 = vmax.f32 %v3153_v51, 0.0  ;;  %v3154_v36 = vadd.f32 %v17906_v53, %v3134_v58 }
 0x581   : > { %v3192_v37 = vrot.slane %v3166_v20, 1  ;;  %v3167_v29 = vmax.f32 %v3154_v36, 0.0 }
 0x582   : > { %v3093_v0 = vpop.f32.mrb[236].mxu0 }
 0x583   : > { %v3194_v46 = vrot.slane %v3167_v29, 1  ;;  %v3135_v26 = vadd.f32 %v3093_v0, %v17881_v7  ;;  %v14083_v52 = vpop.f32.mrb[237].mxu0  ;;  %v3193_v42 = vsel %vm819_vm3, %v3190_v24, %v3192_v37 }
 0x584   : > { %v3096_v47 = vpop.f32.mrb[238].mxu0  ;;  %v3225_v17 = vmax.f32 %v3165_v45, %v3193_v42 }
 0x585   : > { %v3195_v11 = vsel %vm819_vm3, %v3192_v37, %v3194_v46  ;;  %v3155_v2 = vadd.f32 %v17906_v53, %v3135_v26  ;;  %v3136_v21 = vadd.f32 %v3096_v47, %v17883_v28  ;;  %v14084_v60 = vpop.f32.mrb[239].mxu0 }
 0x586   : > { %v3226_v62 = vmax.f32 %v3166_v20, %v3195_v11  ;;  %v3255_v44 = vrot.slane %v3225_v17, 2 }
 0x587   : > { %v3168_v54 = vmax.f32 %v3155_v2, 0.0  ;;  %v3156_v31 = vadd.f32 %v17906_v53, %v3136_v21 }
 0x588   : > { %v3256_v23 = vrot.slane %v3226_v62, 2 }
 0x589   : > { %v3196_v50 = vrot.slane %v3168_v54, 1  ;;  %v3169_v7 = vmax.f32 %v3156_v31, 0.0 }
 0x58a   : > { %v3101_v49 = vpop.f32.mrb[240].mxu0  ;;  %v3257_v41 = vsel %vm1026_vm4, %v3255_v44, %v3256_v23 }
 0x58b   : > { %v3197_v12 = vsel %vm819_vm3, %v3194_v46, %v3196_v50  ;;  %v3198_v8 = vrot.slane %v3169_v7, 1  ;;  %v3137_v55 = vadd.f32 %v3101_v49, %v17887_v56  ;;  %v14087_v43 = vpop.f32.mrb[241].mxu0  ;;  %v3290_v18 = vmax.f32 %v3224_v48, %v3257_v41 }
 0x58c   : > { %v3227_v28 = vmax.f32 %v3167_v29, %v3197_v12  ;;  %v3104_v16 = vpop.f32.mrb[242].mxu0 }
 0x58d   : > { %v3199_v22 = vsel %vm819_vm3, %v3196_v50, %v3198_v8  ;;  %v3157_v6 = vadd.f32 %v17906_v53, %v3137_v55  ;;  %v3138_v40 = vadd.f32 %v3104_v16, %v17889_v35  ;;  %v14088_v38 = vpop.f32.mrb[243].mxu0 }
 0x58e   : > { %v17929_v27 = vmax.f32 %v3168_v54, %v3199_v22  ;;  %v3258_v39 = vrot.slane %v3227_v28, 2 }
 0x58f   : > { %v3170_v59 = vmax.f32 %v3157_v6, 0.0  ;;  %v3158_v33 = vadd.f32 %v17906_v53, %v3138_v40 }
 0x590   : > { %v3259_v45 = vsel %vm1026_vm4, %v3256_v23, %v3258_v39  ;;  %v3260_v56 = vrot.slane %v17929_v27, 2 }
 0x591   : > { %v3200_v57 = vrot.slane %v3170_v59, 1  ;;  %v3171_v63 = vmax.f32 %v3158_v33, 0.0  ;;  %v3291_v24 = vmax.f32 %v3225_v17, %v3259_v45 }
 0x592   : > { %v3109_v10 = vpop.f32.mrb[244].mxu0  ;;  %v3261_v14 = vsel %vm1026_vm4, %v3258_v39, %v3260_v56 }
 0x593   : > { %v3201_v13 = vsel %vm819_vm3, %v3198_v8, %v3200_v57  ;;  %v3202_v35 = vrot.slane %v3171_v63, 1  ;;  %v3139_v51 = vadd.f32 %v3109_v10, %v17893_v61  ;;  %v14091_v58 = vpop.f32.mrb[245].mxu0  ;;  %v3309_v30 = vpack.c.bf16 %v3291_v24, %v3290_v18 }
 0x594   : > { %v3229_v25 = vmax.f32 %v3169_v7, %v3201_v13  ;;  %v3112_v48 = vpop.f32.mrb[246].mxu0  ;;  %v3292_v20 = vmax.f32 %v3226_v62, %v3261_v14 }
 0x595   : > { %v3203_v36 = vsel %vm819_vm3, %v3200_v57, %v3202_v35  ;;  %v3159_v37 = vadd.f32 %v17906_v53, %v3139_v51  ;;  %v3140_v29 = vadd.f32 %v3112_v48, %v17895_v32  ;;  %v14092_v0 = vpop.f32.mrb[247].mxu0  ;;  %14101 = vmatprep.subr.bf16.mxu1 %v3309_v30 }
 0x596   : > { %v3230_v46 = vmax.f32 %v3170_v59, %v3203_v36  ;;  %14102 = vmatpush3.bf16.msra.mxu1 %v3309_v30  ;;  %v3262_v26 = vrot.slane %v3229_v25, 2 }
 0x597   : > { %v3172_v52 = vmax.f32 %v3159_v37, 0.0  ;;  %v3160_v42 = vadd.f32 %v17906_v53, %v3140_v29 }
 0x598   : > { %v3263_v61 = vsel %vm1026_vm4, %v3260_v56, %v3262_v26  ;;  %v3264_v47 = vrot.slane %v3230_v46, 2 }
 0x599   : > { %v3204_v17 = vrot.slane %v3172_v52, 1  ;;  %v3173_v11 = vmax.f32 %v3160_v42, 0.0  ;;  %v3293_v2 = vmax.f32 %v3227_v28, %v3263_v61  ;;  %v16396_v42 = vmov 65535  }
 0x59a   : > { %v3117_v21 = vpop.f32.mrb[248].mxu0  ;;  %v3265_v60 = vsel %vm1026_vm4, %v3262_v26, %v3264_v47  ;;  %v3347_v61 = vsel %vm535_vm1, 4294967295, %v16396_v42 }
 0x59b   : > { %v3205_v62 = vsel %vm819_vm3, %v3202_v35, %v3204_v17  ;;  %v3206_v32 = vrot.slane %v3173_v11, 1  ;;  %v3141_v54 = vadd.f32 %v3117_v21, %v17899_v19  ;;  %v14095_v31 = vpop.f32.mrb[249].mxu0  ;;  %v3310_v44 = vpack.c.bf16 %v3293_v2, %v3292_v20 }
 0x59c   : > { %v3231_v23 = vmax.f32 %v3171_v63, %v3205_v62  ;;  %v3120_v50 = vpop.f32.mrb[250].mxu0  ;;  %v3294_v7 = vmax.f32 %v17929_v27, %v3265_v60  ;;  %v3348_v21 = vsel %vm2984_vm13, %v3347_v61, 0  ;;  %v14436_v31 = vld [vmem:[#allocation9 + $0x10] sm:$0xff]  }
 0x59d   : > { %v3207_v49 = vsel %vm819_vm3, %v3204_v17, %v3206_v32  ;;  %v3161_v41 = vadd.f32 %v17906_v53, %v3141_v54  ;;  %v3142_v12 = vadd.f32 %v3120_v50, %v17901_v15  ;;  %v14096_v8 = vpop.f32.mrb[251].mxu0  ;;  %14103 = vmatprep.subr.bf16.mxu1 %v3310_v44  ;;  %v14435_v54 = vld [vmem:[#allocation9 + $0x8] sm:$0xff]   ;;  %v14455_v50 = vld [vmem:[#allocation11 + $0xd4] ss:$8 sps:$4 sm:$0xff]  }
 0x59e   : > { %v3232_v55 = vmax.f32 %v3172_v52, %v3207_v49  ;;  %14104 = vmatpush3.bf16.msra.mxu1 %v3310_v44  ;;  %v3266_v43 = vrot.slane %v3231_v23, 2  ;;  %v14437_v44 = vld [vmem:[#allocation9 + $0x18] ss:$0 sps:$4 sm:$0x11]   ;;  %3569 = vmatprep.subr.bf16.mxu0 %v14455_v50  ;;  %v14458_v49 = vld [vmem:[#allocation11 + $0xe4] ss:$8 sps:$4 sm:$0xff]  }
 0x59f   : > { %v3174_v18 = vmax.f32 %v3161_v41, 0.0  ;;  %v3162_v19 = vadd.f32 %v17906_v53, %v3142_v12  ;;  %v14461_v41 = vld [vmem:[#allocation11 + $0xf4] ss:$8 sps:$4 sm:$0xff]   ;;  %v14459_v12 = vld [vmem:[#allocation11 + $0xf0] ss:$8 sps:$4 sm:$0xff]  }
 0x5a0   : > { %v3267_v28 = vsel %vm1026_vm4, %v3264_v47, %v3266_v43  ;;  %v3268_v16 = vrot.slane %v3232_v55, 2  ;;  %v14464_v8 = vld [vmem:[#allocation11 + $0x4] ss:$8 sps:$4 sm:$0xff]  }
 0x5a1   : > { %v3208_v22 = vrot.slane %v3174_v18, 1  ;;  %v3175_v6 = vmax.f32 %v3162_v19, 0.0  ;;  %v3295_v40 = vmax.f32 %v3229_v25, %v3267_v28  ;;  %v14470_v50 = vld [vmem:[#allocation11 + $0x24] ss:$8 sps:$4 sm:$0xff]  }
 0x5a2   : > { %v3125_v38 = vpop.f32.mrb[252].mxu0  ;;  %v3269_v27 = vsel %vm1026_vm4, %v3266_v43, %v3268_v16 }
 0x5a3   : > { %v3209_v39 = vsel %vm819_vm3, %v3206_v32, %v3208_v22  ;;  %v3210_v15 = vrot.slane %v3175_v6, 1  ;;  %v3143_v59 = vadd.f32 %v3125_v38, %v17904_v9  ;;  %v14099_v33 = vpop.f32.mrb[253].mxu0  ;;  %v3311_v45 = vpack.c.bf16 %v3295_v40, %v3294_v7  ;;  %v14456_v7 = vld [vmem:[#allocation11 + $0xe0] ss:$8 sps:$4 sm:$0xff]  }
 0x5a4   : > { %v3233_v56 = vmax.f32 %v3173_v11, %v3209_v39  ;;  %v3128_v57 = vpop.f32.mrb[254].mxu0  ;;  %v3296_v63 = vmax.f32 %v3230_v46, %v3269_v27 }
 0x5a5   : > { %v3211_v24 = vsel %vm819_vm3, %v3208_v22, %v3210_v15  ;;  %v3163_v10 = vadd.f32 %v17906_v53, %v3143_v59  ;;  %v14100_v14 = vpop.f32.mrb[255].mxu0  ;;  %14105 = vmatprep.subr.bf16.mxu1 %v3311_v45  ;;  %v3235_v53 = vmax.f32 %v3175_v6, %v3210_v15 }
 0x5a6   : > { %v3234_v13 = vmax.f32 %v3174_v18, %v3211_v24  ;;  %14106 = vmatpush3.bf16.msra.mxu1 %v3311_v45  ;;  %v3270_v35 = vrot.slane %v3233_v56, 2 }
 0x5a7   : > { %v3176_v51 = vmax.f32 %v3163_v10, 0.0 }
 0x5a8   : > { %v3271_v58 = vsel %vm1026_vm4, %v3268_v16, %v3270_v35  ;;  %v3272_v30 = vrot.slane %v3234_v13, 2 }
 0x5a9   : > { %v3237_v25 = vrot.slane %v3176_v51, 1  ;;  %v3297_v9 = vmax.f32 %v3231_v23, %v3271_v58  ;;  %v14453_v23 = vld [vmem:[#allocation11 + $0xd0] ss:$8 sps:$4 sm:$0xff]  }
 0x5aa   : > { %v3273_v48 = vsel %vm1026_vm4, %v3270_v35, %v3272_v30  ;;  %3570 = vmatpush1.bf16.msra.mxu0 %v14453_v23 }
 0x5ab   : > { %v3238_v20 = vsel %vm819_vm3, %v3210_v15, %v3237_v25  ;;  %v3242_v36 = vmax.f32 %v3176_v51, %v3237_v25  ;;  %v3312_v37 = vpack.c.bf16 %v3297_v9, %v3296_v63  ;;  %v3298_v29 = vmax.f32 %v3232_v55, %v3273_v48  ;;  %3571 = vmatprep.subr.bf16.mxu0 %v14458_v49  ;;  %v14462_v25 = vld [vmem:[#allocation11] ss:$8 sps:$4 sm:$0xff]  }
 0x5ac   : > { %v3241_v0 = vmax.f32 %v3175_v6, %v3238_v20 }
 0x5ad   : > { %v3276_v46 = vrot.slane %v3242_v36, 2  ;;  %14107 = vmatprep.subr.bf16.mxu1 %v3312_v37 }
 0x5ae   : > { %v3274_v26 = vrot.slane %v3241_v0, 2  ;;  %14108 = vmatpush3.bf16.msra.mxu1 %v3312_v37  ;;  %3572 = vmatpush1.bf16.msra.mxu0 %v14456_v7 }
 0x5af   : > { %v3301_v52 = vmax.f32 %v3235_v53, %v3276_v46  ;;  %3573 = vmatprep.subr.bf16.mxu0 %v14461_v41 }
 0x5b0   : > { %v3275_v47 = vsel %vm1026_vm4, %v3272_v30, %v3274_v26  ;;  %v3277_v17 = vsel %vm1026_vm4, %v3274_v26, %v3276_v46 }
 0x5b1   : > { %v3299_v11 = vmax.f32 %v3233_v56, %v3275_v47  ;;  %v3300_v2 = vmax.f32 %v3234_v13, %v3277_v17 }
 0x5b2   : > { %3574 = vmatpush1.bf16.msra.mxu0 %v14459_v12 }
 0x5b3   : > { %v3313_v60 = vpack.c.bf16 %v3299_v11, %v3298_v29  ;;  %v3314_v62 = vpack.c.bf16 %v3301_v52, %v3300_v2  ;;  %3700 = vmatprep.subr.bf16.mxu0 %v14464_v8  ;;  %v14467_v29 = vld [vmem:[#allocation11 + $0x14] ss:$8 sps:$4 sm:$0xff]  }
 0x5b5   : > { %14109 = vmatprep.subr.bf16.mxu1 %v3313_v60  ;;  %v3350_v32 = vand.u32 %v3348_v21, %v3314_v62 }
 0x5b6   : > { %14110 = vmatpush3.bf16.msra.mxu1 %v3313_v60 }
 0x5b7   : > { %14111 = vmatprep.subr.bf16.mxu1 %v3350_v32 }
 0x5ba   : > { %14112 = vmatpush3.bf16.msra.mxu1 %v3350_v32  ;;  %v14465_v32 = vld [vmem:[#allocation11 + $0x10] ss:$8 sps:$4 sm:$0xff]  }
 0x5bd   : > { %14114 = vmatmul.mubr.msk.bf16.vlgmr.msra.gmra.mrb[128].mxu1 %vm3333_vm14, %v14435_v54 }
 0x5be   : > { %14117 = vmatprep.mubr.msk.bf16.mxu1 %vm3333_vm14, %v14436_v31 }
 0x5c5   : > { %14118 = vmatmul.mubr.msk.bf16.gmra.mrb[132].mxu1 %vm3333_vm14, %v14437_v44 }
 0x5c6   : > { %5214 = vmatprep.mubr.bf16.mxu1 %v18444_v34 }
 0x690   : > { %v14115_v55 = vpop.f32.mrb[128].mxu1 }
 0x691   : > { %v3386_v43 = vpop.f32.mrb[129].mxu1 }
 0x692   : > { %v14116_v18 = vpop.f32.mrb[130].mxu1 }
 0x693   : > { %v17968_v19 = vpack.c.bf16 %v14116_v18, %v14115_v55  ;;  %v3389_v28 = vpop.f32.mrb[131].mxu1 }
 0x694   : > { %v17970_v16 = vpack.c.bf16 %v3389_v28, %v3386_v43 }
 0x695   : > { %v17973_v22 = vshll.u32 %v17968_v19, 16  ;;  %v17976_v6 = vshrl.u32 %v17968_v19, 16  ;;  %v3782_v40 = vrot.slane %v17968_v19, 1  ;;  %v3958_v38 = vrot.slane %v17968_v19, 3 }
 0x696   : > { %v3454_v27 = vshrl.u32 %v17970_v16, 16  ;;  %v3456_v39 = vshll.u32 %v17970_v16, 16  ;;  %v3781_v15 = vrot.slane %v17970_v16, 1  ;;  %v3957_v59 = vrot.slane %v17970_v16, 3 }
 0x697   : > { %v3463_v33 = vrot.slane %v17973_v22, 1  ;;  %v4137_v45 = vrot.slane %v17976_v6, 3  ;;  %v4138_v56 = vrot.slane %v17973_v22, 4  ;;  %v4673_v51 = vrot.slane %v17976_v6, 6 }
 0x698   : > { %v3458_v57 = vrot.slane %v3456_v39, 1  ;;  %v14119_v63 = vpop.f32.mrb[132].mxu1  ;;  %v17988_v24 = vsel %vm819_vm3, %v3781_v15, %v3782_v40  ;;  %v17991_v10 = vsel %vm2984_vm13, %v3957_v59, %v3958_v38  ;;  %v4134_v14 = vrot.slane %v3454_v27, 3 }
 0x699   : > { %v17993_v13 = vpack.c.bf16 %v14119_v63, %v14119_v63  ;;  %v3402_v35 = vpop.f32.mrb[133].mxu1  ;;  %v4135_v58 = vrot.slane %v3456_v39, 4  ;;  %v4139_v30 = vor.u32 %v4138_v56, %v4137_v45  ;;  %v4317_v20 = vrot.slane %v17970_v16, 4 }
 0x69a   : > { %v3459_v9 = vor.u32 %v3458_v57, %v3454_v27  ;;  %v14120_v48 = vpop.f32.mrb[134].mxu1  ;;  %v4318_v36 = vrot.slane %v17968_v19, 4  ;;  %v4493_v37 = vrot.slane %v17970_v16, 6  ;;  %v3467_v46 = vor.u32 %v17976_v6, %v3463_v33 }
 0x69b   : > { %v4682_v0 = vshll.u32 %v17993_v13, 16  ;;  %v3405_v53 = vpop.f32.mrb[135].mxu1  ;;  %v4136_v26 = vor.u32 %v4135_v58, %v4134_v14  ;;  %v4494_v52 = vrot.slane %v17968_v19, 6  ;;  %v4670_v11 = vrot.slane %v3454_v27, 6  ;;  %v14471_v58 = vld [vmem:[#allocation11 + $0x30] ss:$8 sps:$4 sm:$0xff]  }
 0x69c   : > { %v3464_v61 = vsel %vm1604_vm8, %v3459_v9, %v3463_v33  ;;  %v18003_v47 = vpack.c.bf16 %v3405_v53, %v3402_v35  ;;  %v18006_v17 = vsel %vm535_vm1, %v4317_v20, %v4318_v36  ;;  %v4864_v2 = vrot.slane %v17993_v13, 7  ;;  %v14473_v33 = vld [vmem:[#allocation11 + $0x34] ss:$8 sps:$4 sm:$0xff]   ;;  %v14476_v20 = vld [vmem:[#allocation11 + $0x44] ss:$8 sps:$4 sm:$0xff]  }
 0x69d   : > { %3592 = vmatmul.mubr.bf16.vlgmr.msra.gmra.mrb[0].mxu0 %v3464_v61  ;;  %v18010_v21 = vsel %vm4133_vm15, %v4136_v26, %v4139_v30  ;;  %v18013_v60 = vsel %vm2457_vm10, %v4493_v37, %v4494_v52  ;;  %v4671_v62 = vrot.slane %v3456_v39, 7  ;;  %v4674_v12 = vrot.slane %v17973_v22, 7  ;;  %v14468_v39 = vld [vmem:[#allocation11 + $0x20] ss:$8 sps:$4 sm:$0xff]   ;;  %v14482_v53 = vld [vmem:[#allocation11 + $0x64] ss:$8 sps:$4 sm:$0xff]  }
 0x69e   : > { %3701 = vmatpush1.bf16.msra.mxu0 %v14462_v25  ;;  %3601 = vmatprep.mubr.bf16.mxu0 %v18444_v34  ;;  %v3469_v54 = vshll.u32 %v18003_v47, 16  ;;  %v3473_v31 = vshrl.u32 %v18003_v47, 16  ;;  %v3784_v44 = vrot.slane %v18003_v47, 1  ;;  %v3960_v23 = vrot.slane %v18003_v47, 3  ;;  %v14485_v26 = vld [vmem:[#allocation11 + $0x74] ss:$8 sps:$4 sm:$0xff]  }
 0x69f   : > { %3702 = vmatprep.subr.bf16.mxu0 %v14467_v29  ;;  %v4320_v7 = vrot.slane %v18003_v47, 4  ;;  %v4496_v49 = vrot.slane %v18003_v47, 6  ;;  %v4672_v41 = vor.u32 %v4671_v62, %v4670_v11  ;;  %v4675_v27 = vor.u32 %v4674_v12, %v4673_v51  ;;  %v14479_v29 = vld [vmem:[#allocation11 + $0x54] ss:$8 sps:$4 sm:$0xff]   ;;  %v14488_v61 = vld [vmem:[#allocation11 + $0x104] ss:$8 sps:$4 sm:$0xff]  }
 0x6a0   : > { %v3471_v8 = vrot.slane %v3469_v54, 1  ;;  %v18026_v55 = vsel %vm819_vm3, %v3782_v40, %v3784_v44  ;;  %v18031_v43 = vsel %vm2984_vm13, %v3958_v38, %v3960_v23  ;;  %v4141_v18 = vrot.slane %v3473_v31, 3  ;;  %v14486_v11 = vld [vmem:[#allocation11 + $0x100] ss:$8 sps:$4 sm:$0xff]   ;;  %v14489_v62 = vld [vmem:[#allocation11 + $0x110] ss:$8 sps:$4 sm:$0xff]  }
 0x6a1   : > { %v4142_v28 = vrot.slane %v3469_v54, 4  ;;  %v18036_v6 = vsel %vm535_vm1, %v4318_v36, %v4320_v7  ;;  %v18041_v22 = vsel %vm2457_vm10, %v4494_v52, %v4496_v49  ;;  %v4684_v40 = vrot.slane %v4682_v0, 7  ;;  %v14474_v36 = vld [vmem:[#allocation11 + $0x40] ss:$8 sps:$4 sm:$0xff]   ;;  %v14477_v0 = vld [vmem:[#allocation11 + $0x50] ss:$8 sps:$4 sm:$0xff]  }
 0x6a2   : > { %3703 = vmatpush1.bf16.msra.mxu0 %v14465_v32  ;;  %v3472_v15 = vsel %vm1604_vm8, %v3467_v46, %v3471_v8  ;;  %v4677_v38 = vrot.slane %v3473_v31, 6  ;;  %v4678_v59 = vrot.slane %v3469_v54, 7  ;;  %v18047_v56 = vsel %vm4669_vm0, %v4672_v41, %v4675_v27  ;;  %v14480_v46 = vld [vmem:[#allocation11 + $0x60] ss:$8 sps:$4 sm:$0xff]   ;;  %v14483_v52 = vld [vmem:[#allocation11 + $0x70] ss:$8 sps:$4 sm:$0xff]  }
 0x6a3   : > { %3704 = vmatprep.subr.bf16.mxu0 %v14470_v50  ;;  %v18044_v45 = vor.u32 %v4142_v28, %v4141_v18  ;;  %v4859_v57 = vrot.slane %v17970_v16, 7  ;;  %v4860_v63 = vrot.slane %v17968_v19, 7  ;;  %v4862_v13 = vrot.slane %v18003_v47, 7  ;;  %v14494_v32 = vld [vmem:[#allocation11 + $0x124] ss:$8 sps:$4 sm:$0xff]  }
 0x6a4   : > { %v4679_v14 = vor.u32 %v4678_v59, %v4677_v38  ;;  %v3475_v37 = vor.u32 %v3473_v31, %v3471_v8  ;;  %v14492_v54 = vld [vmem:[#allocation11 + $0x120] ss:$8 sps:$4 sm:$0xff]   ;;  %v14497_v31 = vld [vmem:[#allocation11 + $0x134] ss:$8 sps:$4 sm:$0xff]   ;;  %v14495_v50 = vld [vmem:[#allocation11 + $0x130] ss:$8 sps:$4 sm:$0xff]  }
 0x6a5   : > { %3602 = vmatmul.mubr.bf16.gmra.mrb[4].mxu0 %v3472_v15  ;;  %v18054_v35 = vsel %vm4133_vm15, %v4139_v30, %v18044_v45  ;;  %v18057_v51 = vsel %vm1379_vm6, %v4859_v57, %v4860_v63  ;;  %v18067_v48 = vsel %vm1379_vm6, %v4860_v63, %v4862_v13  ;;  %v18070_v30 = vsel %vm1379_vm6, %v4862_v13, %v4864_v2  ;;  %v14491_v2 = vld [vmem:[#allocation11 + $0x114] ss:$8 sps:$4 sm:$0xff]   ;;  %v14500_v41 = vld [vmem:[#allocation11 + $0x144] ss:$8 sps:$4 sm:$0xff]   ;;  %v14501_v8 = vld [vmem:[#allocation11 + $0x150] ss:$8 sps:$4 sm:$0xff]  }
 0x6a6   : > { %3705 = vmatpush1.bf16.msra.mxu0 %v14468_v39  ;;  %3611 = vmatprep.mubr.bf16.mxu0 %v18444_v34  ;;  %v18061_v25 = vsel %vm4669_vm0, %v4675_v27, %v4679_v14  ;;  %v18064_v9 = vsel %vm4669_vm0, %v4679_v14, %v4684_v40  ;;  %v14503_v12 = vld [vmem:[#allocation11 + $0x154] ss:$8 sps:$4 sm:$0xff]   ;;  %v14506_v18 = vld [vmem:[#allocation11 + $0x164] ss:$8 sps:$4 sm:$0xff]   ;;  %v14507_v27 = vld [vmem:[#allocation11 + $0x170] ss:$8 sps:$4 sm:$0xff]  }
 0x6a7   : > { %3706 = vmatprep.subr.bf16.mxu0 %v14473_v33  ;;  %v14509_v28 = vld [vmem:[#allocation11 + $0x174] ss:$8 sps:$4 sm:$0xff]   ;;  %v14512_v40 = vld [vmem:[#allocation11 + $0x184] ss:$8 sps:$4 sm:$0xff]   ;;  %v14510_v39 = vld [vmem:[#allocation11 + $0x180] ss:$8 sps:$4 sm:$0xff]  }
 0x6a8   : > { %v14515_v15 = vld [vmem:[#allocation11 + $0x194] ss:$8 sps:$4 sm:$0xff]   ;;  %v14513_v38 = vld [vmem:[#allocation11 + $0x190] ss:$8 sps:$4 sm:$0xff]   ;;  %v14518_v59 = vld [vmem:[#allocation11 + $0x1a4] ss:$8 sps:$4 sm:$0xff]  }
 0x6a9   : > { %v14516_v33 = vld [vmem:[#allocation11 + $0x1a0] ss:$8 sps:$4 sm:$0xff]   ;;  %v14521_v57 = vld [vmem:[#allocation11 + $0x1b4] ss:$8 sps:$4 sm:$0xff]   ;;  %v14519_v63 = vld [vmem:[#allocation11 + $0x1b0] ss:$8 sps:$4 sm:$0xff]  }
 0x6aa   : > { %3707 = vmatpush1.bf16.msra.mxu0 %v14471_v58  ;;  %v14524_v14 = vld [vmem:[#allocation11 + $0x1c4] ss:$8 sps:$4 sm:$0xff]   ;;  %v14527_v13 = vld [vmem:[#allocation11 + $0x1d4] ss:$8 sps:$4 sm:$0xff]   ;;  %v14525_v58 = vld [vmem:[#allocation11 + $0x1d0] ss:$8 sps:$4 sm:$0xff]  }
 0x6ab   : > { %3708 = vmatprep.subr.bf16.mxu0 %v14476_v20  ;;  %v14530_v20 = vld [vmem:[#allocation11 + $0x1e4] ss:$8 sps:$4 sm:$0xff]   ;;  %vm9755_vm6 = vcmask 89088  }
 0x6ad   : > { %3612 = vmatmul.mubr.bf16.gmra.mrb[8].mxu0 %v3475_v37  ;;  %v14531_v37 = vld [vmem:[#allocation11 + $0x1f0] ss:$8 sps:$4 sm:$0xff]  }
 0x6ae   : > { %3709 = vmatpush1.bf16.msra.mxu0 %v14474_v36  ;;  %3732 = vmatprep.mubr.bf16.mxu0 %v18444_v34  ;;  %v14533_v36 = vld [vmem:[#allocation11 + $0x1f4] ss:$8 sps:$4 sm:$0xff]  }
 0x6af   : > { %3710 = vmatprep.subr.bf16.mxu0 %v14479_v29  ;;  %v14536_v29 = vld [vmem:[#allocation11 + $0x204] ss:$8 sps:$4 sm:$0xff]  }
 0x6b2   : > { %3711 = vmatpush1.bf16.msra.mxu0 %v14477_v0  ;;  %v14534_v0 = vld [vmem:[#allocation11 + $0x200] ss:$8 sps:$4 sm:$0xff]  }
 0x6b3   : > { %3712 = vmatprep.subr.bf16.mxu0 %v14482_v53  ;;  %v14539_v53 = vld [vmem:[#allocation11 + $0x214] ss:$8 sps:$4 sm:$0xff]  }
 0x6b6   : > { %3713 = vmatpush1.bf16.msra.mxu0 %v14480_v46  ;;  %v14542_v46 = vld [vmem:[#allocation11 + $0x224] ss:$8 sps:$4 sm:$0xff]  }
 0x6b7   : > { %3714 = vmatprep.subr.bf16.mxu0 %v14485_v26  ;;  %v14540_v26 = vld [vmem:[#allocation11 + $0x220] ss:$8 sps:$4 sm:$0xff]  }
 0x6ba   : > { %3715 = vmatpush1.bf16.msra.mxu0 %v14483_v52  ;;  %v14545_v52 = vld [vmem:[#allocation11 + $0x234] ss:$8 sps:$4 sm:$0xff]  }
 0x6bb   : > { %3869 = vmatprep.subr.bf16.mxu0 %v14488_v61  ;;  %v14543_v61 = vld [vmem:[#allocation11 + $0x230] ss:$8 sps:$4 sm:$0xff]  }
 0x6bd   : > { %3733 = vmatmul.mubr.bf16.vlgmr.msra.gmra.mrb[0].mxu0 %v17970_v16  ;;  %v14498_v16 = vld [vmem:[#allocation11 + $0x140] ss:$8 sps:$4 sm:$0xff]  }
 0x6be   : > { %3870 = vmatpush1.bf16.msra.mxu0 %v14486_v11  ;;  %3742 = vmatprep.mubr.bf16.mxu0 %v18444_v34  ;;  %v14548_v11 = vld [vmem:[#allocation11 + $0x244] ss:$8 sps:$4 sm:$0xff]  }
 0x6bf   : > { %3871 = vmatprep.subr.bf16.mxu0 %v14491_v2  ;;  %v14551_v2 = vld [vmem:[#allocation11 + $0x254] ss:$8 sps:$4 sm:$0xff]  }
 0x6c2   : > { %3872 = vmatpush1.bf16.msra.mxu0 %v14489_v62  ;;  %v14549_v62 = vld [vmem:[#allocation11 + $0x250] ss:$8 sps:$4 sm:$0xff]  }
 0x6c3   : > { %3873 = vmatprep.subr.bf16.mxu0 %v14494_v32  ;;  %v14554_v32 = vld [vmem:[#allocation11 + $0x264] ss:$8 sps:$4 sm:$0xff]  }
 0x6c5   : > { %3743 = vmatmul.mubr.bf16.gmra.mrb[4].mxu0 %v17968_v19  ;;  %v14504_v19 = vld [vmem:[#allocation11 + $0x160] ss:$8 sps:$4 sm:$0xff]  }
 0x6c6   : > { %3874 = vmatpush1.bf16.msra.mxu0 %v14492_v54  ;;  %3752 = vmatprep.mubr.bf16.mxu0 %v18444_v34  ;;  %v14557_v54 = vld [vmem:[#allocation11 + $0x274] ss:$8 sps:$4 sm:$0xff]  }
 0x6c7   : > { %3875 = vmatprep.subr.bf16.mxu0 %v14497_v31  ;;  %v14555_v31 = vld [vmem:[#allocation11 + $0x270] ss:$8 sps:$4 sm:$0xff]  }
 0x6ca   : > { %3876 = vmatpush1.bf16.msra.mxu0 %v14495_v50  ;;  %v14560_v50 = vld [vmem:[#allocation11 + $0x284] ss:$8 sps:$4 sm:$0xff]  }
 0x6cb   : > { %3877 = vmatprep.subr.bf16.mxu0 %v14500_v41  ;;  %v14558_v41 = vld [vmem:[#allocation11 + $0x280] ss:$8 sps:$4 sm:$0xff]  }
 0x6cd   : > { %3753 = vmatmul.mubr.bf16.gmra.mrb[12].mxu0 %v18003_v47  ;;  %v14633_v47 = vld [vmem:[#allocation11 + $0x410] ss:$8 sps:$4 sm:$0xff]  }
 0x6ce   : > { %3878 = vmatpush1.bf16.msra.mxu0 %v14498_v16  ;;  %3901 = vmatprep.mubr.bf16.mxu0 %v18444_v34  ;;  %v14563_v16 = vld [vmem:[#allocation11 + $0x294] ss:$8 sps:$4 sm:$0xff]  }
 0x6cf   : > { %3879 = vmatprep.subr.bf16.mxu0 %v14503_v12  ;;  %v14566_v12 = vld [vmem:[#allocation11 + $0x2a4] ss:$8 sps:$4 sm:$0xff]  }
 0x6d2   : > { %3880 = vmatpush1.bf16.msra.mxu0 %v14501_v8  ;;  %v14564_v8 = vld [vmem:[#allocation11 + $0x2a0] ss:$8 sps:$4 sm:$0xff]  }
 0x6d3   : > { %3881 = vmatprep.subr.bf16.mxu0 %v14506_v18  ;;  %v14569_v18 = vld [vmem:[#allocation11 + $0x2b4] ss:$8 sps:$4 sm:$0xff]  }
 0x6d6   : > { %3882 = vmatpush1.bf16.msra.mxu0 %v14504_v19  ;;  %v14567_v19 = vld [vmem:[#allocation11 + $0x2b0] ss:$8 sps:$4 sm:$0xff]  }
 0x6d7   : > { %3883 = vmatprep.subr.bf16.mxu0 %v14509_v28  ;;  %v14572_v28 = vld [vmem:[#allocation11 + $0x2c4] ss:$8 sps:$4 sm:$0xff]  }
 0x6da   : > { %3884 = vmatpush1.bf16.msra.mxu0 %v14507_v27  ;;  %v14575_v27 = vld [vmem:[#allocation11 + $0x2d4] ss:$8 sps:$4 sm:$0xff]  }
 0x6db   : > { %4045 = vmatprep.subr.bf16.mxu0 %v14512_v40  ;;  %v14573_v40 = vld [vmem:[#allocation11 + $0x2d0] ss:$8 sps:$4 sm:$0xff]  }
 0x6dd   : > { %3902 = vmatmul.mubr.bf16.vlgmr.msra.gmra.mrb[0].mxu0 %v17988_v24  ;;  %v14522_v24 = vld [vmem:[#allocation11 + $0x1c0] ss:$8 sps:$4 sm:$0xff]  }
 0x6de   : > { %4046 = vmatpush1.bf16.msra.mxu0 %v14510_v39  ;;  %3911 = vmatprep.mubr.bf16.mxu0 %v18444_v34  ;;  %v14578_v39 = vld [vmem:[#allocation11 + $0x2e4] ss:$8 sps:$4 sm:$0xff]  }
 0x6df   : > { %4047 = vmatprep.subr.bf16.mxu0 %v14515_v15  ;;  %v14581_v15 = vld [vmem:[#allocation11 + $0x2f4] ss:$8 sps:$4 sm:$0xff]  }
 0x6e2   : > { %4048 = vmatpush1.bf16.msra.mxu0 %v14513_v38  ;;  %v14579_v38 = vld [vmem:[#allocation11 + $0x2f0] ss:$8 sps:$4 sm:$0xff]  }
 0x6e3   : > { %4049 = vmatprep.subr.bf16.mxu0 %v14518_v59  ;;  %v14584_v59 = vld [vmem:[#allocation11 + $0x304] ss:$8 sps:$4 sm:$0xff]  }
 0x6e5   : > { %3912 = vmatmul.mubr.bf16.gmra.mrb[4].mxu0 %v18026_v55  ;;  %v14528_v55 = vld [vmem:[#allocation11 + $0x1e0] ss:$8 sps:$4 sm:$0xff]  }
 0x6e6   : > { %4050 = vmatpush1.bf16.msra.mxu0 %v14516_v33  ;;  %3921 = vmatprep.mubr.bf16.mxu0 %v18444_v34  ;;  %v14582_v33 = vld [vmem:[#allocation11 + $0x300] ss:$8 sps:$4 sm:$0xff]  }
 0x6e7   : > { %4051 = vmatprep.subr.bf16.mxu0 %v14521_v57  ;;  %v14587_v57 = vld [vmem:[#allocation11 + $0x314] ss:$8 sps:$4 sm:$0xff]  }
 0x6ea   : > { %4052 = vmatpush1.bf16.msra.mxu0 %v14519_v63  ;;  %v14590_v63 = vld [vmem:[#allocation11 + $0x324] ss:$8 sps:$4 sm:$0xff]  }
 0x6eb   : > { %4053 = vmatprep.subr.bf16.mxu0 %v14524_v14  ;;  %v14588_v14 = vld [vmem:[#allocation11 + $0x320] ss:$8 sps:$4 sm:$0xff]  }
 0x6ed   : > { %3922 = vmatmul.mubr.bf16.gmra.mrb[16].mxu0 %v3784_v44  ;;  %v14537_v44 = vld [vmem:[#allocation11 + $0x210] ss:$8 sps:$4 sm:$0xff]  }
 0x6ee   : > { %4054 = vmatpush1.bf16.msra.mxu0 %v14522_v24  ;;  %4077 = vmatprep.mubr.bf16.mxu0 %v18444_v34  ;;  %v14593_v24 = vld [vmem:[#allocation11 + $0x334] ss:$8 sps:$4 sm:$0xff]  }
 0x6ef   : > { %4055 = vmatprep.subr.bf16.mxu0 %v14527_v13  ;;  %v14591_v13 = vld [vmem:[#allocation11 + $0x330] ss:$8 sps:$4 sm:$0xff]  }
 0x6f2   : > { %4056 = vmatpush1.bf16.msra.mxu0 %v14525_v58  ;;  %v14596_v58 = vld [vmem:[#allocation11 + $0x344] ss:$8 sps:$4 sm:$0xff]  }
 0x6f3   : > { %4057 = vmatprep.subr.bf16.mxu0 %v14530_v20  ;;  %v14599_v20 = vld [vmem:[#allocation11 + $0x354] ss:$8 sps:$4 sm:$0xff]  }
 0x6f6   : > { %4058 = vmatpush1.bf16.msra.mxu0 %v14528_v55  ;;  %v14597_v55 = vld [vmem:[#allocation11 + $0x350] ss:$8 sps:$4 sm:$0xff]  }
 0x6f7   : > { %4059 = vmatprep.subr.bf16.mxu0 %v14533_v36  ;;  %v14602_v36 = vld [vmem:[#allocation11 + $0x364] ss:$8 sps:$4 sm:$0xff]  }
 0x6fa   : > { %4060 = vmatpush1.bf16.msra.mxu0 %v14531_v37  ;;  %v14605_v37 = vld [vmem:[#allocation11 + $0x374] ss:$8 sps:$4 sm:$0xff]  }
 0x6fb   : > { %4228 = vmatprep.subr.bf16.mxu0 %v14536_v29  ;;  %v14603_v29 = vld [vmem:[#allocation11 + $0x370] ss:$8 sps:$4 sm:$0xff]  }
 0x6fd   : > { %4078 = vmatmul.mubr.bf16.vlgmr.msra.gmra.mrb[0].mxu0 %v17991_v10  ;;  %v14546_v10 = vld [vmem:[#allocation11 + $0x240] ss:$8 sps:$4 sm:$0xff]  }
 0x6fe   : > { %4229 = vmatpush1.bf16.msra.mxu0 %v14534_v0  ;;  %4087 = vmatprep.mubr.bf16.mxu0 %v18444_v34  ;;  %v14608_v0 = vld [vmem:[#allocation11 + $0x384] ss:$8 sps:$4 sm:$0xff]  }
 0x6ff   : > { %4230 = vmatprep.subr.bf16.mxu0 %v14539_v53  ;;  %v14606_v53 = vld [vmem:[#allocation11 + $0x380] ss:$8 sps:$4 sm:$0xff]  }
 0x702   : > { %4231 = vmatpush1.bf16.msra.mxu0 %v14537_v44  ;;  %v14611_v44 = vld [vmem:[#allocation11 + $0x394] ss:$8 sps:$4 sm:$0xff]  }
 0x703   : > { %4232 = vmatprep.subr.bf16.mxu0 %v14542_v46  ;;  %v14614_v46 = vld [vmem:[#allocation11 + $0x3a4] ss:$8 sps:$4 sm:$0xff]  }
 0x705   : > { %4088 = vmatmul.mubr.bf16.gmra.mrb[4].mxu0 %v18031_v43  ;;  %v14552_v43 = vld [vmem:[#allocation11 + $0x260] ss:$8 sps:$4 sm:$0xff]  }
 0x706   : > { %4233 = vmatpush1.bf16.msra.mxu0 %v14540_v26  ;;  %4097 = vmatprep.mubr.bf16.mxu0 %v18444_v34  ;;  %v14612_v26 = vld [vmem:[#allocation11 + $0x3a0] ss:$8 sps:$4 sm:$0xff]  }
 0x707   : > { %4234 = vmatprep.subr.bf16.mxu0 %v14545_v52  ;;  %v14617_v52 = vld [vmem:[#allocation11 + $0x3b4] ss:$8 sps:$4 sm:$0xff]  }
 0x70a   : > { %4235 = vmatpush1.bf16.msra.mxu0 %v14543_v61  ;;  %v14615_v61 = vld [vmem:[#allocation11 + $0x3b0] ss:$8 sps:$4 sm:$0xff]  }
 0x70b   : > { %4236 = vmatprep.subr.bf16.mxu0 %v14548_v11  ;;  %v14620_v11 = vld [vmem:[#allocation11 + $0x3c4] ss:$8 sps:$4 sm:$0xff]  }
 0x70d   : > { %4098 = vmatmul.mubr.bf16.gmra.mrb[20].mxu0 %v3960_v23  ;;  %v14561_v23 = vld [vmem:[#allocation11 + $0x290] ss:$8 sps:$4 sm:$0xff]  }
 0x70e   : > { %4237 = vmatpush1.bf16.msra.mxu0 %v14546_v10  ;;  %4260 = vmatprep.mubr.bf16.mxu0 %v18444_v34  ;;  %v14623_v10 = vld [vmem:[#allocation11 + $0x3d4] ss:$8 sps:$4 sm:$0xff]  }
 0x70f   : > { %4238 = vmatprep.subr.bf16.mxu0 %v14551_v2  ;;  %v14621_v2 = vld [vmem:[#allocation11 + $0x3d0] ss:$8 sps:$4 sm:$0xff]  }
 0x712   : > { %4239 = vmatpush1.bf16.msra.mxu0 %v14549_v62  ;;  %v14626_v62 = vld [vmem:[#allocation11 + $0x3e4] ss:$8 sps:$4 sm:$0xff]  }
 0x713   : > { %4240 = vmatprep.subr.bf16.mxu0 %v14554_v32  ;;  %v14629_v32 = vld [vmem:[#allocation11 + $0x3f4] ss:$8 sps:$4 sm:$0xff]  }
 0x716   : > { %4241 = vmatpush1.bf16.msra.mxu0 %v14552_v43  ;;  %v14627_v43 = vld [vmem:[#allocation11 + $0x3f0] ss:$8 sps:$4 sm:$0xff]  }
 0x717   : > { %4242 = vmatprep.subr.bf16.mxu0 %v14557_v54  ;;  %v14632_v54 = vld [vmem:[#allocation11 + $0x404] ss:$8 sps:$4 sm:$0xff]  }
 0x71a   : > { %4243 = vmatpush1.bf16.msra.mxu0 %v14555_v31  ;;  %v14630_v31 = vld [vmem:[#allocation11 + $0x400] ss:$8 sps:$4 sm:$0xff]  }
 0x71b   : > { %4405 = vmatprep.subr.bf16.mxu0 %v14560_v50  ;;  %v14635_v50 = vld [vmem:[#allocation11 + $0x414] ss:$8 sps:$4 sm:$0xff]  }
 0x71d   : > { %4261 = vmatmul.mubr.bf16.vlgmr.msra.gmra.mrb[0].mxu0 %v18010_v21  ;;  %v14570_v21 = vld [vmem:[#allocation11 + $0x2c0] ss:$8 sps:$4 sm:$0xff]  }
 0x71e   : > { %4406 = vmatpush1.bf16.msra.mxu0 %v14558_v41  ;;  %4270 = vmatprep.mubr.bf16.mxu0 %v18444_v34 }
 0x71f   : > { %4407 = vmatprep.subr.bf16.mxu0 %v14563_v16 }
 0x722   : > { %4408 = vmatpush1.bf16.msra.mxu0 %v14561_v23  ;;  %v14636_v23 = vld [vmem:[#allocation11 + $0x420] ss:$8 sps:$4 sm:$0xff]  }
 0x723   : > { %4409 = vmatprep.subr.bf16.mxu0 %v14566_v12 }
 0x725   : > { %4271 = vmatmul.mubr.bf16.gmra.mrb[4].mxu0 %v18054_v35  ;;  %v14576_v35 = vld [vmem:[#allocation11 + $0x2e0] ss:$8 sps:$4 sm:$0xff]  }
 0x726   : > { %4410 = vmatpush1.bf16.msra.mxu0 %v14564_v8  ;;  %4280 = vmatprep.mubr.bf16.mxu0 %v18444_v34  ;;  %v14641_v8 = vld [vmem:[#allocation11 + $0x434] ss:$8 sps:$4 sm:$0xff]  }
 0x727   : > { %4411 = vmatprep.subr.bf16.mxu0 %v14569_v18 }
 0x72a   : > { %4412 = vmatpush1.bf16.msra.mxu0 %v14567_v19  ;;  %v14639_v19 = vld [vmem:[#allocation11 + $0x430] ss:$8 sps:$4 sm:$0xff]  }
 0x72b   : > { %4413 = vmatprep.subr.bf16.mxu0 %v14572_v28  ;;  %v14642_v28 = vld [vmem:[#allocation11 + $0x440] ss:$8 sps:$4 sm:$0xff]  }
 0x72d   : > { %4281 = vmatmul.mubr.bf16.gmra.mrb[24].mxu0 %v18044_v45  ;;  %v14585_v45 = vld [vmem:[#allocation11 + $0x310] ss:$8 sps:$4 sm:$0xff]  }
 0x72e   : > { %4414 = vmatpush1.bf16.msra.mxu0 %v14570_v21  ;;  %4437 = vmatprep.mubr.bf16.mxu0 %v18444_v34  ;;  %v14647_v21 = vld [vmem:[#allocation11 + $0x454] ss:$8 sps:$4 sm:$0xff]  }
 0x72f   : > { %4415 = vmatprep.subr.bf16.mxu0 %v14575_v27  ;;  %v14645_v27 = vld [vmem:[#allocation11 + $0x450] ss:$8 sps:$4 sm:$0xff]  }
 0x732   : > { %4416 = vmatpush1.bf16.msra.mxu0 %v14573_v40  ;;  %v14650_v40 = vld [vmem:[#allocation11 + $0x464] ss:$8 sps:$4 sm:$0xff]  }
 0x733   : > { %4417 = vmatprep.subr.bf16.mxu0 %v14578_v39  ;;  %v14653_v39 = vld [vmem:[#allocation11 + $0x474] ss:$8 sps:$4 sm:$0xff]  }
 0x736   : > { %4418 = vmatpush1.bf16.msra.mxu0 %v14576_v35  ;;  %v14651_v35 = vld [vmem:[#allocation11 + $0x470] ss:$8 sps:$4 sm:$0xff]  }
 0x737   : > { %4419 = vmatprep.subr.bf16.mxu0 %v14581_v15 }
 0x73a   : > { %4420 = vmatpush1.bf16.msra.mxu0 %v14579_v38 }
 0x73b   : > { %4581 = vmatprep.subr.bf16.mxu0 %v14584_v59 }
 0x73d   : > { %4438 = vmatmul.mubr.bf16.vlgmr.msra.gmra.mrb[0].mxu0 %v18006_v17  ;;  %v14594_v17 = vld [vmem:[#allocation11 + $0x340] ss:$8 sps:$4 sm:$0xff]  }
 0x73e   : > { %4582 = vmatpush1.bf16.msra.mxu0 %v14582_v33  ;;  %4447 = vmatprep.mubr.bf16.mxu0 %v18444_v34 }
 0x73f   : > { %4583 = vmatprep.subr.bf16.mxu0 %v14587_v57 }
 0x742   : > { %4584 = vmatpush1.bf16.msra.mxu0 %v14585_v45 }
 0x743   : > { %4585 = vmatprep.subr.bf16.mxu0 %v14590_v63 }
 0x745   : > { %4448 = vmatmul.mubr.bf16.gmra.mrb[4].mxu0 %v18036_v6  ;;  %v14600_v6 = vld [vmem:[#allocation11 + $0x360] ss:$8 sps:$4 sm:$0xff]  }
 0x746   : > { %4586 = vmatpush1.bf16.msra.mxu0 %v14588_v14  ;;  %4457 = vmatprep.mubr.bf16.mxu0 %v18444_v34 }
 0x747   : > { %4587 = vmatprep.subr.bf16.mxu0 %v14593_v24 }
 0x74a   : > { %4588 = vmatpush1.bf16.msra.mxu0 %v14591_v13 }
 0x74b   : > { %4589 = vmatprep.subr.bf16.mxu0 %v14596_v58 }
 0x74d   : > { %4458 = vmatmul.mubr.bf16.gmra.mrb[28].mxu0 %v4320_v7  ;;  %v14609_v7 = vld [vmem:[#allocation11 + $0x390] ss:$8 sps:$4 sm:$0xff]  }
 0x74e   : > { %4590 = vmatpush1.bf16.msra.mxu0 %v14594_v17  ;;  %4613 = vmatprep.mubr.bf16.mxu0 %v18444_v34 }
 0x74f   : > { %4591 = vmatprep.subr.bf16.mxu0 %v14599_v20 }
 0x752   : > { %4592 = vmatpush1.bf16.msra.mxu0 %v14597_v55 }
 0x753   : > { %4593 = vmatprep.subr.bf16.mxu0 %v14602_v36 }
 0x756   : > { %4594 = vmatpush1.bf16.msra.mxu0 %v14600_v6 }
 0x757   : > { %4595 = vmatprep.subr.bf16.mxu0 %v14605_v37 }
 0x75a   : > { %4596 = vmatpush1.bf16.msra.mxu0 %v14603_v29 }
 0x75b   : > { %4769 = vmatprep.subr.bf16.mxu0 %v14608_v0 }
 0x75d   : > { %4614 = vmatmul.mubr.bf16.vlgmr.msra.gmra.mrb[0].mxu0 %v18013_v60  ;;  %v14618_v60 = vld [vmem:[#allocation11 + $0x3c0] ss:$8 sps:$4 sm:$0xff]  }
 0x75e   : > { %4770 = vmatpush1.bf16.msra.mxu0 %v14606_v53  ;;  %4623 = vmatprep.mubr.bf16.mxu0 %v18444_v34 }
 0x75f   : > { %4771 = vmatprep.subr.bf16.mxu0 %v14611_v44 }
 0x762   : > { %4772 = vmatpush1.bf16.msra.mxu0 %v14609_v7 }
 0x763   : > { %4773 = vmatprep.subr.bf16.mxu0 %v14614_v46 }
 0x765   : > { %4624 = vmatmul.mubr.bf16.gmra.mrb[4].mxu0 %v18041_v22  ;;  %v14624_v22 = vld [vmem:[#allocation11 + $0x3e0] ss:$8 sps:$4 sm:$0xff]  }
 0x766   : > { %4774 = vmatpush1.bf16.msra.mxu0 %v14612_v26  ;;  %4633 = vmatprep.mubr.bf16.mxu0 %v18444_v34 }
 0x767   : > { %4775 = vmatprep.subr.bf16.mxu0 %v14617_v52 }
 0x76a   : > { %4776 = vmatpush1.bf16.msra.mxu0 %v14615_v61 }
 0x76b   : > { %4777 = vmatprep.subr.bf16.mxu0 %v14620_v11  ;;  %v14659_v11 = vld [vmem:[#allocation15 + $0x200] ss:$16 sps:$4 sm:$0xff]  }
 0x76d   : > { %4634 = vmatmul.mubr.bf16.gmra.mrb[32].mxu0 %v4496_v49  ;;  %v14638_v49 = vld [vmem:[#allocation11 + $0x424] ss:$8 sps:$4 sm:$0xff]  }
 0x76e   : > { %4778 = vmatpush1.bf16.msra.mxu0 %v14618_v60  ;;  %4801 = vmatprep.mubr.bf16.mxu0 %v18444_v34  ;;  %v14661_v60 = vld [vmem:[#allocation15 + $0x204] ss:$16 sps:$4 sm:$0xff]  }
 0x76f   : > { %4779 = vmatprep.subr.bf16.mxu0 %v14623_v10  ;;  %v14667_v10 = vld [vmem:[#allocation15 + $0x224] ss:$16 sps:$4 sm:$0xff]  }
 0x772   : > { %4780 = vmatpush1.bf16.msra.mxu0 %v14621_v2  ;;  %v14665_v2 = vld [vmem:[#allocation15 + $0x220] ss:$16 sps:$4 sm:$0xff]  }
 0x773   : > { %4781 = vmatprep.subr.bf16.mxu0 %v14626_v62  ;;  %v14673_v62 = vld [vmem:[#allocation15 + $0x244] ss:$16 sps:$4 sm:$0xff]  }
 0x776   : > { %4782 = vmatpush1.bf16.msra.mxu0 %v14624_v22  ;;  %v14671_v22 = vld [vmem:[#allocation15 + $0x240] ss:$16 sps:$4 sm:$0xff]  }
 0x777   : > { %4783 = vmatprep.subr.bf16.mxu0 %v14629_v32  ;;  %v14679_v32 = vld [vmem:[#allocation15 + $0x264] ss:$16 sps:$4 sm:$0xff]  }
 0x77a   : > { %4784 = vmatpush1.bf16.msra.mxu0 %v14627_v43  ;;  %v14677_v43 = vld [vmem:[#allocation15 + $0x260] ss:$16 sps:$4 sm:$0xff]  }
 0x77b   : > { %4949 = vmatprep.subr.bf16.mxu0 %v14632_v54  ;;  %v14685_v54 = vld [vmem:[#allocation15 + $0x284] ss:$16 sps:$4 sm:$0xff]  }
 0x77d   : > { %4802 = vmatmul.mubr.bf16.vlgmr.msra.gmra.mrb[0].mxu0 %v18047_v56  ;;  %v14644_v56 = vld [vmem:[#allocation11 + $0x444] ss:$8 sps:$4 sm:$0xff]  }
 0x77e   : > { %4950 = vmatpush1.bf16.msra.mxu0 %v14630_v31  ;;  %4811 = vmatprep.mubr.bf16.mxu0 %v18444_v34  ;;  %v14683_v31 = vld [vmem:[#allocation15 + $0x280] ss:$16 sps:$4 sm:$0xff]  }
 0x77f   : > { %4951 = vmatprep.subr.bf16.mxu0 %v14635_v50  ;;  %v14691_v50 = vld [vmem:[#allocation15 + $0x2a4] ss:$16 sps:$4 sm:$0xff]  }
 0x780   : > { %v3613_v41 = vpop.f32.mrb[8].mxu0 }
 0x781   : > { %v3615_v16 = vpop.f32.mrb[9].mxu0 }
 0x782   : > { %4952 = vmatpush1.bf16.msra.mxu0 %v14633_v47  ;;  %v3617_v12 = vpop.f32.mrb[10].mxu0  ;;  %v14689_v47 = vld [vmem:[#allocation15 + $0x2a0] ss:$16 sps:$4 sm:$0xff]  }
 0x783   : > { %4953 = vmatprep.subr.bf16.mxu0 %v14638_v49  ;;  %v3618_v18 = vpop.f32.mrb[11].mxu0  ;;  %v14697_v49 = vld [vmem:[#allocation15 + $0x2c4] ss:$16 sps:$4 sm:$0xff]  }
 0x785   : > { %4812 = vmatmul.mubr.bf16.gmra.mrb[4].mxu0 %v18061_v25  ;;  %v14648_v25 = vld [vmem:[#allocation11 + $0x460] ss:$8 sps:$4 sm:$0xff]  }
 0x786   : > { %4954 = vmatpush1.bf16.msra.mxu0 %v14636_v23  ;;  %4821 = vmatprep.mubr.bf16.mxu0 %v18444_v34  ;;  %v14701_v23 = vld [vmem:[#allocation15 + $0x2e0] ss:$16 sps:$4 sm:$0xff]  }
 0x787   : > { %4955 = vmatprep.subr.bf16.mxu0 %v14641_v8  ;;  %v14709_v8 = vld [vmem:[#allocation15 + $0x304] ss:$16 sps:$4 sm:$0xff]  }
 0x78a   : > { %4956 = vmatpush1.bf16.msra.mxu0 %v14639_v19 }
 0x78b   : > { %4957 = vmatprep.subr.bf16.mxu0 %v14644_v56 }
 0x78d   : > { %4822 = vmatmul.mubr.bf16.gmra.mrb[36].mxu0 %v18064_v9 }
 0x78e   : > { %4958 = vmatpush1.bf16.msra.mxu0 %v14642_v28  ;;  %4981 = vmatprep.mubr.bf16.mxu0 %v18444_v34 }
 0x78f   : > { %4959 = vmatprep.subr.bf16.mxu0 %v14647_v21 }
 0x792   : > { %4960 = vmatpush1.bf16.msra.mxu0 %v14645_v27  ;;  %v14707_v27 = vld [vmem:[#allocation15 + $0x300] ss:$16 sps:$4 sm:$0xff]  }
 0x793   : > { %4961 = vmatprep.subr.bf16.mxu0 %v14650_v40  ;;  %v14715_v40 = vld [vmem:[#allocation15 + $0x324] ss:$16 sps:$4 sm:$0xff]  }
 0x796   : > { %4962 = vmatpush1.bf16.msra.mxu0 %v14648_v25  ;;  %v14713_v25 = vld [vmem:[#allocation15 + $0x320] ss:$16 sps:$4 sm:$0xff]  }
 0x797   : > { %4963 = vmatprep.subr.bf16.mxu0 %v14653_v39  ;;  %v14721_v39 = vld [vmem:[#allocation15 + $0x344] ss:$16 sps:$4 sm:$0xff]  }
 0x79a   : > { %4964 = vmatpush1.bf16.msra.mxu0 %v14651_v35  ;;  %v14719_v35 = vld [vmem:[#allocation15 + $0x340] ss:$16 sps:$4 sm:$0xff]  }
 0x79b   : > { %5714 = vmatprep.subr.bf16.mxu0 %v14661_v60 }
 0x79d   : > { %4982 = vmatmul.mubr.bf16.vlgmr.msra.gmra.mrb[0].mxu0 %v18057_v51 }
 0x79e   : > { %4991 = vmatprep.mubr.bf16.mxu0 %v18444_v34  ;;  %5715 = vmatpush1.bf16.msra.mxu0 %v14659_v11 }
 0x79f   : > { %5716 = vmatprep.subr.bf16.mxu0 %v14667_v10 }
 0x7a0   : > { %v3754_v15 = vpop.f32.mrb[12].mxu0 }
 0x7a1   : > { %v3755_v9 = vadd.f32 %v3754_v15, %v3613_v41  ;;  %v3756_v38 = vpop.f32.mrb[13].mxu0  ;;  %v14695_v41 = vld [vmem:[#allocation15 + $0x2c0] ss:$16 sps:$4 sm:$0xff]   ;;  %v14727_v15 = vld [vmem:[#allocation15 + $0x364] ss:$16 sps:$4 sm:$0xff]  }
 0x7a2   : > { %v3757_v59 = vadd.f32 %v3756_v38, %v3615_v16  ;;  %v3758_v33 = vpop.f32.mrb[14].mxu0  ;;  %5717 = vmatpush1.bf16.msra.mxu0 %v14665_v2  ;;  %v14703_v16 = vld [vmem:[#allocation15 + $0x2e4] ss:$16 sps:$4 sm:$0xff]  }
 0x7a3   : > { %v3759_v57 = vpop.f32.mrb[15].mxu0  ;;  %5718 = vmatprep.subr.bf16.mxu0 %v14673_v62  ;;  %v14733_v38 = vld [vmem:[#allocation15 + $0x384] ss:$16 sps:$4 sm:$0xff]  }
 0x7a5   : > { %4992 = vmatmul.mubr.bf16.gmra.mrb[4].mxu0 %v18067_v48 }
 0x7a6   : > { %5001 = vmatprep.mubr.bf16.mxu0 %v18444_v34  ;;  %5719 = vmatpush1.bf16.msra.mxu0 %v14671_v22 }
 0x7a7   : > { %5720 = vmatprep.subr.bf16.mxu0 %v14679_v32 }
 0x7aa   : > { %5721 = vmatpush1.bf16.msra.mxu0 %v14677_v43 }
 0x7ab   : > { %5722 = vmatprep.subr.bf16.mxu0 %v14685_v54 }
 0x7ad   : > { %5002 = vmatmul.mubr.bf16.gmra.mrb[40].mxu0 %v18070_v30 }
 0x7ae   : > { %5723 = vmatpush1.bf16.msra.mxu0 %v14683_v31 }
 0x7af   : > { %5724 = vmatprep.subr.bf16.mxu0 %v14691_v50 }
 0x7b2   : > { %5725 = vmatpush1.bf16.msra.mxu0 %v14689_v47 }
 0x7b3   : > { %5726 = vmatprep.subr.bf16.mxu0 %v14697_v49 }
 0x7b6   : > { %5727 = vmatpush1.bf16.msra.mxu0 %v14695_v41 }
 0x7b7   : > { %5728 = vmatprep.subr.bf16.mxu0 %v14703_v16 }
 0x7ba   : > { %5729 = vmatpush1.bf16.msra.mxu0 %v14701_v23 }
 0x7bb   : > { %5730 = vmatprep.subr.bf16.mxu0 %v14709_v8 }
 0x7be   : > { %5731 = vmatpush1.bf16.msra.mxu0 %v14707_v27 }
 0x7bf   : > { %5732 = vmatprep.subr.bf16.mxu0 %v14715_v40 }
 0x7c0   : > { %v3923_v45 = vpop.f32.mrb[16].mxu0 }
 0x7c1   : > { %v3938_v63 = vadd.f32 %v3923_v45, %v3755_v9  ;;  %v3925_v14 = vpop.f32.mrb[17].mxu0  ;;  %v14725_v9 = vld [vmem:[#allocation15 + $0x360] ss:$16 sps:$4 sm:$0xff]  }
 0x7c2   : > { %v3939_v24 = vadd.f32 %v3925_v14, %v3757_v59  ;;  %v3927_v13 = vpop.f32.mrb[18].mxu0  ;;  %5733 = vmatpush1.bf16.msra.mxu0 %v14713_v25  ;;  %v14731_v59 = vld [vmem:[#allocation15 + $0x380] ss:$16 sps:$4 sm:$0xff]  }
 0x7c3   : > { %v3928_v51 = vpop.f32.mrb[19].mxu0  ;;  %5734 = vmatprep.subr.bf16.mxu0 %v14721_v39  ;;  %v18125_v13 = vsub.s32 0, %v16733_v1 }
 0x7c4   : > { %v5020_v51 = vld [vmem:[#allocation12] sm:$0x3] }
 0x7c6   : > { %5735 = vmatpush1.bf16.msra.mxu0 %v14719_v35 }
 0x7c7   : > { %5736 = vmatprep.subr.bf16.mxu0 %v14727_v15 }
 0x7ca   : > { %5737 = vmatpush1.bf16.msra.mxu0 %v14725_v9 }
 0x7cb   : > { %5738 = vmatprep.subr.bf16.mxu0 %v14733_v38 }
 0x7ce   : > { %5739 = vmatpush1.bf16.msra.mxu0 %v14731_v59 }
 0x7e0   : > { %v4099_v58 = vpop.f32.mrb[20].mxu0 }
 0x7e1   : > { %v4114_v17 = vadd.f32 %v4099_v58, %v3938_v63  ;;  %v4101_v20 = vpop.f32.mrb[21].mxu0  ;;  %v18128_v58 = vsub.s32 1, %v16733_v1 }
 0x7e2   : > { %v4115_v55 = vadd.f32 %v4101_v20, %v3939_v24  ;;  %v4103_v36 = vpop.f32.mrb[22].mxu0 }
 0x7e3   : > { %v4104_v6 = vpop.f32.mrb[23].mxu0  ;;  %v5029_v20 = vrot.slane %v5020_v51, %v18128_v58 }
 0x800   : > { %v4282_v37 = vpop.f32.mrb[24].mxu0 }
 0x801   : > { %v4297_v29 = vadd.f32 %v4282_v37, %v4114_v17  ;;  %v4284_v0 = vpop.f32.mrb[25].mxu0  ;;  %v5025_v17 = vrot.slane %v5020_v51, %v18125_v13 }
 0x802   : > { %v4298_v48 = vadd.f32 %v4284_v0, %v4115_v55  ;;  %v4286_v53 = vpop.f32.mrb[26].mxu0 }
 0x803   : > { %v4287_v44 = vpop.f32.mrb[27].mxu0 }
 0x820   : > { %v4459_v7 = vpop.f32.mrb[28].mxu0 }
 0x821   : > { %v4474_v30 = vadd.f32 %v4459_v7, %v4297_v29  ;;  %v4461_v46 = vpop.f32.mrb[29].mxu0 }
 0x822   : > { %v4475_v26 = vadd.f32 %v4461_v46, %v4298_v48  ;;  %v4463_v52 = vpop.f32.mrb[30].mxu0 }
 0x823   : > { %v4464_v61 = vpop.f32.mrb[31].mxu0 }
 0x840   : > { %v4635_v12 = vpop.f32.mrb[32].mxu0 }
 0x841   : > { %v4650_v18 = vadd.f32 %v4635_v12, %v4474_v30  ;;  %v4637_v19 = vpop.f32.mrb[33].mxu0 }
 0x842   : > { %v4651_v56 = vadd.f32 %v4637_v19, %v4475_v26  ;;  %v4639_v28 = vpop.f32.mrb[34].mxu0 }
 0x843   : > { %v4640_v21 = vpop.f32.mrb[35].mxu0 }
 0x860   : > { %v4823_v33 = vpop.f32.mrb[36].mxu0 }
 0x861   : > { %v4838_v57 = vadd.f32 %v4823_v33, %v4650_v18  ;;  %v4825_v45 = vpop.f32.mrb[37].mxu0 }
 0x862   : > { %v4839_v63 = vadd.f32 %v4825_v45, %v4651_v56  ;;  %v4827_v14 = vpop.f32.mrb[38].mxu0 }
 0x863   : > { %v4828_v24 = vpop.f32.mrb[39].mxu0 }
 0x870   : > { %v4983_v55 = vpop.f32.mrb[0].mxu0 }
 0x871   : > { %v5032_v36 = vadd.f32 %v5025_v17, %v4983_v55  ;;  %v4985_v6 = vpop.f32.mrb[1].mxu0 }
 0x872   : > { %v5033_v37 = vadd.f32 %v5029_v20, %v4985_v6  ;;  %v4987_v29 = vpop.f32.mrb[2].mxu0 }
 0x873   : > { %v5042_v0 = vmax.f32 %v5032_v36, 0.0  ;;  %v5034_v48 = vadd.f32 %v5025_v17, %v4987_v29  ;;  %v4989_v53 = vpop.f32.mrb[3].mxu0 }
 0x874   : > { %v5043_v44 = vmax.f32 %v5033_v37, 0.0  ;;  %v5035_v7 = vadd.f32 %v5029_v20, %v4989_v53 }
 0x875   : > { %v5044_v30 = vmax.f32 %v5034_v48, 0.0  ;;  %v5060_v26 = vrot.slane %v5042_v0, 1 }
 0x876   : > { %v5045_v46 = vmax.f32 %v5035_v7, 0.0  ;;  %v5063_v61 = vrot.slane %v5043_v44, 1 }
 0x877   : > { %v5061_v52 = vrot.slane %v5044_v30, 1 }
 0x878   : > { %v5064_v11 = vrot.slane %v5045_v46, 1  ;;  %v4993_v60 = vpop.f32.mrb[4].mxu0 }
 0x879   : > { %v5062_v10 = vsel %vm819_vm3, %v5060_v26, %v5061_v52  ;;  %v5036_v2 = vadd.f32 %v5025_v17, %v4993_v60  ;;  %v4995_v62 = vpop.f32.mrb[5].mxu0 }
 0x87a   : > { %v5082_v22 = vmax.f32 %v5042_v0, %v5062_v10  ;;  %v5065_v32 = vsel %vm819_vm3, %v5063_v61, %v5064_v11  ;;  %v5037_v43 = vadd.f32 %v5029_v20, %v4995_v62  ;;  %v4997_v54 = vpop.f32.mrb[6].mxu0 }
 0x87b   : > { %v5046_v31 = vmax.f32 %v5036_v2, 0.0  ;;  %v5038_v50 = vadd.f32 %v5025_v17, %v4997_v54  ;;  %v4999_v47 = vpop.f32.mrb[7].mxu0  ;;  %v5083_v49 = vmax.f32 %v5043_v44, %v5065_v32 }
 0x87c   : > { %v5047_v41 = vmax.f32 %v5037_v43, 0.0  ;;  %v5039_v16 = vadd.f32 %v5029_v20, %v4999_v47  ;;  %v5115_v25 = vrot.slane %v5082_v22, 6 }
 0x87d   : > { %v5066_v23 = vrot.slane %v5046_v31, 1  ;;  %v5048_v12 = vmax.f32 %v5038_v50, 0.0  ;;  %v5118_v14 = vrot.slane %v5083_v49, 6 }
 0x87e   : > { %v5068_v8 = vrot.slane %v5047_v41, 1  ;;  %v5049_v18 = vmax.f32 %v5039_v16, 0.0 }
 0x87f   : > { %v5067_v19 = vsel %vm819_vm3, %v5061_v52, %v5066_v23  ;;  %v5070_v56 = vrot.slane %v5048_v12, 1 }
 0x880   : > { %v5084_v28 = vmax.f32 %v5044_v30, %v5067_v19  ;;  %v5069_v21 = vsel %vm819_vm3, %v5064_v11, %v5068_v8  ;;  %v5072_v27 = vrot.slane %v5049_v18, 1  ;;  %v5003_v40 = vpop.f32.mrb[40].mxu0  ;;  %v5174_v19 = vsel %vm1026_vm4, 4294967295, %v16396_v42 }
 0x881   : > { %v5071_v39 = vsel %vm819_vm3, %v5066_v23, %v5070_v56  ;;  %v5018_v35 = vadd.f32 %v5003_v40, %v4838_v57  ;;  %v5005_v15 = vpop.f32.mrb[41].mxu0  ;;  %v5085_v9 = vmax.f32 %v5045_v46, %v5069_v21 }
 0x882   : > { %v5116_v38 = vrot.slane %v5084_v28, 6  ;;  %v5086_v59 = vmax.f32 %v5046_v31, %v5071_v39  ;;  %v5073_v33 = vsel %vm819_vm3, %v5068_v8, %v5072_v27  ;;  %v5007_v45 = vpop.f32.mrb[42].mxu0  ;;  %v5019_v55 = vadd.f32 %v5005_v15, %v4839_v63  ;;  %v14658_v15 = vld [vmem:[#allocation15 + $0x40c] ss:$16 sps:$4 sm:$0xff]  }
 0x883   : > { %v5087_v24 = vmax.f32 %v5047_v41, %v5073_v33  ;;  %v5040_v51 = vadd.f32 %v5025_v17, %v5018_v35  ;;  %v5008_v36 = vpop.f32.mrb[43].mxu0  ;;  %v5119_v6 = vrot.slane %v5085_v9, 6  ;;  %v5089_v16 = vmax.f32 %v5049_v18, %v5072_v27  ;;  %v14670_v33 = vld [vmem:[#allocation15 + $0x44c] ss:$16 sps:$4 sm:$0xff]  }
 0x884   : > { %v5121_v37 = vrot.slane %v5086_v59, 6  ;;  %v5117_v29 = vsel %vm2457_vm10, %v5115_v25, %v5116_v38  ;;  %v5041_v48 = vadd.f32 %v5029_v20, %v5019_v55  ;;  %v14655_v45 = vld [vmem:[#allocation14 + $0x8] sm:$0x1f]  }
 0x885   : > { %v5050_v0 = vmax.f32 %v5040_v51, 0.0  ;;  %v5120_v57 = vsel %vm2457_vm10, %v5118_v14, %v5119_v6  ;;  %v5123_v53 = vrot.slane %v5087_v24, 6  ;;  %v5141_v30 = vmax.f32 %v5082_v22, %v5117_v29  ;;  %v14668_v14 = vld [vmem:[#allocation15 + $0x448] ss:$16 sps:$4 sm:$0xff]   ;;  %v14682_v55 = vld [vmem:[#allocation15 + $0x48c] ss:$16 sps:$4 sm:$0xff]  }
 0x886   : > { %v5142_v44 = vmax.f32 %v5083_v49, %v5120_v57  ;;  %v5122_v7 = vsel %vm2457_vm10, %v5116_v38, %v5121_v37  ;;  %v5051_v26 = vmax.f32 %v5041_v48, 0.0  ;;  %v5088_v22 = vmax.f32 %v5048_v12, %v5070_v56  ;;  %v14664_v38 = vld [vmem:[#allocation15 + $0x42c] ss:$16 sps:$4 sm:$0xff]   ;;  %v14674_v51 = vld [vmem:[#allocation15 + $0x468] ss:$16 sps:$4 sm:$0xff]  }
 0x887   : > { %v5092_v46 = vrot.slane %v5050_v0, 1  ;;  %v5124_v52 = vsel %vm2457_vm10, %v5119_v6, %v5123_v53  ;;  %v5143_v17 = vmax.f32 %v5084_v28, %v5122_v7  ;;  %v14680_v36 = vld [vmem:[#allocation15 + $0x488] ss:$16 sps:$4 sm:$0xff]   ;;  %v14688_v6 = vld [vmem:[#allocation15 + $0x4ac] ss:$16 sps:$4 sm:$0xff]  }
 0x888   : > { %v5144_v63 = vmax.f32 %v5085_v9, %v5124_v52  ;;  %v5094_v60 = vrot.slane %v5051_v26, 1  ;;  %v14694_v29 = vld [vmem:[#allocation15 + $0x4cc] ss:$16 sps:$4 sm:$0xff]   ;;  %v14698_v57 = vld [vmem:[#allocation15 + $0x4e8] ss:$16 sps:$4 sm:$0xff]  }
 0x889   : > { %v5093_v61 = vsel %vm819_vm3, %v5070_v56, %v5092_v46  ;;  %v5102_v11 = vmax.f32 %v5050_v0, %v5092_v46  ;;  %v5153_v10 = vpack.c.bf16 %v5143_v17, %v5141_v30  ;;  %v5175_v56 = vsel %vm819_vm3, %v5174_v19, 0  ;;  %v14692_v0 = vld [vmem:[#allocation15 + $0x4c8] ss:$16 sps:$4 sm:$0xff]   ;;  %v14700_v48 = vld [vmem:[#allocation15 + $0x4ec] ss:$16 sps:$4 sm:$0xff]  }
 0x88a   : > { %v5100_v2 = vmax.f32 %v5048_v12, %v5093_v61  ;;  %v5154_v20 = vpack.c.bf16 %v5144_v63, %v5142_v44  ;;  %v5095_v32 = vsel %vm819_vm3, %v5072_v27, %v5094_v60  ;;  %v5103_v43 = vmax.f32 %v5051_v26, %v5094_v60  ;;  %v14656_v27 = vld [vmem:[#allocation15 + $0x408] ss:$16 sps:$4 sm:$0xff]   ;;  %v14712_v7 = vld [vmem:[#allocation15 + $0x52c] ss:$16 sps:$4 sm:$0xff]  }
 0x88b   : > { %v5129_v62 = vrot.slane %v5102_v11, 6  ;;  %v5101_v31 = vmax.f32 %v5049_v18, %v5095_v32  ;;  %v14654_v18 = vld [vmem:[#allocation14] sm:$0xff]   ;;  %v14704_v44 = vld [vmem:[#allocation15 + $0x508] ss:$16 sps:$4 sm:$0xff]   ;;  %v14718_v46 = vld [vmem:[#allocation15 + $0x54c] ss:$16 sps:$4 sm:$0xff]  }
 0x88c   : > { %v5125_v54 = vrot.slane %v5100_v2, 6  ;;  %5182 = vmatprep.subr.bf16.mxu1 %v5154_v20  ;;  %v5131_v50 = vrot.slane %v5103_v43, 6  ;;  %v14710_v30 = vld [vmem:[#allocation15 + $0x528] ss:$16 sps:$4 sm:$0xff]   ;;  %v14724_v52 = vld [vmem:[#allocation15 + $0x56c] ss:$16 sps:$4 sm:$0xff]  }
 0x88d   : > { %5183 = vmatpush1.bf16.msra.mxu1 %v5153_v10  ;;  %v5127_v49 = vrot.slane %v5101_v31, 6  ;;  %v14716_v26 = vld [vmem:[#allocation15 + $0x548] ss:$16 sps:$4 sm:$0xff]   ;;  %v14730_v63 = vld [vmem:[#allocation15 + $0x58c] ss:$16 sps:$4 sm:$0xff]  }
 0x88e   : > { %v5130_v47 = vsel %vm2457_vm10, %v5125_v54, %v5129_v62  ;;  %v5126_v41 = vsel %vm2457_vm10, %v5121_v37, %v5125_v54  ;;  %v14686_v37 = vld [vmem:[#allocation15 + $0x4a8] ss:$16 sps:$4 sm:$0xff]   ;;  %v14736_v60 = vld [vmem:[#allocation15 + $0x5ac] ss:$16 sps:$4 sm:$0xff]   ;;  %v14737_v10 = vld [vmem:[#allocation15 + $0x3a0] ss:$16 sps:$4 sm:$0xff]  }
 0x88f   : > { %v5145_v23 = vmax.f32 %v5086_v59, %v5126_v41  ;;  %v5147_v8 = vmax.f32 %v5088_v22, %v5130_v47  ;;  %v5128_v28 = vsel %vm2457_vm10, %v5123_v53, %v5127_v49  ;;  %v5132_v21 = vsel %vm2457_vm10, %v5127_v49, %v5131_v50  ;;  %v14662_v59 = vld [vmem:[#allocation15 + $0x428] ss:$16 sps:$4 sm:$0xff]   ;;  %v14706_v53 = vld [vmem:[#allocation15 + $0x50c] ss:$16 sps:$4 sm:$0xff]   ;;  %v14739_v2 = vld [vmem:[#allocation15 + $0x3a4] ss:$16 sps:$4 sm:$0xff]  }
 0x890   : > { %v5146_v40 = vmax.f32 %v5087_v24, %v5128_v28  ;;  %v5148_v25 = vmax.f32 %v5089_v16, %v5132_v21  ;;  %v14676_v24 = vld [vmem:[#allocation15 + $0x46c] ss:$16 sps:$4 sm:$0xff]   ;;  %v14722_v17 = vld [vmem:[#allocation15 + $0x568] ss:$16 sps:$4 sm:$0xff]   ;;  %5740 = vmatprep.subr.bf16.mxu0 %v14739_v2  ;;  %v14743_v32 = vld [vmem:[#allocation15 + $0x3c0] ss:$16 sps:$4 sm:$0xff]  }
 0x891   : > { %v5155_v12 = vpack.c.bf16 %v5147_v8, %v5145_v23  ;;  %v14728_v61 = vld [vmem:[#allocation15 + $0x588] ss:$16 sps:$4 sm:$0xff]   ;;  %5741 = vmatpush1.bf16.msra.mxu0 %v14737_v10  ;;  %v14742_v62 = vld [vmem:[#allocation15 + $0x5cc] ss:$16 sps:$4 sm:$0xff]   ;;  %v14745_v43 = vld [vmem:[#allocation15 + $0x3c4] ss:$16 sps:$4 sm:$0xff]  }
 0x892   : > { %v5156_v39 = vpack.c.bf16 %v5148_v25, %v5146_v40  ;;  %v14734_v11 = vld [vmem:[#allocation15 + $0x5a8] ss:$16 sps:$4 sm:$0xff]   ;;  %v14748_v31 = vld [vmem:[#allocation15 + $0x5ec] ss:$16 sps:$4 sm:$0xff]   ;;  %v14751_v22 = vld [vmem:[#allocation15 + $0x3e4] ss:$16 sps:$4 sm:$0xff]   ;;  %5742 = vmatprep.subr.bf16.mxu0 %v14745_v43 }
 0x893   : > { %v5177_v9 = vand.u32 %v5175_v56, %v5155_v12  ;;  %v14740_v20 = vld [vmem:[#allocation15 + $0x5c8] ss:$16 sps:$4 sm:$0xff]   ;;  %v14749_v50 = vld [vmem:[#allocation15 + $0x3e0] ss:$16 sps:$4 sm:$0xff]   ;;  %v14754_v47 = vld [vmem:[#allocation15 + $0x604] ss:$16 sps:$4 sm:$0xff]  }
 0x894   : > { %v5180_v35 = vand.u32 %v5175_v56, %v5156_v39  ;;  %v14746_v54 = vld [vmem:[#allocation15 + $0x5e8] ss:$16 sps:$4 sm:$0xff]   ;;  %v14757_v49 = vld [vmem:[#allocation15 + $0x20c] ss:$16 sps:$4 sm:$0xff]  }
 0x895   : > { %5743 = vmatpush1.bf16.msra.mxu0 %v14743_v32  ;;  %v14755_v10 = vld [vmem:[#allocation15 + $0x208] ss:$16 sps:$4 sm:$0xff]   ;;  %v14763_v43 = vld [vmem:[#allocation15 + $0x22c] ss:$16 sps:$4 sm:$0xff]  }
 0x896   : > { %5184 = vmatprep.subr.bf16.mxu1 %v5180_v35  ;;  %5744 = vmatprep.subr.bf16.mxu0 %v14751_v22 }
 0x897   : > { %5185 = vmatpush1.bf16.msra.mxu1 %v5177_v9 }
 0x898   : > { %6646 = vmatprep.subr.bf16.mxu1 %v14658_v15 }
 0x899   : > { %5745 = vmatpush1.bf16.msra.mxu0 %v14749_v50  ;;  %v14758_v50 = vld [vmem:[#allocation15 + $0x620] ss:$16 sps:$4 sm:$0xff]  }
 0x89a   : > { %12534 = vmatmul.mubr.msk.bf16.vlgmr.msra.gmra.mrb[136].mxu1 %vm5167_vm2, %v14654_v18  ;;  %5757 = vmatprep.subr.bf16.mxu0 %v14757_v49 }
 0x89b   : > { %5224 = vmatprep.mubr.bf16.mxu1 %v18444_v34  ;;  %6647 = vmatpush1.bf16.msra.mxu1 %v14656_v27 }
 0x89c   : > { %6648 = vmatprep.subr.bf16.mxu1 %v14664_v38 }
 0x89f   : > { %6649 = vmatpush1.bf16.msra.mxu1 %v14662_v59 }
 0x8a0   : > { %6650 = vmatprep.subr.bf16.mxu1 %v14670_v33 }
 0x8a2   : > { %12535 = vmatmul.mubr.msk.bf16.gmra.mrb[140].mxu1 %vm5167_vm2, %v14655_v45 }
 0x8a3   : > { %6651 = vmatpush1.bf16.msra.mxu1 %v14668_v14 }
 0x8a4   : > { %6652 = vmatprep.subr.bf16.mxu1 %v14676_v24 }
 0x8a7   : > { %6653 = vmatpush1.bf16.msra.mxu1 %v14674_v51 }
 0x8a8   : > { %6654 = vmatprep.subr.bf16.mxu1 %v14682_v55 }
 0x8ab   : > { %6655 = vmatpush1.bf16.msra.mxu1 %v14680_v36 }
 0x8ac   : > { %6656 = vmatprep.subr.bf16.mxu1 %v14688_v6 }
 0x8af   : > { %6657 = vmatpush1.bf16.msra.mxu1 %v14686_v37 }
 0x8b0   : > { %6658 = vmatprep.subr.bf16.mxu1 %v14694_v29 }
 0x8b3   : > { %6659 = vmatpush1.bf16.msra.mxu1 %v14692_v0 }
 0x8b4   : > { %6660 = vmatprep.subr.bf16.mxu1 %v14700_v48 }
 0x8b7   : > { %6661 = vmatpush1.bf16.msra.mxu1 %v14698_v57 }
 0x8b8   : > { %6662 = vmatprep.subr.bf16.mxu1 %v14706_v53 }
 0x8bb   : > { %6663 = vmatpush1.bf16.msra.mxu1 %v14704_v44  ;;  %v14752_v44 = vld [vmem:[#allocation15 + $0x600] ss:$16 sps:$4 sm:$0xff]  }
 0x8bc   : > { %6664 = vmatprep.subr.bf16.mxu1 %v14712_v7 }
 0x8bf   : > { %6665 = vmatpush1.bf16.msra.mxu1 %v14710_v30 }
 0x8c0   : > { %6666 = vmatprep.subr.bf16.mxu1 %v14718_v46 }
 0x8c3   : > { %6667 = vmatpush1.bf16.msra.mxu1 %v14716_v26 }
 0x8c4   : > { %6668 = vmatprep.subr.bf16.mxu1 %v14724_v52 }
 0x8c7   : > { %6669 = vmatpush1.bf16.msra.mxu1 %v14722_v17 }
 0x8c8   : > { %6670 = vmatprep.subr.bf16.mxu1 %v14730_v63  ;;  %v14760_v63 = vld [vmem:[#allocation15 + $0x624] ss:$16 sps:$4 sm:$0xff]  }
 0x8cb   : > { %6671 = vmatpush1.bf16.msra.mxu1 %v14728_v61 }
 0x8cc   : > { %6672 = vmatprep.subr.bf16.mxu1 %v14736_v60 }
 0x8cf   : > { %6673 = vmatpush1.bf16.msra.mxu1 %v14734_v11 }
 0x8d0   : > { %6674 = vmatprep.subr.bf16.mxu1 %v14742_v62 }
 0x8d3   : > { %6675 = vmatpush1.bf16.msra.mxu1 %v14740_v20 }
 0x8d4   : > { %6676 = vmatprep.subr.bf16.mxu1 %v14748_v31 }
 0x8d7   : > { %6677 = vmatpush1.bf16.msra.mxu1 %v14746_v54 }
 0x8d8   : > { %7090 = vmatprep.subr.bf16.mxu1 %v14754_v47 }
 0x96d   : > { %v5216_v41 = vpop.f32.mrb[136].mxu1 }
 0x96e   : > { %v5218_v16 = vpop.f32.mrb[137].mxu1 }
 0x96f   : > { %v5220_v23 = vpop.f32.mrb[138].mxu1 }
 0x970   : > { %v18152_v8 = vpack.c.bf16 %v5220_v23, %v5216_v41  ;;  %v5222_v19 = vpop.f32.mrb[139].mxu1  ;;  %v14766_v41 = vld [vmem:[#allocation15 + $0x644] ss:$16 sps:$4 sm:$0xff]  }
 0x971   : > { %v18154_v28 = vpack.c.bf16 %v5222_v19, %v5218_v16 }
 0x972   : > { %v18157_v21 = vshrl.u32 %v18152_v8, 16  ;;  %v18160_v40 = vshll.u32 %v18152_v8, 16  ;;  %v6275_v7 = vrot.slane %v18152_v8, 1 }
 0x973   : > { %v5381_v25 = vshrl.u32 %v18154_v28, 16  ;;  %v5383_v12 = vshll.u32 %v18154_v28, 16  ;;  %v6278_v51 = vrot.slane %v18154_v28, 1  ;;  %v6765_v54 = vrot.slane %v18154_v28, 2 }
 0x974   : > { %v7249_v56 = vrot.slane %v18157_v21, 2  ;;  %v7250_v9 = vrot.slane %v18160_v40, 3  ;;  %v5373_v55 = vrot.slane %v18160_v40, 1 }
 0x975   : > { %v5226_v39 = vpop.f32.mrb[140].mxu1  ;;  %v7258_v35 = vrot.slane %v5381_v25, 2  ;;  %v7259_v15 = vrot.slane %v5383_v12, 3  ;;  %v5385_v14 = vrot.slane %v5383_v12, 1  ;;  %v8730_v29 = vrot.slane %v5381_v25, 4 }
 0x976   : > { %v5228_v18 = vpop.f32.mrb[141].mxu1  ;;  %v7251_v59 = vor.u32 %v7250_v9, %v7249_v56  ;;  %v8731_v53 = vrot.slane %v5383_v12, 5  ;;  %v5374_v2 = vor.u32 %v5373_v55, %v18157_v21  ;;  %v8724_v9 = vrot.slane %v18160_v40, 5  ;;  %v14767_v55 = vld [vmem:[#allocation15 + $0x248] ss:$16 sps:$4 sm:$0xff]  }
 0x977   : > { %v5230_v27 = vpop.f32.mrb[142].mxu1  ;;  %v7260_v38 = vor.u32 %v7259_v15, %v7258_v35  ;;  %v5386_v30 = vor.u32 %v5385_v14, %v5381_v25  ;;  %v14761_v25 = vld [vmem:[#allocation15 + $0x228] ss:$16 sps:$4 sm:$0xff]   ;;  %v14769_v35 = vld [vmem:[#allocation15 + $0x24c] ss:$16 sps:$4 sm:$0xff]  }
 0x978   : > { %v18166_v33 = vpack.c.bf16 %v5230_v27, %v5226_v39  ;;  %v5232_v45 = vpop.f32.mrb[143].mxu1  ;;  %v8732_v31 = vor.u32 %v8731_v53, %v8730_v29  ;;  %v8723_v39 = vrot.slane %v18157_v21, 4  ;;  %v14772_v14 = vld [vmem:[#allocation15 + $0x664] ss:$16 sps:$4 sm:$0xff]   ;;  %v14775_v21 = vld [vmem:[#allocation15 + $0x26c] ss:$16 sps:$4 sm:$0xff]  }
 0x979   : > { %v18168_v24 = vpack.c.bf16 %v5232_v45, %v5228_v18  ;;  %v14764_v45 = vld [vmem:[#allocation15 + $0x640] ss:$16 sps:$4 sm:$0xff]   ;;  %v14781_v29 = vld [vmem:[#allocation15 + $0x28c] ss:$16 sps:$4 sm:$0xff]  }
 0x97a   : > { %v5376_v36 = vshll.u32 %v18166_v33, 16  ;;  %v6276_v6 = vrot.slane %v18166_v33, 1  ;;  %v7252_v37 = vshrl.u32 %v18166_v33, 16  ;;  %v14770_v40 = vld [vmem:[#allocation15 + $0x660] ss:$16 sps:$4 sm:$0xff]  }
 0x97b   : > { %v6279_v0 = vrot.slane %v18168_v24, 1  ;;  %v5388_v48 = vshll.u32 %v18168_v24, 16  ;;  %v7261_v57 = vshrl.u32 %v18168_v24, 16  ;;  %v6766_v61 = vrot.slane %v18168_v24, 2  ;;  %v14787_v53 = vld [vmem:[#allocation15 + $0x2ac] ss:$16 sps:$4 sm:$0xff]  }
 0x97c   : > { %v5378_v46 = vrot.slane %v5376_v36, 1  ;;  %v7254_v26 = vrot.slane %v7252_v37, 2  ;;  %v18185_v60 = vsel %vm819_vm3, %v6275_v7, %v6276_v6  ;;  %v7255_v62 = vrot.slane %v5376_v36, 3  ;;  %v14790_v7 = vld [vmem:[#allocation15 + $0x6c4] ss:$16 sps:$4 sm:$0xff]  }
 0x97d   : > { %v18180_v52 = vsel %vm819_vm3, %v6278_v51, %v6279_v0  ;;  %v5390_v17 = vrot.slane %v5388_v48, 1  ;;  %v7263_v11 = vrot.slane %v7261_v57, 2  ;;  %v7264_v20 = vrot.slane %v5388_v48, 3  ;;  %v14776_v0 = vld [vmem:[#allocation15 + $0x680] ss:$16 sps:$4 sm:$0xff]  }
 0x97e   : > { %6678 = vmatprep.mubr.bf16.mxu1 %v18180_v52  ;;  %v18192_v22 = vsel %vm1604_vm8, %v5374_v2, %v5378_v46  ;;  %v7256_v49 = vor.u32 %v7255_v62, %v7254_v26  ;;  %v18196_v16 = vsel %vm1026_vm4, %v6765_v54, %v6766_v61  ;;  %v8733_v23 = vrot.slane %v7261_v57, 4  ;;  %v14779_v57 = vld [vmem:[#allocation15 + $0x288] ss:$16 sps:$4 sm:$0xff]   ;;  %v14793_v46 = vld [vmem:[#allocation15 + $0x2cc] ss:$16 sps:$4 sm:$0xff]  }
 0x97f   : > { %6679 = vmatmul.mubr.bf16.vlgmr.msra.gmra.mrb[144].mxu1 %v18185_v60  ;;  %v5391_v32 = vsel %vm1604_vm8, %v5386_v30, %v5390_v17  ;;  %v7265_v47 = vor.u32 %v7264_v20, %v7263_v11  ;;  %v8734_v19 = vrot.slane %v5388_v48, 5  ;;  %v8726_v18 = vrot.slane %v7252_v37, 4  ;;  %v14773_v37 = vld [vmem:[#allocation15 + $0x268] ss:$16 sps:$4 sm:$0xff]   ;;  %v14784_v48 = vld [vmem:[#allocation15 + $0x6a4] ss:$16 sps:$4 sm:$0xff]  }
 0x980   : > { %7091 = vmatpush1.bf16.msra.mxu1 %v14752_v44  ;;  %5746 = vmatprep.mubr.bf16.mxu0 %v5391_v32  ;;  %v18203_v56 = vsel %vm2796_vm12, %v7251_v59, %v7256_v49  ;;  %v8727_v27 = vrot.slane %v5376_v36, 5  ;;  %v8725_v59 = vor.u32 %v8724_v9, %v8723_v39  ;;  %v14778_v36 = vld [vmem:[#allocation15 + $0x684] ss:$16 sps:$4 sm:$0xff]   ;;  %v14782_v44 = vld [vmem:[#allocation15 + $0x6a0] ss:$16 sps:$4 sm:$0xff]  }
 0x981   : > { %5747 = vmatmul.mubr.bf16.vlgmr.msra.gmra.mrb[44].mxu0 %v18192_v22  ;;  %7092 = vmatprep.subr.bf16.mxu1 %v14760_v63  ;;  %v18200_v12 = vsel %vm2796_vm12, %v7260_v38, %v7265_v47  ;;  %v8735_v15 = vor.u32 %v8734_v19, %v8733_v23  ;;  %v14785_v30 = vld [vmem:[#allocation15 + $0x2a8] ss:$16 sps:$4 sm:$0xff]   ;;  %v14788_v26 = vld [vmem:[#allocation15 + $0x6c0] ss:$16 sps:$4 sm:$0xff]   ;;  %v14796_v17 = vld [vmem:[#allocation15 + $0x6e4] ss:$16 sps:$4 sm:$0xff]  }
 0x982   : > { %5758 = vmatpush1.bf16.msra.mxu0 %v14755_v10  ;;  %7122 = vmatprep.mubr.bf16.mxu1 %v18196_v16  ;;  %v8728_v51 = vor.u32 %v8727_v27, %v8726_v18  ;;  %v14791_v63 = vld [vmem:[#allocation15 + $0x2c8] ss:$16 sps:$4 sm:$0xff]   ;;  %v14799_v61 = vld [vmem:[#allocation15 + $0x2ec] ss:$16 sps:$4 sm:$0xff]   ;;  %v14794_v11 = vld [vmem:[#allocation15 + $0x6e0] ss:$16 sps:$4 sm:$0xff]  }
 0x983   : > { %5759 = vmatprep.subr.bf16.mxu0 %v14763_v43  ;;  %5789 = vmatprep.mubr.bf16.mxu0 %v5391_v32  ;;  %v18208_v38 = vsel %vm8722_vm5, %v8732_v31, %v8735_v15  ;;  %v14802_v10 = vld [vmem:[#allocation15 + $0x704] ss:$16 sps:$4 sm:$0xff]   ;;  %v14797_v2 = vld [vmem:[#allocation15 + $0x2e8] ss:$16 sps:$4 sm:$0xff]   ;;  %v14805_v20 = vld [vmem:[#allocation15 + $0x30c] ss:$16 sps:$4 sm:$0xff]  }
 0x984   : > { %7093 = vmatpush1.bf16.msra.mxu1 %v14758_v50  ;;  %v18211_v6 = vsel %vm8722_vm5, %v8725_v59, %v8728_v51  ;;  %v14800_v62 = vld [vmem:[#allocation15 + $0x700] ss:$16 sps:$4 sm:$0xff]   ;;  %v14808_v32 = vld [vmem:[#allocation15 + $0x724] ss:$16 sps:$4 sm:$0xff]   ;;  %v14803_v43 = vld [vmem:[#allocation15 + $0x308] ss:$16 sps:$4 sm:$0xff]  }
 0x985   : > { %7094 = vmatprep.subr.bf16.mxu1 %v14766_v41  ;;  %v14811_v54 = vld [vmem:[#allocation15 + $0x32c] ss:$16 sps:$4 sm:$0xff]   ;;  %v14806_v31 = vld [vmem:[#allocation15 + $0x720] ss:$16 sps:$4 sm:$0xff]   ;;  %v14814_v50 = vld [vmem:[#allocation15 + $0x744] ss:$16 sps:$4 sm:$0xff]  }
 0x986   : > { %5760 = vmatpush1.bf16.msra.mxu0 %v14761_v25  ;;  %v14809_v47 = vld [vmem:[#allocation15 + $0x328] ss:$16 sps:$4 sm:$0xff]   ;;  %v14817_v49 = vld [vmem:[#allocation15 + $0x34c] ss:$16 sps:$4 sm:$0xff]   ;;  %v14812_v41 = vld [vmem:[#allocation15 + $0x740] ss:$16 sps:$4 sm:$0xff]  }
 0x987   : > { %5761 = vmatprep.subr.bf16.mxu0 %v14769_v35  ;;  %v14820_v23 = vld [vmem:[#allocation15 + $0x764] ss:$16 sps:$4 sm:$0xff]   ;;  %v14815_v19 = vld [vmem:[#allocation15 + $0x348] ss:$16 sps:$4 sm:$0xff]   ;;  %v14823_v25 = vld [vmem:[#allocation15 + $0x36c] ss:$16 sps:$4 sm:$0xff]  }
 0x988   : > { %7095 = vmatpush1.bf16.msra.mxu1 %v14764_v45  ;;  %v14818_v39 = vld [vmem:[#allocation15 + $0x760] ss:$16 sps:$4 sm:$0xff]   ;;  %v14826_v35 = vld [vmem:[#allocation15 + $0x784] ss:$16 sps:$4 sm:$0xff]   ;;  %v14821_v15 = vld [vmem:[#allocation15 + $0x368] ss:$16 sps:$4 sm:$0xff]  }
 0x989   : > { %7096 = vmatprep.subr.bf16.mxu1 %v14772_v14  ;;  %v14829_v9 = vld [vmem:[#allocation15 + $0x38c] ss:$16 sps:$4 sm:$0xff]   ;;  %v14824_v18 = vld [vmem:[#allocation15 + $0x780] ss:$16 sps:$4 sm:$0xff]   ;;  %v14832_v27 = vld [vmem:[#allocation15 + $0x7a4] ss:$16 sps:$4 sm:$0xff]  }
 0x98a   : > { %5762 = vmatpush1.bf16.msra.mxu0 %v14767_v55  ;;  %v14827_v45 = vld [vmem:[#allocation15 + $0x388] ss:$16 sps:$4 sm:$0xff]   ;;  %v14835_v14 = vld [vmem:[#allocation15 + $0x3ac] ss:$16 sps:$4 sm:$0xff]   ;;  %v14830_v59 = vld [vmem:[#allocation15 + $0x7a0] ss:$16 sps:$4 sm:$0xff]  }
 0x98b   : > { %5763 = vmatprep.subr.bf16.mxu0 %v14775_v21  ;;  %v14838_v51 = vld [vmem:[#allocation15 + $0x7c4] ss:$16 sps:$4 sm:$0xff]   ;;  %v14833_v55 = vld [vmem:[#allocation15 + $0x3a8] ss:$16 sps:$4 sm:$0xff]   ;;  %v14841_v21 = vld [vmem:[#allocation15 + $0x3cc] ss:$16 sps:$4 sm:$0xff]  }
 0x98c   : > { %7097 = vmatpush1.bf16.msra.mxu1 %v14770_v40  ;;  %v14836_v40 = vld [vmem:[#allocation15 + $0x7c0] ss:$16 sps:$4 sm:$0xff]  }
 0x98d   : > { %7098 = vmatprep.subr.bf16.mxu1 %v14778_v36  ;;  %v14844_v36 = vld [vmem:[#allocation15 + $0x7e4] ss:$16 sps:$4 sm:$0xff]  }
 0x98e   : > { %5764 = vmatpush1.bf16.msra.mxu0 %v14773_v37  ;;  %v14839_v37 = vld [vmem:[#allocation15 + $0x3c8] ss:$16 sps:$4 sm:$0xff]  }
 0x98f   : > { %5765 = vmatprep.subr.bf16.mxu0 %v14781_v29  ;;  %v14847_v29 = vld [vmem:[#allocation15 + $0x3ec] ss:$16 sps:$4 sm:$0xff]  }
 0x990   : > { %7099 = vmatpush1.bf16.msra.mxu1 %v14776_v0  ;;  %v14842_v0 = vld [vmem:[#allocation15 + $0x7e0] ss:$16 sps:$4 sm:$0xff]  }
 0x991   : > { %7100 = vmatprep.subr.bf16.mxu1 %v14784_v48  ;;  %v14850_v48 = vld [vmem:[#allocation15 + $0x60c] ss:$16 sps:$4 sm:$0xff]  }
 0x992   : > { %5766 = vmatpush1.bf16.msra.mxu0 %v14779_v57  ;;  %v14845_v57 = vld [vmem:[#allocation15 + $0x3e8] ss:$16 sps:$4 sm:$0xff]  }
 0x993   : > { %5767 = vmatprep.subr.bf16.mxu0 %v14787_v53  ;;  %v6763_v53 = vrot.slane %v18166_v33, 2 }
 0x994   : > { %7101 = vmatpush1.bf16.msra.mxu1 %v14782_v44  ;;  %v14853_v44 = vld [vmem:[#allocation15 + $0x4] ss:$16 sps:$4 sm:$0xff]  }
 0x995   : > { %7102 = vmatprep.subr.bf16.mxu1 %v14790_v7  ;;  %v14848_v7 = vld [vmem:[#allocation15 + $0x608] ss:$16 sps:$4 sm:$0xff]  }
 0x996   : > { %5768 = vmatpush1.bf16.msra.mxu0 %v14785_v30  ;;  %v6762_v30 = vrot.slane %v18152_v8, 2 }
 0x997   : > { %5769 = vmatprep.subr.bf16.mxu0 %v14793_v46  ;;  %v14856_v46 = vld [vmem:[#allocation15 + $0x62c] ss:$16 sps:$4 sm:$0xff]  }
 0x998   : > { %7103 = vmatpush1.bf16.msra.mxu1 %v14788_v26  ;;  %v18216_v26 = vsel %vm1026_vm4, %v6762_v30, %v6763_v53  ;;  %v14911_v53 = vld [vmem:[#allocation15 + $0x140] ss:$16 sps:$4 sm:$0xff]   ;;  %v14922_v30 = vld [vmem:[#allocation15 + $0x78c] ss:$16 sps:$4 sm:$0xff]  }
 0x999   : > { %7104 = vmatprep.subr.bf16.mxu1 %v14796_v17  ;;  %v14851_v17 = vld [vmem:[#allocation15] ss:$16 sps:$4 sm:$0xff]  }
 0x99a   : > { %5770 = vmatpush1.bf16.msra.mxu0 %v14791_v63  ;;  %v14859_v63 = vld [vmem:[#allocation15 + $0x24] ss:$16 sps:$4 sm:$0xff]  }
 0x99b   : > { %5771 = vmatprep.subr.bf16.mxu0 %v14799_v61  ;;  %v14854_v61 = vld [vmem:[#allocation15 + $0x628] ss:$16 sps:$4 sm:$0xff]  }
 0x99c   : > { %7105 = vmatpush1.bf16.msra.mxu1 %v14794_v11  ;;  %v14862_v11 = vld [vmem:[#allocation15 + $0x64c] ss:$16 sps:$4 sm:$0xff]  }
 0x99d   : > { %7106 = vmatprep.subr.bf16.mxu1 %v14802_v10  ;;  %v14857_v10 = vld [vmem:[#allocation15 + $0x20] ss:$16 sps:$4 sm:$0xff]  }
 0x99e   : > { %5772 = vmatpush1.bf16.msra.mxu0 %v14797_v2  ;;  %v14865_v2 = vld [vmem:[#allocation15 + $0x44] ss:$16 sps:$4 sm:$0xff]  }
 0x99f   : > { %5773 = vmatprep.subr.bf16.mxu0 %v14805_v20  ;;  %v14860_v20 = vld [vmem:[#allocation15 + $0x648] ss:$16 sps:$4 sm:$0xff]  }
 0x9a0   : > { %7107 = vmatpush1.bf16.msra.mxu1 %v14800_v62  ;;  %v14868_v62 = vld [vmem:[#allocation15 + $0x66c] ss:$16 sps:$4 sm:$0xff]  }
 0x9a1   : > { %7108 = vmatprep.subr.bf16.mxu1 %v14808_v32  ;;  %v14863_v32 = vld [vmem:[#allocation15 + $0x40] ss:$16 sps:$4 sm:$0xff]  }
 0x9a2   : > { %5774 = vmatpush1.bf16.msra.mxu0 %v14803_v43  ;;  %v14871_v43 = vld [vmem:[#allocation15 + $0x64] ss:$16 sps:$4 sm:$0xff]  }
 0x9a3   : > { %5775 = vmatprep.subr.bf16.mxu0 %v14811_v54  ;;  %v14869_v54 = vld [vmem:[#allocation15 + $0x60] ss:$16 sps:$4 sm:$0xff]  }
 0x9a4   : > { %7109 = vmatpush1.bf16.msra.mxu1 %v14806_v31  ;;  %v14877_v31 = vld [vmem:[#allocation15 + $0x84] ss:$16 sps:$4 sm:$0xff]  }
 0x9a5   : > { %7110 = vmatprep.subr.bf16.mxu1 %v14814_v50  ;;  %v14872_v50 = vld [vmem:[#allocation15 + $0x688] ss:$16 sps:$4 sm:$0xff]  }
 0x9a6   : > { %5776 = vmatpush1.bf16.msra.mxu0 %v14809_v47  ;;  %v14880_v47 = vld [vmem:[#allocation15 + $0x6ac] ss:$16 sps:$4 sm:$0xff]  }
 0x9a7   : > { %5777 = vmatprep.subr.bf16.mxu0 %v14817_v49  ;;  %v14875_v49 = vld [vmem:[#allocation15 + $0x80] ss:$16 sps:$4 sm:$0xff]  }
 0x9a8   : > { %7111 = vmatpush1.bf16.msra.mxu1 %v14812_v41  ;;  %v14883_v41 = vld [vmem:[#allocation15 + $0xa4] ss:$16 sps:$4 sm:$0xff]  }
 0x9a9   : > { %7112 = vmatprep.subr.bf16.mxu1 %v14820_v23  ;;  %v14878_v23 = vld [vmem:[#allocation15 + $0x6a8] ss:$16 sps:$4 sm:$0xff]  }
 0x9aa   : > { %5778 = vmatpush1.bf16.msra.mxu0 %v14815_v19  ;;  %v14886_v19 = vld [vmem:[#allocation15 + $0x6cc] ss:$16 sps:$4 sm:$0xff]  }
 0x9ab   : > { %5779 = vmatprep.subr.bf16.mxu0 %v14823_v25  ;;  %v14881_v25 = vld [vmem:[#allocation15 + $0xa0] ss:$16 sps:$4 sm:$0xff]  }
 0x9ac   : > { %7113 = vmatpush1.bf16.msra.mxu1 %v14818_v39  ;;  %v14889_v39 = vld [vmem:[#allocation15 + $0xc4] ss:$16 sps:$4 sm:$0xff]  }
 0x9ad   : > { %7114 = vmatprep.subr.bf16.mxu1 %v14826_v35  ;;  %v14884_v35 = vld [vmem:[#allocation15 + $0x6c8] ss:$16 sps:$4 sm:$0xff]  }
 0x9ae   : > { %5780 = vmatpush1.bf16.msra.mxu0 %v14821_v15  ;;  %v14892_v15 = vld [vmem:[#allocation15 + $0x6ec] ss:$16 sps:$4 sm:$0xff]  }
 0x9af   : > { %5781 = vmatprep.subr.bf16.mxu0 %v14829_v9  ;;  %v14887_v9 = vld [vmem:[#allocation15 + $0xc0] ss:$16 sps:$4 sm:$0xff]  }
 0x9b0   : > { %7115 = vmatpush1.bf16.msra.mxu1 %v14824_v18  ;;  %v14895_v18 = vld [vmem:[#allocation15 + $0xe4] ss:$16 sps:$4 sm:$0xff]  }
 0x9b1   : > { %7116 = vmatprep.subr.bf16.mxu1 %v14832_v27  ;;  %v14890_v27 = vld [vmem:[#allocation15 + $0x6e8] ss:$16 sps:$4 sm:$0xff]  }
 0x9b2   : > { %5782 = vmatpush1.bf16.msra.mxu0 %v14827_v45  ;;  %v14898_v45 = vld [vmem:[#allocation15 + $0x70c] ss:$16 sps:$4 sm:$0xff]  }
 0x9b3   : > { %5783 = vmatprep.subr.bf16.mxu0 %v14835_v14  ;;  %v14893_v14 = vld [vmem:[#allocation15 + $0xe0] ss:$16 sps:$4 sm:$0xff]  }
 0x9b4   : > { %7117 = vmatpush1.bf16.msra.mxu1 %v14830_v59  ;;  %v14901_v59 = vld [vmem:[#allocation15 + $0x104] ss:$16 sps:$4 sm:$0xff]  }
 0x9b5   : > { %7118 = vmatprep.subr.bf16.mxu1 %v14838_v51  ;;  %v14896_v51 = vld [vmem:[#allocation15 + $0x708] ss:$16 sps:$4 sm:$0xff]  }
 0x9b6   : > { %5784 = vmatpush1.bf16.msra.mxu0 %v14833_v55  ;;  %v14904_v55 = vld [vmem:[#allocation15 + $0x72c] ss:$16 sps:$4 sm:$0xff]  }
 0x9b7   : > { %5785 = vmatprep.subr.bf16.mxu0 %v14841_v21  ;;  %v14899_v21 = vld [vmem:[#allocation15 + $0x100] ss:$16 sps:$4 sm:$0xff]  }
 0x9b8   : > { %7119 = vmatpush1.bf16.msra.mxu1 %v14836_v40  ;;  %v14907_v40 = vld [vmem:[#allocation15 + $0x124] ss:$16 sps:$4 sm:$0xff]  }
 0x9b9   : > { %7120 = vmatprep.subr.bf16.mxu1 %v14844_v36  ;;  %v14902_v36 = vld [vmem:[#allocation15 + $0x728] ss:$16 sps:$4 sm:$0xff]  }
 0x9ba   : > { %5786 = vmatpush1.bf16.msra.mxu0 %v14839_v37  ;;  %v14910_v37 = vld [vmem:[#allocation15 + $0x74c] ss:$16 sps:$4 sm:$0xff]  }
 0x9bb   : > { %5787 = vmatprep.subr.bf16.mxu0 %v14847_v29  ;;  %v14905_v29 = vld [vmem:[#allocation15 + $0x120] ss:$16 sps:$4 sm:$0xff]  }
 0x9bc   : > { %7121 = vmatpush1.bf16.msra.mxu1 %v14842_v0  ;;  %v14913_v0 = vld [vmem:[#allocation15 + $0x144] ss:$16 sps:$4 sm:$0xff]  }
 0x9bd   : > { %7133 = vmatprep.subr.bf16.mxu1 %v14850_v48  ;;  %v14908_v48 = vld [vmem:[#allocation15 + $0x748] ss:$16 sps:$4 sm:$0xff]  }
 0x9be   : > { %5788 = vmatpush1.bf16.msra.mxu0 %v14845_v57  ;;  %v14916_v57 = vld [vmem:[#allocation15 + $0x76c] ss:$16 sps:$4 sm:$0xff]  }
 0x9bf   : > { %7123 = vmatmul.mubr.bf16.vlgmr.msra.gmra.mrb[148].mxu1 %v18216_v26  ;;  %6120 = vmatprep.subr.bf16.mxu0 %v14853_v44  ;;  %v14919_v44 = vld [vmem:[#allocation15 + $0x164] ss:$16 sps:$4 sm:$0xff]  }
 0x9c0   : > { %7134 = vmatpush1.bf16.msra.mxu1 %v14848_v7  ;;  %7165 = vmatprep.mubr.bf16.mxu1 %v18196_v16  ;;  %v14866_v16 = vld [vmem:[#allocation15 + $0x668] ss:$16 sps:$4 sm:$0xff]  }
 0x9c1   : > { %5790 = vmatmul.mubr.bf16.vlgmr.msra.gmra.mrb[48].mxu0 %v18192_v22  ;;  %7135 = vmatprep.subr.bf16.mxu1 %v14856_v46  ;;  %v14874_v22 = vld [vmem:[#allocation15 + $0x68c] ss:$16 sps:$4 sm:$0xff]   ;;  %v14914_v7 = vld [vmem:[#allocation15 + $0x768] ss:$16 sps:$4 sm:$0xff]   ;;  %v14917_v46 = vld [vmem:[#allocation15 + $0x160] ss:$16 sps:$4 sm:$0xff]  }
 0x9c2   : > { %6121 = vmatpush1.bf16.msra.mxu0 %v14851_v17  ;;  %6152 = vmatprep.mubr.bf16.mxu0 %v18154_v28  ;;  %v14925_v17 = vld [vmem:[#allocation15 + $0x184] ss:$16 sps:$4 sm:$0xff]  }
 0x9c3   : > { %6122 = vmatprep.subr.bf16.mxu0 %v14859_v63  ;;  %v14920_v63 = vld [vmem:[#allocation15 + $0x788] ss:$16 sps:$4 sm:$0xff]  }
 0x9c4   : > { %7136 = vmatpush1.bf16.msra.mxu1 %v14854_v61  ;;  %v14928_v61 = vld [vmem:[#allocation15 + $0x7ac] ss:$16 sps:$4 sm:$0xff]  }
 0x9c5   : > { %7137 = vmatprep.subr.bf16.mxu1 %v14862_v11  ;;  %v14923_v11 = vld [vmem:[#allocation15 + $0x180] ss:$16 sps:$4 sm:$0xff]  }
 0x9c6   : > { %6123 = vmatpush1.bf16.msra.mxu0 %v14857_v10  ;;  %v14931_v10 = vld [vmem:[#allocation15 + $0x1a4] ss:$16 sps:$4 sm:$0xff]  }
 0x9c7   : > { %6124 = vmatprep.subr.bf16.mxu0 %v14865_v2  ;;  %v14926_v2 = vld [vmem:[#allocation15 + $0x7a8] ss:$16 sps:$4 sm:$0xff]  }
 0x9c8   : > { %7138 = vmatpush1.bf16.msra.mxu1 %v14860_v20  ;;  %v14934_v20 = vld [vmem:[#allocation15 + $0x7cc] ss:$16 sps:$4 sm:$0xff]  }
 0x9c9   : > { %7139 = vmatprep.subr.bf16.mxu1 %v14868_v62  ;;  %v14929_v62 = vld [vmem:[#allocation15 + $0x1a0] ss:$16 sps:$4 sm:$0xff]  }
 0x9ca   : > { %6125 = vmatpush1.bf16.msra.mxu0 %v14863_v32  ;;  %v14937_v32 = vld [vmem:[#allocation15 + $0x1c4] ss:$16 sps:$4 sm:$0xff]  }
 0x9cb   : > { %6126 = vmatprep.subr.bf16.mxu0 %v14871_v43  ;;  %v14932_v43 = vld [vmem:[#allocation15 + $0x7c8] ss:$16 sps:$4 sm:$0xff]  }
 0x9cc   : > { %7140 = vmatpush1.bf16.msra.mxu1 %v14866_v16  ;;  %v14940_v16 = vld [vmem:[#allocation15 + $0x7ec] ss:$16 sps:$4 sm:$0xff]  }
 0x9cd   : > { %7141 = vmatprep.subr.bf16.mxu1 %v14874_v22  ;;  %v14935_v22 = vld [vmem:[#allocation15 + $0x1c0] ss:$16 sps:$4 sm:$0xff]  }
 0x9ce   : > { %6127 = vmatpush1.bf16.msra.mxu0 %v14869_v54  ;;  %v14943_v54 = vld [vmem:[#allocation15 + $0x1e4] ss:$16 sps:$4 sm:$0xff]  }
 0x9cf   : > { %6128 = vmatprep.subr.bf16.mxu0 %v14877_v31  ;;  %v14938_v31 = vld [vmem:[#allocation15 + $0x7e8] ss:$16 sps:$4 sm:$0xff]  }
 0x9d0   : > { %7142 = vmatpush1.bf16.msra.mxu1 %v14872_v50  ;;  %v14946_v50 = vld [vmem:[#allocation15 + $0x804] ss:$16 sps:$4 sm:$0xff]  }
 0x9d1   : > { %7143 = vmatprep.subr.bf16.mxu1 %v14880_v47  ;;  %v14941_v47 = vld [vmem:[#allocation15 + $0x1e0] ss:$16 sps:$4 sm:$0xff]  }
 0x9d2   : > { %6129 = vmatpush1.bf16.msra.mxu0 %v14875_v49  ;;  %v14949_v49 = vld [vmem:[#allocation15 + $0xc] ss:$16 sps:$4 sm:$0xff]  }
 0x9d3   : > { %6130 = vmatprep.subr.bf16.mxu0 %v14883_v41  ;;  %v14944_v41 = vld [vmem:[#allocation15 + $0x800] ss:$16 sps:$4 sm:$0xff]  }
 0x9d4   : > { %7144 = vmatpush1.bf16.msra.mxu1 %v14878_v23  ;;  %v14952_v23 = vld [vmem:[#allocation15 + $0x824] ss:$16 sps:$4 sm:$0xff]  }
 0x9d5   : > { %7145 = vmatprep.subr.bf16.mxu1 %v14886_v19  ;;  %v14947_v19 = vld [vmem:[#allocation15 + $0x8] ss:$16 sps:$4 sm:$0xff]  }
 0x9d6   : > { %6131 = vmatpush1.bf16.msra.mxu0 %v14881_v25  ;;  %v14955_v25 = vld [vmem:[#allocation15 + $0x2c] ss:$16 sps:$4 sm:$0xff]  }
 0x9d7   : > { %6132 = vmatprep.subr.bf16.mxu0 %v14889_v39  ;;  %v14950_v39 = vld [vmem:[#allocation15 + $0x820] ss:$16 sps:$4 sm:$0xff]  }
 0x9d8   : > { %7146 = vmatpush1.bf16.msra.mxu1 %v14884_v35  ;;  %v14958_v35 = vld [vmem:[#allocation15 + $0x844] ss:$16 sps:$4 sm:$0xff]  }
 0x9d9   : > { %7147 = vmatprep.subr.bf16.mxu1 %v14892_v15  ;;  %v14953_v15 = vld [vmem:[#allocation15 + $0x28] ss:$16 sps:$4 sm:$0xff]  }
 0x9da   : > { %6133 = vmatpush1.bf16.msra.mxu0 %v14887_v9  ;;  %v14961_v9 = vld [vmem:[#allocation15 + $0x4c] ss:$16 sps:$4 sm:$0xff]  }
 0x9db   : > { %6134 = vmatprep.subr.bf16.mxu0 %v14895_v18  ;;  %v14956_v18 = vld [vmem:[#allocation15 + $0x840] ss:$16 sps:$4 sm:$0xff]  }
 0x9dc   : > { %7148 = vmatpush1.bf16.msra.mxu1 %v14890_v27  ;;  %v14959_v27 = vld [vmem:[#allocation15 + $0x48] ss:$16 sps:$4 sm:$0xff]  }
 0x9dd   : > { %7149 = vmatprep.subr.bf16.mxu1 %v14898_v45  ;;  %v14967_v45 = vld [vmem:[#allocation15 + $0x6c] ss:$16 sps:$4 sm:$0xff]  }
 0x9de   : > { %6135 = vmatpush1.bf16.msra.mxu0 %v14893_v14  ;;  %v14962_v14 = vld [vmem:[#allocation15 + $0x860] ss:$16 sps:$4 sm:$0xff]  }
 0x9df   : > { %6136 = vmatprep.subr.bf16.mxu0 %v14901_v59  ;;  %v14970_v59 = vld [vmem:[#allocation15 + $0x884] ss:$16 sps:$4 sm:$0xff]  }
 0x9e0   : > { %7150 = vmatpush1.bf16.msra.mxu1 %v14896_v51  ;;  %v14965_v51 = vld [vmem:[#allocation15 + $0x68] ss:$16 sps:$4 sm:$0xff]  }
 0x9e1   : > { %7151 = vmatprep.subr.bf16.mxu1 %v14904_v55  ;;  %v14973_v55 = vld [vmem:[#allocation15 + $0x8c] ss:$16 sps:$4 sm:$0xff]  }
 0x9e2   : > { %6137 = vmatpush1.bf16.msra.mxu0 %v14899_v21  ;;  %v14968_v21 = vld [vmem:[#allocation15 + $0x880] ss:$16 sps:$4 sm:$0xff]  }
 0x9e3   : > { %6138 = vmatprep.subr.bf16.mxu0 %v14907_v40  ;;  %v14976_v40 = vld [vmem:[#allocation15 + $0x8a4] ss:$16 sps:$4 sm:$0xff]  }
 0x9e4   : > { %7152 = vmatpush1.bf16.msra.mxu1 %v14902_v36  ;;  %v14971_v36 = vld [vmem:[#allocation15 + $0x88] ss:$16 sps:$4 sm:$0xff]  }
 0x9e5   : > { %7153 = vmatprep.subr.bf16.mxu1 %v14910_v37  ;;  %v14979_v37 = vld [vmem:[#allocation15 + $0xac] ss:$16 sps:$4 sm:$0xff]  }
 0x9e6   : > { %6139 = vmatpush1.bf16.msra.mxu0 %v14905_v29  ;;  %v14974_v29 = vld [vmem:[#allocation15 + $0x8a0] ss:$16 sps:$4 sm:$0xff]  }
 0x9e7   : > { %6140 = vmatprep.subr.bf16.mxu0 %v14913_v0  ;;  %v14982_v0 = vld [vmem:[#allocation15 + $0x8c4] ss:$16 sps:$4 sm:$0xff]  }
 0x9e8   : > { %7154 = vmatpush1.bf16.msra.mxu1 %v14908_v48  ;;  %v14977_v48 = vld [vmem:[#allocation15 + $0xa8] ss:$16 sps:$4 sm:$0xff]  }
 0x9e9   : > { %7155 = vmatprep.subr.bf16.mxu1 %v14916_v57  ;;  %v14985_v57 = vld [vmem:[#allocation15 + $0xcc] ss:$16 sps:$4 sm:$0xff]  }
 0x9ea   : > { %6141 = vmatpush1.bf16.msra.mxu0 %v14911_v53  ;;  %v14980_v53 = vld [vmem:[#allocation15 + $0x8c0] ss:$16 sps:$4 sm:$0xff]  }
 0x9eb   : > { %6142 = vmatprep.subr.bf16.mxu0 %v14919_v44  ;;  %v14988_v44 = vld [vmem:[#allocation15 + $0x8e4] ss:$16 sps:$4 sm:$0xff]  }
 0x9ec   : > { %7156 = vmatpush1.bf16.msra.mxu1 %v14914_v7  ;;  %v14983_v7 = vld [vmem:[#allocation15 + $0xc8] ss:$16 sps:$4 sm:$0xff]  }
 0x9ed   : > { %7157 = vmatprep.subr.bf16.mxu1 %v14922_v30  ;;  %v14991_v30 = vld [vmem:[#allocation15 + $0xec] ss:$16 sps:$4 sm:$0xff]  }
 0x9ee   : > { %6143 = vmatpush1.bf16.msra.mxu0 %v14917_v46  ;;  %v14986_v46 = vld [vmem:[#allocation15 + $0x8e0] ss:$16 sps:$4 sm:$0xff]  }
 0x9ef   : > { %6144 = vmatprep.subr.bf16.mxu0 %v14925_v17  ;;  %v14994_v17 = vld [vmem:[#allocation15 + $0x904] ss:$16 sps:$4 sm:$0xff]  }
 0x9f0   : > { %7158 = vmatpush1.bf16.msra.mxu1 %v14920_v63  ;;  %v14989_v63 = vld [vmem:[#allocation15 + $0xe8] ss:$16 sps:$4 sm:$0xff]  }
 0x9f1   : > { %7159 = vmatprep.subr.bf16.mxu1 %v14928_v61  ;;  %v14997_v61 = vld [vmem:[#allocation15 + $0x10c] ss:$16 sps:$4 sm:$0xff]  }
 0x9f2   : > { %6145 = vmatpush1.bf16.msra.mxu0 %v14923_v11  ;;  %v14992_v11 = vld [vmem:[#allocation15 + $0x900] ss:$16 sps:$4 sm:$0xff]  }
 0x9f3   : > { %6146 = vmatprep.subr.bf16.mxu0 %v14931_v10  ;;  %v15000_v10 = vld [vmem:[#allocation15 + $0x924] ss:$16 sps:$4 sm:$0xff]  }
 0x9f4   : > { %7160 = vmatpush1.bf16.msra.mxu1 %v14926_v2  ;;  %v14995_v2 = vld [vmem:[#allocation15 + $0x108] ss:$16 sps:$4 sm:$0xff]  }
 0x9f5   : > { %7161 = vmatprep.subr.bf16.mxu1 %v14934_v20  ;;  %v15003_v20 = vld [vmem:[#allocation15 + $0x12c] ss:$16 sps:$4 sm:$0xff]  }
 0x9f6   : > { %6147 = vmatpush1.bf16.msra.mxu0 %v14929_v62  ;;  %v14998_v62 = vld [vmem:[#allocation15 + $0x920] ss:$16 sps:$4 sm:$0xff]  }
 0x9f7   : > { %6148 = vmatprep.subr.bf16.mxu0 %v14937_v32  ;;  %v15006_v32 = vld [vmem:[#allocation15 + $0x944] ss:$16 sps:$4 sm:$0xff]  }
 0x9f8   : > { %7162 = vmatpush1.bf16.msra.mxu1 %v14932_v43  ;;  %v15001_v43 = vld [vmem:[#allocation15 + $0x128] ss:$16 sps:$4 sm:$0xff]  }
 0x9f9   : > { %7163 = vmatprep.subr.bf16.mxu1 %v14940_v16  ;;  %v15009_v16 = vld [vmem:[#allocation15 + $0x14c] ss:$16 sps:$4 sm:$0xff]  }
 0x9fa   : > { %6149 = vmatpush1.bf16.msra.mxu0 %v14935_v22  ;;  %v15004_v22 = vld [vmem:[#allocation15 + $0x940] ss:$16 sps:$4 sm:$0xff]  }
 0x9fb   : > { %6150 = vmatprep.subr.bf16.mxu0 %v14943_v54  ;;  %v15012_v54 = vld [vmem:[#allocation15 + $0x964] ss:$16 sps:$4 sm:$0xff]  }
 0x9fc   : > { %7164 = vmatpush1.bf16.msra.mxu1 %v14938_v31  ;;  %v15007_v31 = vld [vmem:[#allocation15 + $0x148] ss:$16 sps:$4 sm:$0xff]  }
 0x9fd   : > { %7589 = vmatprep.subr.bf16.mxu1 %v14946_v50  ;;  %v15015_v50 = vld [vmem:[#allocation15 + $0x16c] ss:$16 sps:$4 sm:$0xff]  }
 0x9fe   : > { %6151 = vmatpush1.bf16.msra.mxu0 %v14941_v47  ;;  %v15010_v47 = vld [vmem:[#allocation15 + $0x960] ss:$16 sps:$4 sm:$0xff]  }
 0x9ff   : > { %7166 = vmatmul.mubr.bf16.vlgmr.msra.gmra.mrb[144].mxu1 %v18216_v26  ;;  %6163 = vmatprep.subr.bf16.mxu0 %v14949_v49  ;;  %v14964_v26 = vld [vmem:[#allocation15 + $0x864] ss:$16 sps:$4 sm:$0xff]  }
 0xa00   : > { %7590 = vmatpush1.bf16.msra.mxu1 %v14944_v41  ;;  %7621 = vmatprep.mubr.bf16.mxu1 %v18200_v12  ;;  %v15018_v49 = vld [vmem:[#allocation15 + $0x984] ss:$16 sps:$4 sm:$0xff]   ;;  %v15013_v41 = vld [vmem:[#allocation15 + $0x168] ss:$16 sps:$4 sm:$0xff]  }
 0xa01   : > { %6153 = vmatmul.mubr.bf16.vlgmr.msra.gmra.mrb[44].mxu0 %v18152_v8  ;;  %7591 = vmatprep.subr.bf16.mxu1 %v14952_v23  ;;  %v15021_v23 = vld [vmem:[#allocation15 + $0x18c] ss:$16 sps:$4 sm:$0xff]  }
 0xa02   : > { %6164 = vmatpush1.bf16.msra.mxu0 %v14947_v19  ;;  %6195 = vmatprep.mubr.bf16.mxu0 %v18154_v28  ;;  %v15016_v19 = vld [vmem:[#allocation15 + $0x980] ss:$16 sps:$4 sm:$0xff]  }
 0xa03   : > { %6165 = vmatprep.subr.bf16.mxu0 %v14955_v25  ;;  %v15024_v25 = vld [vmem:[#allocation15 + $0x9a4] ss:$16 sps:$4 sm:$0xff]  }
 0xa04   : > { %7592 = vmatpush1.bf16.msra.mxu1 %v14950_v39  ;;  %v15019_v39 = vld [vmem:[#allocation15 + $0x188] ss:$16 sps:$4 sm:$0xff]  }
 0xa05   : > { %7593 = vmatprep.subr.bf16.mxu1 %v14958_v35  ;;  %v15027_v35 = vld [vmem:[#allocation15 + $0x1ac] ss:$16 sps:$4 sm:$0xff]  }
 0xa06   : > { %6166 = vmatpush1.bf16.msra.mxu0 %v14953_v15  ;;  %v15022_v15 = vld [vmem:[#allocation15 + $0x9a0] ss:$16 sps:$4 sm:$0xff]  }
 0xa07   : > { %6167 = vmatprep.subr.bf16.mxu0 %v14961_v9  ;;  %v15030_v9 = vld [vmem:[#allocation15 + $0x9c4] ss:$16 sps:$4 sm:$0xff]  }
 0xa08   : > { %7594 = vmatpush1.bf16.msra.mxu1 %v14956_v18  ;;  %v15025_v18 = vld [vmem:[#allocation15 + $0x1a8] ss:$16 sps:$4 sm:$0xff]  }
 0xa09   : > { %7595 = vmatprep.subr.bf16.mxu1 %v14964_v26  ;;  %v15033_v26 = vld [vmem:[#allocation15 + $0x1cc] ss:$16 sps:$4 sm:$0xff]  }
 0xa0a   : > { %6168 = vmatpush1.bf16.msra.mxu0 %v14959_v27  ;;  %v15028_v27 = vld [vmem:[#allocation15 + $0x9c0] ss:$16 sps:$4 sm:$0xff]  }
 0xa0b   : > { %6169 = vmatprep.subr.bf16.mxu0 %v14967_v45  ;;  %v15036_v45 = vld [vmem:[#allocation15 + $0x9e4] ss:$16 sps:$4 sm:$0xff]  }
 0xa0c   : > { %7596 = vmatpush1.bf16.msra.mxu1 %v14962_v14  ;;  %v15031_v14 = vld [vmem:[#allocation15 + $0x1c8] ss:$16 sps:$4 sm:$0xff]  }
 0xa0d   : > { %7597 = vmatprep.subr.bf16.mxu1 %v14970_v59  ;;  %v15039_v59 = vld [vmem:[#allocation15 + $0x1ec] ss:$16 sps:$4 sm:$0xff]  }
 0xa0e   : > { %6170 = vmatpush1.bf16.msra.mxu0 %v14965_v51  ;;  %v15034_v51 = vld [vmem:[#allocation15 + $0x9e0] ss:$16 sps:$4 sm:$0xff]  }
 0xa0f   : > { %6171 = vmatprep.subr.bf16.mxu0 %v14973_v55  ;;  %v15042_v55 = vld [vmem:[#allocation15 + $0x80c] ss:$16 sps:$4 sm:$0xff]  }
 0xa10   : > { %7598 = vmatpush1.bf16.msra.mxu1 %v14968_v21  ;;  %v15037_v21 = vld [vmem:[#allocation15 + $0x1e8] ss:$16 sps:$4 sm:$0xff]  }
 0xa11   : > { %7599 = vmatprep.subr.bf16.mxu1 %v14976_v40  ;;  %v15045_v40 = vld [vmem:[#allocation15 + $0x404] ss:$16 sps:$4 sm:$0xff]  }
 0xa12   : > { %6172 = vmatpush1.bf16.msra.mxu0 %v14971_v36  ;;  %v15040_v36 = vld [vmem:[#allocation15 + $0x808] ss:$16 sps:$4 sm:$0xff]  }
 0xa13   : > { %6173 = vmatprep.subr.bf16.mxu0 %v14979_v37  ;;  %v15048_v37 = vld [vmem:[#allocation15 + $0x82c] ss:$16 sps:$4 sm:$0xff]  }
 0xa14   : > { %7600 = vmatpush1.bf16.msra.mxu1 %v14974_v29  ;;  %v15043_v29 = vld [vmem:[#allocation15 + $0x400] ss:$16 sps:$4 sm:$0xff]  }
 0xa15   : > { %7601 = vmatprep.subr.bf16.mxu1 %v14982_v0  ;;  %v15051_v0 = vld [vmem:[#allocation15 + $0x424] ss:$16 sps:$4 sm:$0xff]  }
 0xa16   : > { %6174 = vmatpush1.bf16.msra.mxu0 %v14977_v48  ;;  %v15046_v48 = vld [vmem:[#allocation15 + $0x828] ss:$16 sps:$4 sm:$0xff]  }
 0xa17   : > { %6175 = vmatprep.subr.bf16.mxu0 %v14985_v57  ;;  %v15054_v57 = vld [vmem:[#allocation15 + $0x84c] ss:$16 sps:$4 sm:$0xff]  }
 0xa18   : > { %7602 = vmatpush1.bf16.msra.mxu1 %v14980_v53  ;;  %v15049_v53 = vld [vmem:[#allocation15 + $0x420] ss:$16 sps:$4 sm:$0xff]  }
 0xa19   : > { %7603 = vmatprep.subr.bf16.mxu1 %v14988_v44  ;;  %v15057_v44 = vld [vmem:[#allocation15 + $0x444] ss:$16 sps:$4 sm:$0xff]  }
 0xa1a   : > { %6176 = vmatpush1.bf16.msra.mxu0 %v14983_v7  ;;  %v15052_v7 = vld [vmem:[#allocation15 + $0x848] ss:$16 sps:$4 sm:$0xff]  }
 0xa1b   : > { %6177 = vmatprep.subr.bf16.mxu0 %v14991_v30  ;;  %v15060_v30 = vld [vmem:[#allocation15 + $0x86c] ss:$16 sps:$4 sm:$0xff]  }
 0xa1c   : > { %7604 = vmatpush1.bf16.msra.mxu1 %v14986_v46  ;;  %v15055_v46 = vld [vmem:[#allocation15 + $0x440] ss:$16 sps:$4 sm:$0xff]  }
 0xa1d   : > { %7605 = vmatprep.subr.bf16.mxu1 %v14994_v17  ;;  %v15063_v17 = vld [vmem:[#allocation15 + $0x464] ss:$16 sps:$4 sm:$0xff]  }
 0xa1e   : > { %6178 = vmatpush1.bf16.msra.mxu0 %v14989_v63  ;;  %v15066_v63 = vld [vmem:[#allocation15 + $0x88c] ss:$16 sps:$4 sm:$0xff]  }
 0xa1f   : > { %6179 = vmatprep.subr.bf16.mxu0 %v14997_v61  ;;  %v15061_v61 = vld [vmem:[#allocation15 + $0x460] ss:$16 sps:$4 sm:$0xff]  }
 0xa20   : > { %7606 = vmatpush1.bf16.msra.mxu1 %v14992_v11  ;;  %v15069_v11 = vld [vmem:[#allocation15 + $0x484] ss:$16 sps:$4 sm:$0xff]  }
 0xa21   : > { %7607 = vmatprep.subr.bf16.mxu1 %v15000_v10  ;;  %v15072_v10 = vld [vmem:[#allocation15 + $0x8ac] ss:$16 sps:$4 sm:$0xff]  }
 0xa22   : > { %6180 = vmatpush1.bf16.msra.mxu0 %v14995_v2  ;;  %v15067_v2 = vld [vmem:[#allocation15 + $0x480] ss:$16 sps:$4 sm:$0xff]  }
 0xa23   : > { %6181 = vmatprep.subr.bf16.mxu0 %v15003_v20  ;;  %v15075_v20 = vld [vmem:[#allocation15 + $0x4a4] ss:$16 sps:$4 sm:$0xff]  }
 0xa24   : > { %7608 = vmatpush1.bf16.msra.mxu1 %v14998_v62  ;;  %v15070_v62 = vld [vmem:[#allocation15 + $0x8a8] ss:$16 sps:$4 sm:$0xff]  }
 0xa25   : > { %7609 = vmatprep.subr.bf16.mxu1 %v15006_v32  ;;  %v15078_v32 = vld [vmem:[#allocation15 + $0x8cc] ss:$16 sps:$4 sm:$0xff]  }
 0xa26   : > { %6182 = vmatpush1.bf16.msra.mxu0 %v15001_v43  ;;  %v15073_v43 = vld [vmem:[#allocation15 + $0x4a0] ss:$16 sps:$4 sm:$0xff]  }
 0xa27   : > { %6183 = vmatprep.subr.bf16.mxu0 %v15009_v16  ;;  %v15081_v16 = vld [vmem:[#allocation15 + $0x4c4] ss:$16 sps:$4 sm:$0xff]  }
 0xa28   : > { %7610 = vmatpush1.bf16.msra.mxu1 %v15004_v22  ;;  %v15076_v22 = vld [vmem:[#allocation15 + $0x8c8] ss:$16 sps:$4 sm:$0xff]  }
 0xa29   : > { %7611 = vmatprep.subr.bf16.mxu1 %v15012_v54  ;;  %v15084_v54 = vld [vmem:[#allocation15 + $0x8ec] ss:$16 sps:$4 sm:$0xff]  }
 0xa2a   : > { %6184 = vmatpush1.bf16.msra.mxu0 %v15007_v31  ;;  %v15079_v31 = vld [vmem:[#allocation15 + $0x4c0] ss:$16 sps:$4 sm:$0xff]  }
 0xa2b   : > { %6185 = vmatprep.subr.bf16.mxu0 %v15015_v50  ;;  %v15087_v50 = vld [vmem:[#allocation15 + $0x4e4] ss:$16 sps:$4 sm:$0xff]  }
 0xa2c   : > { %7612 = vmatpush1.bf16.msra.mxu1 %v15010_v47  ;;  %v15082_v47 = vld [vmem:[#allocation15 + $0x8e8] ss:$16 sps:$4 sm:$0xff]  }
 0xa2d   : > { %7613 = vmatprep.subr.bf16.mxu1 %v15018_v49  ;;  %v15090_v49 = vld [vmem:[#allocation15 + $0x90c] ss:$16 sps:$4 sm:$0xff]  }
 0xa2e   : > { %6186 = vmatpush1.bf16.msra.mxu0 %v15013_v41  ;;  %v15085_v41 = vld [vmem:[#allocation15 + $0x4e0] ss:$16 sps:$4 sm:$0xff]  }
 0xa2f   : > { %6187 = vmatprep.subr.bf16.mxu0 %v15021_v23  ;;  %v15093_v23 = vld [vmem:[#allocation15 + $0x504] ss:$16 sps:$4 sm:$0xff]  }
 0xa30   : > { %7614 = vmatpush1.bf16.msra.mxu1 %v15016_v19  ;;  %v15088_v19 = vld [vmem:[#allocation15 + $0x908] ss:$16 sps:$4 sm:$0xff]  }
 0xa31   : > { %7615 = vmatprep.subr.bf16.mxu1 %v15024_v25  ;;  %v15096_v25 = vld [vmem:[#allocation15 + $0x92c] ss:$16 sps:$4 sm:$0xff]  }
 0xa32   : > { %6188 = vmatpush1.bf16.msra.mxu0 %v15019_v39  ;;  %v15091_v39 = vld [vmem:[#allocation15 + $0x500] ss:$16 sps:$4 sm:$0xff]  }
 0xa33   : > { %6189 = vmatprep.subr.bf16.mxu0 %v15027_v35  ;;  %v15099_v35 = vld [vmem:[#allocation15 + $0x524] ss:$16 sps:$4 sm:$0xff]  }
 0xa34   : > { %7616 = vmatpush1.bf16.msra.mxu1 %v15022_v15  ;;  %v15094_v15 = vld [vmem:[#allocation15 + $0x928] ss:$16 sps:$4 sm:$0xff]  }
 0xa35   : > { %7617 = vmatprep.subr.bf16.mxu1 %v15030_v9  ;;  %v15102_v9 = vld [vmem:[#allocation15 + $0x94c] ss:$16 sps:$4 sm:$0xff]  }
 0xa36   : > { %6190 = vmatpush1.bf16.msra.mxu0 %v15025_v18  ;;  %v15097_v18 = vld [vmem:[#allocation15 + $0x520] ss:$16 sps:$4 sm:$0xff]  }
 0xa37   : > { %6191 = vmatprep.subr.bf16.mxu0 %v15033_v26  ;;  %v15105_v26 = vld [vmem:[#allocation15 + $0x544] ss:$16 sps:$4 sm:$0xff]  }
 0xa38   : > { %7618 = vmatpush1.bf16.msra.mxu1 %v15028_v27  ;;  %v15100_v27 = vld [vmem:[#allocation15 + $0x948] ss:$16 sps:$4 sm:$0xff]  }
 0xa39   : > { %7619 = vmatprep.subr.bf16.mxu1 %v15036_v45  ;;  %v15108_v45 = vld [vmem:[#allocation15 + $0x96c] ss:$16 sps:$4 sm:$0xff]  }
 0xa3a   : > { %6192 = vmatpush1.bf16.msra.mxu0 %v15031_v14  ;;  %v15103_v14 = vld [vmem:[#allocation15 + $0x540] ss:$16 sps:$4 sm:$0xff]  }
 0xa3b   : > { %6193 = vmatprep.subr.bf16.mxu0 %v15039_v59  ;;  %v15111_v59 = vld [vmem:[#allocation15 + $0x564] ss:$16 sps:$4 sm:$0xff]  }
 0xa3c   : > { %7620 = vmatpush1.bf16.msra.mxu1 %v15034_v51  ;;  %v15106_v51 = vld [vmem:[#allocation15 + $0x968] ss:$16 sps:$4 sm:$0xff]  }
 0xa3d   : > { %7632 = vmatprep.subr.bf16.mxu1 %v15042_v55  ;;  %v15114_v55 = vld [vmem:[#allocation15 + $0x98c] ss:$16 sps:$4 sm:$0xff]  }
 0xa3e   : > { %6194 = vmatpush1.bf16.msra.mxu0 %v15037_v21  ;;  %v15109_v21 = vld [vmem:[#allocation15 + $0x560] ss:$16 sps:$4 sm:$0xff]  }
 0xa3f   : > { %7622 = vmatmul.mubr.bf16.vlgmr.msra.gmra.mrb[148].mxu1 %v18203_v56  ;;  %6603 = vmatprep.subr.bf16.mxu0 %v15045_v40  ;;  %v15117_v40 = vld [vmem:[#allocation15 + $0x584] ss:$16 sps:$4 sm:$0xff]  }
 0xa40   : > { %7633 = vmatpush1.bf16.msra.mxu1 %v15040_v36  ;;  %7664 = vmatprep.mubr.bf16.mxu1 %v18200_v12  ;;  %v15058_v12 = vld [vmem:[#allocation15 + $0x868] ss:$16 sps:$4 sm:$0xff]  }
 0xa41   : > { %6196 = vmatmul.mubr.bf16.vlgmr.msra.gmra.mrb[48].mxu0 %v18152_v8  ;;  %7634 = vmatprep.subr.bf16.mxu1 %v15048_v37  ;;  %v15112_v36 = vld [vmem:[#allocation15 + $0x988] ss:$16 sps:$4 sm:$0xff]   ;;  %v15120_v37 = vld [vmem:[#allocation15 + $0x9ac] ss:$16 sps:$4 sm:$0xff]  }
 0xa42   : > { %6604 = vmatpush1.bf16.msra.mxu0 %v15043_v29  ;;  %6635 = vmatprep.mubr.bf16.mxu0 %v18180_v52  ;;  %v15064_v52 = vld [vmem:[#allocation15 + $0x888] ss:$16 sps:$4 sm:$0xff]   ;;  %v15115_v29 = vld [vmem:[#allocation15 + $0x580] ss:$16 sps:$4 sm:$0xff]  }
 0xa43   : > { %6605 = vmatprep.subr.bf16.mxu0 %v15051_v0  ;;  %v15123_v0 = vld [vmem:[#allocation15 + $0x5a4] ss:$16 sps:$4 sm:$0xff]  }
 0xa44   : > { %7635 = vmatpush1.bf16.msra.mxu1 %v15046_v48  ;;  %v15118_v48 = vld [vmem:[#allocation15 + $0x9a8] ss:$16 sps:$4 sm:$0xff]  }
 0xa45   : > { %7636 = vmatprep.subr.bf16.mxu1 %v15054_v57  ;;  %v15126_v57 = vld [vmem:[#allocation15 + $0x9cc] ss:$16 sps:$4 sm:$0xff]  }
 0xa46   : > { %6606 = vmatpush1.bf16.msra.mxu0 %v15049_v53  ;;  %v15121_v53 = vld [vmem:[#allocation15 + $0x5a0] ss:$16 sps:$4 sm:$0xff]  }
 0xa47   : > { %6607 = vmatprep.subr.bf16.mxu0 %v15057_v44  ;;  %v15129_v44 = vld [vmem:[#allocation15 + $0x5c4] ss:$16 sps:$4 sm:$0xff]  }
 0xa48   : > { %7637 = vmatpush1.bf16.msra.mxu1 %v15052_v7  ;;  %v15124_v7 = vld [vmem:[#allocation15 + $0x9c8] ss:$16 sps:$4 sm:$0xff]  }
 0xa49   : > { %7638 = vmatprep.subr.bf16.mxu1 %v15060_v30  ;;  %v15132_v30 = vld [vmem:[#allocation15 + $0x9ec] ss:$16 sps:$4 sm:$0xff]  }
 0xa4a   : > { %6608 = vmatpush1.bf16.msra.mxu0 %v15055_v46  ;;  %v15127_v46 = vld [vmem:[#allocation15 + $0x5c0] ss:$16 sps:$4 sm:$0xff]  }
 0xa4b   : > { %6609 = vmatprep.subr.bf16.mxu0 %v15063_v17  ;;  %v15135_v17 = vld [vmem:[#allocation15 + $0x5e4] ss:$16 sps:$4 sm:$0xff]  }
 0xa4c   : > { %7639 = vmatpush1.bf16.msra.mxu1 %v15058_v12  ;;  %v15130_v12 = vld [vmem:[#allocation15 + $0x9e8] ss:$16 sps:$4 sm:$0xff]  }
 0xa4d   : > { %7640 = vmatprep.subr.bf16.mxu1 %v15066_v63  ;;  %v15138_v63 = vld [vmem:[#allocation15 + $0xa04] ss:$16 sps:$4 sm:$0xff]  }
 0xa4e   : > { %6610 = vmatpush1.bf16.msra.mxu0 %v15061_v61  ;;  %v15133_v61 = vld [vmem:[#allocation15 + $0x5e0] ss:$16 sps:$4 sm:$0xff]  }
 0xa4f   : > { %6611 = vmatprep.subr.bf16.mxu0 %v15069_v11  ;;  %v7752_v11 = vrot.slane %v18168_v24, 3 }
 0xa50   : > { %7641 = vmatpush1.bf16.msra.mxu1 %v15064_v52  ;;  %v15136_v52 = vld [vmem:[#allocation15 + $0xa00] ss:$16 sps:$4 sm:$0xff]  }
 0xa51   : > { %7642 = vmatprep.subr.bf16.mxu1 %v15072_v10  ;;  %v7751_v10 = vrot.slane %v18154_v28, 3 }
 0xa52   : > { %6612 = vmatpush1.bf16.msra.mxu0 %v15067_v2  ;;  %v15141_v2 = vld [vmem:[#allocation15 + $0xa24] ss:$16 sps:$4 sm:$0xff]  }
 0xa53   : > { %6613 = vmatprep.subr.bf16.mxu0 %v15075_v20  ;;  %v18234_v20 = vsel %vm2984_vm13, %v7751_v10, %v7752_v11  ;;  %v15202_v11 = vld [vmem:[#allocation15 + $0xac8] ss:$16 sps:$4 sm:$0xff]  }
 0xa54   : > { %7643 = vmatpush1.bf16.msra.mxu1 %v15070_v62  ;;  %v15139_v62 = vld [vmem:[#allocation15 + $0xa20] ss:$16 sps:$4 sm:$0xff]   ;;  %v15205_v10 = vld [vmem:[#allocation15 + $0xae8] ss:$16 sps:$4 sm:$0xff]  }
 0xa55   : > { %7644 = vmatprep.subr.bf16.mxu1 %v15078_v32  ;;  %v15144_v32 = vld [vmem:[#allocation15 + $0xa44] ss:$16 sps:$4 sm:$0xff]  }
 0xa56   : > { %6614 = vmatpush1.bf16.msra.mxu0 %v15073_v43  ;;  %v15142_v43 = vld [vmem:[#allocation15 + $0xa40] ss:$16 sps:$4 sm:$0xff]  }
 0xa57   : > { %6615 = vmatprep.subr.bf16.mxu0 %v15081_v16  ;;  %v15147_v16 = vld [vmem:[#allocation15 + $0xa64] ss:$16 sps:$4 sm:$0xff]  }
 0xa58   : > { %7645 = vmatpush1.bf16.msra.mxu1 %v15076_v22  ;;  %v15145_v22 = vld [vmem:[#allocation15 + $0xa60] ss:$16 sps:$4 sm:$0xff]  }
 0xa59   : > { %7646 = vmatprep.subr.bf16.mxu1 %v15084_v54  ;;  %v15148_v54 = vld [vmem:[#allocation15 + $0xa80] ss:$16 sps:$4 sm:$0xff]  }
 0xa5a   : > { %6616 = vmatpush1.bf16.msra.mxu0 %v15079_v31  ;;  %v15153_v31 = vld [vmem:[#allocation15 + $0xaa4] ss:$16 sps:$4 sm:$0xff]  }
 0xa5b   : > { %6617 = vmatprep.subr.bf16.mxu0 %v15087_v50  ;;  %v15151_v50 = vld [vmem:[#allocation15 + $0xaa0] ss:$16 sps:$4 sm:$0xff]  }
 0xa5c   : > { %7647 = vmatpush1.bf16.msra.mxu1 %v15082_v47  ;;  %v15154_v47 = vld [vmem:[#allocation15 + $0xac0] ss:$16 sps:$4 sm:$0xff]  }
 0xa5d   : > { %7648 = vmatprep.subr.bf16.mxu1 %v15090_v49  ;;  %v15159_v49 = vld [vmem:[#allocation15 + $0xae4] ss:$16 sps:$4 sm:$0xff]  }
 0xa5e   : > { %6618 = vmatpush1.bf16.msra.mxu0 %v15085_v41  ;;  %v15157_v41 = vld [vmem:[#allocation15 + $0xae0] ss:$16 sps:$4 sm:$0xff]  }
 0xa5f   : > { %6619 = vmatprep.subr.bf16.mxu0 %v15093_v23  ;;  %v15162_v23 = vld [vmem:[#allocation15 + $0xb04] ss:$16 sps:$4 sm:$0xff]  }
 0xa60   : > { %7649 = vmatpush1.bf16.msra.mxu1 %v15088_v19  ;;  %v15160_v19 = vld [vmem:[#allocation15 + $0xb00] ss:$16 sps:$4 sm:$0xff]  }
 0xa61   : > { %7650 = vmatprep.subr.bf16.mxu1 %v15096_v25  ;;  %v15165_v25 = vld [vmem:[#allocation15 + $0xb24] ss:$16 sps:$4 sm:$0xff]  }
 0xa62   : > { %6620 = vmatpush1.bf16.msra.mxu0 %v15091_v39  ;;  %v15163_v39 = vld [vmem:[#allocation15 + $0xb20] ss:$16 sps:$4 sm:$0xff]  }
 0xa63   : > { %6621 = vmatprep.subr.bf16.mxu0 %v15099_v35  ;;  %v15168_v35 = vld [vmem:[#allocation15 + $0xb44] ss:$16 sps:$4 sm:$0xff]  }
 0xa64   : > { %7651 = vmatpush1.bf16.msra.mxu1 %v15094_v15  ;;  %v15166_v15 = vld [vmem:[#allocation15 + $0xb40] ss:$16 sps:$4 sm:$0xff]  }
 0xa65   : > { %7652 = vmatprep.subr.bf16.mxu1 %v15102_v9  ;;  %v15171_v9 = vld [vmem:[#allocation15 + $0xb64] ss:$16 sps:$4 sm:$0xff]  }
 0xa66   : > { %6622 = vmatpush1.bf16.msra.mxu0 %v15097_v18  ;;  %v15169_v18 = vld [vmem:[#allocation15 + $0xb60] ss:$16 sps:$4 sm:$0xff]  }
 0xa67   : > { %6623 = vmatprep.subr.bf16.mxu0 %v15105_v26  ;;  %v15174_v26 = vld [vmem:[#allocation15 + $0xb84] ss:$16 sps:$4 sm:$0xff]  }
 0xa68   : > { %7653 = vmatpush1.bf16.msra.mxu1 %v15100_v27  ;;  %v15172_v27 = vld [vmem:[#allocation15 + $0xb80] ss:$16 sps:$4 sm:$0xff]  }
 0xa69   : > { %7654 = vmatprep.subr.bf16.mxu1 %v15108_v45  ;;  %v15177_v45 = vld [vmem:[#allocation15 + $0xba4] ss:$16 sps:$4 sm:$0xff]  }
 0xa6a   : > { %6624 = vmatpush1.bf16.msra.mxu0 %v15103_v14  ;;  %v15175_v14 = vld [vmem:[#allocation15 + $0xba0] ss:$16 sps:$4 sm:$0xff]  }
 0xa6b   : > { %6625 = vmatprep.subr.bf16.mxu0 %v15111_v59  ;;  %v15180_v59 = vld [vmem:[#allocation15 + $0xbc4] ss:$16 sps:$4 sm:$0xff]  }
 0xa6c   : > { %7655 = vmatpush1.bf16.msra.mxu1 %v15106_v51  ;;  %v15178_v51 = vld [vmem:[#allocation15 + $0xbc0] ss:$16 sps:$4 sm:$0xff]  }
 0xa6d   : > { %7656 = vmatprep.subr.bf16.mxu1 %v15114_v55  ;;  %v15183_v55 = vld [vmem:[#allocation15 + $0xbe4] ss:$16 sps:$4 sm:$0xff]  }
 0xa6e   : > { %6626 = vmatpush1.bf16.msra.mxu0 %v15109_v21  ;;  %v15181_v21 = vld [vmem:[#allocation15 + $0xbe0] ss:$16 sps:$4 sm:$0xff]  }
 0xa6f   : > { %6627 = vmatprep.subr.bf16.mxu0 %v15117_v40  ;;  %v15186_v40 = vld [vmem:[#allocation15 + $0xa0c] ss:$16 sps:$4 sm:$0xff]  }
 0xa70   : > { %7657 = vmatpush1.bf16.msra.mxu1 %v15112_v36  ;;  %v7749_v36 = vrot.slane %v18166_v33, 3 }
 0xa71   : > { %7658 = vmatprep.subr.bf16.mxu1 %v15120_v37  ;;  %v7748_v37 = vrot.slane %v18152_v8, 3 }
 0xa72   : > { %6628 = vmatpush1.bf16.msra.mxu0 %v15115_v29  ;;  %v15184_v29 = vld [vmem:[#allocation15 + $0xa08] ss:$16 sps:$4 sm:$0xff]  }
 0xa73   : > { %6629 = vmatprep.subr.bf16.mxu0 %v15123_v0  ;;  %v15189_v0 = vld [vmem:[#allocation15 + $0xa2c] ss:$16 sps:$4 sm:$0xff]  }
 0xa74   : > { %7659 = vmatpush1.bf16.msra.mxu1 %v15118_v48  ;;  %v18242_v48 = vsel %vm2984_vm13, %v7748_v37, %v7749_v36  ;;  %v15250_v37 = vld [vmem:[#allocation15 + $0xcc0] ss:$16 sps:$4 sm:$0xff]  }
 0xa75   : > { %7660 = vmatprep.subr.bf16.mxu1 %v15126_v57  ;;  %v15187_v57 = vld [vmem:[#allocation15 + $0xa28] ss:$16 sps:$4 sm:$0xff]  }
 0xa76   : > { %6630 = vmatpush1.bf16.msra.mxu0 %v15121_v53  ;;  %v15192_v53 = vld [vmem:[#allocation15 + $0xa4c] ss:$16 sps:$4 sm:$0xff]  }
 0xa77   : > { %6631 = vmatprep.subr.bf16.mxu0 %v15129_v44  ;;  %v15190_v44 = vld [vmem:[#allocation15 + $0xa48] ss:$16 sps:$4 sm:$0xff]  }
 0xa78   : > { %7661 = vmatpush1.bf16.msra.mxu1 %v15124_v7  ;;  %v15195_v7 = vld [vmem:[#allocation15 + $0xa6c] ss:$16 sps:$4 sm:$0xff]  }
 0xa79   : > { %7662 = vmatprep.subr.bf16.mxu1 %v15132_v30  ;;  %v15193_v30 = vld [vmem:[#allocation15 + $0xa68] ss:$16 sps:$4 sm:$0xff]  }
 0xa7a   : > { %6632 = vmatpush1.bf16.msra.mxu0 %v15127_v46  ;;  %v15198_v46 = vld [vmem:[#allocation15 + $0xa8c] ss:$16 sps:$4 sm:$0xff]  }
 0xa7b   : > { %6633 = vmatprep.subr.bf16.mxu0 %v15135_v17  ;;  %v15196_v17 = vld [vmem:[#allocation15 + $0xa88] ss:$16 sps:$4 sm:$0xff]  }
 0xa7c   : > { %7663 = vmatpush1.bf16.msra.mxu1 %v15130_v12  ;;  %v15201_v12 = vld [vmem:[#allocation15 + $0xaac] ss:$16 sps:$4 sm:$0xff]  }
 0xa7d   : > { %8076 = vmatprep.subr.bf16.mxu1 %v15138_v63  ;;  %v15199_v63 = vld [vmem:[#allocation15 + $0xaa8] ss:$16 sps:$4 sm:$0xff]  }
 0xa7e   : > { %6634 = vmatpush1.bf16.msra.mxu0 %v15133_v61  ;;  %v15204_v61 = vld [vmem:[#allocation15 + $0xacc] ss:$16 sps:$4 sm:$0xff]  }
 0xa7f   : > { %7665 = vmatmul.mubr.bf16.vlgmr.msra.gmra.mrb[144].mxu1 %v18203_v56  ;;  %v15150_v56 = vld [vmem:[#allocation15 + $0xa84] ss:$16 sps:$4 sm:$0xff]  }
 0xa80   : > { %8077 = vmatpush1.bf16.msra.mxu1 %v15136_v52  ;;  %8108 = vmatprep.mubr.bf16.mxu1 %v18234_v20  ;;  %v15207_v52 = vld [vmem:[#allocation15 + $0xaec] ss:$16 sps:$4 sm:$0xff]  }
 0xa81   : > { %6636 = vmatmul.mubr.bf16.vlgmr.msra.gmra.mrb[44].mxu0 %v18185_v60  ;;  %8078 = vmatprep.subr.bf16.mxu1 %v15141_v2  ;;  %v15156_v60 = vld [vmem:[#allocation15 + $0xac4] ss:$16 sps:$4 sm:$0xff]   ;;  %v15210_v2 = vld [vmem:[#allocation15 + $0xb0c] ss:$16 sps:$4 sm:$0xff]  }
 0xa82   : > { %9805 = vmatprep.mubr.bf16.mxu0 %v18444_v34 }
 0xa84   : > { %8079 = vmatpush1.bf16.msra.mxu1 %v15139_v62  ;;  %v15213_v62 = vld [vmem:[#allocation15 + $0xb2c] ss:$16 sps:$4 sm:$0xff]  }
 0xa85   : > { %8080 = vmatprep.subr.bf16.mxu1 %v15144_v32  ;;  %v15211_v32 = vld [vmem:[#allocation15 + $0xb28] ss:$16 sps:$4 sm:$0xff]  }
 0xa88   : > { %8081 = vmatpush1.bf16.msra.mxu1 %v15142_v43  ;;  %v15216_v43 = vld [vmem:[#allocation15 + $0xb4c] ss:$16 sps:$4 sm:$0xff]  }
 0xa89   : > { %8082 = vmatprep.subr.bf16.mxu1 %v15147_v16  ;;  %v15214_v16 = vld [vmem:[#allocation15 + $0xb48] ss:$16 sps:$4 sm:$0xff]  }
 0xa8c   : > { %8083 = vmatpush1.bf16.msra.mxu1 %v15145_v22  ;;  %v15219_v22 = vld [vmem:[#allocation15 + $0xb6c] ss:$16 sps:$4 sm:$0xff]  }
 0xa8d   : > { %8084 = vmatprep.subr.bf16.mxu1 %v15150_v56  ;;  %v15217_v56 = vld [vmem:[#allocation15 + $0xb68] ss:$16 sps:$4 sm:$0xff]  }
 0xa90   : > { %8085 = vmatpush1.bf16.msra.mxu1 %v15148_v54  ;;  %v15222_v54 = vld [vmem:[#allocation15 + $0xb8c] ss:$16 sps:$4 sm:$0xff]  }
 0xa91   : > { %8086 = vmatprep.subr.bf16.mxu1 %v15153_v31  ;;  %v15220_v31 = vld [vmem:[#allocation15 + $0xb88] ss:$16 sps:$4 sm:$0xff]  }
 0xa94   : > { %8087 = vmatpush1.bf16.msra.mxu1 %v15151_v50  ;;  %v15225_v50 = vld [vmem:[#allocation15 + $0xbac] ss:$16 sps:$4 sm:$0xff]  }
 0xa95   : > { %8088 = vmatprep.subr.bf16.mxu1 %v15156_v60  ;;  %v15223_v60 = vld [vmem:[#allocation15 + $0xba8] ss:$16 sps:$4 sm:$0xff]  }
 0xa98   : > { %8089 = vmatpush1.bf16.msra.mxu1 %v15154_v47  ;;  %v15228_v47 = vld [vmem:[#allocation15 + $0xbcc] ss:$16 sps:$4 sm:$0xff]  }
 0xa99   : > { %8090 = vmatprep.subr.bf16.mxu1 %v15159_v49  ;;  %v15226_v49 = vld [vmem:[#allocation15 + $0xbc8] ss:$16 sps:$4 sm:$0xff]  }
 0xa9c   : > { %8091 = vmatpush1.bf16.msra.mxu1 %v15157_v41  ;;  %v15231_v41 = vld [vmem:[#allocation15 + $0xbec] ss:$16 sps:$4 sm:$0xff]  }
 0xa9d   : > { %8092 = vmatprep.subr.bf16.mxu1 %v15162_v23  ;;  %v15229_v23 = vld [vmem:[#allocation15 + $0xbe8] ss:$16 sps:$4 sm:$0xff]  }
 0xaa0   : > { %8093 = vmatpush1.bf16.msra.mxu1 %v15160_v19  ;;  %v15234_v19 = vld [vmem:[#allocation15 + $0xc04] ss:$16 sps:$4 sm:$0xff]  }
 0xaa1   : > { %8094 = vmatprep.subr.bf16.mxu1 %v15165_v25  ;;  %v8239_v25 = vrot.slane %v18168_v24, 4 }
 0xaa4   : > { %8095 = vmatpush1.bf16.msra.mxu1 %v15163_v39  ;;  %v15232_v39 = vld [vmem:[#allocation15 + $0xc00] ss:$16 sps:$4 sm:$0xff]  }
 0xaa5   : > { %8096 = vmatprep.subr.bf16.mxu1 %v15168_v35  ;;  %v8238_v35 = vrot.slane %v18154_v28, 4 }
 0xaa8   : > { %8097 = vmatpush1.bf16.msra.mxu1 %v15166_v15  ;;  %v15237_v15 = vld [vmem:[#allocation15 + $0xc24] ss:$16 sps:$4 sm:$0xff]  }
 0xaa9   : > { %8098 = vmatprep.subr.bf16.mxu1 %v15171_v9  ;;  %v18250_v9 = vsel %vm535_vm1, %v8238_v35, %v8239_v25  ;;  %v15292_v25 = vld [vmem:[#allocation15 + $0xc88] ss:$16 sps:$4 sm:$0xff]  }
 0xaaa   : > { %v15295_v35 = vld [vmem:[#allocation15 + $0xca8] ss:$16 sps:$4 sm:$0xff]  }
 0xaac   : > { %8099 = vmatpush1.bf16.msra.mxu1 %v15169_v18  ;;  %v15235_v18 = vld [vmem:[#allocation15 + $0xc20] ss:$16 sps:$4 sm:$0xff]  }
 0xaad   : > { %8100 = vmatprep.subr.bf16.mxu1 %v15174_v26  ;;  %v15240_v26 = vld [vmem:[#allocation15 + $0xc44] ss:$16 sps:$4 sm:$0xff]  }
 0xab0   : > { %8101 = vmatpush1.bf16.msra.mxu1 %v15172_v27  ;;  %v15238_v27 = vld [vmem:[#allocation15 + $0xc40] ss:$16 sps:$4 sm:$0xff]  }
 0xab1   : > { %8102 = vmatprep.subr.bf16.mxu1 %v15177_v45  ;;  %v15243_v45 = vld [vmem:[#allocation15 + $0xc64] ss:$16 sps:$4 sm:$0xff]  }
 0xab4   : > { %8103 = vmatpush1.bf16.msra.mxu1 %v15175_v14  ;;  %v15241_v14 = vld [vmem:[#allocation15 + $0xc60] ss:$16 sps:$4 sm:$0xff]  }
 0xab5   : > { %8104 = vmatprep.subr.bf16.mxu1 %v15180_v59  ;;  %v15246_v59 = vld [vmem:[#allocation15 + $0xc84] ss:$16 sps:$4 sm:$0xff]  }
 0xab8   : > { %8105 = vmatpush1.bf16.msra.mxu1 %v15178_v51  ;;  %v15244_v51 = vld [vmem:[#allocation15 + $0xc80] ss:$16 sps:$4 sm:$0xff]  }
 0xab9   : > { %8106 = vmatprep.subr.bf16.mxu1 %v15183_v55  ;;  %v15249_v55 = vld [vmem:[#allocation15 + $0xca4] ss:$16 sps:$4 sm:$0xff]  }
 0xabc   : > { %8107 = vmatpush1.bf16.msra.mxu1 %v15181_v21  ;;  %v15247_v21 = vld [vmem:[#allocation15 + $0xca0] ss:$16 sps:$4 sm:$0xff]  }
 0xabd   : > { %8119 = vmatprep.subr.bf16.mxu1 %v15186_v40  ;;  %v15252_v40 = vld [vmem:[#allocation15 + $0xcc4] ss:$16 sps:$4 sm:$0xff]  }
 0xabf   : > { %8109 = vmatmul.mubr.bf16.vlgmr.msra.gmra.mrb[148].mxu1 %v18242_v48 }
 0xac0   : > { %8120 = vmatpush1.bf16.msra.mxu1 %v15184_v29  ;;  %8151 = vmatprep.mubr.bf16.mxu1 %v18234_v20  ;;  %v15208_v20 = vld [vmem:[#allocation15 + $0xb08] ss:$16 sps:$4 sm:$0xff]  }
 0xac1   : > { %8121 = vmatprep.subr.bf16.mxu1 %v15189_v0  ;;  %v15255_v0 = vld [vmem:[#allocation15 + $0xce4] ss:$16 sps:$4 sm:$0xff]  }
 0xac4   : > { %8122 = vmatpush1.bf16.msra.mxu1 %v15187_v57 }
 0xac5   : > { %8123 = vmatprep.subr.bf16.mxu1 %v15192_v53  ;;  %v15253_v53 = vld [vmem:[#allocation15 + $0xce0] ss:$16 sps:$4 sm:$0xff]  }
 0xac8   : > { %8124 = vmatpush1.bf16.msra.mxu1 %v15190_v44  ;;  %v15258_v44 = vld [vmem:[#allocation15 + $0xd04] ss:$16 sps:$4 sm:$0xff]  }
 0xac9   : > { %8125 = vmatprep.subr.bf16.mxu1 %v15195_v7  ;;  %v15256_v7 = vld [vmem:[#allocation15 + $0xd00] ss:$16 sps:$4 sm:$0xff]  }
 0xacc   : > { %8126 = vmatpush1.bf16.msra.mxu1 %v15193_v30  ;;  %v15261_v30 = vld [vmem:[#allocation15 + $0xd24] ss:$16 sps:$4 sm:$0xff]  }
 0xacd   : > { %8127 = vmatprep.subr.bf16.mxu1 %v15198_v46  ;;  %v15259_v46 = vld [vmem:[#allocation15 + $0xd20] ss:$16 sps:$4 sm:$0xff]  }
 0xad0   : > { %8128 = vmatpush1.bf16.msra.mxu1 %v15196_v17  ;;  %v15264_v17 = vld [vmem:[#allocation15 + $0xd44] ss:$16 sps:$4 sm:$0xff]  }
 0xad1   : > { %8129 = vmatprep.subr.bf16.mxu1 %v15201_v12  ;;  %v15262_v12 = vld [vmem:[#allocation15 + $0xd40] ss:$16 sps:$4 sm:$0xff]  }
 0xad4   : > { %8130 = vmatpush1.bf16.msra.mxu1 %v15199_v63  ;;  %v15267_v63 = vld [vmem:[#allocation15 + $0xd64] ss:$16 sps:$4 sm:$0xff]  }
 0xad5   : > { %8131 = vmatprep.subr.bf16.mxu1 %v15204_v61  ;;  %v15265_v61 = vld [vmem:[#allocation15 + $0xd60] ss:$16 sps:$4 sm:$0xff]  }
 0xad8   : > { %8132 = vmatpush1.bf16.msra.mxu1 %v15202_v11  ;;  %v15270_v11 = vld [vmem:[#allocation15 + $0xd84] ss:$16 sps:$4 sm:$0xff]  }
 0xad9   : > { %8133 = vmatprep.subr.bf16.mxu1 %v15207_v52  ;;  %v15268_v52 = vld [vmem:[#allocation15 + $0xd80] ss:$16 sps:$4 sm:$0xff]  }
 0xadc   : > { %8134 = vmatpush1.bf16.msra.mxu1 %v15205_v10  ;;  %v15273_v10 = vld [vmem:[#allocation15 + $0xda4] ss:$16 sps:$4 sm:$0xff]  }
 0xadd   : > { %8135 = vmatprep.subr.bf16.mxu1 %v15210_v2  ;;  %v15271_v2 = vld [vmem:[#allocation15 + $0xda0] ss:$16 sps:$4 sm:$0xff]  }
 0xae0   : > { %8136 = vmatpush1.bf16.msra.mxu1 %v15208_v20  ;;  %v15276_v20 = vld [vmem:[#allocation15 + $0xdc4] ss:$16 sps:$4 sm:$0xff]  }
 0xae1   : > { %8137 = vmatprep.subr.bf16.mxu1 %v15213_v62  ;;  %v15274_v62 = vld [vmem:[#allocation15 + $0xdc0] ss:$16 sps:$4 sm:$0xff]  }
 0xae4   : > { %8138 = vmatpush1.bf16.msra.mxu1 %v15211_v32  ;;  %v15279_v32 = vld [vmem:[#allocation15 + $0xde4] ss:$16 sps:$4 sm:$0xff]  }
 0xae5   : > { %8139 = vmatprep.subr.bf16.mxu1 %v15216_v43  ;;  %v15277_v43 = vld [vmem:[#allocation15 + $0xde0] ss:$16 sps:$4 sm:$0xff]  }
 0xae8   : > { %8140 = vmatpush1.bf16.msra.mxu1 %v15214_v16  ;;  %v15282_v16 = vld [vmem:[#allocation15 + $0xc0c] ss:$16 sps:$4 sm:$0xff]  }
 0xae9   : > { %8141 = vmatprep.subr.bf16.mxu1 %v15219_v22  ;;  %v8236_v22 = vrot.slane %v18166_v33, 4 }
 0xaec   : > { %8142 = vmatpush1.bf16.msra.mxu1 %v15217_v56  ;;  %v8235_v56 = vrot.slane %v18152_v8, 4 }
 0xaed   : > { %8143 = vmatprep.subr.bf16.mxu1 %v15222_v54  ;;  %v15280_v54 = vld [vmem:[#allocation15 + $0xc08] ss:$16 sps:$4 sm:$0xff]  }
 0xaf0   : > { %8144 = vmatpush1.bf16.msra.mxu1 %v15220_v31  ;;  %v15285_v31 = vld [vmem:[#allocation15 + $0xc2c] ss:$16 sps:$4 sm:$0xff]  }
 0xaf1   : > { %8145 = vmatprep.subr.bf16.mxu1 %v15225_v50  ;;  %v18264_v50 = vsel %vm535_vm1, %v8235_v56, %v8236_v22  ;;  %v15342_v22 = vld [vmem:[#allocation15 + $0xe84] ss:$16 sps:$4 sm:$0xff]   ;;  %v15340_v56 = vld [vmem:[#allocation15 + $0xe80] ss:$16 sps:$4 sm:$0xff]  }
 0xaf4   : > { %8146 = vmatpush1.bf16.msra.mxu1 %v15223_v60  ;;  %v15283_v60 = vld [vmem:[#allocation15 + $0xc28] ss:$16 sps:$4 sm:$0xff]  }
 0xaf5   : > { %8147 = vmatprep.subr.bf16.mxu1 %v15228_v47  ;;  %v15288_v47 = vld [vmem:[#allocation15 + $0xc4c] ss:$16 sps:$4 sm:$0xff]  }
 0xaf8   : > { %8148 = vmatpush1.bf16.msra.mxu1 %v15226_v49  ;;  %v15286_v49 = vld [vmem:[#allocation15 + $0xc48] ss:$16 sps:$4 sm:$0xff]  }
 0xaf9   : > { %8149 = vmatprep.subr.bf16.mxu1 %v15231_v41  ;;  %v15291_v41 = vld [vmem:[#allocation15 + $0xc6c] ss:$16 sps:$4 sm:$0xff]  }
 0xafc   : > { %8150 = vmatpush1.bf16.msra.mxu1 %v15229_v23  ;;  %v15289_v23 = vld [vmem:[#allocation15 + $0xc68] ss:$16 sps:$4 sm:$0xff]  }
 0xafd   : > { %8563 = vmatprep.subr.bf16.mxu1 %v15234_v19  ;;  %v15294_v19 = vld [vmem:[#allocation15 + $0xc8c] ss:$16 sps:$4 sm:$0xff]  }
 0xaff   : > { %8152 = vmatmul.mubr.bf16.vlgmr.msra.gmra.mrb[144].mxu1 %v18242_v48 }
 0xb00   : > { %8564 = vmatpush1.bf16.msra.mxu1 %v15232_v39  ;;  %8595 = vmatprep.mubr.bf16.mxu1 %v18250_v9  ;;  %v15297_v39 = vld [vmem:[#allocation15 + $0xcac] ss:$16 sps:$4 sm:$0xff]  }
 0xb01   : > { %8565 = vmatprep.subr.bf16.mxu1 %v15237_v15  ;;  %v15300_v15 = vld [vmem:[#allocation15 + $0xccc] ss:$16 sps:$4 sm:$0xff]  }
 0xb04   : > { %8566 = vmatpush1.bf16.msra.mxu1 %v15235_v18  ;;  %v15298_v18 = vld [vmem:[#allocation15 + $0xcc8] ss:$16 sps:$4 sm:$0xff]  }
 0xb05   : > { %8567 = vmatprep.subr.bf16.mxu1 %v15240_v26 }
 0xb08   : > { %8568 = vmatpush1.bf16.msra.mxu1 %v15238_v27  ;;  %v15303_v27 = vld [vmem:[#allocation15 + $0xcec] ss:$16 sps:$4 sm:$0xff]  }
 0xb09   : > { %8569 = vmatprep.subr.bf16.mxu1 %v15243_v45 }
 0xb0c   : > { %8570 = vmatpush1.bf16.msra.mxu1 %v15241_v14 }
 0xb0d   : > { %8571 = vmatprep.subr.bf16.mxu1 %v15246_v59  ;;  %v15301_v59 = vld [vmem:[#allocation15 + $0xce8] ss:$16 sps:$4 sm:$0xff]  }
 0xb10   : > { %8572 = vmatpush1.bf16.msra.mxu1 %v15244_v51  ;;  %v15306_v51 = vld [vmem:[#allocation15 + $0xd0c] ss:$16 sps:$4 sm:$0xff]  }
 0xb11   : > { %8573 = vmatprep.subr.bf16.mxu1 %v15249_v55  ;;  %v15304_v55 = vld [vmem:[#allocation15 + $0xd08] ss:$16 sps:$4 sm:$0xff]  }
 0xb14   : > { %v18253_v36 = vpop.f32.mrb[48].mxu0  ;;  %8574 = vmatpush1.bf16.msra.mxu1 %v15247_v21  ;;  %v15309_v21 = vld [vmem:[#allocation15 + $0xd2c] ss:$16 sps:$4 sm:$0xff]  }
 0xb15   : > { %v18255_v29 = vpop.f32.mrb[49].mxu0  ;;  %8575 = vmatprep.subr.bf16.mxu1 %v15252_v40  ;;  %v15307_v40 = vld [vmem:[#allocation15 + $0xd28] ss:$16 sps:$4 sm:$0xff]  }
 0xb16   : > { %v18257_v48 = vpop.f32.mrb[50].mxu0 }
 0xb17   : > { %v18259_v57 = vpop.f32.mrb[51].mxu0 }
 0xb18   : > { %8576 = vmatpush1.bf16.msra.mxu1 %v15250_v37  ;;  %v15312_v37 = vld [vmem:[#allocation15 + $0xd4c] ss:$16 sps:$4 sm:$0xff]  }
 0xb19   : > { %8577 = vmatprep.subr.bf16.mxu1 %v15255_v0  ;;  %v15310_v0 = vld [vmem:[#allocation15 + $0xd48] ss:$16 sps:$4 sm:$0xff]  }
 0xb1c   : > { %8578 = vmatpush1.bf16.msra.mxu1 %v15253_v53  ;;  %v15315_v53 = vld [vmem:[#allocation15 + $0xd6c] ss:$16 sps:$4 sm:$0xff]  }
 0xb1d   : > { %8579 = vmatprep.subr.bf16.mxu1 %v15258_v44  ;;  %v15313_v44 = vld [vmem:[#allocation15 + $0xd68] ss:$16 sps:$4 sm:$0xff]  }
 0xb20   : > { %8580 = vmatpush1.bf16.msra.mxu1 %v15256_v7  ;;  %v15318_v7 = vld [vmem:[#allocation15 + $0xd8c] ss:$16 sps:$4 sm:$0xff]  }
 0xb21   : > { %8581 = vmatprep.subr.bf16.mxu1 %v15261_v30  ;;  %v15316_v30 = vld [vmem:[#allocation15 + $0xd88] ss:$16 sps:$4 sm:$0xff]  }
 0xb24   : > { %8582 = vmatpush1.bf16.msra.mxu1 %v15259_v46  ;;  %v15321_v46 = vld [vmem:[#allocation15 + $0xdac] ss:$16 sps:$4 sm:$0xff]  }
 0xb25   : > { %8583 = vmatprep.subr.bf16.mxu1 %v15264_v17  ;;  %v15319_v17 = vld [vmem:[#allocation15 + $0xda8] ss:$16 sps:$4 sm:$0xff]  }
 0xb28   : > { %8584 = vmatpush1.bf16.msra.mxu1 %v15262_v12  ;;  %v15324_v12 = vld [vmem:[#allocation15 + $0xdcc] ss:$16 sps:$4 sm:$0xff]  }
 0xb29   : > { %8585 = vmatprep.subr.bf16.mxu1 %v15267_v63  ;;  %v15322_v63 = vld [vmem:[#allocation15 + $0xdc8] ss:$16 sps:$4 sm:$0xff]  }
 0xb2c   : > { %8586 = vmatpush1.bf16.msra.mxu1 %v15265_v61  ;;  %v15327_v61 = vld [vmem:[#allocation15 + $0xdec] ss:$16 sps:$4 sm:$0xff]  }
 0xb2d   : > { %8587 = vmatprep.subr.bf16.mxu1 %v15270_v11  ;;  %v15325_v11 = vld [vmem:[#allocation15 + $0xde8] ss:$16 sps:$4 sm:$0xff]  }
 0xb30   : > { %8588 = vmatpush1.bf16.msra.mxu1 %v15268_v52  ;;  %v15330_v52 = vld [vmem:[#allocation15 + $0xe04] ss:$16 sps:$4 sm:$0xff]  }
 0xb31   : > { %8589 = vmatprep.subr.bf16.mxu1 %v15273_v10  ;;  %v15328_v10 = vld [vmem:[#allocation15 + $0xe00] ss:$16 sps:$4 sm:$0xff]  }
 0xb34   : > { %8590 = vmatpush1.bf16.msra.mxu1 %v15271_v2  ;;  %v15333_v2 = vld [vmem:[#allocation15 + $0xe24] ss:$16 sps:$4 sm:$0xff]  }
 0xb35   : > { %8591 = vmatprep.subr.bf16.mxu1 %v15276_v20  ;;  %v15331_v20 = vld [vmem:[#allocation15 + $0xe20] ss:$16 sps:$4 sm:$0xff]  }
 0xb38   : > { %8592 = vmatpush1.bf16.msra.mxu1 %v15274_v62  ;;  %v15336_v62 = vld [vmem:[#allocation15 + $0xe44] ss:$16 sps:$4 sm:$0xff]  }
 0xb39   : > { %8593 = vmatprep.subr.bf16.mxu1 %v15279_v32  ;;  %v15334_v32 = vld [vmem:[#allocation15 + $0xe40] ss:$16 sps:$4 sm:$0xff]  }
 0xb3c   : > { %8594 = vmatpush1.bf16.msra.mxu1 %v15277_v43  ;;  %v15339_v43 = vld [vmem:[#allocation15 + $0xe64] ss:$16 sps:$4 sm:$0xff]  }
 0xb3d   : > { %8606 = vmatprep.subr.bf16.mxu1 %v15282_v16  ;;  %v15337_v16 = vld [vmem:[#allocation15 + $0xe60] ss:$16 sps:$4 sm:$0xff]  }
 0xb3f   : > { %8596 = vmatmul.mubr.bf16.vlgmr.msra.gmra.mrb[148].mxu1 %v18264_v50 }
 0xb40   : > { %8607 = vmatpush1.bf16.msra.mxu1 %v15280_v54  ;;  %8638 = vmatprep.mubr.bf16.mxu1 %v18250_v9  ;;  %v15345_v54 = vld [vmem:[#allocation15 + $0xea4] ss:$16 sps:$4 sm:$0xff]  }
 0xb41   : > { %8608 = vmatprep.subr.bf16.mxu1 %v15285_v31  ;;  %v15343_v31 = vld [vmem:[#allocation15 + $0xea0] ss:$16 sps:$4 sm:$0xff]  }
 0xb44   : > { %8609 = vmatpush1.bf16.msra.mxu1 %v15283_v60  ;;  %v15346_v60 = vld [vmem:[#allocation15 + $0xec0] ss:$16 sps:$4 sm:$0xff]  }
 0xb45   : > { %8610 = vmatprep.subr.bf16.mxu1 %v15288_v47  ;;  %v15351_v47 = vld [vmem:[#allocation15 + $0xee4] ss:$16 sps:$4 sm:$0xff]  }
 0xb48   : > { %8611 = vmatpush1.bf16.msra.mxu1 %v15286_v49  ;;  %v15349_v49 = vld [vmem:[#allocation15 + $0xee0] ss:$16 sps:$4 sm:$0xff]  }
 0xb49   : > { %8612 = vmatprep.subr.bf16.mxu1 %v15291_v41  ;;  %v15354_v41 = vld [vmem:[#allocation15 + $0xf04] ss:$16 sps:$4 sm:$0xff]  }
 0xb4c   : > { %8613 = vmatpush1.bf16.msra.mxu1 %v15289_v23  ;;  %v15352_v23 = vld [vmem:[#allocation15 + $0xf00] ss:$16 sps:$4 sm:$0xff]  }
 0xb4d   : > { %8614 = vmatprep.subr.bf16.mxu1 %v15294_v19  ;;  %v15357_v19 = vld [vmem:[#allocation15 + $0xf24] ss:$16 sps:$4 sm:$0xff]  }
 0xb50   : > { %8615 = vmatpush1.bf16.msra.mxu1 %v15292_v25  ;;  %v15355_v25 = vld [vmem:[#allocation15 + $0xf20] ss:$16 sps:$4 sm:$0xff]  }
 0xb51   : > { %8616 = vmatprep.subr.bf16.mxu1 %v15297_v39  ;;  %v15360_v39 = vld [vmem:[#allocation15 + $0xf44] ss:$16 sps:$4 sm:$0xff]  }
 0xb54   : > { %v18268_v9 = vpop.f32.mrb[44].mxu0  ;;  %8617 = vmatpush1.bf16.msra.mxu1 %v15295_v35  ;;  %v15358_v35 = vld [vmem:[#allocation15 + $0xf40] ss:$16 sps:$4 sm:$0xff]  }
 0xb55   : > { %v18270_v26 = vpop.f32.mrb[45].mxu0  ;;  %8618 = vmatprep.subr.bf16.mxu1 %v15300_v15  ;;  %v15363_v15 = vld [vmem:[#allocation15 + $0xf64] ss:$16 sps:$4 sm:$0xff]  }
 0xb56   : > { %v18272_v45 = vpop.f32.mrb[46].mxu0 }
 0xb57   : > { %v18274_v14 = vpop.f32.mrb[47].mxu0 }
 0xb58   : > { %8619 = vmatpush1.bf16.msra.mxu1 %v15298_v18  ;;  %v15361_v18 = vld [vmem:[#allocation15 + $0xf60] ss:$16 sps:$4 sm:$0xff]  }
 0xb59   : > { %8620 = vmatprep.subr.bf16.mxu1 %v15303_v27  ;;  %v15366_v27 = vld [vmem:[#allocation15 + $0xf84] ss:$16 sps:$4 sm:$0xff]  }
 0xb5c   : > { %8621 = vmatpush1.bf16.msra.mxu1 %v15301_v59  ;;  %v15364_v59 = vld [vmem:[#allocation15 + $0xf80] ss:$16 sps:$4 sm:$0xff]  }
 0xb5d   : > { %8622 = vmatprep.subr.bf16.mxu1 %v15306_v51  ;;  %v15369_v51 = vld [vmem:[#allocation15 + $0xfa4] ss:$16 sps:$4 sm:$0xff]  }
 0xb60   : > { %8623 = vmatpush1.bf16.msra.mxu1 %v15304_v55  ;;  %v15367_v55 = vld [vmem:[#allocation15 + $0xfa0] ss:$16 sps:$4 sm:$0xff]  }
 0xb61   : > { %8624 = vmatprep.subr.bf16.mxu1 %v15309_v21  ;;  %v15372_v21 = vld [vmem:[#allocation15 + $0xfc4] ss:$16 sps:$4 sm:$0xff]  }
 0xb64   : > { %8625 = vmatpush1.bf16.msra.mxu1 %v15307_v40  ;;  %v15370_v40 = vld [vmem:[#allocation15 + $0xfc0] ss:$16 sps:$4 sm:$0xff]  }
 0xb65   : > { %8626 = vmatprep.subr.bf16.mxu1 %v15312_v37  ;;  %v15375_v37 = vld [vmem:[#allocation15 + $0xfe4] ss:$16 sps:$4 sm:$0xff]  }
 0xb68   : > { %8627 = vmatpush1.bf16.msra.mxu1 %v15310_v0  ;;  %v15373_v0 = vld [vmem:[#allocation15 + $0xfe0] ss:$16 sps:$4 sm:$0xff]  }
 0xb69   : > { %8628 = vmatprep.subr.bf16.mxu1 %v15315_v53  ;;  %v15378_v53 = vld [vmem:[#allocation15 + $0xe0c] ss:$16 sps:$4 sm:$0xff]  }
 0xb6c   : > { %8629 = vmatpush1.bf16.msra.mxu1 %v15313_v44  ;;  %v15376_v44 = vld [vmem:[#allocation15 + $0xe08] ss:$16 sps:$4 sm:$0xff]  }
 0xb6d   : > { %8630 = vmatprep.subr.bf16.mxu1 %v15318_v7  ;;  %v15381_v7 = vld [vmem:[#allocation15 + $0xe2c] ss:$16 sps:$4 sm:$0xff]  }
 0xb70   : > { %8631 = vmatpush1.bf16.msra.mxu1 %v15316_v30  ;;  %v15379_v30 = vld [vmem:[#allocation15 + $0xe28] ss:$16 sps:$4 sm:$0xff]  }
 0xb71   : > { %8632 = vmatprep.subr.bf16.mxu1 %v15321_v46  ;;  %v15384_v46 = vld [vmem:[#allocation15 + $0xe4c] ss:$16 sps:$4 sm:$0xff]  }
 0xb74   : > { %8633 = vmatpush1.bf16.msra.mxu1 %v15319_v17  ;;  %v15382_v17 = vld [vmem:[#allocation15 + $0xe48] ss:$16 sps:$4 sm:$0xff]  }
 0xb75   : > { %8634 = vmatprep.subr.bf16.mxu1 %v15324_v12  ;;  %v15387_v12 = vld [vmem:[#allocation15 + $0xe6c] ss:$16 sps:$4 sm:$0xff]  }
 0xb78   : > { %8635 = vmatpush1.bf16.msra.mxu1 %v15322_v63  ;;  %v15385_v63 = vld [vmem:[#allocation15 + $0xe68] ss:$16 sps:$4 sm:$0xff]  }
 0xb79   : > { %8636 = vmatprep.subr.bf16.mxu1 %v15327_v61  ;;  %v15390_v61 = vld [vmem:[#allocation15 + $0xe8c] ss:$16 sps:$4 sm:$0xff]  }
 0xb7c   : > { %8637 = vmatpush1.bf16.msra.mxu1 %v15325_v11  ;;  %v15388_v11 = vld [vmem:[#allocation15 + $0xe88] ss:$16 sps:$4 sm:$0xff]  }
 0xb7d   : > { %9059 = vmatprep.subr.bf16.mxu1 %v15330_v52  ;;  %v15393_v52 = vld [vmem:[#allocation15 + $0xeac] ss:$16 sps:$4 sm:$0xff]  }
 0xb7f   : > { %8639 = vmatmul.mubr.bf16.vlgmr.msra.gmra.mrb[144].mxu1 %v18264_v50  ;;  %v15348_v50 = vld [vmem:[#allocation15 + $0xec4] ss:$16 sps:$4 sm:$0xff]  }
 0xb80   : > { %9060 = vmatpush1.bf16.msra.mxu1 %v15328_v10  ;;  %9091 = vmatprep.mubr.bf16.mxu1 %v18208_v38  ;;  %v15391_v10 = vld [vmem:[#allocation15 + $0xea8] ss:$16 sps:$4 sm:$0xff]  }
 0xb81   : > { %9061 = vmatprep.subr.bf16.mxu1 %v15333_v2  ;;  %v15396_v2 = vld [vmem:[#allocation15 + $0xecc] ss:$16 sps:$4 sm:$0xff]  }
 0xb84   : > { %9062 = vmatpush1.bf16.msra.mxu1 %v15331_v20  ;;  %v15399_v20 = vld [vmem:[#allocation15 + $0xeec] ss:$16 sps:$4 sm:$0xff]  }
 0xb85   : > { %9063 = vmatprep.subr.bf16.mxu1 %v15336_v62  ;;  %v15397_v62 = vld [vmem:[#allocation15 + $0xee8] ss:$16 sps:$4 sm:$0xff]  }
 0xb88   : > { %9064 = vmatpush1.bf16.msra.mxu1 %v15334_v32  ;;  %v15402_v32 = vld [vmem:[#allocation15 + $0xf0c] ss:$16 sps:$4 sm:$0xff]  }
 0xb89   : > { %9065 = vmatprep.subr.bf16.mxu1 %v15339_v43  ;;  %v15400_v43 = vld [vmem:[#allocation15 + $0xf08] ss:$16 sps:$4 sm:$0xff]  }
 0xb8c   : > { %9066 = vmatpush1.bf16.msra.mxu1 %v15337_v16  ;;  %v15405_v16 = vld [vmem:[#allocation15 + $0xf2c] ss:$16 sps:$4 sm:$0xff]  }
 0xb8d   : > { %9067 = vmatprep.subr.bf16.mxu1 %v15342_v22  ;;  %v15403_v22 = vld [vmem:[#allocation15 + $0xf28] ss:$16 sps:$4 sm:$0xff]  }
 0xb90   : > { %9068 = vmatpush1.bf16.msra.mxu1 %v15340_v56  ;;  %v15408_v56 = vld [vmem:[#allocation15 + $0xf4c] ss:$16 sps:$4 sm:$0xff]  }
 0xb91   : > { %9069 = vmatprep.subr.bf16.mxu1 %v15345_v54  ;;  %v15406_v54 = vld [vmem:[#allocation15 + $0xf48] ss:$16 sps:$4 sm:$0xff]  }
 0xb94   : > { %9070 = vmatpush1.bf16.msra.mxu1 %v15343_v31  ;;  %v15411_v31 = vld [vmem:[#allocation15 + $0xf6c] ss:$16 sps:$4 sm:$0xff]  }
 0xb95   : > { %9071 = vmatprep.subr.bf16.mxu1 %v15348_v50  ;;  %v15409_v50 = vld [vmem:[#allocation15 + $0xf68] ss:$16 sps:$4 sm:$0xff]  }
 0xb98   : > { %9072 = vmatpush1.bf16.msra.mxu1 %v15346_v60  ;;  %v15414_v60 = vld [vmem:[#allocation15 + $0xf8c] ss:$16 sps:$4 sm:$0xff]  }
 0xb99   : > { %9073 = vmatprep.subr.bf16.mxu1 %v15351_v47  ;;  %v15412_v47 = vld [vmem:[#allocation15 + $0xf88] ss:$16 sps:$4 sm:$0xff]  }
 0xb9c   : > { %9074 = vmatpush1.bf16.msra.mxu1 %v15349_v49  ;;  %v15417_v49 = vld [vmem:[#allocation15 + $0xfac] ss:$16 sps:$4 sm:$0xff]  }
 0xb9d   : > { %9075 = vmatprep.subr.bf16.mxu1 %v15354_v41  ;;  %v15415_v41 = vld [vmem:[#allocation15 + $0xfa8] ss:$16 sps:$4 sm:$0xff]  }
 0xba0   : > { %9076 = vmatpush1.bf16.msra.mxu1 %v15352_v23  ;;  %v15420_v23 = vld [vmem:[#allocation15 + $0xfcc] ss:$16 sps:$4 sm:$0xff]  }
 0xba1   : > { %9077 = vmatprep.subr.bf16.mxu1 %v15357_v19  ;;  %v15418_v19 = vld [vmem:[#allocation15 + $0xfc8] ss:$16 sps:$4 sm:$0xff]  }
 0xba4   : > { %9078 = vmatpush1.bf16.msra.mxu1 %v15355_v25  ;;  %v15423_v25 = vld [vmem:[#allocation15 + $0xfec] ss:$16 sps:$4 sm:$0xff]  }
 0xba5   : > { %9079 = vmatprep.subr.bf16.mxu1 %v15360_v39  ;;  %v15421_v39 = vld [vmem:[#allocation15 + $0xfe8] ss:$16 sps:$4 sm:$0xff]  }
 0xba8   : > { %9080 = vmatpush1.bf16.msra.mxu1 %v15358_v35  ;;  %v15426_v35 = vld [vmem:[#allocation15 + $0x1004] ss:$16 sps:$4 sm:$0xff]  }
 0xba9   : > { %9081 = vmatprep.subr.bf16.mxu1 %v15363_v15  ;;  %v9222_v15 = vrot.slane %v18168_v24, 5  ;;  %v15435_v24 = vld [vmem:[#allocation15 + $0x1064] ss:$16 sps:$4 sm:$0xff]  }
 0xbac   : > { %9082 = vmatpush1.bf16.msra.mxu1 %v15361_v18  ;;  %v15424_v18 = vld [vmem:[#allocation15 + $0x1000] ss:$16 sps:$4 sm:$0xff]  }
 0xbad   : > { %9083 = vmatprep.subr.bf16.mxu1 %v15366_v27  ;;  %v9221_v27 = vrot.slane %v18154_v28, 5  ;;  %v15438_v28 = vld [vmem:[#allocation15 + $0x1084] ss:$16 sps:$4 sm:$0xff]  }
 0xbb0   : > { %9084 = vmatpush1.bf16.msra.mxu1 %v15364_v59  ;;  %v15429_v59 = vld [vmem:[#allocation15 + $0x1024] ss:$16 sps:$4 sm:$0xff]  }
 0xbb1   : > { %9085 = vmatprep.subr.bf16.mxu1 %v15369_v51  ;;  %v18284_v51 = vsel %vm2105_vm9, %v9221_v27, %v9222_v15  ;;  %v15487_v15 = vld [vmem:[#allocation15 + $0x10a8] ss:$16 sps:$4 sm:$0xff]  }
 0xbb2   : > { %v15490_v27 = vld [vmem:[#allocation15 + $0x10c8] ss:$16 sps:$4 sm:$0xff]  }
 0xbb4   : > { %9086 = vmatpush1.bf16.msra.mxu1 %v15367_v55  ;;  %v15427_v55 = vld [vmem:[#allocation15 + $0x1020] ss:$16 sps:$4 sm:$0xff]  }
 0xbb5   : > { %9087 = vmatprep.subr.bf16.mxu1 %v15372_v21  ;;  %v15432_v21 = vld [vmem:[#allocation15 + $0x1044] ss:$16 sps:$4 sm:$0xff]  }
 0xbb8   : > { %9088 = vmatpush1.bf16.msra.mxu1 %v15370_v40  ;;  %v15430_v40 = vld [vmem:[#allocation15 + $0x1040] ss:$16 sps:$4 sm:$0xff]  }
 0xbb9   : > { %9089 = vmatprep.subr.bf16.mxu1 %v15375_v37  ;;  %v15433_v37 = vld [vmem:[#allocation15 + $0x1060] ss:$16 sps:$4 sm:$0xff]  }
 0xbbc   : > { %9090 = vmatpush1.bf16.msra.mxu1 %v15373_v0  ;;  %v15436_v0 = vld [vmem:[#allocation15 + $0x1080] ss:$16 sps:$4 sm:$0xff]  }
 0xbbd   : > { %9102 = vmatprep.subr.bf16.mxu1 %v15378_v53  ;;  %v15439_v53 = vld [vmem:[#allocation15 + $0x10a0] ss:$16 sps:$4 sm:$0xff]  }
 0xbbf   : > { %9092 = vmatmul.mubr.bf16.vlgmr.msra.gmra.mrb[148].mxu1 %v18211_v6 }
 0xbc0   : > { %9103 = vmatpush1.bf16.msra.mxu1 %v15376_v44  ;;  %9134 = vmatprep.mubr.bf16.mxu1 %v18208_v38  ;;  %v15394_v38 = vld [vmem:[#allocation15 + $0xec8] ss:$16 sps:$4 sm:$0xff]   ;;  %v15444_v44 = vld [vmem:[#allocation15 + $0x10c4] ss:$16 sps:$4 sm:$0xff]  }
 0xbc1   : > { %9104 = vmatprep.subr.bf16.mxu1 %v15381_v7  ;;  %v15442_v7 = vld [vmem:[#allocation15 + $0x10c0] ss:$16 sps:$4 sm:$0xff]  }
 0xbc4   : > { %9105 = vmatpush1.bf16.msra.mxu1 %v15379_v30  ;;  %v15447_v30 = vld [vmem:[#allocation15 + $0x10e4] ss:$16 sps:$4 sm:$0xff]  }
 0xbc5   : > { %9106 = vmatprep.subr.bf16.mxu1 %v15384_v46  ;;  %v15445_v46 = vld [vmem:[#allocation15 + $0x10e0] ss:$16 sps:$4 sm:$0xff]  }
 0xbc8   : > { %9107 = vmatpush1.bf16.msra.mxu1 %v15382_v17  ;;  %v15450_v17 = vld [vmem:[#allocation15 + $0x1104] ss:$16 sps:$4 sm:$0xff]  }
 0xbc9   : > { %9108 = vmatprep.subr.bf16.mxu1 %v15387_v12  ;;  %v15448_v12 = vld [vmem:[#allocation15 + $0x1100] ss:$16 sps:$4 sm:$0xff]  }
 0xbcc   : > { %9109 = vmatpush1.bf16.msra.mxu1 %v15385_v63  ;;  %v15453_v63 = vld [vmem:[#allocation15 + $0x1124] ss:$16 sps:$4 sm:$0xff]  }
 0xbcd   : > { %9110 = vmatprep.subr.bf16.mxu1 %v15390_v61  ;;  %v15451_v61 = vld [vmem:[#allocation15 + $0x1120] ss:$16 sps:$4 sm:$0xff]  }
 0xbd0   : > { %9111 = vmatpush1.bf16.msra.mxu1 %v15388_v11  ;;  %v15456_v11 = vld [vmem:[#allocation15 + $0x1144] ss:$16 sps:$4 sm:$0xff]  }
 0xbd1   : > { %9112 = vmatprep.subr.bf16.mxu1 %v15393_v52  ;;  %v15454_v52 = vld [vmem:[#allocation15 + $0x1140] ss:$16 sps:$4 sm:$0xff]  }
 0xbd4   : > { %9113 = vmatpush1.bf16.msra.mxu1 %v15391_v10  ;;  %v15459_v10 = vld [vmem:[#allocation15 + $0x1164] ss:$16 sps:$4 sm:$0xff]  }
 0xbd5   : > { %9114 = vmatprep.subr.bf16.mxu1 %v15396_v2  ;;  %v15457_v2 = vld [vmem:[#allocation15 + $0x1160] ss:$16 sps:$4 sm:$0xff]  }
 0xbd8   : > { %9115 = vmatpush1.bf16.msra.mxu1 %v15394_v38  ;;  %v15462_v38 = vld [vmem:[#allocation15 + $0x1184] ss:$16 sps:$4 sm:$0xff]  }
 0xbd9   : > { %9116 = vmatprep.subr.bf16.mxu1 %v15399_v20  ;;  %v15460_v20 = vld [vmem:[#allocation15 + $0x1180] ss:$16 sps:$4 sm:$0xff]  }
 0xbdc   : > { %9117 = vmatpush1.bf16.msra.mxu1 %v15397_v62  ;;  %v15465_v62 = vld [vmem:[#allocation15 + $0x11a4] ss:$16 sps:$4 sm:$0xff]  }
 0xbdd   : > { %9118 = vmatprep.subr.bf16.mxu1 %v15402_v32  ;;  %v15463_v32 = vld [vmem:[#allocation15 + $0x11a0] ss:$16 sps:$4 sm:$0xff]  }
 0xbe0   : > { %9119 = vmatpush1.bf16.msra.mxu1 %v15400_v43  ;;  %v15468_v43 = vld [vmem:[#allocation15 + $0x11c4] ss:$16 sps:$4 sm:$0xff]  }
 0xbe1   : > { %9120 = vmatprep.subr.bf16.mxu1 %v15405_v16  ;;  %v15466_v16 = vld [vmem:[#allocation15 + $0x11c0] ss:$16 sps:$4 sm:$0xff]  }
 0xbe4   : > { %9121 = vmatpush1.bf16.msra.mxu1 %v15403_v22  ;;  %v15471_v22 = vld [vmem:[#allocation15 + $0x11e4] ss:$16 sps:$4 sm:$0xff]  }
 0xbe5   : > { %9122 = vmatprep.subr.bf16.mxu1 %v15408_v56  ;;  %v15469_v56 = vld [vmem:[#allocation15 + $0x11e0] ss:$16 sps:$4 sm:$0xff]  }
 0xbe8   : > { %9123 = vmatpush1.bf16.msra.mxu1 %v15406_v54  ;;  %v15474_v54 = vld [vmem:[#allocation15 + $0x100c] ss:$16 sps:$4 sm:$0xff]  }
 0xbe9   : > { %9124 = vmatprep.subr.bf16.mxu1 %v15411_v31  ;;  %v9219_v31 = vrot.slane %v18166_v33, 5  ;;  %v15481_v33 = vld [vmem:[#allocation15 + $0x1068] ss:$16 sps:$4 sm:$0xff]  }
 0xbec   : > { %9125 = vmatpush1.bf16.msra.mxu1 %v15409_v50  ;;  %v9218_v50 = vrot.slane %v18152_v8, 5  ;;  %v15486_v8 = vld [vmem:[#allocation15 + $0x108c] ss:$16 sps:$4 sm:$0xff]  }
 0xbed   : > { %9126 = vmatprep.subr.bf16.mxu1 %v15414_v60  ;;  %v15472_v60 = vld [vmem:[#allocation15 + $0x1008] ss:$16 sps:$4 sm:$0xff]  }
 0xbf0   : > { %9127 = vmatpush1.bf16.msra.mxu1 %v15412_v47  ;;  %v15477_v47 = vld [vmem:[#allocation15 + $0x102c] ss:$16 sps:$4 sm:$0xff]  }
 0xbf1   : > { %9128 = vmatprep.subr.bf16.mxu1 %v15417_v49  ;;  %v9220_v49 = vsel %vm2105_vm9, %v9218_v50, %v9219_v31 }
 0xbf4   : > { %9129 = vmatpush1.bf16.msra.mxu1 %v15415_v41  ;;  %v15475_v41 = vld [vmem:[#allocation15 + $0x1028] ss:$16 sps:$4 sm:$0xff]  }
 0xbf5   : > { %9130 = vmatprep.subr.bf16.mxu1 %v15420_v23  ;;  %v15480_v23 = vld [vmem:[#allocation15 + $0x104c] ss:$16 sps:$4 sm:$0xff]  }
 0xbf8   : > { %9131 = vmatpush1.bf16.msra.mxu1 %v15418_v19  ;;  %v15478_v19 = vld [vmem:[#allocation15 + $0x1048] ss:$16 sps:$4 sm:$0xff]  }
 0xbf9   : > { %9132 = vmatprep.subr.bf16.mxu1 %v15423_v25  ;;  %v15483_v25 = vld [vmem:[#allocation15 + $0x106c] ss:$16 sps:$4 sm:$0xff]  }
 0xbfc   : > { %9133 = vmatpush1.bf16.msra.mxu1 %v15421_v39  ;;  %v15484_v39 = vld [vmem:[#allocation15 + $0x1088] ss:$16 sps:$4 sm:$0xff]  }
 0xbfd   : > { %9546 = vmatprep.subr.bf16.mxu1 %v15426_v35  ;;  %v15489_v35 = vld [vmem:[#allocation15 + $0x10ac] ss:$16 sps:$4 sm:$0xff]  }
 0xbff   : > { %9135 = vmatmul.mubr.bf16.vlgmr.msra.gmra.mrb[144].mxu1 %v18211_v6  ;;  %v15441_v6 = vld [vmem:[#allocation15 + $0x10a4] ss:$16 sps:$4 sm:$0xff]  }
 0xc00   : > { %9547 = vmatpush1.bf16.msra.mxu1 %v15424_v18  ;;  %9578 = vmatprep.mubr.bf16.mxu1 %v18284_v51  ;;  %v15492_v18 = vld [vmem:[#allocation15 + $0x10cc] ss:$16 sps:$4 sm:$0xff]  }
 0xc01   : > { %9548 = vmatprep.subr.bf16.mxu1 %v15429_v59  ;;  %v15495_v59 = vld [vmem:[#allocation15 + $0x10ec] ss:$16 sps:$4 sm:$0xff]  }
 0xc04   : > { %9549 = vmatpush1.bf16.msra.mxu1 %v15427_v55  ;;  %v15498_v55 = vld [vmem:[#allocation15 + $0x110c] ss:$16 sps:$4 sm:$0xff]  }
 0xc05   : > { %9550 = vmatprep.subr.bf16.mxu1 %v15432_v21  ;;  %v15496_v21 = vld [vmem:[#allocation15 + $0x1108] ss:$16 sps:$4 sm:$0xff]  }
 0xc08   : > { %9551 = vmatpush1.bf16.msra.mxu1 %v15430_v40  ;;  %v15501_v40 = vld [vmem:[#allocation15 + $0x112c] ss:$16 sps:$4 sm:$0xff]  }
 0xc09   : > { %9552 = vmatprep.subr.bf16.mxu1 %v15435_v24  ;;  %v15499_v24 = vld [vmem:[#allocation15 + $0x1128] ss:$16 sps:$4 sm:$0xff]  }
 0xc0c   : > { %9553 = vmatpush1.bf16.msra.mxu1 %v15433_v37  ;;  %v15504_v37 = vld [vmem:[#allocation15 + $0x114c] ss:$16 sps:$4 sm:$0xff]  }
 0xc0d   : > { %9554 = vmatprep.subr.bf16.mxu1 %v15438_v28  ;;  %v15502_v28 = vld [vmem:[#allocation15 + $0x1148] ss:$16 sps:$4 sm:$0xff]  }
 0xc10   : > { %9555 = vmatpush1.bf16.msra.mxu1 %v15436_v0  ;;  %v15507_v0 = vld [vmem:[#allocation15 + $0x116c] ss:$16 sps:$4 sm:$0xff]  }
 0xc11   : > { %9556 = vmatprep.subr.bf16.mxu1 %v15441_v6  ;;  %v15505_v6 = vld [vmem:[#allocation15 + $0x1168] ss:$16 sps:$4 sm:$0xff]  }
 0xc14   : > { %9557 = vmatpush1.bf16.msra.mxu1 %v15439_v53  ;;  %v15510_v53 = vld [vmem:[#allocation15 + $0x118c] ss:$16 sps:$4 sm:$0xff]  }
 0xc15   : > { %9558 = vmatprep.subr.bf16.mxu1 %v15444_v44  ;;  %v15508_v44 = vld [vmem:[#allocation15 + $0x1188] ss:$16 sps:$4 sm:$0xff]  }
 0xc18   : > { %9559 = vmatpush1.bf16.msra.mxu1 %v15442_v7  ;;  %v15513_v7 = vld [vmem:[#allocation15 + $0x11ac] ss:$16 sps:$4 sm:$0xff]  }
 0xc19   : > { %9560 = vmatprep.subr.bf16.mxu1 %v15447_v30  ;;  %v15511_v30 = vld [vmem:[#allocation15 + $0x11a8] ss:$16 sps:$4 sm:$0xff]  }
 0xc1c   : > { %9561 = vmatpush1.bf16.msra.mxu1 %v15445_v46  ;;  %v15516_v46 = vld [vmem:[#allocation15 + $0x11cc] ss:$16 sps:$4 sm:$0xff]  }
 0xc1d   : > { %9562 = vmatprep.subr.bf16.mxu1 %v15450_v17  ;;  %v15514_v17 = vld [vmem:[#allocation15 + $0x11c8] ss:$16 sps:$4 sm:$0xff]  }
 0xc20   : > { %9563 = vmatpush1.bf16.msra.mxu1 %v15448_v12  ;;  %v15519_v12 = vld [vmem:[#allocation15 + $0x11ec] ss:$16 sps:$4 sm:$0xff]  }
 0xc21   : > { %9564 = vmatprep.subr.bf16.mxu1 %v15453_v63  ;;  %v15517_v63 = vld [vmem:[#allocation15 + $0x11e8] ss:$16 sps:$4 sm:$0xff]  }
 0xc24   : > { %9565 = vmatpush1.bf16.msra.mxu1 %v15451_v61  ;;  %v9640_v61 = vld [vmem:[#allocation17] sm:$0xf] }
 0xc25   : > { %9566 = vmatprep.subr.bf16.mxu1 %v15456_v11  ;;  %v9645_v11 = vrot.slane %v9640_v61, %v18125_v13 }
 0xc28   : > { %9567 = vmatpush1.bf16.msra.mxu1 %v15454_v52 }
 0xc29   : > { %9568 = vmatprep.subr.bf16.mxu1 %v15459_v10  ;;  %v9649_v10 = vrot.slane %v9640_v61, %v18128_v58 }
 0xc2c   : > { %9569 = vmatpush1.bf16.msra.mxu1 %v15457_v2 }
 0xc2d   : > { %9570 = vmatprep.subr.bf16.mxu1 %v15462_v38 }
 0xc30   : > { %9571 = vmatpush1.bf16.msra.mxu1 %v15460_v20 }
 0xc31   : > { %9572 = vmatprep.subr.bf16.mxu1 %v15465_v62 }
 0xc34   : > { %9573 = vmatpush1.bf16.msra.mxu1 %v15463_v32 }
 0xc35   : > { %9574 = vmatprep.subr.bf16.mxu1 %v15468_v43 }
 0xc38   : > { %9575 = vmatpush1.bf16.msra.mxu1 %v15466_v16 }
 0xc39   : > { %9576 = vmatprep.subr.bf16.mxu1 %v15471_v22 }
 0xc3c   : > { %9577 = vmatpush1.bf16.msra.mxu1 %v15469_v56 }
 0xc3d   : > { %9589 = vmatprep.subr.bf16.mxu1 %v15474_v54 }
 0xc3f   : > { %9579 = vmatmul.mubr.bf16.vlgmr.msra.gmra.mrb[148].mxu1 %v9220_v49 }
 0xc40   : > { %9590 = vmatpush1.bf16.msra.mxu1 %v15472_v60  ;;  %9621 = vmatprep.mubr.bf16.mxu1 %v18284_v51  ;;  %v15493_v51 = vld [vmem:[#allocation15 + $0x10e8] ss:$16 sps:$4 sm:$0xff]  }
 0xc41   : > { %9591 = vmatprep.subr.bf16.mxu1 %v15477_v47 }
 0xc44   : > { %9592 = vmatpush1.bf16.msra.mxu1 %v15475_v41 }
 0xc45   : > { %9593 = vmatprep.subr.bf16.mxu1 %v15480_v23 }
 0xc48   : > { %9594 = vmatpush1.bf16.msra.mxu1 %v15478_v19 }
 0xc49   : > { %9595 = vmatprep.subr.bf16.mxu1 %v15483_v25 }
 0xc4c   : > { %9596 = vmatpush1.bf16.msra.mxu1 %v15481_v33 }
 0xc4d   : > { %9597 = vmatprep.subr.bf16.mxu1 %v15486_v8 }
 0xc50   : > { %9598 = vmatpush1.bf16.msra.mxu1 %v15484_v39 }
 0xc51   : > { %9599 = vmatprep.subr.bf16.mxu1 %v15489_v35 }
 0xc54   : > { %9600 = vmatpush1.bf16.msra.mxu1 %v15487_v15 }
 0xc55   : > { %9601 = vmatprep.subr.bf16.mxu1 %v15492_v18 }
 0xc58   : > { %9602 = vmatpush1.bf16.msra.mxu1 %v15490_v27 }
 0xc59   : > { %9603 = vmatprep.subr.bf16.mxu1 %v15495_v59  ;;  %v9759_v59 = vsel %vm2984_vm13, 4294967295, %v16396_v42  ;;  %v18307_v42 = vsub.s32 2, %v16733_v1 }
 0xc5c   : > { %9604 = vmatpush1.bf16.msra.mxu1 %v15493_v51 }
 0xc5d   : > { %9605 = vmatprep.subr.bf16.mxu1 %v15498_v55 }
 0xc60   : > { %9606 = vmatpush1.bf16.msra.mxu1 %v15496_v21 }
 0xc61   : > { %9607 = vmatprep.subr.bf16.mxu1 %v15501_v40 }
 0xc64   : > { %9608 = vmatpush1.bf16.msra.mxu1 %v15499_v24 }
 0xc65   : > { %9609 = vmatprep.subr.bf16.mxu1 %v15504_v37 }
 0xc68   : > { %9610 = vmatpush1.bf16.msra.mxu1 %v15502_v28  ;;  %v9760_v28 = vsel %vm1026_vm4, %v9759_v59, 0 }
 0xc69   : > { %9611 = vmatprep.subr.bf16.mxu1 %v15507_v0 }
 0xc6c   : > { %9612 = vmatpush1.bf16.msra.mxu1 %v15505_v6 }
 0xc6d   : > { %9613 = vmatprep.subr.bf16.mxu1 %v15510_v53 }
 0xc70   : > { %9614 = vmatpush1.bf16.msra.mxu1 %v15508_v44  ;;  %v9750_v44 = vld [vmem:[#allocation18] sm:$0x1] }
 0xc71   : > { %9615 = vmatprep.subr.bf16.mxu1 %v15513_v7  ;;  %v18310_v7 = vsub.s32 3, %v16733_v1 }
 0xc74   : > { %9616 = vmatpush1.bf16.msra.mxu1 %v15511_v30  ;;  %v9653_v30 = vrot.slane %v9640_v61, %v18307_v42 }
 0xc75   : > { %9617 = vmatprep.subr.bf16.mxu1 %v15516_v46 }
 0xc78   : > { %9618 = vmatpush1.bf16.msra.mxu1 %v15514_v17  ;;  %v9657_v17 = vrot.slane %v9640_v61, %v18310_v7 }
 0xc79   : > { %9619 = vmatprep.subr.bf16.mxu1 %v15519_v12 }
 0xc7c   : > { %9620 = vmatpush1.bf16.msra.mxu1 %v15517_v63 }
 0xc7f   : > { %9622 = vmatmul.mubr.bf16.vlgmr.msra.gmra.mrb[144].mxu1 %v9220_v49 }
 0xd12   : > { %v9580_v52 = vpop.f32.mrb[148].mxu1 }
 0xd13   : > { %v14121_v2 = vadd.f32 %v9580_v52, %v18268_v9  ;;  %v9582_v38 = vpop.f32.mrb[149].mxu1 }
 0xd14   : > { %v14122_v20 = vadd.f32 %v9582_v38, %v18270_v26  ;;  %v9584_v62 = vpop.f32.mrb[150].mxu1 }
 0xd15   : > { %v9662_v32 = vadd.f32 %v14121_v2, %v9645_v11  ;;  %v14123_v43 = vadd.f32 %v9584_v62, %v18272_v45  ;;  %v9586_v16 = vpop.f32.mrb[151].mxu1 }
 0xd16   : > { %v9663_v22 = vadd.f32 %v14122_v20, %v9649_v10  ;;  %v14124_v56 = vadd.f32 %v9586_v16, %v18274_v14 }
 0xd17   : > { %v9670_v54 = vmax.f32 %v9662_v32, 0.0  ;;  %v9666_v31 = vadd.f32 %v14123_v43, %v9645_v11 }
 0xd18   : > { %v9671_v50 = vmax.f32 %v9663_v22, 0.0  ;;  %v9667_v60 = vadd.f32 %v14124_v56, %v9649_v10 }
 0xd19   : > { %v9674_v47 = vmax.f32 %v9666_v31, 0.0  ;;  %v9686_v41 = vrot.slane %v9670_v54, 1 }
 0xd1a   : > { %v9675_v49 = vmax.f32 %v9667_v60, 0.0  ;;  %v9689_v9 = vrot.slane %v9671_v50, 1 }
 0xd1b   : > { %v9687_v23 = vrot.slane %v9674_v47, 1 }
 0xd1c   : > { %v9690_v19 = vrot.slane %v9675_v49, 1 }
 0xd1d   : > { %v9688_v26 = vsel %vm819_vm3, %v9686_v41, %v9687_v23  ;;  %v9710_v25 = vmax.f32 %v9674_v47, %v9687_v23 }
 0xd1e   : > { %v9706_v33 = vmax.f32 %v9670_v54, %v9688_v26  ;;  %v9691_v45 = vsel %vm819_vm3, %v9689_v9, %v9690_v19  ;;  %v9711_v8 = vmax.f32 %v9675_v49, %v9690_v19 }
 0xd1f   : > { %v9723_v39 = vrot.slane %v9710_v25, 4  ;;  %v9707_v35 = vmax.f32 %v9671_v50, %v9691_v45 }
 0xd20   : > { %v9722_v14 = vrot.slane %v9706_v33, 4  ;;  %v9726_v15 = vrot.slane %v9711_v8, 4 }
 0xd21   : > { %v9725_v18 = vrot.slane %v9707_v35, 4  ;;  %v9746_v55 = vmax.f32 %v9710_v25, %v9723_v39 }
 0xd22   : > { %v9724_v27 = vsel %vm535_vm1, %v9722_v14, %v9723_v39  ;;  %v9747_v40 = vmax.f32 %v9711_v8, %v9726_v15 }
 0xd23   : > { %v9742_v51 = vmax.f32 %v9706_v33, %v9724_v27  ;;  %v9727_v21 = vsel %vm535_vm1, %v9725_v18, %v9726_v15  ;;  %v9855_v18 = vstv %s16369_s18  ;;  %s276_s18 = sadd.s32 1, %s16369_s18  }
 0xd24   : > { %v9743_v24 = vmax.f32 %v9707_v35, %v9727_v21  ;;  %p273_p2 = scmp.ge.s32.totalorder %s276_s18, 2  }
 0xd25   : > { %v9751_v37 = vpack.c.bf16 %v9746_v55, %v9742_v51  ;;  %s9879_s28 = sld [smem:[#allocation2]] (%p273_p2)  ;;  %s16397_s18 = smov (%p273_p2), [#allocation29]  }
 0xd26   : > { %v9752_v0 = vpack.c.bf16 %v9747_v40, %v9743_v24  ;;  %s12163_s9 = sshll.u32 (%p273_p2), %s16397_s18, 4  ;;  %s12164_s9 = int_to_ptr.vmem [resolvable:$true] %s12163_s9 }
 0xd27   : > { %v9762_v53 = vand.u32 %v9760_v28, %v9751_v37  ;;  %s16289_s25 = scalar_lea.vmem (%p273_p2), %s12164_s9, 32  ;;  %p16294_p4 = scmp.lt.s32.totalorder (%p273_p2), %s12164_s9, %s12164_s9 }
 0xd28   : > { %v9765_v6 = vand.u32 %v9760_v28, %v9752_v0  ;;  %p16290_p3 = scmp.ne.s32.totalorder (%p273_p2), %s12164_s9, %s16289_s25  ;;  %p16295_p5 = scmp.lt.s32.totalorder (%p273_p2), %s16289_s25, %s16289_s25 }
 0xd2a   : > { %9773 = vmatprep.subr.bf16.mxu0 %v9765_v6  ;;  %p16296_p6 = por (%p273_p2), %p16295_p5, %p16294_p4 }
 0xd2b   : > { %9774 = vmatpush1.bf16.msra.mxu0 %v9762_v53 }
 0xd2c   :  { %p16297_p7 = pnand (%p273_p2), %p16296_p6, %p16290_p3 }
 0xd2e   : > { %13112 = vmatmul.mubr.msk.bf16.vlgmr.msra.gmra.mrb[52].mxu0 %vm9755_vm6, %v9750_v44 }
 0xd2f   : > { %9846 = vmatprep.mubr.bf16.mxu0 %v18444_v34 }
 0xd52   : > { %v9623_v46 = vpop.f32.mrb[144].mxu1 }
 0xd53   : > { %v14125_v12 = vadd.f32 %v9623_v46, %v18253_v36  ;;  %v9625_v63 = vpop.f32.mrb[145].mxu1 }
 0xd54   : > { %v14126_v11 = vadd.f32 %v9625_v63, %v18255_v29  ;;  %v9627_v52 = vpop.f32.mrb[146].mxu1  ;;  %v15523_v63 = vld [vmem:[#allocation20 + $0xc] ss:$16 sps:$4 sm:$0xff] (%p273_p2)  }
 0xd55   : > { %v9664_v10 = vadd.f32 %v14125_v12, %v9653_v30  ;;  %v14127_v34 = vadd.f32 %v9627_v52, %v18257_v48  ;;  %v9629_v2 = vpop.f32.mrb[147].mxu1  ;;  %v15526_v52 = vld [vmem:[#allocation20 + $0x8] ss:$16 sps:$4 sm:$0xff] (%p273_p2)   ;;  %10761 = vmatprep.subr.bf16.mxu1 (%p273_p2), %v15523_v63 }
 0xd56   : > { %v9665_v38 = vadd.f32 %v14126_v11, %v9657_v17  ;;  %v14128_v20 = vadd.f32 %v9629_v2, %v18259_v57  ;;  %v15525_v11 = vld [vmem:[#allocation20] ss:$16 sps:$4 sm:$0xff] (%p273_p2)   ;;  %10762 = vmatpush1.bf16.msra.mxu1 (%p273_p2), %v15526_v52  ;;  %v15604_v63 = vld [vmem:[#allocation20 + $0x1a8] ss:$16 sps:$4 sm:$0xff] (%p273_p2)   ;;  %v15607_v52 = vld [vmem:[#allocation20 + $0x1cc] ss:$16 sps:$4 sm:$0xff] (%p273_p2)  }
 0xd57   : > { %v9672_v62 = vmax.f32 %v9664_v10, 0.0  ;;  %v9668_v32 = vadd.f32 %v14127_v34, %v9653_v30  ;;  %v15527_v10 = vld [vmem:[#allocation20 + $0x24] ss:$16 sps:$4 sm:$0xff] (%p273_p2)   ;;  %v15529_v34 = vld [vmem:[#allocation20 + $0x2c] ss:$16 sps:$4 sm:$0xff] (%p273_p2)  }
 0xd58   : > { %v9673_v43 = vmax.f32 %v9665_v38, 0.0  ;;  %v9669_v16 = vadd.f32 %v14128_v20, %v9657_v17  ;;  %v18447_v17 = vld [vmem:[#allocation40_spill] sm:$0xff]  ;;  %v15532_v20 = vld [vmem:[#allocation20 + $0x28] ss:$16 sps:$4 sm:$0xff] (%p273_p2)   ;;  %10763 = vmatprep.subr.bf16.mxu1 (%p273_p2), %v15529_v34 }
 0xd59   : > { %v9676_v22 = vmax.f32 %v9668_v32, 0.0  ;;  %v9692_v61 = vrot.slane %v9672_v62, 1  ;;  %v15531_v38 = vld [vmem:[#allocation20 + $0x20] ss:$16 sps:$4 sm:$0xff] (%p273_p2)   ;;  %v18353_v32 = vstv (%p273_p2), %s9879_s28  ;;  %v15610_v34 = vld [vmem:[#allocation20 + $0x1c8] ss:$16 sps:$4 sm:$0xff] (%p273_p2)  }
 0xd5a   : > { %v9677_v56 = vmax.f32 %v9669_v16, 0.0  ;;  %v9695_v36 = vrot.slane %v9673_v43, 1  ;;  %v15537_v16 = vld [vmem:[#allocation20 + $0x40] ss:$16 sps:$4 sm:$0xff] (%p273_p2)   ;;  %10764 = vmatpush1.bf16.msra.mxu1 (%p273_p2), %v15532_v20  ;;  %v15613_v20 = vld [vmem:[#allocation20 + $0x1ec] ss:$16 sps:$4 sm:$0xff] (%p273_p2)  }
 0xd5b   : > { %v9693_v54 = vrot.slane %v9676_v22, 1 }
 0xd5c   : > { %v9696_v31 = vrot.slane %v9677_v56, 1 }
 0xd5d   : > { %v9694_v29 = vsel %vm819_vm3, %v9692_v61, %v9693_v54  ;;  %v9712_v50 = vmax.f32 %v9676_v22, %v9693_v54  ;;  %v15544_v61 = vld [vmem:[#allocation20 + $0x68] ss:$16 sps:$4 sm:$0xff] (%p273_p2)   ;;  %v15545_v54 = vld [vmem:[#allocation20 + $0x84] ss:$16 sps:$4 sm:$0xff] (%p273_p2)  }
 0xd5e   : > { %v9708_v60 = vmax.f32 %v9672_v62, %v9694_v29  ;;  %v9697_v48 = vsel %vm819_vm3, %v9695_v36, %v9696_v31  ;;  %v9713_v47 = vmax.f32 %v9677_v56, %v9696_v31  ;;  %vm9856_vm3 = vcmp.eq.s32.totalorder %v16733_v1, %v9855_v18  ;;  %v15533_v62 = vld [vmem:[#allocation20 + $0x44] ss:$16 sps:$4 sm:$0xff] (%p273_p2)   ;;  %v15538_v1 = vld [vmem:[#allocation20 + $0x48] ss:$16 sps:$4 sm:$0xff] (%p273_p2)   ;;  %v15543_v56 = vld [vmem:[#allocation20 + $0x60] ss:$16 sps:$4 sm:$0xff] (%p273_p2)  }
 0xd5f   : > { %v9729_v49 = vrot.slane %v9712_v50, 4  ;;  %v9709_v41 = vmax.f32 %v9673_v43, %v9697_v48  ;;  %v15535_v43 = vld [vmem:[#allocation20 + $0x4c] ss:$16 sps:$4 sm:$0xff] (%p273_p2)   ;;  %v15549_v31 = vld [vmem:[#allocation20 + $0x80] ss:$16 sps:$4 sm:$0xff] (%p273_p2)  }
 0xd60   : > { %v9728_v57 = vrot.slane %v9708_v60, 4  ;;  %v9732_v23 = vrot.slane %v9713_v47, 4  ;;  %10765 = vmatprep.subr.bf16.mxu1 (%p273_p2), %v15535_v43  ;;  %v15547_v36 = vld [vmem:[#allocation20 + $0x8c] ss:$16 sps:$4 sm:$0xff] (%p273_p2)   ;;  %v15550_v29 = vld [vmem:[#allocation20 + $0x88] ss:$16 sps:$4 sm:$0xff] (%p273_p2)  }
 0xd61   : > { %v9731_v9 = vrot.slane %v9709_v41, 4  ;;  %v9748_v25 = vmax.f32 %v9712_v50, %v9729_v49  ;;  %10766 = vmatpush1.bf16.msra.mxu1 (%p273_p2), %v15538_v1  ;;  %v15551_v50 = vld [vmem:[#allocation20 + $0xa4] ss:$16 sps:$4 sm:$0xff] (%p273_p2)   ;;  %v15555_v48 = vld [vmem:[#allocation20 + $0xa0] ss:$16 sps:$4 sm:$0xff] (%p273_p2)  }
 0xd62   : > { %v9730_v19 = vsel %vm535_vm1, %v9728_v57, %v9729_v49  ;;  %v9749_v45 = vmax.f32 %v9713_v47, %v9732_v23  ;;  %v15556_v47 = vld [vmem:[#allocation20 + $0xa8] ss:$16 sps:$4 sm:$0xff] (%p273_p2)   ;;  %v15557_v49 = vld [vmem:[#allocation20 + $0xc4] ss:$16 sps:$4 sm:$0xff] (%p273_p2)   ;;  %v15561_v57 = vld [vmem:[#allocation20 + $0xc0] ss:$16 sps:$4 sm:$0xff] (%p273_p2)  }
 0xd63   : > { %v9744_v26 = vmax.f32 %v9708_v60, %v9730_v19  ;;  %v9733_v33 = vsel %vm535_vm1, %v9731_v9, %v9732_v23  ;;  %v15553_v60 = vld [vmem:[#allocation20 + $0xac] ss:$16 sps:$4 sm:$0xff] (%p273_p2)   ;;  %v15562_v23 = vld [vmem:[#allocation20 + $0xc8] ss:$16 sps:$4 sm:$0xff] (%p273_p2)   ;;  %v15563_v9 = vld [vmem:[#allocation20 + $0xe4] ss:$16 sps:$4 sm:$0xff] (%p273_p2)  }
 0xd64   : > { %v9745_v8 = vmax.f32 %v9709_v41, %v9733_v33  ;;  %v15559_v41 = vld [vmem:[#allocation20 + $0xcc] ss:$16 sps:$4 sm:$0xff] (%p273_p2)   ;;  %v15569_v33 = vld [vmem:[#allocation20 + $0x104] ss:$16 sps:$4 sm:$0xff] (%p273_p2)   ;;  %v15580_v18 = vld [vmem:[#allocation20 + $0x128] ss:$16 sps:$4 sm:$0xff] (%p273_p2)  }
 0xd65   : > { %v9753_v39 = vpack.c.bf16 %v9748_v25, %v9744_v26  ;;  %v15565_v19 = vld [vmem:[#allocation20 + $0xec] ss:$16 sps:$4 sm:$0xff] (%p273_p2)   ;;  %v15567_v26 = vld [vmem:[#allocation20 + $0xe0] ss:$16 sps:$4 sm:$0xff] (%p273_p2)   ;;  %v15568_v25 = vld [vmem:[#allocation20 + $0xe8] ss:$16 sps:$4 sm:$0xff] (%p273_p2)  }
 0xd66   : > { %v9754_v35 = vpack.c.bf16 %v9749_v45, %v9745_v8  ;;  %v15571_v45 = vld [vmem:[#allocation20 + $0x10c] ss:$16 sps:$4 sm:$0xff] (%p273_p2)   ;;  %v15573_v8 = vld [vmem:[#allocation20 + $0x100] ss:$16 sps:$4 sm:$0xff] (%p273_p2)   ;;  %v15616_v43 = vld [vmem:[#allocation20 + $0x1e8] ss:$16 sps:$4 sm:$0xff] (%p273_p2)  }
 0xd67   : > { %v9768_v15 = vand.u32 %v9760_v28, %v9753_v39  ;;  %v15574_v39 = vld [vmem:[#allocation20 + $0x108] ss:$16 sps:$4 sm:$0xff] (%p273_p2)   ;;  %v15619_v1 = vld [vmem:[#allocation20 + $0x204] ss:$16 sps:$4 sm:$0xff] (%p273_p2)  }
 0xd68   : > { %v9771_v14 = vand.u32 %v9760_v28, %v9754_v35  ;;  %v15575_v35 = vld [vmem:[#allocation20 + $0x124] ss:$16 sps:$4 sm:$0xff] (%p273_p2)  }
 0xd6a   : > { %9814 = vmatprep.subr.bf16.mxu0 %v9771_v14  ;;  %v15577_v14 = vld [vmem:[#allocation20 + $0x12c] ss:$16 sps:$4 sm:$0xff] (%p273_p2)  }
 0xd6b   : > { %9815 = vmatpush1.bf16.msra.mxu0 %v9768_v15  ;;  %v15579_v15 = vld [vmem:[#allocation20 + $0x120] ss:$16 sps:$4 sm:$0xff] (%p273_p2)  }
 0xd6e   : > { %13113 = vmatmul.mubr.msk.bf16.vlgmr.msra.gmra.mrb[56].mxu0 %vm9755_vm6, %v9750_v44 }
 0xe01   : > { %v9807_v27 = vpop.f32.mrb[52].mxu0 }
 0xe02   : > { %v9862_v59 = vrot.slane %v9807_v27, %v18125_v13  ;;  %v9809_v51 = vpop.f32.mrb[53].mxu0  ;;  %v15581_v27 = vld [vmem:[#allocation20 + $0x144] ss:$16 sps:$4 sm:$0xff] (%p273_p2)  }
 0xe03   : > { %v9866_v55 = vrot.slane %v9809_v51, %v18125_v13  ;;  %v9811_v21 = vpop.f32.mrb[54].mxu0  ;;  %v15585_v51 = vld [vmem:[#allocation20 + $0x140] ss:$16 sps:$4 sm:$0xff] (%p273_p2)  }
 0xe04   : > { %v18328_v5 = vsel %vm9856_vm3, %v9862_v59, %v16365_v5   ;;  %v9812_v24 = vpop.f32.mrb[55].mxu0  ;;  %v15583_v59 = vld [vmem:[#allocation20 + $0x14c] ss:$16 sps:$4 sm:$0xff] (%p273_p2)   ;;  %v15587_v21 = vld [vmem:[#allocation20 + $0x164] ss:$16 sps:$4 sm:$0xff] (%p273_p2)  }
 0xe05   : > { %v18445_v40 = vmov %v18328_v5  ;;  %v9876_v37 = vsel %vm9856_vm3, %v9866_v55, %v16361_v4   ;;  %v15586_v55 = vld [vmem:[#allocation20 + $0x148] ss:$16 sps:$4 sm:$0xff] (%p273_p2)   ;;  %v15589_v24 = vld [vmem:[#allocation20 + $0x16c] ss:$16 sps:$4 sm:$0xff] (%p273_p2)  }
 0xe06   : > { %v18451_v4 = vmov %v9876_v37  ;;  %v18452_v5 = vmov %v18445_v40 }
 0xe07   :  { %v15521_v5 = vld [vmem:[#allocation20 + $0x4] ss:$16 sps:$4 sm:$0xff] (%p273_p2)  }
 0xe08   :  { %10679 = vmatprep.subr.bf16.mxu0 (%p273_p2), %v15521_v5  ;;  %v15539_v4 = vld [vmem:[#allocation20 + $0x64] ss:$16 sps:$4 sm:$0xff] (%p273_p2)   ;;  %v15603_v5 = vld [vmem:[#allocation20 + $0x1a0] ss:$16 sps:$4 sm:$0xff] (%p273_p2)  }
 0xe09   :  { %10680 = vmatpush1.bf16.msra.mxu0 (%p273_p2), %v15525_v11  ;;  %v15605_v11 = vld [vmem:[#allocation20 + $0x1c4] ss:$16 sps:$4 sm:$0xff] (%p273_p2)  }
 0xe0a   :  { %10681 = vmatprep.subr.bf16.mxu0 (%p273_p2), %v15527_v10  ;;  %v15609_v10 = vld [vmem:[#allocation20 + $0x1c0] ss:$16 sps:$4 sm:$0xff] (%p273_p2)  }
 0xe0d   :  { %10682 = vmatpush1.bf16.msra.mxu0 (%p273_p2), %v15531_v38  ;;  %v15611_v38 = vld [vmem:[#allocation20 + $0x1e4] ss:$16 sps:$4 sm:$0xff] (%p273_p2)  }
 0xe0e   :  { %10683 = vmatprep.subr.bf16.mxu0 (%p273_p2), %v15533_v62  ;;  %v15615_v62 = vld [vmem:[#allocation20 + $0x1e0] ss:$16 sps:$4 sm:$0xff] (%p273_p2)  }
 0xe11   :  { %10684 = vmatpush1.bf16.msra.mxu0 (%p273_p2), %v15537_v16  ;;  %v9881_v16 = vmul.f32 (%p273_p2), %v18353_v32, %v18445_v40  ;;  %v15623_v40 = vld [vmem:[#allocation20 + $0x220] ss:$16 sps:$4 sm:$0xff] (%p273_p2)  }
 0xe12   :  { %10685 = vmatprep.subr.bf16.mxu0 (%p273_p2), %v15539_v4 }
 0xe15   :  { %10686 = vmatpush1.bf16.msra.mxu0 (%p273_p2), %v15543_v56  ;;  %v9885_v56 = vpack.c.bf16 (%p273_p2), %v9881_v16, %v9881_v16  ;;  %v15695_v16 = vld [vmem:[#allocation20 + $0x3a0] ss:$16 sps:$4 sm:$0xff] (%p273_p2)  }
 0xe16   :  { %10687 = vmatprep.subr.bf16.mxu0 (%p273_p2), %v15545_v54  ;;  %v15628_v54 = vld [vmem:[#allocation20 + $0x22c] ss:$16 sps:$4 sm:$0xff] (%p273_p2)  }
 0xe19   :  { %10688 = vmatpush1.bf16.msra.mxu0 (%p273_p2), %v15549_v31  ;;  %v15626_v31 = vld [vmem:[#allocation20 + $0x228] ss:$16 sps:$4 sm:$0xff] (%p273_p2)  }
 0xe1a   :  { %10689 = vmatprep.subr.bf16.mxu0 (%p273_p2), %v15551_v50  ;;  %v15629_v50 = vld [vmem:[#allocation20 + $0x240] ss:$16 sps:$4 sm:$0xff] (%p273_p2)  }
 0xe1d   :  { %10690 = vmatpush1.bf16.msra.mxu0 (%p273_p2), %v15555_v48  ;;  %v15637_v48 = vld [vmem:[#allocation20 + $0x264] ss:$16 sps:$4 sm:$0xff] (%p273_p2)  }
 0xe1e   :  { %10691 = vmatprep.subr.bf16.mxu0 (%p273_p2), %v15557_v49  ;;  %v15635_v49 = vld [vmem:[#allocation20 + $0x260] ss:$16 sps:$4 sm:$0xff] (%p273_p2)  }
 0xe21   :  { %10692 = vmatpush1.bf16.msra.mxu0 (%p273_p2), %v15561_v57  ;;  %v15643_v57 = vld [vmem:[#allocation20 + $0x284] ss:$16 sps:$4 sm:$0xff] (%p273_p2)  }
 0xe22   :  { %10693 = vmatprep.subr.bf16.mxu0 (%p273_p2), %v15563_v9  ;;  %v15641_v9 = vld [vmem:[#allocation20 + $0x280] ss:$16 sps:$4 sm:$0xff] (%p273_p2)  }
 0xe25   :  { %10694 = vmatpush1.bf16.msra.mxu0 (%p273_p2), %v15567_v26  ;;  %v15649_v26 = vld [vmem:[#allocation20 + $0x2a4] ss:$16 sps:$4 sm:$0xff] (%p273_p2)  }
 0xe26   :  { %10695 = vmatprep.subr.bf16.mxu0 (%p273_p2), %v15569_v33  ;;  %v15647_v33 = vld [vmem:[#allocation20 + $0x2a0] ss:$16 sps:$4 sm:$0xff] (%p273_p2)  }
 0xe29   :  { %10696 = vmatpush1.bf16.msra.mxu0 (%p273_p2), %v15573_v8  ;;  %v15655_v8 = vld [vmem:[#allocation20 + $0x2c4] ss:$16 sps:$4 sm:$0xff] (%p273_p2)  }
 0xe2a   :  { %10697 = vmatprep.subr.bf16.mxu0 (%p273_p2), %v15575_v35  ;;  %v15653_v35 = vld [vmem:[#allocation20 + $0x2c0] ss:$16 sps:$4 sm:$0xff] (%p273_p2)  }
 0xe2d   :  { %10698 = vmatpush1.bf16.msra.mxu0 (%p273_p2), %v15579_v15  ;;  %v15661_v15 = vld [vmem:[#allocation20 + $0x2e4] ss:$16 sps:$4 sm:$0xff] (%p273_p2)  }
 0xe2e   :  { %10699 = vmatprep.subr.bf16.mxu0 (%p273_p2), %v15581_v27  ;;  %v15659_v27 = vld [vmem:[#allocation20 + $0x2e0] ss:$16 sps:$4 sm:$0xff] (%p273_p2)  }
 0xe31   :  { %10700 = vmatpush1.bf16.msra.mxu0 (%p273_p2), %v15585_v51  ;;  %v15667_v51 = vld [vmem:[#allocation20 + $0x304] ss:$16 sps:$4 sm:$0xff] (%p273_p2)  }
 0xe32   :  { %10701 = vmatprep.subr.bf16.mxu0 (%p273_p2), %v15587_v21  ;;  %v15665_v21 = vld [vmem:[#allocation20 + $0x300] ss:$16 sps:$4 sm:$0xff] (%p273_p2)  }
 0xe41   : > { %v9848_v28 = vpop.f32.mrb[56].mxu0  ;;  %275 = sbr.rel (!%p273_p2) target bundleno = 311 (0x137), region = 196 }
 0xe42   : > { %v9870_v0 = vrot.slane %v9848_v28, %v18125_v13  ;;  %v9850_v6 = vpop.f32.mrb[57].mxu0  ;;  %v15592_v28 = vld [vmem:[#allocation20 + $0x168] ss:$16 sps:$4 sm:$0xff] (%p273_p2)  }
 0xe43   : > { %v9874_v53 = vrot.slane %v9850_v6, %v18125_v13  ;;  %v9852_v44 = vpop.f32.mrb[58].mxu0  ;;  %v15595_v6 = vld [vmem:[#allocation20 + $0x18c] ss:$16 sps:$4 sm:$0xff] (%p273_p2)  }
 0xe44   : > { %v18334_v3 = vsel %vm9856_vm3, %v9870_v0, %v16357_v3   ;;  %v9853_v46 = vpop.f32.mrb[59].mxu0  ;;  %v15593_v0 = vld [vmem:[#allocation20 + $0x184] ss:$16 sps:$4 sm:$0xff] (%p273_p2)   ;;  %v15598_v44 = vld [vmem:[#allocation20 + $0x188] ss:$16 sps:$4 sm:$0xff] (%p273_p2)  }
 0xe45   : > { %v18446_v30 = vmov %v18334_v3  ;;  %v18337_v2 = vsel %vm9856_vm3, %v9874_v53, %v18447_v17   ;;  %v15597_v53 = vld [vmem:[#allocation20 + $0x180] ss:$16 sps:$4 sm:$0xff] (%p273_p2)   ;;  %v15599_v46 = vld [vmem:[#allocation20 + $0x1a4] ss:$16 sps:$4 sm:$0xff] (%p273_p2)   ;;  %v15601_v17 = vld [vmem:[#allocation20 + $0x1ac] ss:$16 sps:$4 sm:$0xff] (%p273_p2)  }
 0xe46   : > { %v18448_v12 = vmov %v18337_v2  ;;  %v18450_v3 = vmov %v18446_v30 }
 0xe47   : > { %v18449_v2 = vmov %v18448_v12  ;;  %v9882_v3 = vmul.f32 (%p273_p2), %v18353_v32, %v9876_v37  ;;  %v15591_v37 = vld [vmem:[#allocation20 + $0x160] ss:$16 sps:$4 sm:$0xff] (%p273_p2)   ;;  %v9884_v4 = vmul.f32 (%p273_p2), %v18353_v32, %v18448_v12  ;;  %v15634_v12 = vld [vmem:[#allocation20 + $0x24c] ss:$16 sps:$4 sm:$0xff] (%p273_p2)  }
 0xe48   :  { %v15541_v2 = vld [vmem:[#allocation20 + $0x6c] ss:$16 sps:$4 sm:$0xff]   ;;  %10702 = vmatpush1.bf16.msra.mxu0 %v15591_v37  ;;  %v15673_v37 = vld [vmem:[#allocation20 + $0x324] ss:$16 sps:$4 sm:$0xff]  }
 0xe49   :  { %v9886_v22 = vpack.c.bf16 %v9882_v3, %v9882_v3  ;;  %10767 = vmatprep.subr.bf16.mxu1 %v15541_v2  ;;  %10703 = vmatprep.subr.bf16.mxu0 %v15593_v0  ;;  %v15622_v3 = vld [vmem:[#allocation20 + $0x20c] ss:$16 sps:$4 sm:$0xff]   ;;  %v15617_v2 = vld [vmem:[#allocation20 + $0x200] ss:$16 sps:$4 sm:$0xff]  }
 0xe4a   :  { %10768 = vmatpush1.bf16.msra.mxu1 %v15544_v61  ;;  %v15625_v61 = vld [vmem:[#allocation20 + $0x224] ss:$16 sps:$4 sm:$0xff]   ;;  %v15671_v0 = vld [vmem:[#allocation20 + $0x320] ss:$16 sps:$4 sm:$0xff]  }
 0xe4b   :  { %10711 = vmatprep.mubr.bf16.mxu0 %v9886_v22  ;;  %10793 = vmatprep.mubr.bf16.mxu1 %v9886_v22  ;;  %v15620_v22 = vld [vmem:[#allocation20 + $0x208] ss:$16 sps:$4 sm:$0xff]  }
 0xe4c   :  { %10769 = vmatprep.subr.bf16.mxu1 %v15547_v36  ;;  %10704 = vmatpush1.bf16.msra.mxu0 %v15597_v53  ;;  %v9888_v36 = vpack.c.bf16 %v9884_v4, %v9884_v4  ;;  %v15679_v53 = vld [vmem:[#allocation20 + $0x344] ss:$16 sps:$4 sm:$0xff]   ;;  %v15706_v4 = vld [vmem:[#allocation20 + $0x3cc] ss:$16 sps:$4 sm:$0xff]  }
 0xe4d   :  { %10705 = vmatprep.subr.bf16.mxu0 %v15599_v46  ;;  %v15677_v46 = vld [vmem:[#allocation20 + $0x340] ss:$16 sps:$4 sm:$0xff]  }
 0xe4e   :  { %10770 = vmatpush1.bf16.msra.mxu1 %v15550_v29  ;;  %v15631_v29 = vld [vmem:[#allocation20 + $0x244] ss:$16 sps:$4 sm:$0xff]  }
 0xe4f   :  { %10771 = vmatprep.subr.bf16.mxu1 %v15553_v60  ;;  %v15632_v60 = vld [vmem:[#allocation20 + $0x248] ss:$16 sps:$4 sm:$0xff]  }
 0xe50   :  { %10706 = vmatpush1.bf16.msra.mxu0 %v15603_v5  ;;  %v15685_v5 = vld [vmem:[#allocation20 + $0x364] ss:$16 sps:$4 sm:$0xff]  }
 0xe51   :  { %10707 = vmatprep.subr.bf16.mxu0 %v15605_v11  ;;  %v15683_v11 = vld [vmem:[#allocation20 + $0x360] ss:$16 sps:$4 sm:$0xff]  }
 0xe52   :  { %10772 = vmatpush1.bf16.msra.mxu1 %v15556_v47  ;;  %v15640_v47 = vld [vmem:[#allocation20 + $0x26c] ss:$16 sps:$4 sm:$0xff]  }
 0xe53   :  { %10773 = vmatprep.subr.bf16.mxu1 %v15559_v41  ;;  %v15638_v41 = vld [vmem:[#allocation20 + $0x268] ss:$16 sps:$4 sm:$0xff]  }
 0xe54   :  { %10708 = vmatpush1.bf16.msra.mxu0 %v15609_v10  ;;  %v15691_v10 = vld [vmem:[#allocation20 + $0x384] ss:$16 sps:$4 sm:$0xff]  }
 0xe55   :  { %10709 = vmatprep.subr.bf16.mxu0 %v15611_v38  ;;  %v15689_v38 = vld [vmem:[#allocation20 + $0x380] ss:$16 sps:$4 sm:$0xff]  }
 0xe56   :  { %10774 = vmatpush1.bf16.msra.mxu1 %v15562_v23  ;;  %v15646_v23 = vld [vmem:[#allocation20 + $0x28c] ss:$16 sps:$4 sm:$0xff]  }
 0xe57   :  { %10775 = vmatprep.subr.bf16.mxu1 %v15565_v19  ;;  %v15644_v19 = vld [vmem:[#allocation20 + $0x288] ss:$16 sps:$4 sm:$0xff]  }
 0xe58   :  { %10710 = vmatpush1.bf16.msra.mxu0 %v15615_v62  ;;  %v15697_v62 = vld [vmem:[#allocation20 + $0x3a4] ss:$16 sps:$4 sm:$0xff]  }
 0xe59   :  { %10720 = vmatprep.subr.bf16.mxu0 %v15619_v1  ;;  %v15698_v1 = vld [vmem:[#allocation20 + $0x3a8] ss:$16 sps:$4 sm:$0xff]  }
 0xe5a   :  { %10776 = vmatpush1.bf16.msra.mxu1 %v15568_v25  ;;  %v15652_v25 = vld [vmem:[#allocation20 + $0x2ac] ss:$16 sps:$4 sm:$0xff]  }
 0xe5b   :  { %10777 = vmatprep.subr.bf16.mxu1 %v15571_v45  ;;  %10712 = vmatmul.mubr.bf16.vlgmr.msra.gmra.mrb[0].mxu0 %v9885_v56  ;;  %v15650_v45 = vld [vmem:[#allocation20 + $0x2a8] ss:$16 sps:$4 sm:$0xff]  }
 0xe5c   :  { %10721 = vmatpush1.bf16.msra.mxu0 %v15617_v2  ;;  %10752 = vmatprep.mubr.bf16.mxu0 %v9888_v36  ;;  %v15701_v2 = vld [vmem:[#allocation20 + $0x3c0] ss:$16 sps:$4 sm:$0xff]  }
 0xe5d   :  { %10722 = vmatprep.subr.bf16.mxu0 %v15625_v61  ;;  %v15712_v61 = vld [vmem:[#allocation20 + $0x3ec] ss:$16 sps:$4 sm:$0xff]  }
 0xe5e   :  { %10778 = vmatpush1.bf16.msra.mxu1 %v15574_v39  ;;  %v15658_v39 = vld [vmem:[#allocation20 + $0x2cc] ss:$16 sps:$4 sm:$0xff]  }
 0xe5f   :  { %10779 = vmatprep.subr.bf16.mxu1 %v15577_v14  ;;  %v15656_v14 = vld [vmem:[#allocation20 + $0x2c8] ss:$16 sps:$4 sm:$0xff]  }
 0xe60   :  { %10723 = vmatpush1.bf16.msra.mxu0 %v15623_v40  ;;  %v9883_v40 = vmul.f32 %v18353_v32, %v18446_v30  ;;  %v15727_v30 = vld [vmem:[#allocation23 + $0x44] ss:$16 sps:$4 sm:$0xff]   ;;  %v15730_v32 = vld [vmem:[#allocation23 + $0x4c] ss:$16 sps:$4 sm:$0xff]  }
 0xe61   :  { %10724 = vmatprep.subr.bf16.mxu0 %v15631_v29  ;;  %v15718_v29 = vld [vmem:[#allocation23 + $0xc] ss:$16 sps:$4 sm:$0xff]  }
 0xe62   :  { %10780 = vmatpush1.bf16.msra.mxu1 %v15580_v18  ;;  %v15664_v18 = vld [vmem:[#allocation20 + $0x2ec] ss:$16 sps:$4 sm:$0xff]  }
 0xe63   :  { %10781 = vmatprep.subr.bf16.mxu1 %v15583_v59  ;;  %v15662_v59 = vld [vmem:[#allocation20 + $0x2e8] ss:$16 sps:$4 sm:$0xff]  }
 0xe64   :  { %10725 = vmatpush1.bf16.msra.mxu0 %v15629_v50  ;;  %v15716_v50 = vld [vmem:[#allocation23 + $0x8] ss:$16 sps:$4 sm:$0xff]  }
 0xe65   :  { %10726 = vmatprep.subr.bf16.mxu0 %v15637_v48  ;;  %v15721_v48 = vld [vmem:[#allocation23 + $0x24] ss:$16 sps:$4 sm:$0xff]  }
 0xe66   :  { %10782 = vmatpush1.bf16.msra.mxu1 %v15586_v55  ;;  %v15670_v55 = vld [vmem:[#allocation20 + $0x30c] ss:$16 sps:$4 sm:$0xff]  }
 0xe67   :  { %10783 = vmatprep.subr.bf16.mxu1 %v15589_v24  ;;  %v15668_v24 = vld [vmem:[#allocation20 + $0x308] ss:$16 sps:$4 sm:$0xff]  }
 0xe68   :  { %10727 = vmatpush1.bf16.msra.mxu0 %v15635_v49  ;;  %v15719_v49 = vld [vmem:[#allocation23 + $0x20] ss:$16 sps:$4 sm:$0xff]  }
 0xe69   :  { %10728 = vmatprep.subr.bf16.mxu0 %v15643_v57  ;;  %v15725_v57 = vld [vmem:[#allocation23 + $0x40] ss:$16 sps:$4 sm:$0xff]  }
 0xe6a   :  { %10784 = vmatpush1.bf16.msra.mxu1 %v15592_v28  ;;  %v15676_v28 = vld [vmem:[#allocation20 + $0x32c] ss:$16 sps:$4 sm:$0xff]  }
 0xe6b   :  { %10785 = vmatprep.subr.bf16.mxu1 %v15595_v6  ;;  %v15674_v6 = vld [vmem:[#allocation20 + $0x328] ss:$16 sps:$4 sm:$0xff]  }
 0xe6c   :  { %10729 = vmatpush1.bf16.msra.mxu0 %v15641_v9  ;;  %v15733_v9 = vld [vmem:[#allocation23 + $0x64] ss:$16 sps:$4 sm:$0xff]  }
 0xe6d   :  { %10730 = vmatprep.subr.bf16.mxu0 %v15649_v26  ;;  %v15731_v26 = vld [vmem:[#allocation23 + $0x60] ss:$16 sps:$4 sm:$0xff]  }
 0xe6e   :  { %10786 = vmatpush1.bf16.msra.mxu1 %v15598_v44  ;;  %v15682_v44 = vld [vmem:[#allocation20 + $0x34c] ss:$16 sps:$4 sm:$0xff]  }
 0xe6f   :  { %10787 = vmatprep.subr.bf16.mxu1 %v15601_v17  ;;  %v15680_v17 = vld [vmem:[#allocation20 + $0x348] ss:$16 sps:$4 sm:$0xff]  }
 0xe70   :  { %10731 = vmatpush1.bf16.msra.mxu0 %v15647_v33  ;;  %v15739_v33 = vld [vmem:[#allocation23 + $0x84] ss:$16 sps:$4 sm:$0xff]  }
 0xe71   :  { %10732 = vmatprep.subr.bf16.mxu0 %v15655_v8  ;;  %v15737_v8 = vld [vmem:[#allocation23 + $0x80] ss:$16 sps:$4 sm:$0xff]  }
 0xe72   :  { %10788 = vmatpush1.bf16.msra.mxu1 %v15604_v63  ;;  %v15688_v63 = vld [vmem:[#allocation20 + $0x36c] ss:$16 sps:$4 sm:$0xff]  }
 0xe73   :  { %10789 = vmatprep.subr.bf16.mxu1 %v15607_v52  ;;  %v15686_v52 = vld [vmem:[#allocation20 + $0x368] ss:$16 sps:$4 sm:$0xff]  }
 0xe74   :  { %10733 = vmatpush1.bf16.msra.mxu0 %v15653_v35  ;;  %v15745_v35 = vld [vmem:[#allocation23 + $0xa4] ss:$16 sps:$4 sm:$0xff]  }
 0xe75   :  { %10734 = vmatprep.subr.bf16.mxu0 %v15661_v15  ;;  %v15743_v15 = vld [vmem:[#allocation23 + $0xa0] ss:$16 sps:$4 sm:$0xff]  }
 0xe76   :  { %10790 = vmatpush1.bf16.msra.mxu1 %v15610_v34  ;;  %v15694_v34 = vld [vmem:[#allocation20 + $0x38c] ss:$16 sps:$4 sm:$0xff]  }
 0xe77   :  { %10791 = vmatprep.subr.bf16.mxu1 %v15613_v20  ;;  %v15692_v20 = vld [vmem:[#allocation20 + $0x388] ss:$16 sps:$4 sm:$0xff]  }
 0xe78   :  { %10735 = vmatpush1.bf16.msra.mxu0 %v15659_v27  ;;  %v15751_v27 = vld [vmem:[#allocation23 + $0xc4] ss:$16 sps:$4 sm:$0xff]  }
 0xe79   :  { %10736 = vmatprep.subr.bf16.mxu0 %v15667_v51  ;;  %v15749_v51 = vld [vmem:[#allocation23 + $0xc0] ss:$16 sps:$4 sm:$0xff]  }
 0xe7a   :  { %10792 = vmatpush1.bf16.msra.mxu1 %v15616_v43  ;;  %v15700_v43 = vld [vmem:[#allocation20 + $0x3ac] ss:$16 sps:$4 sm:$0xff]  }
 0xe7b   :  { %10802 = vmatprep.subr.bf16.mxu1 %v15622_v3  ;;  %v15703_v3 = vld [vmem:[#allocation20 + $0x3c4] ss:$16 sps:$4 sm:$0xff]  }
 0xe7c   :  { %10737 = vmatpush1.bf16.msra.mxu0 %v15665_v21  ;;  %v15757_v21 = vld [vmem:[#allocation23 + $0xe4] ss:$16 sps:$4 sm:$0xff]  }
 0xe7d   :  { %10794 = vmatmul.mubr.bf16.vlgmr.msra.gmra.mrb[0].mxu1 %v9885_v56  ;;  %10738 = vmatprep.subr.bf16.mxu0 %v15673_v37  ;;  %v15709_v56 = vld [vmem:[#allocation20 + $0x3e4] ss:$16 sps:$4 sm:$0xff]  }
 0xe7e   :  { %10803 = vmatpush1.bf16.msra.mxu1 %v15620_v22  ;;  %10834 = vmatprep.mubr.bf16.mxu1 %v9888_v36  ;;  %v15704_v22 = vld [vmem:[#allocation20 + $0x3c8] ss:$16 sps:$4 sm:$0xff]   ;;  %v15755_v37 = vld [vmem:[#allocation23 + $0xe0] ss:$16 sps:$4 sm:$0xff]  }
 0xe7f   :  { %10804 = vmatprep.subr.bf16.mxu1 %v15628_v54  ;;  %v15707_v54 = vld [vmem:[#allocation20 + $0x3e0] ss:$16 sps:$4 sm:$0xff]   ;;  %v15710_v36 = vld [vmem:[#allocation20 + $0x3e8] ss:$16 sps:$4 sm:$0xff]  }
 0xe80   :  { %10739 = vmatpush1.bf16.msra.mxu0 %v15671_v0  ;;  %v15763_v0 = vld [vmem:[#allocation23 + $0x104] ss:$16 sps:$4 sm:$0xff]  }
 0xe81   :  { %10740 = vmatprep.subr.bf16.mxu0 %v15679_v53  ;;  %v15761_v53 = vld [vmem:[#allocation23 + $0x100] ss:$16 sps:$4 sm:$0xff]  }
 0xe82   :  { %10805 = vmatpush1.bf16.msra.mxu1 %v15626_v31  ;;  %v15715_v31 = vld [vmem:[#allocation23 + $0x4] ss:$16 sps:$4 sm:$0xff]  }
 0xe83   :  { %10806 = vmatprep.subr.bf16.mxu1 %v15634_v12  ;;  %v15713_v12 = vld [vmem:[#allocation23] ss:$16 sps:$4 sm:$0xff]  }
 0xe84   :  { %10741 = vmatpush1.bf16.msra.mxu0 %v15677_v46  ;;  %v15769_v46 = vld [vmem:[#allocation23 + $0x124] ss:$16 sps:$4 sm:$0xff]  }
 0xe85   :  { %10742 = vmatprep.subr.bf16.mxu0 %v15685_v5  ;;  %v15767_v5 = vld [vmem:[#allocation23 + $0x120] ss:$16 sps:$4 sm:$0xff]  }
 0xe86   :  { %10807 = vmatpush1.bf16.msra.mxu1 %v15632_v60  ;;  %v9887_v60 = vpack.c.bf16 %v9883_v40, %v9883_v40  ;;  %v15797_v40 = vld [vmem:[#allocation23 + $0x1c0] ss:$16 sps:$4 sm:$0xff]  }
 0xe87   :  { %10808 = vmatprep.subr.bf16.mxu1 %v15640_v47  ;;  %v15724_v47 = vld [vmem:[#allocation23 + $0x2c] ss:$16 sps:$4 sm:$0xff]  }
 0xe88   :  { %10743 = vmatpush1.bf16.msra.mxu0 %v15683_v11  ;;  %v15775_v11 = vld [vmem:[#allocation23 + $0x144] ss:$16 sps:$4 sm:$0xff]  }
 0xe89   :  { %10744 = vmatprep.subr.bf16.mxu0 %v15691_v10  ;;  %v15773_v10 = vld [vmem:[#allocation23 + $0x140] ss:$16 sps:$4 sm:$0xff]  }
 0xe8a   :  { %10809 = vmatpush1.bf16.msra.mxu1 %v15638_v41  ;;  %v15722_v41 = vld [vmem:[#allocation23 + $0x28] ss:$16 sps:$4 sm:$0xff]  }
 0xe8b   :  { %10810 = vmatprep.subr.bf16.mxu1 %v15646_v23  ;;  %v15728_v23 = vld [vmem:[#allocation23 + $0x48] ss:$16 sps:$4 sm:$0xff]  }
 0xe8c   :  { %10745 = vmatpush1.bf16.msra.mxu0 %v15689_v38  ;;  %v15781_v38 = vld [vmem:[#allocation23 + $0x164] ss:$16 sps:$4 sm:$0xff]  }
 0xe8d   :  { %10746 = vmatprep.subr.bf16.mxu0 %v15697_v62  ;;  %v15779_v62 = vld [vmem:[#allocation23 + $0x160] ss:$16 sps:$4 sm:$0xff]  }
 0xe8e   :  { %10811 = vmatpush1.bf16.msra.mxu1 %v15644_v19  ;;  %v15736_v19 = vld [vmem:[#allocation23 + $0x6c] ss:$16 sps:$4 sm:$0xff]  }
 0xe8f   :  { %10812 = vmatprep.subr.bf16.mxu1 %v15652_v25  ;;  %v15734_v25 = vld [vmem:[#allocation23 + $0x68] ss:$16 sps:$4 sm:$0xff]  }
 0xe90   :  { %10747 = vmatpush1.bf16.msra.mxu0 %v15695_v16  ;;  %v15787_v16 = vld [vmem:[#allocation23 + $0x184] ss:$16 sps:$4 sm:$0xff]  }
 0xe91   :  { %10748 = vmatprep.subr.bf16.mxu0 %v15703_v3  ;;  %v15785_v3 = vld [vmem:[#allocation23 + $0x180] ss:$16 sps:$4 sm:$0xff]  }
 0xe92   :  { %10813 = vmatpush1.bf16.msra.mxu1 %v15650_v45  ;;  %v15742_v45 = vld [vmem:[#allocation23 + $0x8c] ss:$16 sps:$4 sm:$0xff]  }
 0xe93   :  { %10814 = vmatprep.subr.bf16.mxu1 %v15658_v39  ;;  %v15740_v39 = vld [vmem:[#allocation23 + $0x88] ss:$16 sps:$4 sm:$0xff]  }
 0xe94   :  { %10749 = vmatpush1.bf16.msra.mxu0 %v15701_v2  ;;  %v15793_v2 = vld [vmem:[#allocation23 + $0x1a4] ss:$16 sps:$4 sm:$0xff]  }
 0xe95   :  { %10750 = vmatprep.subr.bf16.mxu0 %v15709_v56  ;;  %v15791_v56 = vld [vmem:[#allocation23 + $0x1a0] ss:$16 sps:$4 sm:$0xff]  }
 0xe96   :  { %10815 = vmatpush1.bf16.msra.mxu1 %v15656_v14  ;;  %v15748_v14 = vld [vmem:[#allocation23 + $0xac] ss:$16 sps:$4 sm:$0xff]  }
 0xe97   :  { %10816 = vmatprep.subr.bf16.mxu1 %v15664_v18  ;;  %v15746_v18 = vld [vmem:[#allocation23 + $0xa8] ss:$16 sps:$4 sm:$0xff]  }
 0xe98   :  { %10751 = vmatpush1.bf16.msra.mxu0 %v15707_v54  ;;  %v15799_v54 = vld [vmem:[#allocation23 + $0x1c4] ss:$16 sps:$4 sm:$0xff]  }
 0xe99   :  { %11641 = vmatprep.subr.bf16.mxu0 %v15715_v31  ;;  %v15800_v31 = vld [vmem:[#allocation23 + $0x1c8] ss:$16 sps:$4 sm:$0xff]  }
 0xe9a   :  { %10817 = vmatpush1.bf16.msra.mxu1 %v15662_v59  ;;  %v15754_v59 = vld [vmem:[#allocation23 + $0xcc] ss:$16 sps:$4 sm:$0xff]  }
 0xe9b   :  { %10818 = vmatprep.subr.bf16.mxu1 %v15670_v55  ;;  %10753 = vmatmul.mubr.bf16.vlgmr.msra.gmra.mrb[0].mxu0 %v9887_v60  ;;  %v15752_v55 = vld [vmem:[#allocation23 + $0xc8] ss:$16 sps:$4 sm:$0xff]  }
 0xe9c   :  { %11642 = vmatpush1.bf16.msra.mxu0 %v15713_v12  ;;  %v15808_v12 = vld [vmem:[#allocation23 + $0x1ec] ss:$16 sps:$4 sm:$0xff]  }
 0xe9d   :  { %11643 = vmatprep.subr.bf16.mxu0 %v15721_v48  ;;  %v15811_v48 = vld [vmem:[#allocation23 + $0x204] ss:$16 sps:$4 sm:$0xff]  }
 0xe9e   :  { %10819 = vmatpush1.bf16.msra.mxu1 %v15668_v24  ;;  %v15760_v24 = vld [vmem:[#allocation23 + $0xec] ss:$16 sps:$4 sm:$0xff]  }
 0xe9f   :  { %10820 = vmatprep.subr.bf16.mxu1 %v15676_v28  ;;  %v15758_v28 = vld [vmem:[#allocation23 + $0xe8] ss:$16 sps:$4 sm:$0xff]  }
 0xea0   :  { %11644 = vmatpush1.bf16.msra.mxu0 %v15719_v49  ;;  %v18362_v49 = vld [vmem:[#allocation21] sm:$0xf] }
 0xea1   :  { %11645 = vmatprep.subr.bf16.mxu0 %v15727_v30  ;;  %v10026_v30 = vrot.slane %v18362_v49, %v18128_v58 }
 0xea2   :  { %10821 = vmatpush1.bf16.msra.mxu1 %v15674_v6  ;;  %v15766_v6 = vld [vmem:[#allocation23 + $0x10c] ss:$16 sps:$4 sm:$0xff]  }
 0xea3   :  { %10822 = vmatprep.subr.bf16.mxu1 %v15682_v44  ;;  %v15764_v44 = vld [vmem:[#allocation23 + $0x108] ss:$16 sps:$4 sm:$0xff]  }
 0xea4   :  { %11646 = vmatpush1.bf16.msra.mxu0 %v15725_v57 }
 0xea5   :  { %11647 = vmatprep.subr.bf16.mxu0 %v15733_v9 }
 0xea6   :  { %10823 = vmatpush1.bf16.msra.mxu1 %v15680_v17  ;;  %v15772_v17 = vld [vmem:[#allocation23 + $0x12c] ss:$16 sps:$4 sm:$0xff]  }
 0xea7   :  { %10824 = vmatprep.subr.bf16.mxu1 %v15688_v63  ;;  %v15770_v63 = vld [vmem:[#allocation23 + $0x128] ss:$16 sps:$4 sm:$0xff]  }
 0xea8   :  { %11648 = vmatpush1.bf16.msra.mxu0 %v15731_v26 }
 0xea9   :  { %11649 = vmatprep.subr.bf16.mxu0 %v15739_v33 }
 0xeaa   :  { %10825 = vmatpush1.bf16.msra.mxu1 %v15686_v52  ;;  %v15778_v52 = vld [vmem:[#allocation23 + $0x14c] ss:$16 sps:$4 sm:$0xff]  }
 0xeab   :  { %10826 = vmatprep.subr.bf16.mxu1 %v15694_v34  ;;  %v15776_v34 = vld [vmem:[#allocation23 + $0x148] ss:$16 sps:$4 sm:$0xff]  }
 0xeac   :  { %11650 = vmatpush1.bf16.msra.mxu0 %v15737_v8 }
 0xead   :  { %11651 = vmatprep.subr.bf16.mxu0 %v15745_v35 }
 0xeae   :  { %10827 = vmatpush1.bf16.msra.mxu1 %v15692_v20  ;;  %v15784_v20 = vld [vmem:[#allocation23 + $0x16c] ss:$16 sps:$4 sm:$0xff]  }
 0xeaf   :  { %10828 = vmatprep.subr.bf16.mxu1 %v15700_v43  ;;  %v15782_v43 = vld [vmem:[#allocation23 + $0x168] ss:$16 sps:$4 sm:$0xff]  }
 0xeb0   :  { %11652 = vmatpush1.bf16.msra.mxu0 %v15743_v15 }
 0xeb1   :  { %11653 = vmatprep.subr.bf16.mxu0 %v15751_v27 }
 0xeb2   :  { %10829 = vmatpush1.bf16.msra.mxu1 %v15698_v1  ;;  %v15790_v1 = vld [vmem:[#allocation23 + $0x18c] ss:$16 sps:$4 sm:$0xff]  }
 0xeb3   :  { %10830 = vmatprep.subr.bf16.mxu1 %v15706_v4  ;;  %v15788_v4 = vld [vmem:[#allocation23 + $0x188] ss:$16 sps:$4 sm:$0xff]  }
 0xeb4   :  { %11654 = vmatpush1.bf16.msra.mxu0 %v15749_v51  ;;  %v15812_v51 = vld [vmem:[#allocation23 + $0x208] ss:$16 sps:$4 sm:$0xff]  }
 0xeb5   :  { %11655 = vmatprep.subr.bf16.mxu0 %v15757_v21  ;;  %v15817_v21 = vld [vmem:[#allocation23 + $0x224] ss:$16 sps:$4 sm:$0xff]  }
 0xeb6   :  { %10831 = vmatpush1.bf16.msra.mxu1 %v15704_v22  ;;  %v15796_v22 = vld [vmem:[#allocation23 + $0x1ac] ss:$16 sps:$4 sm:$0xff]  }
 0xeb7   :  { %10832 = vmatprep.subr.bf16.mxu1 %v15712_v61  ;;  %v15794_v61 = vld [vmem:[#allocation23 + $0x1a8] ss:$16 sps:$4 sm:$0xff]  }
 0xeb8   :  { %11656 = vmatpush1.bf16.msra.mxu0 %v15755_v37 }
 0xeb9   :  { %11657 = vmatprep.subr.bf16.mxu0 %v15763_v0  ;;  %v15818_v0 = vld [vmem:[#allocation23 + $0x228] ss:$16 sps:$4 sm:$0xff]  }
 0xeba   :  { %10833 = vmatpush1.bf16.msra.mxu1 %v15710_v36  ;;  %v15802_v36 = vld [vmem:[#allocation23 + $0x1cc] ss:$16 sps:$4 sm:$0xff]  }
 0xebb   :  { %11723 = vmatprep.subr.bf16.mxu1 %v15718_v29  ;;  %v15805_v29 = vld [vmem:[#allocation23 + $0x1e4] ss:$16 sps:$4 sm:$0xff]  }
 0xebc   :  { %11658 = vmatpush1.bf16.msra.mxu0 %v15761_v53  ;;  %v15826_v53 = vld [vmem:[#allocation23 + $0x24c] ss:$16 sps:$4 sm:$0xff]  }
 0xebd   :  { %10835 = vmatmul.mubr.bf16.vlgmr.msra.gmra.mrb[0].mxu1 %v9887_v60  ;;  %11659 = vmatprep.subr.bf16.mxu0 %v15769_v46  ;;  %v15806_v60 = vld [vmem:[#allocation23 + $0x1e8] ss:$16 sps:$4 sm:$0xff]  }
 0xebe   :  { %11724 = vmatpush1.bf16.msra.mxu1 %v15716_v50  ;;  %v15803_v50 = vld [vmem:[#allocation23 + $0x1e0] ss:$16 sps:$4 sm:$0xff]   ;;  %v15824_v46 = vld [vmem:[#allocation23 + $0x248] ss:$16 sps:$4 sm:$0xff]  }
 0xebf   :  { %11725 = vmatprep.subr.bf16.mxu1 %v15724_v47  ;;  %v15814_v47 = vld [vmem:[#allocation23 + $0x20c] ss:$16 sps:$4 sm:$0xff]  }
 0xec0   :  { %11660 = vmatpush1.bf16.msra.mxu0 %v15767_v5  ;;  %v15832_v5 = vld [vmem:[#allocation23 + $0x26c] ss:$16 sps:$4 sm:$0xff]  }
 0xec1   :  { %11661 = vmatprep.subr.bf16.mxu0 %v15775_v11  ;;  %v15830_v11 = vld [vmem:[#allocation23 + $0x268] ss:$16 sps:$4 sm:$0xff]  }
 0xec2   :  { %11726 = vmatpush1.bf16.msra.mxu1 %v15722_v41  ;;  %v10022_v41 = vrot.slane %v18362_v49, %v18125_v13 }
 0xec3   :  { %11727 = vmatprep.subr.bf16.mxu1 %v15730_v32  ;;  %v10034_v32 = vrot.slane %v18362_v49, %v18310_v7 }
 0xec4   :  { %11662 = vmatpush1.bf16.msra.mxu0 %v15773_v10  ;;  %v15838_v10 = vld [vmem:[#allocation23 + $0x28c] ss:$16 sps:$4 sm:$0xff]  }
 0xec5   :  { %11663 = vmatprep.subr.bf16.mxu0 %v15781_v38  ;;  %v15836_v38 = vld [vmem:[#allocation23 + $0x288] ss:$16 sps:$4 sm:$0xff]  }
 0xec6   :  { %11728 = vmatpush1.bf16.msra.mxu1 %v15728_v23 }
 0xec7   :  { %11729 = vmatprep.subr.bf16.mxu1 %v15736_v19 }
 0xec8   :  { %11664 = vmatpush1.bf16.msra.mxu0 %v15779_v62  ;;  %v15844_v62 = vld [vmem:[#allocation23 + $0x2ac] ss:$16 sps:$4 sm:$0xff]  }
 0xec9   :  { %11665 = vmatprep.subr.bf16.mxu0 %v15787_v16  ;;  %v15842_v16 = vld [vmem:[#allocation23 + $0x2a8] ss:$16 sps:$4 sm:$0xff]  }
 0xeca   :  { %11730 = vmatpush1.bf16.msra.mxu1 %v15734_v25 }
 0xecb   :  { %11731 = vmatprep.subr.bf16.mxu1 %v15742_v45 }
 0xecc   :  { %11666 = vmatpush1.bf16.msra.mxu0 %v15785_v3  ;;  %v15850_v3 = vld [vmem:[#allocation23 + $0x2cc] ss:$16 sps:$4 sm:$0xff]  }
 0xecd   :  { %11667 = vmatprep.subr.bf16.mxu0 %v15793_v2  ;;  %v15848_v2 = vld [vmem:[#allocation23 + $0x2c8] ss:$16 sps:$4 sm:$0xff]  }
 0xece   :  { %11732 = vmatpush1.bf16.msra.mxu1 %v15740_v39 }
 0xecf   :  { %11733 = vmatprep.subr.bf16.mxu1 %v15748_v14 }
 0xed0   :  { %11668 = vmatpush1.bf16.msra.mxu0 %v15791_v56  ;;  %v15856_v56 = vld [vmem:[#allocation23 + $0x2ec] ss:$16 sps:$4 sm:$0xff]  }
 0xed1   :  { %11669 = vmatprep.subr.bf16.mxu0 %v15799_v54  ;;  %v15854_v54 = vld [vmem:[#allocation23 + $0x2e8] ss:$16 sps:$4 sm:$0xff]  }
 0xed2   :  { %11734 = vmatpush1.bf16.msra.mxu1 %v15746_v18 }
 0xed3   :  { %11735 = vmatprep.subr.bf16.mxu1 %v15754_v59  ;;  %v15809_v59 = vld [vmem:[#allocation23 + $0x200] ss:$16 sps:$4 sm:$0xff]  }
 0xed4   :  { %11670 = vmatpush1.bf16.msra.mxu0 %v15797_v40  ;;  %v15862_v40 = vld [vmem:[#allocation23 + $0x30c] ss:$16 sps:$4 sm:$0xff]  }
 0xed5   :  { %11671 = vmatprep.subr.bf16.mxu0 %v15805_v29  ;;  %v15860_v29 = vld [vmem:[#allocation23 + $0x308] ss:$16 sps:$4 sm:$0xff]  }
 0xed6   :  { %11736 = vmatpush1.bf16.msra.mxu1 %v15752_v55 }
 0xed7   :  { %11737 = vmatprep.subr.bf16.mxu1 %v15760_v24  ;;  %v15820_v24 = vld [vmem:[#allocation23 + $0x22c] ss:$16 sps:$4 sm:$0xff]  }
 0xed8   :  { %11672 = vmatpush1.bf16.msra.mxu0 %v15803_v50  ;;  %v15868_v50 = vld [vmem:[#allocation23 + $0x32c] ss:$16 sps:$4 sm:$0xff]  }
 0xed9   :  { %11682 = vmatprep.subr.bf16.mxu0 %v15811_v48  ;;  %v15866_v48 = vld [vmem:[#allocation23 + $0x328] ss:$16 sps:$4 sm:$0xff]  }
 0xeda   :  { %11738 = vmatpush1.bf16.msra.mxu1 %v15758_v28  ;;  %v15815_v28 = vld [vmem:[#allocation23 + $0x220] ss:$16 sps:$4 sm:$0xff]  }
 0xedb   :  { %11739 = vmatprep.subr.bf16.mxu1 %v15766_v6  ;;  %v15823_v6 = vld [vmem:[#allocation23 + $0x244] ss:$16 sps:$4 sm:$0xff]  }
 0xede   :  { %11740 = vmatpush1.bf16.msra.mxu1 %v15764_v44  ;;  %v15821_v44 = vld [vmem:[#allocation23 + $0x240] ss:$16 sps:$4 sm:$0xff]  }
 0xedf   :  { %11741 = vmatprep.subr.bf16.mxu1 %v15772_v17  ;;  %v15829_v17 = vld [vmem:[#allocation23 + $0x264] ss:$16 sps:$4 sm:$0xff]  }
 0xee2   :  { %11742 = vmatpush1.bf16.msra.mxu1 %v15770_v63  ;;  %v15827_v63 = vld [vmem:[#allocation23 + $0x260] ss:$16 sps:$4 sm:$0xff]  }
 0xee3   :  { %11743 = vmatprep.subr.bf16.mxu1 %v15778_v52  ;;  %v15835_v52 = vld [vmem:[#allocation23 + $0x284] ss:$16 sps:$4 sm:$0xff]  }
 0xee6   :  { %11744 = vmatpush1.bf16.msra.mxu1 %v15776_v34  ;;  %v15833_v34 = vld [vmem:[#allocation23 + $0x280] ss:$16 sps:$4 sm:$0xff]  }
 0xee7   :  { %11745 = vmatprep.subr.bf16.mxu1 %v15784_v20  ;;  %v15841_v20 = vld [vmem:[#allocation23 + $0x2a4] ss:$16 sps:$4 sm:$0xff]  }
 0xeea   :  { %11746 = vmatpush1.bf16.msra.mxu1 %v15782_v43  ;;  %v15839_v43 = vld [vmem:[#allocation23 + $0x2a0] ss:$16 sps:$4 sm:$0xff]  }
 0xeeb   :  { %11747 = vmatprep.subr.bf16.mxu1 %v15790_v1  ;;  %v15847_v1 = vld [vmem:[#allocation23 + $0x2c4] ss:$16 sps:$4 sm:$0xff]  }
 0xeee   :  { %11748 = vmatpush1.bf16.msra.mxu1 %v15788_v4  ;;  %v15845_v4 = vld [vmem:[#allocation23 + $0x2c0] ss:$16 sps:$4 sm:$0xff]  }
 0xeef   :  { %11749 = vmatprep.subr.bf16.mxu1 %v15796_v22  ;;  %v15853_v22 = vld [vmem:[#allocation23 + $0x2e4] ss:$16 sps:$4 sm:$0xff]  }
 0xef2   :  { %11750 = vmatpush1.bf16.msra.mxu1 %v15794_v61  ;;  %v15851_v61 = vld [vmem:[#allocation23 + $0x2e0] ss:$16 sps:$4 sm:$0xff]  }
 0xef3   :  { %11751 = vmatprep.subr.bf16.mxu1 %v15802_v36  ;;  %v15859_v36 = vld [vmem:[#allocation23 + $0x304] ss:$16 sps:$4 sm:$0xff]  }
 0xef6   :  { %11752 = vmatpush1.bf16.msra.mxu1 %v15800_v31  ;;  %v15857_v31 = vld [vmem:[#allocation23 + $0x300] ss:$16 sps:$4 sm:$0xff]  }
 0xef7   :  { %11753 = vmatprep.subr.bf16.mxu1 %v15808_v12  ;;  %v15865_v12 = vld [vmem:[#allocation23 + $0x324] ss:$16 sps:$4 sm:$0xff]  }
 0xefa   :  { %11754 = vmatpush1.bf16.msra.mxu1 %v15806_v60  ;;  %v15863_v60 = vld [vmem:[#allocation23 + $0x320] ss:$16 sps:$4 sm:$0xff]  }
 0xefb   :  { %11764 = vmatprep.subr.bf16.mxu1 %v15814_v47  ;;  %v15871_v47 = vld [vmem:[#allocation23 + $0x344] ss:$16 sps:$4 sm:$0xff]  }
 0xf6e   :  { %v10754_v57 = vpop.f32.mrb[0].mxu0 }
 0xf6f   :  { %v14249_v9 = vadd.f32 %v10754_v57, %v10022_v41  ;;  %v10756_v19 = vpop.f32.mrb[1].mxu0  ;;  %v15874_v41 = vld [vmem:[#allocation23 + $0x34c] ss:$16 sps:$4 sm:$0xff]   ;;  %v15877_v57 = vld [vmem:[#allocation23 + $0x364] ss:$16 sps:$4 sm:$0xff]  }
 0xf70   :  { %v14250_v25 = vadd.f32 %v10756_v19, %v10026_v30  ;;  %v10758_v45 = vpop.f32.mrb[2].mxu0  ;;  %v15869_v30 = vld [vmem:[#allocation23 + $0x340] ss:$16 sps:$4 sm:$0xff]  }
 0xf71   :  { %v10843_v39 = vmax.f32 %v14249_v9, 0.0  ;;  %v10759_v35 = vpop.f32.mrb[3].mxu0  ;;  %v15880_v9 = vld [vmem:[#allocation23 + $0x36c] ss:$16 sps:$4 sm:$0xff]   ;;  %v15875_v19 = vld [vmem:[#allocation23 + $0x360] ss:$16 sps:$4 sm:$0xff]  }
 0xf72   :  { %v10844_v15 = vmax.f32 %v14250_v25, 0.0  ;;  %v15883_v25 = vld [vmem:[#allocation23 + $0x384] ss:$16 sps:$4 sm:$0xff]   ;;  %v15881_v45 = vld [vmem:[#allocation23 + $0x380] ss:$16 sps:$4 sm:$0xff]  }
 0xf73   :  { %v10847_v55 = vpack.c.bf16 %v10843_v39, %v10843_v39  ;;  %v15889_v39 = vld [vmem:[#allocation23 + $0x3a4] ss:$16 sps:$4 sm:$0xff]   ;;  %v15892_v35 = vld [vmem:[#allocation23 + $0x3ac] ss:$16 sps:$4 sm:$0xff]  }
 0xf74   :  { %v10848_v27 = vpack.c.bf16 %v10844_v15, %v10844_v15  ;;  %v15890_v15 = vld [vmem:[#allocation23 + $0x3a8] ss:$16 sps:$4 sm:$0xff]  }
 0xf76   :  { %11673 = vmatprep.mubr.bf16.mxu0 %v10848_v27  ;;  %11755 = vmatprep.mubr.bf16.mxu1 %v10848_v27  ;;  %v15895_v27 = vld [vmem:[#allocation23 + $0x3c4] ss:$16 sps:$4 sm:$0xff]  }
 0xf77   :  { %11674 = vmatmul.mubr.bf16.vlgmr.msra.gmra.mrb[4].mxu0 %v10847_v55  ;;  %11756 = vmatmul.mubr.bf16.vlgmr.msra.gmra.mrb[4].mxu1 %v10847_v55  ;;  %v15896_v55 = vld [vmem:[#allocation23 + $0x3c8] ss:$16 sps:$4 sm:$0xff]  }
 0xf78   :  { %11683 = vmatpush1.bf16.msra.mxu0 %v15809_v59  ;;  %11765 = vmatpush1.bf16.msra.mxu1 %v15812_v51  ;;  %v15898_v59 = vld [vmem:[#allocation23 + $0x3cc] ss:$16 sps:$4 sm:$0xff]   ;;  %v15893_v51 = vld [vmem:[#allocation23 + $0x3c0] ss:$16 sps:$4 sm:$0xff]  }
 0xf79   :  { %11684 = vmatprep.subr.bf16.mxu0 %v15817_v21  ;;  %11766 = vmatprep.subr.bf16.mxu1 %v15820_v24  ;;  %v15901_v24 = vld [vmem:[#allocation23 + $0x3e4] ss:$16 sps:$4 sm:$0xff]  }
 0xf7c   :  { %11685 = vmatpush1.bf16.msra.mxu0 %v15815_v28  ;;  %11767 = vmatpush1.bf16.msra.mxu1 %v15818_v0  ;;  %v15899_v28 = vld [vmem:[#allocation23 + $0x3e0] ss:$16 sps:$4 sm:$0xff]   ;;  %v15902_v0 = vld [vmem:[#allocation23 + $0x3e8] ss:$16 sps:$4 sm:$0xff]  }
 0xf7d   :  { %11686 = vmatprep.subr.bf16.mxu0 %v15823_v6  ;;  %11768 = vmatprep.subr.bf16.mxu1 %v15826_v53  ;;  %v15906_v53 = vld [vmem:[#allocation26 + $0xc0] sm:$0xff]  }
 0xf80   :  { %11687 = vmatpush1.bf16.msra.mxu0 %v15821_v44  ;;  %11769 = vmatpush1.bf16.msra.mxu1 %v15824_v46  ;;  %v15907_v44 = vld [vmem:[#allocation26] sm:$0xff]  }
 0xf81   :  { %11688 = vmatprep.subr.bf16.mxu0 %v15829_v17  ;;  %11770 = vmatprep.subr.bf16.mxu1 %v15832_v5  ;;  %v15908_v46 = vld [vmem:[#allocation26 + $0x80] sm:$0xff]   ;;  %v15910_v5 = vld [vmem:[#allocation26 + $0xc8] sm:$0xff]  }
 0xf84   :  { %11689 = vmatpush1.bf16.msra.mxu0 %v15827_v63  ;;  %11771 = vmatpush1.bf16.msra.mxu1 %v15830_v11  ;;  %v15911_v63 = vld [vmem:[#allocation26 + $0x8] sm:$0xff]  }
 0xf85   :  { %11690 = vmatprep.subr.bf16.mxu0 %v15835_v52  ;;  %11772 = vmatprep.subr.bf16.mxu1 %v15838_v10  ;;  %v15912_v11 = vld [vmem:[#allocation26 + $0x88] sm:$0xff]   ;;  %v15913_v52 = vld [vmem:[#allocation26 + $0x50] sm:$0xff]  }
 0xf86   :  { %v15914_v10 = vld [vmem:[#allocation26 + $0xd0] sm:$0xff]  }
 0xf88   :  { %11691 = vmatpush1.bf16.msra.mxu0 %v15833_v34  ;;  %11773 = vmatpush1.bf16.msra.mxu1 %v15836_v38  ;;  %v15915_v34 = vld [vmem:[#allocation26 + $0x10] sm:$0xff]  }
 0xf89   :  { %11692 = vmatprep.subr.bf16.mxu0 %v15841_v20  ;;  %11774 = vmatprep.subr.bf16.mxu1 %v15844_v62  ;;  %v15916_v38 = vld [vmem:[#allocation26 + $0x90] sm:$0xff]   ;;  %v15917_v20 = vld [vmem:[#allocation26 + $0x58] sm:$0xff]  }
 0xf8a   :  { %v15918_v62 = vld [vmem:[#allocation26 + $0xd8] sm:$0xff]  }
 0xf8c   :  { %11693 = vmatpush1.bf16.msra.mxu0 %v15839_v43  ;;  %11775 = vmatpush1.bf16.msra.mxu1 %v15842_v16  ;;  %v15919_v43 = vld [vmem:[#allocation26 + $0x18] sm:$0xff]  }
 0xf8d   :  { %11694 = vmatprep.subr.bf16.mxu0 %v15847_v1  ;;  %11776 = vmatprep.subr.bf16.mxu1 %v15850_v3  ;;  %v15920_v16 = vld [vmem:[#allocation26 + $0x98] sm:$0xff]   ;;  %v15921_v1 = vld [vmem:[#allocation26 + $0x60] sm:$0xff]  }
 0xf8e   :  { %v15922_v3 = vld [vmem:[#allocation26 + $0xe0] sm:$0xff]  }
 0xf90   :  { %v18370_v23 = vpop.f32.mrb[0].mxu1  ;;  %11695 = vmatpush1.bf16.msra.mxu0 %v15845_v4  ;;  %11777 = vmatpush1.bf16.msra.mxu1 %v15848_v2  ;;  %v15923_v4 = vld [vmem:[#allocation26 + $0x20] sm:$0xff]  }
 0xf91   :  { %v10838_v26 = vpop.f32.mrb[1].mxu1  ;;  %11696 = vmatprep.subr.bf16.mxu0 %v15853_v22  ;;  %11778 = vmatprep.subr.bf16.mxu1 %v15856_v56  ;;  %v15924_v2 = vld [vmem:[#allocation26 + $0xa0] sm:$0xff]   ;;  %v15925_v22 = vld [vmem:[#allocation26 + $0x68] sm:$0xff]  }
 0xf92   :  { %v14252_v33 = vadd.f32 %v10838_v26, %v10034_v32  ;;  %v10840_v8 = vpop.f32.mrb[2].mxu1  ;;  %v15872_v32 = vld [vmem:[#allocation23 + $0x348] ss:$16 sps:$4 sm:$0xff]   ;;  %v15926_v56 = vld [vmem:[#allocation26 + $0xe8] sm:$0xff]  }
 0xf93   :  { %v10841_v14 = vpop.f32.mrb[3].mxu1  ;;  %v15878_v26 = vld [vmem:[#allocation23 + $0x368] ss:$16 sps:$4 sm:$0xff]  }
 0xf94   :  { %v10846_v18 = vmax.f32 %v14252_v33, 0.0  ;;  %11697 = vmatpush1.bf16.msra.mxu0 %v15851_v61  ;;  %11779 = vmatpush1.bf16.msra.mxu1 %v15854_v54  ;;  %v15886_v33 = vld [vmem:[#allocation23 + $0x38c] ss:$16 sps:$4 sm:$0xff]   ;;  %v15884_v8 = vld [vmem:[#allocation23 + $0x388] ss:$16 sps:$4 sm:$0xff]  }
 0xf95   :  { %11698 = vmatprep.subr.bf16.mxu0 %v15859_v36  ;;  %11780 = vmatprep.subr.bf16.mxu1 %v15862_v40  ;;  %v15887_v14 = vld [vmem:[#allocation23 + $0x3a0] ss:$16 sps:$4 sm:$0xff]   ;;  %v15929_v36 = vld [vmem:[#allocation26 + $0x70] sm:$0xff]  }
 0xf96   :  { %v10850_v37 = vpack.c.bf16 %v10846_v18, %v10846_v18  ;;  %v10030_v18 = vrot.slane %v18362_v49, %v18307_v42  ;;  %v15905_v49 = vld [vmem:[#allocation26 + $0x40] sm:$0xff]   ;;  %v15927_v61 = vld [vmem:[#allocation26 + $0x28] sm:$0xff]   ;;  %v15930_v40 = vld [vmem:[#allocation26 + $0xf0] sm:$0xff]  }
 0xf97   :  { %v15928_v54 = vld [vmem:[#allocation26 + $0xa8] sm:$0xff]  }
 0xf98   :  { %11714 = vmatprep.mubr.bf16.mxu0 %v10850_v37  ;;  %11796 = vmatprep.mubr.bf16.mxu1 %v10850_v37  ;;  %v14251_v21 = vadd.f32 %v18370_v23, %v10030_v18  ;;  %v15904_v37 = vld [vmem:[#allocation23 + $0x3ec] ss:$16 sps:$4 sm:$0xff]  }
 0xf99   :  { %11699 = vmatpush1.bf16.msra.mxu0 %v15857_v31  ;;  %11781 = vmatpush1.bf16.msra.mxu1 %v15860_v29  ;;  %v15909_v23 = vld [vmem:[#allocation26 + $0x48] sm:$0xff]   ;;  %v15931_v31 = vld [vmem:[#allocation26 + $0x30] sm:$0xff]  }
 0xf9a   :  { %11700 = vmatprep.subr.bf16.mxu0 %v15865_v12  ;;  %11782 = vmatprep.subr.bf16.mxu1 %v15868_v50  ;;  %v10845_v6 = vmax.f32 %v14251_v21, 0.0  ;;  %v15932_v29 = vld [vmem:[#allocation26 + $0xb0] sm:$0xff]   ;;  %v15933_v12 = vld [vmem:[#allocation26 + $0x78] sm:$0xff]  }
 0xf9b   :  { %v15934_v50 = vld [vmem:[#allocation26 + $0xf8] sm:$0xff]  }
 0xf9c   :  { %v10849_v17 = vpack.c.bf16 %v10845_v6, %v10845_v6 }
 0xf9d   :  { %11701 = vmatpush1.bf16.msra.mxu0 %v15863_v60  ;;  %11783 = vmatpush1.bf16.msra.mxu1 %v15866_v48  ;;  %v15935_v60 = vld [vmem:[#allocation26 + $0x38] sm:$0xff]  }
 0xf9e   :  { %11702 = vmatprep.subr.bf16.mxu0 %v15871_v47  ;;  %11784 = vmatprep.subr.bf16.mxu1 %v15874_v41  ;;  %v15936_v48 = vld [vmem:[#allocation26 + $0xb8] sm:$0xff]  }
 0xf9f   :  { %v10979_v47 = vld [vmem:[#allocation24] sm:$0xf] }
 0xfa0   :  { %v10984_v41 = vrot.slane %v10979_v47, %v18125_v13 }
 0xfa1   :  { %11703 = vmatpush1.bf16.msra.mxu0 %v15869_v30  ;;  %11785 = vmatpush1.bf16.msra.mxu1 %v15872_v32  ;;  %v10992_v30 = vrot.slane %v10979_v47, %v18307_v42  ;;  %v10988_v32 = vrot.slane %v10979_v47, %v18128_v58 }
 0xfa2   :  { %11704 = vmatprep.subr.bf16.mxu0 %v15877_v57  ;;  %11786 = vmatprep.subr.bf16.mxu1 %v15880_v9  ;;  %v10996_v57 = vrot.slane %v10979_v47, %v18310_v7 }
 0xfa5   :  { %11705 = vmatpush1.bf16.msra.mxu0 %v15875_v19  ;;  %11787 = vmatpush1.bf16.msra.mxu1 %v15878_v26 }
 0xfa6   :  { %11706 = vmatprep.subr.bf16.mxu0 %v15883_v25  ;;  %11788 = vmatprep.subr.bf16.mxu1 %v15886_v33 }
 0xfa9   :  { %11707 = vmatpush1.bf16.msra.mxu0 %v15881_v45  ;;  %11789 = vmatpush1.bf16.msra.mxu1 %v15884_v8 }
 0xfaa   :  { %11708 = vmatprep.subr.bf16.mxu0 %v15889_v39  ;;  %11790 = vmatprep.subr.bf16.mxu1 %v15892_v35 }
 0xfad   :  { %11709 = vmatpush1.bf16.msra.mxu0 %v15887_v14  ;;  %11791 = vmatpush1.bf16.msra.mxu1 %v15890_v15 }
 0xfae   :  { %11710 = vmatprep.subr.bf16.mxu0 %v15895_v27  ;;  %11792 = vmatprep.subr.bf16.mxu1 %v15898_v59 }
 0xfb1   :  { %11711 = vmatpush1.bf16.msra.mxu0 %v15893_v51  ;;  %11793 = vmatpush1.bf16.msra.mxu1 %v15896_v55 }
 0xfb2   :  { %11712 = vmatprep.subr.bf16.mxu0 %v15901_v24  ;;  %11794 = vmatprep.subr.bf16.mxu1 %v15904_v37  ;;  %v13370_v37 = vld [vmem:[#allocation27] ss:$0 sm:$0xff] }
 0xfb5   :  { %11713 = vmatpush1.bf16.msra.mxu0 %v15899_v28  ;;  %11795 = vmatpush1.bf16.msra.mxu1 %v15902_v0 }
 0xfb6   :  { %13615 = vmatprep.subr.bf16.mxu0 %v15905_v49  ;;  %13637 = vmatprep.subr.bf16.mxu1 %v15906_v53 }
 0xfb8   :  { %11715 = vmatmul.mubr.bf16.vlgmr.msra.gmra.mrb[4].mxu0 %v10849_v17  ;;  %11797 = vmatmul.mubr.bf16.vlgmr.msra.gmra.mrb[4].mxu1 %v10849_v17 }
 0xfb9   :  { %13616 = vmatpush3.bf16.msra.mxu0 %v15907_v44  ;;  %13638 = vmatpush3.bf16.msra.mxu1 %v15908_v46 }
 0xfba   :  { %13617 = vmatprep.subr.bf16.mxu0 %v15909_v23  ;;  %13639 = vmatprep.subr.bf16.mxu1 %v15910_v5 }
 0xfbd   :  { %13618 = vmatpush3.bf16.msra.mxu0 %v15911_v63  ;;  %13640 = vmatpush3.bf16.msra.mxu1 %v15912_v11 }
 0xfbe   :  { %13619 = vmatprep.subr.bf16.mxu0 %v15913_v52  ;;  %13641 = vmatprep.subr.bf16.mxu1 %v15914_v10 }
 0xfc1   :  { %13620 = vmatpush3.bf16.msra.mxu0 %v15915_v34  ;;  %13642 = vmatpush3.bf16.msra.mxu1 %v15916_v38 }
 0xfc2   :  { %13621 = vmatprep.subr.bf16.mxu0 %v15917_v20  ;;  %13643 = vmatprep.subr.bf16.mxu1 %v15918_v62 }
 0xfc5   :  { %13622 = vmatpush3.bf16.msra.mxu0 %v15919_v43  ;;  %13644 = vmatpush3.bf16.msra.mxu1 %v15920_v16 }
 0xfc6   :  { %13623 = vmatprep.subr.bf16.mxu0 %v15921_v1  ;;  %13645 = vmatprep.subr.bf16.mxu1 %v15922_v3 }
 0xfc9   :  { %13624 = vmatpush3.bf16.msra.mxu0 %v15923_v4  ;;  %13646 = vmatpush3.bf16.msra.mxu1 %v15924_v2 }
 0xfca   :  { %13625 = vmatprep.subr.bf16.mxu0 %v15925_v22  ;;  %13647 = vmatprep.subr.bf16.mxu1 %v15926_v56 }
 0xfcd   :  { %13626 = vmatpush3.bf16.msra.mxu0 %v15927_v61  ;;  %13648 = vmatpush3.bf16.msra.mxu1 %v15928_v54 }
 0xfce   :  { %13627 = vmatprep.subr.bf16.mxu0 %v15929_v36  ;;  %13649 = vmatprep.subr.bf16.mxu1 %v15930_v40 }
 0xfd1   :  { %13628 = vmatpush3.bf16.msra.mxu0 %v15931_v31  ;;  %13650 = vmatpush3.bf16.msra.mxu1 %v15932_v29 }
 0xfd2   :  { %13629 = vmatprep.subr.bf16.mxu0 %v15933_v12  ;;  %13651 = vmatprep.subr.bf16.mxu1 %v15934_v50 }
 0xfd5   :  { %13630 = vmatpush3.bf16.msra.mxu0 %v15935_v60  ;;  %13652 = vmatpush3.bf16.msra.mxu1 %v15936_v48 }
0x108b   :  { %v11716_v9 = vpop.f32.mrb[4].mxu0  ;;  %v11798_v19 = vpop.f32.mrb[4].mxu1 }
0x108c   :  { %v14253_v26 = vadd.f32 %v11716_v9, %v10984_v41  ;;  %v14255_v25 = vadd.f32 %v11798_v19, %v10992_v30  ;;  %v11718_v33 = vpop.f32.mrb[5].mxu0  ;;  %v11800_v45 = vpop.f32.mrb[5].mxu1 }
0x108d   :  { %v14254_v8 = vadd.f32 %v11718_v33, %v10988_v32  ;;  %v14256_v39 = vadd.f32 %v11800_v45, %v10996_v57  ;;  %v11720_v35 = vpop.f32.mrb[6].mxu0  ;;  %v11802_v14 = vpop.f32.mrb[6].mxu1 }
0x108e   :  { %v11805_v15 = vmax.f32 %v14253_v26, 0.0  ;;  %v11807_v18 = vmax.f32 %v14255_v25, 0.0  ;;  %v11721_v27 = vpop.f32.mrb[7].mxu0  ;;  %v11803_v13 = vpop.f32.mrb[7].mxu1 }
0x108f   :  { %v11806_v59 = vmax.f32 %v14254_v8, 0.0  ;;  %v11808_v42 = vmax.f32 %v14256_v39, 0.0 }
0x1090   :  { %v11809_v55 = vpack.c.bf16 %v11805_v15, %v11805_v15  ;;  %v11811_v7 = vpack.c.bf16 %v11807_v18, %v11807_v18 }
0x1091   :  { %v11810_v51 = vpack.c.bf16 %v11806_v59, %v11806_v59  ;;  %v11812_v58 = vpack.c.bf16 %v11808_v42, %v11808_v42 }
0x1093   :  { %12108 = vmatprep.mubr.bf16.mxu0 %v11810_v51  ;;  %12148 = vmatprep.mubr.bf16.mxu1 %v11812_v58 }
0x1094   :  { %12109 = vmatmul.mubr.bf16.vlgmr.msra.gmra.mrb[8].mxu0 %v11809_v55  ;;  %12149 = vmatmul.mubr.bf16.vlgmr.msra.gmra.mrb[8].mxu1 %v11811_v7 }
0x1167   :  { %v13631_v21 = vpop.f32.mrb[8].mxu0  ;;  %v13653_v24 = vpop.f32.mrb[8].mxu1 }
0x1168   :  { %v13632_v28 = vpop.f32.mrb[9].mxu0  ;;  %v13654_v0 = vpop.f32.mrb[9].mxu1 }
0x1169   :  { %v13633_v6 = vadd.f32 %v13632_v28, %v13631_v21  ;;  %v13655_v49 = vadd.f32 %v13654_v0, %v13653_v24  ;;  %v13634_v53 = vpop.f32.mrb[10].mxu0  ;;  %v13656_v44 = vpop.f32.mrb[10].mxu1 }
0x116a   :  { %v13635_v46 = vpop.f32.mrb[11].mxu0  ;;  %v13657_v17 = vpop.f32.mrb[11].mxu1 }
0x116b   :  { %v12111_v23 = vadd.f32 %v13633_v6, %v13370_v37 }
0x116d   :  { %v12151_v5 = vadd.f32 %v13655_v49, %v12111_v23 }
0x116f   :  { %12156 = vst [vmem:[#allocation29] sm:$0x3] %v12151_v5 }
0x1170   :  { %16300 = shalt.err (!%p16297_p7)
}
0x1171   :  { %s18453_s2 = sld [smem:[#allocation46_spill]] }
0x1177   :  { %s16301_s7 = scalar_lea.hbm %s18453_s2, 32 }
0x1178   :  { %p16302_p8 = scmp.ne.s32.totalorder %s18453_s2, %s16301_s7  ;;  %p16305_p9 = scmp.lt.u32.totalorder %s16301_s7, %s18453_s2 }
0x117a   :  { %p16307_p10 = pnand %p16305_p9, %p16302_p8 }
0x117c   :  { %16310 = shalt.err (!%p16307_p10)
}
0x117d   :  { %12166 = dma.vmem_to_hbm [thread:$0]  %s12164_s9, 32, %s18453_s2, [#allocation5]  }
0x117e   :  { %16349 = dma.done.wait [#allocation5], 32  }
0x117f   :  { %16350 = vsyncadd [#allocation5], 4294967264 }
0x1180   :  { %12170 = vsyncpa [#allocation4], 1 }
0x1181   :  { %12171 = vsyncpa [#allocation7], 1 }
0x1182   :  { %12172 = vsyncpa [#allocation10], 1 }
0x1183   :  { %12173 = vsyncpa [#allocation13], 1 }
0x1184   :  { %12174 = vsyncpa [#allocation16], 1 }
0x1185   :  { %12175 = vsyncpa [#allocation19], 1 }
0x1186   :  { %12176 = vsyncpa [#allocation22], 1 }
0x1187   :  { %12177 = vsyncpa [#allocation25], 1 }
0x1188   :  { %12178 = vsyncpa [#allocation28], 1 }
0x1189   :  { %12179 = vsyncpa [#allocation5], 1 }

</bundles_post_ra>
